<compile_context>
chip_gen: v7x
topology: tpu7x:2x2x1
jax: 0.10.0
libtpu: 0.0.40
codegen_flags: <defaults>
</compile_context>

<pallas_src>
import math
import numpy as np

import jax
import jax.numpy as jnp
from jax.experimental import pallas as pl
from jax.experimental.pallas import tpu as pltpu

HB = 32      # rows reserved per image in the row-block layout
L0 = 8       # first data row inside each block (>= 4 zero rows on each side)
H = W = 16   # input spatial size implied by fc1 = 32 * 4 * 4


# ----------------------------- fused kernel --------------------------------

def cnn_kernel(x_ref, k1_ref, b1_ref, k2_ref, b2_ref, kfc_ref, bfc_ref,
               mask_ref, sel_ref, o_ref):
    RT = x_ref.shape[0]                       # bt * HB rows in this batch tile
    f32, bf16 = jnp.float32, jnp.bfloat16

    # ---- conv1: all 5 kernel rows fused into a single K=80 MXU matmul ------
    # x_ref rows r = b*HB + L0 + h hold x[h+dh-2, w_in] at lane 16*dh + w_in.
    acc1 = jnp.dot(x_ref[...], k1_ref[...], preferred_element_type=f32)
    y1 = jnp.maximum(acc1 + b1_ref[...], 0.0)         # lanes = 16*w + c

    # ---- 2x2 max-pool #1: lane-neighbour + row-neighbour via XLU rolls -----
    # shift 256-16 == -16 : tw[:, l] = max(y1[:, l], y1[:, l+16])
    tw = jnp.maximum(y1, pltpu.roll(y1, shift=256 - 16, axis=1))
    # shift RT-1 == -1 : p1[r] = max(tw[r], tw[r+1])
    p1 = jnp.maximum(tw, pltpu.roll(tw, shift=RT - 1, axis=0))
    # zero the rows outside each image's data region -> exact conv2 padding
    p1m = p1 * mask_ref[...]                           # f32, (RT, 256)

    # ---- conv2: 5 row taps, each a sublane roll + one bf16 MXU matmul ------
    # tap dh needs p1m[r + 2*(dh-2)]  (roll shift = -(2*(dh-2)) mod RT)
    acc2 = jnp.dot(p1m.astype(bf16), k2_ref[2], preferred_element_type=f32)
    for dh in (0, 1, 3, 4):
        shifted = pltpu.roll(p1m, shift=(2 * (2 - dh)) % RT, axis=0)
        acc2 = acc2 + jnp.dot(shifted.astype(bf16), k2_ref[dh],
                              preferred_element_type=f32)
    y2 = jnp.maximum(acc2 + b2_ref[...], 0.0)          # lanes = 32*j + d

    # ---- 2x2 max-pool #2 ----------------------------------------------------
    tw2 = jnp.maximum(y2, pltpu.roll(y2, shift=256 - 32, axis=1))
    p2 = jnp.maximum(tw2, pltpu.roll(tw2, shift=RT - 2, axis=0))
    p2b = p2.astype(bf16)
    # p2 valid at rows b*HB + L0 + 4*m, lanes 64*n + d   (m, n in [0,4))

    # ---- fully connected -----------------------------------------------------
    # Gather the 4 valid rows per image with tiny host-built 0/1 matrices,
    # then one lane-dense (bt, 1024) @ (1024, 10) matmul.
    rows = [jnp.dot(sel_ref[m], p2b, preferred_element_type=f32)
            for m in range(4)]
    flat = jnp.concatenate(rows, axis=1).astype(bf16)          # (bt, 1024)
    o_ref[...] = (jnp.dot(flat, kfc_ref[...], preferred_element_type=f32)
                  + bfc_ref[...])


# ------------------------------- wrapper ------------------------------------

@jax.jit
def cnn_forward(params, x_nchw):
    B = x_nchw.shape[0]
    assert x_nchw.shape[1:] == (1, H, W)
    x = x_nchw.reshape(B, H, W).astype(jnp.float32)     # Cin == 1, free reshape

    # Batch tile: always >= 2 grid steps (keeps both v7x TensorCores busy),
    # larger tiles for larger batches (VMEM is not a constraint here).
    bt = 8 if B <= 16 else 16
    n_tiles = max(2, -(-B // bt))
    Bp = n_tiles * bt
    RT = bt * HB

    # Host-side pre-staging of conv1's fused row taps into the padded
    # row-block layout:  xs[b*HB + L0 + h, 16*dh + w] = x[b, h+dh-2, w]
    xp = jnp.pad(x, ((0, 0), (2, 2), (0, 0)))                       # (B,20,16)
    taps = jnp.stack([xp[:, dh:dh + H, :] for dh in range(5)], axis=2)
    xs = taps.reshape(B, H, 5 * W)                                  # (B,16,80)
    xs = jnp.pad(xs, ((0, Bp - B), (L0, HB - L0 - H), (0, 128 - 5 * W)))
    xs = xs.reshape(Bp * HB, 128).astype(jnp.bfloat16)

    # Host-built constants (depend only on the static tile size).
    rows = np.arange(RT) % HB
    row_mask = ((rows >= L0) & (rows < L0 + H)).astype(np.float32).reshape(RT, 1)
    sel = np.zeros((4, bt, RT), np.float32)
    for m in range(4):
        for b in range(bt):
            sel[m, b, b * HB + L0 + 4 * m] = 1.0
    row_mask = jnp.asarray(row_mask)
    sel = jnp.asarray(sel, jnp.bfloat16)

    out = pl.pallas_call(
        cnn_kernel,
        out_shape=jax.ShapeDtypeStruct((Bp, 10), jnp.float32),
        grid=(n_tiles,),
        in_specs=[
            pl.BlockSpec((RT, 128), lambda i: (i, 0)),        # staged input tile
            pl.BlockSpec((128, 256), lambda i: (0, 0)),       # conv1 fused weights
            pl.BlockSpec((1, 256), lambda i: (0, 0)),         # bias1 (per lane)
            pl.BlockSpec((5, 256, 256), lambda i: (0, 0, 0)), # conv2 Toeplitz
            pl.BlockSpec((1, 256), lambda i: (0, 0)),         # bias2 (per lane)
            pl.BlockSpec((1024, 10), lambda i: (0, 0)),       # fc weights
            pl.BlockSpec((1, 10), lambda i: (0, 0)),          # fc bias
            pl.BlockSpec((RT, 1), lambda i: (0, 0)),          # row-validity mask
            pl.BlockSpec((4, bt, RT), lambda i: (0, 0, 0)),   # fc row selectors
        ],
        out_specs=pl.BlockSpec((bt, 10), lambda i: (i, 0)),
        compiler_params=pltpu.CompilerParams(
            dimension_semantics=("parallel",)),
    )(xs, params["K1"], params["bias1"], params["K2"], params["bias2"],
      params["Kfc"], params["bfc"], row_mask, sel)
    return out[:B]


# --------------------------- parameter handling -----------------------------

def init_raw_params(key, out_1=16, out_2=32):
    """PyTorch-layout parameters with PyTorch's default uniform init."""
    ks = jax.random.split(key, 6)

    def uni(k, shape, fan_in):
        bound = 1.0 / math.sqrt(fan_in)
        return jax.random.uniform(k, shape, jnp.float32, -bound, bound)

    return dict(
        w1=uni(ks[0], (out_1, 1, 5, 5), 1 * 5 * 5),
        b1=uni(ks[1], (out_1,), 1 * 5 * 5),
        w2=uni(ks[2], (out_2, out_1, 5, 5), out_1 * 5 * 5),
        b2=uni(ks[3], (out_2,), out_1 * 5 * 5),
        wfc=uni(ks[4], (10, out_2 * 4 * 4), out_2 * 4 * 4),
        bfc=uni(ks[5], (10,), out_2 * 4 * 4),
    )


def pack_params(raw):
    """One-time host-side packing into Toeplitz / lane-tiled bf16 matrices."""
    w1 = np.asarray(raw["w1"], np.float32)    # (16, 1, 5, 5)  [cout,cin,kh,kw]
    w2 = np.asarray(raw["w2"], np.float32)    # (32, 16, 5, 5)
    wfc = np.asarray(raw["wfc"], np.float32)  # (10, 512), flatten order (d,m,n)

    # conv1 (fused taps): lanes_in = 16*dh + w_in, lanes_out = 16*w + c
    K1 = np.zeros((128, 256), np.float32)
    for dh in range(5):
        for w in range(16):
            for dw in range(5):
                w_in = w + dw - 2
                if 0 <= w_in < 16:
                    K1[16 * dh + w_in, 16 * w: 16 * w + 16] = w1[:, 0, dh, dw]

    # conv2: lanes_in = 32*j_in + c  (pooled col j_in, conv1 channel c),
    #        lanes_out = 32*j + d
    K2 = np.zeros((5, 256, 256), np.float32)
    for dh in range(5):
        for j in range(8):
            for dw in range(5):
                j_in = j + dw - 2
                if 0 <= j_in < 8:
                    K2[dh, 32 * j_in: 32 * j_in + 16,
                       32 * j: 32 * j + 32] = w2[:, :, dh, dw].T

    # fc: for pooled row m, lanes_in = 64*n + d ; PyTorch flat idx = d*16+4m+n
    Kfc = np.zeros((4, 256, 10), np.float32)
    for m in range(4):
        for n in range(4):
            Kfc[m, 64 * n: 64 * n + 32, :] = wfc[:, 4 * m + n::16].T
    Kfc = Kfc.reshape(4 * 256, 10)            # concat order matches the kernel

    return dict(
        K1=jnp.asarray(K1, jnp.bfloat16),
        K2=jnp.asarray(K2, jnp.bfloat16),
        Kfc=jnp.asarray(Kfc, jnp.bfloat16),
        bias1=jnp.tile(jnp.asarray(raw["b1"]), 16).reshape(1, 256),   # float32
        bias2=jnp.tile(jnp.asarray(raw["b2"]), 8).reshape(1, 256),    # float32
        bfc=jnp.asarray(raw["bfc"]).reshape(1, 10),                   # float32
    )


# --------------------------- pure-JAX reference -----------------------------

def reference_forward(raw, x_nchw):
    dn = ("NCHW", "OIHW", "NCHW")
    hp = jax.lax.Precision.HIGHEST
    y = jax.lax.conv_general_dilated(x_nchw, raw["w1"], (1, 1), ((2, 2), (2, 2)),
                                     dimension_numbers=dn, precision=hp)
    y = jnp.maximum(y + raw["b1"][None, :, None, None], 0.0)
    B, C, Hh, Ww = y.shape
    y = y.reshape(B, C, Hh // 2, 2, Ww // 2, 2).max(axis=(3, 5))
    y = jax.lax.conv_general_dilated(y, raw["w2"], (1, 1), ((2, 2), (2, 2)),
                                     dimension_numbers=dn, precision=hp)
    y = jnp.maximum(y + raw["b2"][None, :, None, None], 0.0)
    B, C, Hh, Ww = y.shape
    y = y.reshape(B, C, Hh // 2, 2, Ww // 2, 2).max(axis=(3, 5))
    flat = y.reshape(B, -1)
    return jnp.matmul(flat, raw["wfc"].T, precision=hp) + raw["bfc"]


# --------------------------------- main --------------------------------------

if __name__ == "__main__":
    key = jax.random.PRNGKey(0)
    kx, kp = jax.random.split(key)

    # Input implied by the module: 1 channel, 16x16 (16 -> 8 -> 4 spatial,
    # matching fc1 in_features = 32 * 4 * 4).
    x = jax.random.normal(kx, (2, 1, 16, 16), jnp.float32)
    raw = init_raw_params(kp)
    params = pack_params(raw)

    out = cnn_forward(params, x)
    out = jax.block_until_ready(out)
    assert out.shape == (2, 10) and out.dtype == jnp.float32

    ref = reference_forward(raw, x)
    np.testing.assert_allclose(np.asarray(out), np.asarray(ref),
                               rtol=3e-2, atol=3e-2)

    print("KERNEL_OK")
</pallas_src>

<mosaic_0001>
module attributes {stable_mosaic.version = 11 : i64} {
  func.func @cnn_kernel(%arg0: i32, %arg1: memref<256x128xbf16, #tpu.memory_space<vmem>>, %arg2: memref<128x256xbf16, #tpu.memory_space<vmem>>, %arg3: memref<1x256xf32, #tpu.memory_space<vmem>>, %arg4: memref<5x256x256xbf16, #tpu.memory_space<vmem>>, %arg5: memref<1x256xf32, #tpu.memory_space<vmem>>, %arg6: memref<1024x10xbf16, #tpu.memory_space<vmem>>, %arg7: memref<1x10xf32, #tpu.memory_space<vmem>>, %arg8: memref<256x1xf32, #tpu.memory_space<vmem>>, %arg9: memref<4x8x256xbf16, #tpu.memory_space<vmem>>, %arg10: memref<8x10xf32, #tpu.memory_space<vmem>>) attributes {dimension_semantics = [#tpu.dimension_semantics<parallel>], iteration_bounds = array<i64: 2>, scalar_prefetch = 0 : i64, scratch_operands = 0 : i64, tpu.core_type = #tpu.core_type<tc>, window_params = [{transform_indices = @transform_0, window_bounds = array<i64: 256, 128>}, {pipeline_mode = #tpu.pipeline_mode<synchronous>, transform_indices = @transform_1, window_bounds = array<i64: 128, 256>}, {pipeline_mode = #tpu.pipeline_mode<synchronous>, transform_indices = @transform_2, window_bounds = array<i64: 1, 256>}, {pipeline_mode = #tpu.pipeline_mode<synchronous>, transform_indices = @transform_3, window_bounds = array<i64: 5, 256, 256>}, {pipeline_mode = #tpu.pipeline_mode<synchronous>, transform_indices = @transform_4, window_bounds = array<i64: 1, 256>}, {pipeline_mode = #tpu.pipeline_mode<synchronous>, transform_indices = @transform_5, window_bounds = array<i64: 1024, 10>}, {pipeline_mode = #tpu.pipeline_mode<synchronous>, transform_indices = @transform_6, window_bounds = array<i64: 1, 10>}, {pipeline_mode = #tpu.pipeline_mode<synchronous>, transform_indices = @transform_7, window_bounds = array<i64: 256, 1>}, {pipeline_mode = #tpu.pipeline_mode<synchronous>, transform_indices = @transform_8, window_bounds = array<i64: 4, 8, 256>}, {transform_indices = @transform_9, window_bounds = array<i64: 8, 10>}]} {
    %c0 = arith.constant 0 : index
    %c0_0 = arith.constant 0 : index
    %0 = vector.load %arg1[%c0, %c0_0] : memref<256x128xbf16, #tpu.memory_space<vmem>>, vector<256x128xbf16>
    %c0_1 = arith.constant 0 : index
    %c0_2 = arith.constant 0 : index
    %1 = vector.load %arg2[%c0_1, %c0_2] : memref<128x256xbf16, #tpu.memory_space<vmem>>, vector<128x256xbf16>
    %cst = arith.constant dense<0.000000e+00> : vector<256x256xf32>
    %2 = tpu.matmul %0, %1, %cst {dimension_numbers = #tpu.dot_dimension_numbers<[1], [0], [0], [1], [0, 0, 1, 1], [], []>} : vector<256x128xbf16>, vector<128x256xbf16>, vector<256x256xf32> -> vector<256x256xf32>
    %c0_3 = arith.constant 0 : index
    %c0_4 = arith.constant 0 : index
    %3 = vector.load %arg3[%c0_3, %c0_4] : memref<1x256xf32, #tpu.memory_space<vmem>>, vector<1x256xf32>
    %4 = vector.broadcast %3 : vector<1x256xf32> to vector<256x256xf32>
    %5 = arith.addf %2, %4 : vector<256x256xf32>
    %cst_5 = arith.constant 0.000000e+00 : f32
    %6 = vector.broadcast %cst_5 : f32 to vector<256x256xf32>
    %7 = arith.maximumf %5, %6 : vector<256x256xf32>
    %c240_i32 = arith.constant 240 : i32
    %8 = tpu.dynamic_rotate %7 by %c240_i32 dim 1 : vector<256x256xf32>, i32 -> vector<256x256xf32>
    %9 = arith.maximumf %7, %8 : vector<256x256xf32>
    %c255_i32 = arith.constant 255 : i32
    %10 = tpu.dynamic_rotate %9 by %c255_i32 dim 0 : vector<256x256xf32>, i32 -> vector<256x256xf32>
    %11 = arith.maximumf %9, %10 : vector<256x256xf32>
    %c0_6 = arith.constant 0 : index
    %c0_7 = arith.constant 0 : index
    %12 = vector.load %arg8[%c0_6, %c0_7] : memref<256x1xf32, #tpu.memory_space<vmem>>, vector<256x1xf32>
    %13 = vector.broadcast %12 : vector<256x1xf32> to vector<256x256xf32>
    %14 = arith.mulf %11, %13 : vector<256x256xf32>
    %15 = arith.truncf %14 : vector<256x256xf32> to vector<256x256xbf16>
    %c2 = arith.constant 2 : index
    %c0_8 = arith.constant 0 : index
    %c0_9 = arith.constant 0 : index
    %16 = vector.load %arg4[%c2, %c0_8, %c0_9] : memref<5x256x256xbf16, #tpu.memory_space<vmem>>, vector<1x256x256xbf16>
    %17 = vector.shape_cast %16 : vector<1x256x256xbf16> to vector<256x256xbf16>
    %cst_10 = arith.constant dense<0.000000e+00> : vector<256x256xf32>
    %18 = tpu.matmul %15, %17, %cst_10 {dimension_numbers = #tpu.dot_dimension_numbers<[1], [0], [0], [1], [0, 0, 1, 1], [], []>} : vector<256x256xbf16>, vector<256x256xbf16>, vector<256x256xf32> -> vector<256x256xf32>
    %c4_i32 = arith.constant 4 : i32
    %19 = tpu.dynamic_rotate %14 by %c4_i32 dim 0 : vector<256x256xf32>, i32 -> vector<256x256xf32>
    %20 = arith.truncf %19 : vector<256x256xf32> to vector<256x256xbf16>
    %c0_11 = arith.constant 0 : index
    %c0_12 = arith.constant 0 : index
    %c0_13 = arith.constant 0 : index
    %21 = vector.load %arg4[%c0_11, %c0_12, %c0_13] : memref<5x256x256xbf16, #tpu.memory_space<vmem>>, vector<1x256x256xbf16>
    %22 = vector.shape_cast %21 : vector<1x256x256xbf16> to vector<256x256xbf16>
    %cst_14 = arith.constant dense<0.000000e+00> : vector<256x256xf32>
    %23 = tpu.matmul %20, %22, %cst_14 {dimension_numbers = #tpu.dot_dimension_numbers<[1], [0], [0], [1], [0, 0, 1, 1], [], []>} : vector<256x256xbf16>, vector<256x256xbf16>, vector<256x256xf32> -> vector<256x256xf32>
    %24 = arith.addf %18, %23 : vector<256x256xf32>
    %c2_i32 = arith.constant 2 : i32
    %25 = tpu.dynamic_rotate %14 by %c2_i32 dim 0 : vector<256x256xf32>, i32 -> vector<256x256xf32>
    %26 = arith.truncf %25 : vector<256x256xf32> to vector<256x256xbf16>
    %c1 = arith.constant 1 : index
    %c0_15 = arith.constant 0 : index
    %c0_16 = arith.constant 0 : index
    %27 = vector.load %arg4[%c1, %c0_15, %c0_16] : memref<5x256x256xbf16, #tpu.memory_space<vmem>>, vector<1x256x256xbf16>
    %28 = vector.shape_cast %27 : vector<1x256x256xbf16> to vector<256x256xbf16>
    %cst_17 = arith.constant dense<0.000000e+00> : vector<256x256xf32>
    %29 = tpu.matmul %26, %28, %cst_17 {dimension_numbers = #tpu.dot_dimension_numbers<[1], [0], [0], [1], [0, 0, 1, 1], [], []>} : vector<256x256xbf16>, vector<256x256xbf16>, vector<256x256xf32> -> vector<256x256xf32>
    %30 = arith.addf %24, %29 : vector<256x256xf32>
    %c254_i32 = arith.constant 254 : i32
    %31 = tpu.dynamic_rotate %14 by %c254_i32 dim 0 : vector<256x256xf32>, i32 -> vector<256x256xf32>
    %32 = arith.truncf %31 : vector<256x256xf32> to vector<256x256xbf16>
    %c3 = arith.constant 3 : index
    %c0_18 = arith.constant 0 : index
    %c0_19 = arith.constant 0 : index
    %33 = vector.load %arg4[%c3, %c0_18, %c0_19] : memref<5x256x256xbf16, #tpu.memory_space<vmem>>, vector<1x256x256xbf16>
    %34 = vector.shape_cast %33 : vector<1x256x256xbf16> to vector<256x256xbf16>
    %cst_20 = arith.constant dense<0.000000e+00> : vector<256x256xf32>
    %35 = tpu.matmul %32, %34, %cst_20 {dimension_numbers = #tpu.dot_dimension_numbers<[1], [0], [0], [1], [0, 0, 1, 1], [], []>} : vector<256x256xbf16>, vector<256x256xbf16>, vector<256x256xf32> -> vector<256x256xf32>
    %36 = arith.addf %30, %35 : vector<256x256xf32>
    %c252_i32 = arith.constant 252 : i32
    %37 = tpu.dynamic_rotate %14 by %c252_i32 dim 0 : vector<256x256xf32>, i32 -> vector<256x256xf32>
    %38 = arith.truncf %37 : vector<256x256xf32> to vector<256x256xbf16>
    %c4 = arith.constant 4 : index
    %c0_21 = arith.constant 0 : index
    %c0_22 = arith.constant 0 : index
    %39 = vector.load %arg4[%c4, %c0_21, %c0_22] : memref<5x256x256xbf16, #tpu.memory_space<vmem>>, vector<1x256x256xbf16>
    %40 = vector.shape_cast %39 : vector<1x256x256xbf16> to vector<256x256xbf16>
    %cst_23 = arith.constant dense<0.000000e+00> : vector<256x256xf32>
    %41 = tpu.matmul %38, %40, %cst_23 {dimension_numbers = #tpu.dot_dimension_numbers<[1], [0], [0], [1], [0, 0, 1, 1], [], []>} : vector<256x256xbf16>, vector<256x256xbf16>, vector<256x256xf32> -> vector<256x256xf32>
    %42 = arith.addf %36, %41 : vector<256x256xf32>
    %c0_24 = arith.constant 0 : index
    %c0_25 = arith.constant 0 : index
    %43 = vector.load %arg5[%c0_24, %c0_25] : memref<1x256xf32, #tpu.memory_space<vmem>>, vector<1x256xf32>
    %44 = vector.broadcast %43 : vector<1x256xf32> to vector<256x256xf32>
    %45 = arith.addf %42, %44 : vector<256x256xf32>
    %cst_26 = arith.constant 0.000000e+00 : f32
    %46 = vector.broadcast %cst_26 : f32 to vector<256x256xf32>
    %47 = arith.maximumf %45, %46 : vector<256x256xf32>
    %c224_i32 = arith.constant 224 : i32
    %48 = tpu.dynamic_rotate %47 by %c224_i32 dim 1 : vector<256x256xf32>, i32 -> vector<256x256xf32>
    %49 = arith.maximumf %47, %48 : vector<256x256xf32>
    %c254_i32_27 = arith.constant 254 : i32
    %50 = tpu.dynamic_rotate %49 by %c254_i32_27 dim 0 : vector<256x256xf32>, i32 -> vector<256x256xf32>
    %51 = arith.maximumf %49, %50 : vector<256x256xf32>
    %52 = arith.truncf %51 : vector<256x256xf32> to vector<256x256xbf16>
    %c0_28 = arith.constant 0 : index
    %c0_29 = arith.constant 0 : index
    %c0_30 = arith.constant 0 : index
    %53 = vector.load %arg9[%c0_28, %c0_29, %c0_30] : memref<4x8x256xbf16, #tpu.memory_space<vmem>>, vector<1x8x256xbf16>
    %54 = vector.shape_cast %53 : vector<1x8x256xbf16> to vector<8x256xbf16>
    %cst_31 = arith.constant dense<0.000000e+00> : vector<8x256xf32>
    %55 = tpu.matmul %54, %52, %cst_31 {dimension_numbers = #tpu.dot_dimension_numbers<[1], [0], [0], [1], [0, 0, 1, 1], [], []>} : vector<8x256xbf16>, vector<256x256xbf16>, vector<8x256xf32> -> vector<8x256xf32>
    %c1_32 = arith.constant 1 : index
    %c0_33 = arith.constant 0 : index
    %c0_34 = arith.constant 0 : index
    %56 = vector.load %arg9[%c1_32, %c0_33, %c0_34] : memref<4x8x256xbf16, #tpu.memory_space<vmem>>, vector<1x8x256xbf16>
    %57 = vector.shape_cast %56 : vector<1x8x256xbf16> to vector<8x256xbf16>
    %cst_35 = arith.constant dense<0.000000e+00> : vector<8x256xf32>
    %58 = tpu.matmul %57, %52, %cst_35 {dimension_numbers = #tpu.dot_dimension_numbers<[1], [0], [0], [1], [0, 0, 1, 1], [], []>} : vector<8x256xbf16>, vector<256x256xbf16>, vector<8x256xf32> -> vector<8x256xf32>
    %c2_36 = arith.constant 2 : index
    %c0_37 = arith.constant 0 : index
    %c0_38 = arith.constant 0 : index
    %59 = vector.load %arg9[%c2_36, %c0_37, %c0_38] : memref<4x8x256xbf16, #tpu.memory_space<vmem>>, vector<1x8x256xbf16>
    %60 = vector.shape_cast %59 : vector<1x8x256xbf16> to vector<8x256xbf16>
    %cst_39 = arith.constant dense<0.000000e+00> : vector<8x256xf32>
    %61 = tpu.matmul %60, %52, %cst_39 {dimension_numbers = #tpu.dot_dimension_numbers<[1], [0], [0], [1], [0, 0, 1, 1], [], []>} : vector<8x256xbf16>, vector<256x256xbf16>, vector<8x256xf32> -> vector<8x256xf32>
    %c3_40 = arith.constant 3 : index
    %c0_41 = arith.constant 0 : index
    %c0_42 = arith.constant 0 : index
    %62 = vector.load %arg9[%c3_40, %c0_41, %c0_42] : memref<4x8x256xbf16, #tpu.memory_space<vmem>>, vector<1x8x256xbf16>
    %63 = vector.shape_cast %62 : vector<1x8x256xbf16> to vector<8x256xbf16>
    %cst_43 = arith.constant dense<0.000000e+00> : vector<8x256xf32>
    %64 = tpu.matmul %63, %52, %cst_43 {dimension_numbers = #tpu.dot_dimension_numbers<[1], [0], [0], [1], [0, 0, 1, 1], [], []>} : vector<8x256xbf16>, vector<256x256xbf16>, vector<8x256xf32> -> vector<8x256xf32>
    %65 = tpu.concatenate %55, %58, %61, %64 in 1 : vector<8x256xf32>, vector<8x256xf32>, vector<8x256xf32>, vector<8x256xf32> -> vector<8x1024xf32>
    %66 = arith.truncf %65 : vector<8x1024xf32> to vector<8x1024xbf16>
    %c0_44 = arith.constant 0 : index
    %c0_45 = arith.constant 0 : index
    %67 = vector.load %arg6[%c0_44, %c0_45] : memref<1024x10xbf16, #tpu.memory_space<vmem>>, vector<1024x10xbf16>
    %cst_46 = arith.constant dense<0.000000e+00> : vector<8x10xf32>
    %68 = tpu.matmul %66, %67, %cst_46 {dimension_numbers = #tpu.dot_dimension_numbers<[1], [0], [0], [1], [0, 0, 1, 1], [], []>} : vector<8x1024xbf16>, vector<1024x10xbf16>, vector<8x10xf32> -> vector<8x10xf32>
    %c0_47 = arith.constant 0 : index
    %c0_48 = arith.constant 0 : index
    %69 = vector.load %arg7[%c0_47, %c0_48] : memref<1x10xf32, #tpu.memory_space<vmem>>, vector<1x10xf32>
    %70 = vector.broadcast %69 : vector<1x10xf32> to vector<8x10xf32>
    %71 = arith.addf %68, %70 : vector<8x10xf32>
    %c0_49 = arith.constant 0 : index
    %c0_50 = arith.constant 0 : index
    %72 = vector.load %arg10[%c0_49, %c0_50] : memref<8x10xf32, #tpu.memory_space<vmem>>, vector<8x10xf32>
    tpu.vector_store %arg10[%c0_49, %c0_50], %71 {strides = array<i32>} : memref<8x10xf32, #tpu.memory_space<vmem>>, vector<8x10xf32>,
    return
  }
  func.func @transform_0(%arg0: i32) -> (i32, i32) {
    %c0_i32 = arith.constant 0 : i32
    %c0_i32_0 = arith.constant 0 : i32
    return %arg0, %c0_i32 : i32, i32
  }
  func.func @transform_1(%arg0: i32) -> (i32, i32) {
    %c0_i32 = arith.constant 0 : i32
    %c0_i32_0 = arith.constant 0 : i32
    %c0_i32_1 = arith.constant 0 : i32
    return %c0_i32, %c0_i32_0 : i32, i32
  }
  func.func @transform_2(%arg0: i32) -> (i32, i32) {
    %c0_i32 = arith.constant 0 : i32
    %c0_i32_0 = arith.constant 0 : i32
    %c0_i32_1 = arith.constant 0 : i32
    return %c0_i32, %c0_i32_0 : i32, i32
  }
  func.func @transform_3(%arg0: i32) -> (i32, i32, i32) {
    %c0_i32 = arith.constant 0 : i32
    %c0_i32_0 = arith.constant 0 : i32
    %c0_i32_1 = arith.constant 0 : i32
    %c0_i32_2 = arith.constant 0 : i32
    return %c0_i32, %c0_i32_0, %c0_i32_1 : i32, i32, i32
  }
  func.func @transform_4(%arg0: i32) -> (i32, i32) {
    %c0_i32 = arith.constant 0 : i32
    %c0_i32_0 = arith.constant 0 : i32
    %c0_i32_1 = arith.constant 0 : i32
    return %c0_i32, %c0_i32_0 : i32, i32
  }
  func.func @transform_5(%arg0: i32) -> (i32, i32) {
    %c0_i32 = arith.constant 0 : i32
    %c0_i32_0 = arith.constant 0 : i32
    %c0_i32_1 = arith.constant 0 : i32
    return %c0_i32, %c0_i32_0 : i32, i32
  }
  func.func @transform_6(%arg0: i32) -> (i32, i32) {
    %c0_i32 = arith.constant 0 : i32
    %c0_i32_0 = arith.constant 0 : i32
    %c0_i32_1 = arith.constant 0 : i32
    return %c0_i32, %c0_i32_0 : i32, i32
  }
  func.func @transform_7(%arg0: i32) -> (i32, i32) {
    %c0_i32 = arith.constant 0 : i32
    %c0_i32_0 = arith.constant 0 : i32
    %c0_i32_1 = arith.constant 0 : i32
    return %c0_i32, %c0_i32_0 : i32, i32
  }
  func.func @transform_8(%arg0: i32) -> (i32, i32, i32) {
    %c0_i32 = arith.constant 0 : i32
    %c0_i32_0 = arith.constant 0 : i32
    %c0_i32_1 = arith.constant 0 : i32
    %c0_i32_2 = arith.constant 0 : i32
    return %c0_i32, %c0_i32_0, %c0_i32_1 : i32, i32, i32
  }
  func.func @transform_9(%arg0: i32) -> (i32, i32) {
    %c0_i32 = arith.constant 0 : i32
    %c0_i32_0 = arith.constant 0 : i32
    return %arg0, %c0_i32 : i32, i32
  }
}

</mosaic_0001>

<bundles_post_ra>
// kernel: cnn_forward.1
= control target key start
LH: loop header
LB: loop body
LE: loop exit
PB: predicated region body
PF: predicated region fallthrough
CT: control target
= control target key end

     0   :  { %14 = vsyncpa [#allocation3], 0  ;;  %s12779_s0 = inlined_call_operand.vmem [shape: bf16[512,128], index: 0, kind: input, shape index: {}]   ;;  %s12780_s1 = inlined_call_operand.vmem [shape: bf16[128,256], index: 1, kind: input, shape index: {}]   ;;  %s12781_s2 = inlined_call_operand.vmem [shape: f32[1,256], index: 2, kind: input, shape index: {}]   ;;  %s12782_s3 = inlined_call_operand.vmem [shape: bf16[5,256,256], index: 3, kind: input, shape index: {}]   ;;  %s12783_s4 = inlined_call_operand.vmem [shape: f32[1,256], index: 4, kind: input, shape index: {}]   ;;  %s12784_s5 = inlined_call_operand.vmem [shape: bf16[1024,10], index: 5, kind: input, shape index: {}]   ;;  %s12785_s6 = inlined_call_operand.vmem [shape: f32[1,10], index: 6, kind: input, shape index: {}]   ;;  %s12786_s7 = inlined_call_operand.hbm [shape: f32[256,1], index: 7, kind: input, shape index: {}]   ;;  %s12787_s8 = inlined_call_operand.hbm [shape: bf16[4,8,256], index: 8, kind: input, shape index: {}]   ;;  %s12788_s9 = inlined_call_operand.vmem [shape: f32[16,10], index: 9, kind: output, shape index: {}]  }
   0x1   :  { %15 = vsyncpa [#allocation5], 0  ;;  %s7311_s30 = smov 0  }
   0x2 LB: > { %s7317_s10 = sadd.s32 4294967295, %s7252_s30   ;;  %p5821_p0 = scmp.ge.s32.totalorder %s7252_s30, 1  ;;  %s7252_s30 = sphi %s7311_s30, %s21_s30  }
   0x3   : > { %p246_p1 = scmp.lt.s32.totalorder %s7252_s30, 3  ;;  %s7254_s11 = smov [#allocation2]  }
   0x4   : > { %s276_s12 = sshll.u32 %s7254_s11, 4  ;;  %p12789_p3 = scmp.eq.s32.totalorder %s7317_s10, 0  ;;  %s277_s12 = int_to_ptr.vmem [resolvable:$true] %s276_s12 }
   0x5   : > { %p7321_p2 = pnand %p5821_p0, %p246_p1  ;;  %s7255_s14 = smov [#allocation4]  }
   0x6   : > { %s289_s15 = sshll.u32 %s7255_s14, 4  ;;  %s7182_s19 = scalar_lea.hbm %s12786_s7, 4096  ;;  %s7334_s15 = int_to_ptr.vmem [resolvable:$true] %s289_s15 }
   0x7   : > { %s13178_s13 = scalar_select %p7321_p2, 1, 0 }
   0x8   : > { %p6610_p4 = pneg %p7321_p2  ;;  %p7183_p6 = scmp.ne.s32.totalorder %s12786_s7, %s7182_s19 }
   0x9   : > { %p7189_p10 = scmp.lt.u32.totalorder %s7182_s19, %s12786_s7 }
   0xa   : > { %p7330_p5 = pnand %p12789_p3, %p6610_p4 }
   0xc   : > { %p7184_p7 = pneg %p7330_p5 }
   0xe   : > { %p7185_p8 = pnand %p7184_p7, %p7183_p6 }
  0x10   : > { %p7186_p9 = pneg %p7185_p8 }
  0x12   : > { %p7191_p11 = pnand %p7189_p10, %p7186_p9 }
  0x14   : > { %7194 = shalt.err (!%p7191_p11)
}
  0x15   : > { %s7195_s24 = scalar_lea.vmem %s277_s12, 4096  ;;  %p7203_p1 = scmp.lt.s32.totalorder %s277_s12, %s277_s12 }
  0x16   : > { %p7196_p12 = scmp.ne.s32.totalorder %s277_s12, %s7195_s24  ;;  %p7204_p4 = scmp.lt.s32.totalorder %s7195_s24, %s7195_s24 }
  0x18   : > { %p7198_p13 = pnand %p7196_p12, %p7184_p7  ;;  %p7205_p3 = por %p7204_p4, %p7203_p1 }
  0x1a   : > { %p7199_p0 = pneg %p7198_p13 }
  0x1c   : > { %p7206_p2 = pnand %p7205_p3, %p7199_p0 }
  0x1e   : > { %7209 = shalt.err (!%p7206_p2)
}
  0x1f   : > { %s7256_s25 = smov 128   ;;  %s7257_s26 = smov 8  }
  0x20   : > { %6613 = dma.hbm_to_vmem [thread:$0]  (!%p7330_p5), %s12786_s7, 4096, %s277_s12, [#allocation3], %s7256_s25, %s7256_s25, %s7257_s26  }
  0x21   : > { %s7210_s14 = scalar_lea.hbm %s12787_s8, 512 }
  0x22   : > { %p7211_p6 = scmp.ne.s32.totalorder %s12787_s8, %s7210_s14  ;;  %p7217_p8 = scmp.lt.u32.totalorder %s7210_s14, %s12787_s8 }
  0x24   : > { %p7213_p2 = pnand %p7211_p6, %p7184_p7 }
  0x26   : > { %p7214_p3 = pneg %p7213_p2 }
  0x28   : > { %p7219_p9 = pnand %p7217_p8, %p7214_p3 }
  0x2a   : > { %7222 = shalt.err (!%p7219_p9)
}
  0x2b   : > { %s7223_s12 = scalar_lea.vmem %s7334_s15, 512  ;;  %p7231_p13 = scmp.lt.s32.totalorder %s7334_s15, %s7334_s15 }
  0x2c   : > { %p7224_p10 = scmp.ne.s32.totalorder %s7334_s15, %s7223_s12  ;;  %p7232_p0 = scmp.lt.s32.totalorder %s7223_s12, %s7223_s12 }
  0x2e   : > { %p7226_p11 = pnand %p7224_p10, %p7184_p7  ;;  %p7233_p1 = por %p7232_p0, %p7231_p13 }
  0x30   : > { %p7227_p12 = pneg %p7226_p11 }
  0x32   : > { %p7234_p4 = pnand %p7233_p1, %p7227_p12 }
  0x34   : > { %7237 = shalt.err (!%p7234_p4)
}
  0x35   : > { %6616 = dma.hbm_to_vmem [thread:$0]  (!%p7330_p5), %s12787_s8, 512, %s7334_s15, [#allocation5], %s7256_s25, %s7256_s25, %s7257_s26  }
  0x36   : > { %p13180_p6 = scmp.ne.s32.totalorder %s13178_s13, 0 }
  0x38   : > { %314 = sbr.rel (%p13180_p6) target bundleno = 2129 (0x851), region = 56 }
  0x3f   : > { %p13181_p2 = scmp.eq.s32.totalorder %s7317_s10, 0 }
  0x41   : > { %7243 = dma.done.wait (%p13181_p2), [#allocation3], 4096   ;;  %p13182_p7 = pmov %p13181_p2 }
  0x42   : > { %p13183_p3 = pmov %p13181_p2 }
  0x43   : > { %7245 = vsyncadd (%p13182_p7), [#allocation3], 4294963200 }
  0x44   : > { %7247 = dma.done.wait (%p13183_p3), [#allocation5], 512   ;;  %p13184_p8 = pmov %p13181_p2 }
  0x45   : > { %v7258_v0 = vmov 0   ;;  %s5828_s13 = sshll.u32 %s7317_s10, 5  ;;  %v6798_v1 = vld [vmem:[%s12780_s1 + $0x4] ss:$8 sps:$4 sm:$0xff]   ;;  %v6800_v2 = vld [vmem:[%s12780_s1] ss:$8 sps:$4 sm:$0xff]   ;;  %v12824_v56 = vlaneseq }
  0x46   : > { %7249 = vsyncadd (%p13184_p8), [#allocation5], 4294966784  ;;  %632 = vmatprep.mubr.bf16.mxu0 %v7258_v0  ;;  %6637 = vset.pattern.permute.xlu1 %v7258_v0  ;;  %p354_p5 = scmp.lt.s32.totalorder %s5828_s13, 63  ;;  %v6801_v3 = vld [vmem:[%s12780_s1 + $0x14] ss:$8 sps:$4 sm:$0xff]   ;;  %v1312_v16 = vld [vmem:[#allocation2 + $0x8] sm:$0xff] }
  0x47   : > { %6636 = vset.pattern.permute.xlu0 %v7258_v0  ;;  %600 = vmatprep.subr.bf16.mxu0 %v6798_v1  ;;  %v6803_v4 = vld [vmem:[%s12780_s1 + $0x10] ss:$8 sps:$4 sm:$0xff]   ;;  %v6804_v5 = vld [vmem:[%s12780_s1 + $0x24] ss:$8 sps:$4 sm:$0xff]   ;;  %v6806_v6 = vld [vmem:[%s12780_s1 + $0x20] ss:$8 sps:$4 sm:$0xff]  }
  0x48   : > { %s14136_s13 = smov (!%p354_p5, %s5828_s13), 63  ;;  %601 = vmatpush1.bf16.msra.mxu0 %v6800_v2  ;;  %v6807_v7 = vld [vmem:[%s12780_s1 + $0x34] ss:$8 sps:$4 sm:$0xff]   ;;  %v6809_v8 = vld [vmem:[%s12780_s1 + $0x30] ss:$8 sps:$4 sm:$0xff]   ;;  %1350 = vperm.xlu1 %6637, %v1312_v16   ;;  %v1311_v18 = vld [vmem:[#allocation2] sm:$0xff] }
  0x49   : > { %602 = vmatprep.subr.bf16.mxu0 %v6801_v3  ;;  %s5829_s14 = sshll.u32 %s14136_s13, 2  ;;  %v6810_v9 = vld [vmem:[%s12780_s1 + $0x44] ss:$8 sps:$4 sm:$0xff]   ;;  %v6812_v10 = vld [vmem:[%s12780_s1 + $0x40] ss:$8 sps:$4 sm:$0xff]   ;;  %1345 = vperm.xlu0 %6636, %v1311_v18   ;;  %v1342_v19 = vld [vmem:[#allocation2 + $0xf8] sm:$0xff] }
  0x4a   : > { %s7421_s22 = scalar_lea.vmem %s12779_s0, %s5829_s14  ;;  %v6813_v11 = vld [vmem:[%s12780_s1 + $0x54] ss:$8 sps:$4 sm:$0xff]   ;;  %v6815_v12 = vld [vmem:[%s12780_s1 + $0x50] ss:$8 sps:$4 sm:$0xff]   ;;  %v6816_v13 = vld [vmem:[%s12780_s1 + $0x64] ss:$8 sps:$4 sm:$0xff]  }
  0x4b   : > { %v6818_v14 = vld [vmem:[%s12780_s1 + $0x60] ss:$8 sps:$4 sm:$0xff]   ;;  %v6819_v15 = vld [vmem:[%s12780_s1 + $0x74] ss:$8 sps:$4 sm:$0xff]   ;;  %v6821_v17 = vld [vmem:[%s12780_s1 + $0x70] ss:$8 sps:$4 sm:$0xff]  }
  0x4c   : > { %603 = vmatpush1.bf16.msra.mxu0 %v6803_v4  ;;  %v1313_v20 = vld [vmem:[#allocation2 + $0x10] sm:$0xff]  ;;  %v6822_v21 = vld [vmem:[%s7421_s22] sm:$0xff]   ;;  %v1314_v22 = vld [vmem:[#allocation2 + $0x18] sm:$0xff]  ;;  %1500 = vperm.xlu1 %6637, %v1342_v19   ;;  %v7524_v59 = vshrl.u32 %v12824_v56, 7  ;;  %s7260_s17 = smov 96   ;;  %p359_p9 = scmp.lt.s32.totalorder %s7317_s10, 1 }
  0x4d   : > { %604 = vmatprep.subr.bf16.mxu0 %v6804_v5  ;;  %v1315_v23 = vld [vmem:[#allocation2 + $0x20] sm:$0xff]  ;;  %1355 = vperm.xlu0 %6636, %v1313_v20   ;;  %v1316_v24 = vld [vmem:[#allocation2 + $0x28] sm:$0xff]  ;;  %v1317_v25 = vld [vmem:[#allocation2 + $0x30] sm:$0xff]  ;;  %vm5742_vm6 = vcmask 80896  }
  0x4e   : > { %v6823_v26 = vld [vmem:[%s7421_s22 + $0x8] sm:$0xff]   ;;  %v1318_v27 = vld [vmem:[#allocation2 + $0x38] sm:$0xff]  ;;  %v1319_v28 = vld [vmem:[#allocation2 + $0x40] sm:$0xff]  ;;  %v12792_v62 = vsub.s32 0, %v7524_v59  ;;  %v12791_v1 = vsub.s32 1, %v7524_v59  ;;  %vm1182_vm1 = vcmp.lt.s32.totalorder %v7524_v59, 7 }
  0x4f   : > { %v1320_v29 = vld [vmem:[#allocation2 + $0x48] sm:$0xff]  ;;  %v6824_v30 = vld [vmem:[%s7421_s22 + $0x10] sm:$0xff]   ;;  %v6825_v31 = vld [vmem:[%s7421_s22 + $0x18] sm:$0xff]   ;;  %vm1696_vm2 = vcmp.lt.s32.totalorder %v7524_v59, 4  ;;  %vm2595_vm3 = vcmp.lt.s32.totalorder %v7524_v59, 2  ;;  %vm3206_vm4 = vcmp.lt.s32.totalorder %v7524_v59, 6 }
  0x50   : > { %605 = vmatpush1.bf16.msra.mxu0 %v6806_v6  ;;  %1360 = vperm.xlu1 %6637, %v1314_v22   ;;  %v6826_v32 = vld [vmem:[%s7421_s22 + $0x20] sm:$0xff]   ;;  %v6827_v33 = vld [vmem:[%s7421_s22 + $0x28] sm:$0xff]   ;;  %v6828_v34 = vld [vmem:[%s7421_s22 + $0x30] sm:$0xff]   ;;  %s14138_s10 = smov (!%p359_p9, %s7317_s10), 1 }
  0x51   : > { %606 = vmatprep.subr.bf16.mxu0 %v6807_v7  ;;  %1365 = vperm.xlu0 %6636, %v1315_v23   ;;  %v6829_v35 = vld [vmem:[%s7421_s22 + $0x38] sm:$0xff]   ;;  %v6830_v36 = vld [vmem:[%s7421_s22 + $0x40] sm:$0xff]   ;;  %v6831_v37 = vld [vmem:[%s7421_s22 + $0x48] sm:$0xff]   ;;  %s5830_s11 = sshll.u32 %s14138_s10, 3 }
  0x52   : > { %v6832_v38 = vld [vmem:[%s7421_s22 + $0x50] sm:$0xff]   ;;  %v6833_v39 = vld [vmem:[%s7421_s22 + $0x58] sm:$0xff]   ;;  %v6834_v40 = vld [vmem:[%s7421_s22 + $0x60] sm:$0xff]   ;;  %s362_s18 = scalar_lea.vmem %s12788_s9, %s5830_s11 }
  0x53   : > { %v6835_v41 = vld [vmem:[%s7421_s22 + $0x68] sm:$0xff]   ;;  %v6836_v42 = vld [vmem:[%s7421_s22 + $0x70] sm:$0xff]   ;;  %v6837_v43 = vld [vmem:[%s7421_s22 + $0x78] sm:$0xff]   ;;  %s7259_s22 = smov 112  }
  0x54   : > { %607 = vmatpush1.bf16.msra.mxu0 %v6809_v8  ;;  %1370 = vperm.xlu1 %6637, %v1316_v24   ;;  %v6840_v44 = vld [vmem:[%s12782_s3 + $0x404] ss:$8 sps:$4 sm:$0xff]   ;;  %v6838_v45 = vld [vmem:[%s12782_s3 + $0x400] ss:$8 sps:$4 sm:$0xff]   ;;  %v6843_v46 = vld [vmem:[%s12782_s3 + $0x414] ss:$8 sps:$4 sm:$0xff]  }
  0x55   : > { %608 = vmatprep.subr.bf16.mxu0 %v6810_v9  ;;  %1375 = vperm.xlu0 %6636, %v1317_v25   ;;  %v6841_v47 = vld [vmem:[%s12782_s3 + $0x410] ss:$8 sps:$4 sm:$0xff]   ;;  %v6846_v48 = vld [vmem:[%s12782_s3 + $0x424] ss:$8 sps:$4 sm:$0xff]   ;;  %v6844_v49 = vld [vmem:[%s12782_s3 + $0x420] ss:$8 sps:$4 sm:$0xff]  }
  0x56   : > { %v6849_v50 = vld [vmem:[%s12782_s3 + $0x434] ss:$8 sps:$4 sm:$0xff]   ;;  %v6847_v51 = vld [vmem:[%s12782_s3 + $0x430] ss:$8 sps:$4 sm:$0xff]   ;;  %v6852_v52 = vld [vmem:[%s12782_s3 + $0x444] ss:$8 sps:$4 sm:$0xff]  }
  0x57   : > { %v6850_v53 = vld [vmem:[%s12782_s3 + $0x440] ss:$8 sps:$4 sm:$0xff]   ;;  %v6855_v54 = vld [vmem:[%s12782_s3 + $0x454] ss:$8 sps:$4 sm:$0xff]   ;;  %v6853_v55 = vld [vmem:[%s12782_s3 + $0x450] ss:$8 sps:$4 sm:$0xff]  }
  0x58   : > { %609 = vmatpush1.bf16.msra.mxu0 %v6812_v10  ;;  %1380 = vperm.xlu1 %6637, %v1318_v27   ;;  %v6858_v57 = vld [vmem:[%s12782_s3 + $0x464] ss:$8 sps:$4 sm:$0xff]   ;;  %v6856_v58 = vld [vmem:[%s12782_s3 + $0x460] ss:$8 sps:$4 sm:$0xff]   ;;  %v6861_v60 = vld [vmem:[%s12782_s3 + $0x474] ss:$8 sps:$4 sm:$0xff]  }
  0x59   : > { %610 = vmatprep.subr.bf16.mxu0 %v6813_v11  ;;  %1385 = vperm.xlu0 %6636, %v1319_v28   ;;  %v6859_v61 = vld [vmem:[%s12782_s3 + $0x470] ss:$8 sps:$4 sm:$0xff]   ;;  %v412_v63 = vld [vmem:[%s12781_s2] sm:$0x3]  ;;  %v6867_v4 = vld [vmem:[%s12782_s3 + $0x494] ss:$8 sps:$4 sm:$0xff]  }
  0x5a   : > { %v6862_v2 = vld [vmem:[%s12782_s3 + $0x480] ss:$8 sps:$4 sm:$0xff]   ;;  %v7545_v3 = vrot.slane %v412_v63, %v12792_v62  ;;  %v7552_v5 = vrot.slane %v412_v63, %v12791_v1  ;;  %v6865_v6 = vld [vmem:[%s12782_s3 + $0x490] ss:$8 sps:$4 sm:$0xff]   ;;  %v6870_v11 = vld [vmem:[%s12782_s3 + $0x4a4] ss:$8 sps:$4 sm:$0xff]  }
  0x5b   : > { %v6873_v18 = vld [vmem:[%s12782_s3 + $0x4b4] ss:$8 sps:$4 sm:$0xff]  }
  0x5c   : > { %611 = vmatpush1.bf16.msra.mxu0 %v6815_v12  ;;  %1390 = vperm.xlu1 %6637, %v1320_v29  }
  0x5d   : > { %612 = vmatprep.subr.bf16.mxu0 %v6816_v13 }
  0x60   : > { %613 = vmatpush1.bf16.msra.mxu0 %v6818_v14 }
  0x61   : > { %614 = vmatprep.subr.bf16.mxu0 %v6819_v15  ;;  %v6868_v15 = vld [vmem:[%s12782_s3 + $0x4a0] ss:$8 sps:$4 sm:$0xff]  }
  0x64   : > { %615 = vmatpush1.bf16.msra.mxu0 %v6821_v17 }
  0x65   : > { %3978 = vmatprep.subr.bf16.mxu0 %v6840_v44 }
  0x67   : > { %633 = vmatmul.mubr.bf16.vlgmr.msra.gmra.mrb[0].mxu0 %v6822_v21  ;;  %v6871_v21 = vld [vmem:[%s12782_s3 + $0x4b0] ss:$8 sps:$4 sm:$0xff]  }
  0x68   : > { %642 = vmatprep.mubr.bf16.mxu0 %v7258_v0  ;;  %3979 = vmatpush1.bf16.msra.mxu0 %v6838_v45  ;;  %v6882_v45 = vld [vmem:[%s12782_s3 + $0x4e4] ss:$8 sps:$4 sm:$0xff]  }
  0x69   : > { %3980 = vmatprep.subr.bf16.mxu0 %v6843_v46  ;;  %v6880_v46 = vld [vmem:[%s12782_s3 + $0x4e0] ss:$8 sps:$4 sm:$0xff]  }
  0x6c   : > { %3981 = vmatpush1.bf16.msra.mxu0 %v6841_v47 }
  0x6d   : > { %3982 = vmatprep.subr.bf16.mxu0 %v6846_v48 }
  0x6f   : > { %643 = vmatmul.mubr.bf16.gmra.mrb[4].mxu0 %v6823_v26 }
  0x70   : > { %652 = vmatprep.mubr.bf16.mxu0 %v7258_v0  ;;  %3983 = vmatpush1.bf16.msra.mxu0 %v6844_v49 }
  0x71   : > { %3984 = vmatprep.subr.bf16.mxu0 %v6849_v50  ;;  %v6885_v50 = vld [vmem:[%s12782_s3 + $0x4f4] ss:$8 sps:$4 sm:$0xff]  }
  0x74   : > { %3985 = vmatpush1.bf16.msra.mxu0 %v6847_v51 }
  0x75   : > { %3986 = vmatprep.subr.bf16.mxu0 %v6852_v52  ;;  %v6883_v52 = vld [vmem:[%s12782_s3 + $0x4f0] ss:$8 sps:$4 sm:$0xff]  }
  0x77   : > { %653 = vmatmul.mubr.bf16.gmra.mrb[8].mxu0 %v6824_v30  ;;  %v6876_v30 = vld [vmem:[%s12782_s3 + $0x4c4] ss:$8 sps:$4 sm:$0xff]  }
  0x78   : > { %662 = vmatprep.mubr.bf16.mxu0 %v7258_v0  ;;  %3987 = vmatpush1.bf16.msra.mxu0 %v6850_v53 }
  0x79   : > { %3988 = vmatprep.subr.bf16.mxu0 %v6855_v54 }
  0x7c   : > { %3989 = vmatpush1.bf16.msra.mxu0 %v6853_v55 }
  0x7d   : > { %3990 = vmatprep.subr.bf16.mxu0 %v6858_v57 }
  0x7f   : > { %663 = vmatmul.mubr.bf16.gmra.mrb[12].mxu0 %v6825_v31  ;;  %v6874_v31 = vld [vmem:[%s12782_s3 + $0x4c0] ss:$8 sps:$4 sm:$0xff]  }
  0x80   : > { %672 = vmatprep.mubr.bf16.mxu0 %v7258_v0  ;;  %3991 = vmatpush1.bf16.msra.mxu0 %v6856_v58 }
  0x81   : > { %3992 = vmatprep.subr.bf16.mxu0 %v6861_v60 }
  0x84   : > { %3993 = vmatpush1.bf16.msra.mxu0 %v6859_v61 }
  0x87   : > { %673 = vmatmul.mubr.bf16.gmra.mrb[16].mxu0 %v6826_v32 }
  0x88   : > { %682 = vmatprep.mubr.bf16.mxu0 %v7258_v0 }
  0x8f   : > { %683 = vmatmul.mubr.bf16.gmra.mrb[20].mxu0 %v6827_v33 }
  0x90   : > { %692 = vmatprep.mubr.bf16.mxu0 %v7258_v0 }
  0x97   : > { %693 = vmatmul.mubr.bf16.gmra.mrb[24].mxu0 %v6828_v34  ;;  %v6879_v34 = vld [vmem:[%s12782_s3 + $0x4d4] ss:$8 sps:$4 sm:$0xff]  }
  0x98   : > { %702 = vmatprep.mubr.bf16.mxu0 %v7258_v0 }
  0x9f   : > { %703 = vmatmul.mubr.bf16.gmra.mrb[28].mxu0 %v6829_v35 }
  0xa0   : > { %712 = vmatprep.mubr.bf16.mxu0 %v7258_v0 }
  0xa7   : > { %713 = vmatmul.mubr.bf16.gmra.mrb[32].mxu0 %v6830_v36  ;;  %v6877_v36 = vld [vmem:[%s12782_s3 + $0x4d0] ss:$8 sps:$4 sm:$0xff]  }
  0xa8   : > { %722 = vmatprep.mubr.bf16.mxu0 %v7258_v0 }
  0xaf   : > { %723 = vmatmul.mubr.bf16.gmra.mrb[36].mxu0 %v6831_v37 }
  0xb0   : > { %732 = vmatprep.mubr.bf16.mxu0 %v7258_v0 }
  0xb7   : > { %733 = vmatmul.mubr.bf16.gmra.mrb[40].mxu0 %v6832_v38 }
  0xb8   : > { %742 = vmatprep.mubr.bf16.mxu0 %v7258_v0 }
  0xbf   : > { %743 = vmatmul.mubr.bf16.gmra.mrb[44].mxu0 %v6833_v39 }
  0xc0   : > { %752 = vmatprep.mubr.bf16.mxu0 %v7258_v0 }
  0xc7   : > { %753 = vmatmul.mubr.bf16.gmra.mrb[48].mxu0 %v6834_v40 }
  0xc8   : > { %762 = vmatprep.mubr.bf16.mxu0 %v7258_v0 }
  0xcf   : > { %763 = vmatmul.mubr.bf16.gmra.mrb[52].mxu0 %v6835_v41 }
  0xd0   : > { %772 = vmatprep.mubr.bf16.mxu0 %v7258_v0 }
  0xd7   : > { %773 = vmatmul.mubr.bf16.gmra.mrb[56].mxu0 %v6836_v42 }
  0xd8   : > { %782 = vmatprep.mubr.bf16.mxu0 %v7258_v0  ;;  %v6864_v0 = vld [vmem:[%s12782_s3 + $0x484] ss:$8 sps:$4 sm:$0xff]  }
  0xd9   : > { %3994 = vmatprep.subr.bf16.mxu0 %v6864_v0 }
  0xda   : > { %3995 = vmatpush1.bf16.msra.mxu0 %v6862_v2 }
  0xdb   : > { %3996 = vmatprep.subr.bf16.mxu0 %v6867_v4 }
  0xde   : > { %3997 = vmatpush1.bf16.msra.mxu0 %v6865_v6 }
  0xdf   : > { %783 = vmatmul.mubr.bf16.gmra.mrb[60].mxu0 %v6837_v43  ;;  %3998 = vmatprep.subr.bf16.mxu0 %v6870_v11 }
  0xe2   : > { %3999 = vmatpush1.bf16.msra.mxu0 %v6868_v15 }
  0xe3   : > { %4000 = vmatprep.subr.bf16.mxu0 %v6873_v18 }
  0xe6   : > { %4001 = vmatpush1.bf16.msra.mxu0 %v6871_v21 }
  0xe7   : > { %4002 = vmatprep.subr.bf16.mxu0 %v6876_v30 }
  0xea   : > { %4003 = vmatpush1.bf16.msra.mxu0 %v6874_v31 }
  0xeb   : > { %4004 = vmatprep.subr.bf16.mxu0 %v6879_v34 }
  0xee   : > { %4005 = vmatpush1.bf16.msra.mxu0 %v6877_v36 }
  0xef   : > { %4006 = vmatprep.subr.bf16.mxu0 %v6882_v45 }
  0xf2   : > { %4007 = vmatpush1.bf16.msra.mxu0 %v6880_v46 }
  0xf3   : > { %4008 = vmatprep.subr.bf16.mxu0 %v6885_v50 }
  0xf6   : > { %4009 = vmatpush1.bf16.msra.mxu0 %v6883_v52 }
 0x13a   : > { %v634_v7 = vpop.f32.mrb[0].mxu0 }
 0x13b   : > { %v7558_v8 = vadd.f32 %v634_v7, %v7545_v3  ;;  %v636_v9 = vpop.f32.mrb[1].mxu0 }
 0x13c   : > { %v638_v10 = vpop.f32.mrb[2].mxu0  ;;  %v7565_v13 = vadd.f32 %v636_v9, %v7552_v5 }
 0x13d   : > { %v12823_v12 = vmax.f32 %v7558_v8, 0.0  ;;  %v640_v14 = vpop.f32.mrb[3].mxu0  ;;  %v7582_v20 = vadd.f32 %v638_v10, %v7545_v3 }
 0x13e   : > { %v7571_v16 = vadd.f32 %v640_v14, %v7552_v5  ;;  %v12821_v19 = vmax.f32 %v7565_v13, 0.0 }
 0x13f   : > { %857 = vrot.lane.b32.xlu0 %v12823_v12, %s7259_s22  ;;  %v12820_v26 = vmax.f32 %v7582_v20, 0.0 }
 0x140   : > { %v12819_v17 = vmax.f32 %v7571_v16, 0.0 }
 0x142   : > { %v644_v22 = vpop.f32.mrb[4].mxu0  ;;  %923 = vrot.lane.b32.xlu1 %v12819_v17, %s7259_s22 }
 0x143   : > { %v7591_v23 = vadd.f32 %v644_v22, %v7545_v3  ;;  %v646_v24 = vpop.f32.mrb[5].mxu0  ;;  %921 = vrot.lane.b32.xlu0 %v12821_v19, %s7259_s22 }
 0x144   : > { %v648_v25 = vpop.f32.mrb[6].mxu0  ;;  %v7599_v28 = vadd.f32 %v646_v24, %v7552_v5 }
 0x145   : > { %v12817_v27 = vmax.f32 %v7591_v23, 0.0  ;;  %v650_v29 = vpop.f32.mrb[7].mxu0  ;;  %v7615_v33 = vadd.f32 %v648_v25, %v7545_v3 }
 0x146   : > { %v12816_v32 = vmax.f32 %v7599_v28, 0.0  ;;  %v7631_v41 = vadd.f32 %v650_v29, %v7552_v5 }
 0x147   : > { %861 = vrot.lane.b32.xlu1 %v12817_v27, %s7259_s22  ;;  %859 = vrot.lane.b32.xlu0 %v12820_v26, %s7259_s22  ;;  %v12813_v40 = vmax.f32 %v7615_v33, 0.0  ;;  %v1327_v27 = vld [vmem:[#allocation2 + $0x80] sm:$0xff] }
 0x148   : > { %v12812_v47 = vmax.f32 %v7631_v41, 0.0 }
 0x14a   : > { %v654_v35 = vpop.f32.mrb[8].mxu0 }
 0x14b   : > { %v7624_v37 = vadd.f32 %v654_v35, %v7545_v3  ;;  %v656_v38 = vpop.f32.mrb[9].mxu0  ;;  %925 = vrot.lane.b32.xlu0 %v12816_v32, %s7259_s22 }
 0x14c   : > { %v658_v39 = vpop.f32.mrb[10].mxu0  ;;  %v7635_v43 = vadd.f32 %v656_v38, %v7552_v5 }
 0x14d   : > { %v12815_v42 = vmax.f32 %v7624_v37, 0.0  ;;  %v660_v44 = vpop.f32.mrb[11].mxu0  ;;  %v7652_v49 = vadd.f32 %v658_v39, %v7545_v3 }
 0x14e   : > { %v12814_v48 = vmax.f32 %v7635_v43, 0.0  ;;  %v7671_v58 = vadd.f32 %v660_v44, %v7552_v5 }
 0x14f   : > { %865 = vrot.lane.b32.xlu1 %v12815_v42, %s7259_s22  ;;  %863 = vrot.lane.b32.xlu0 %v12813_v40, %s7259_s22  ;;  %v12807_v57 = vmax.f32 %v7652_v49, 0.0 }
 0x150   : > { %v12806_v0 = vmax.f32 %v7671_v58, 0.0 }
 0x152   : > { %v664_v51 = vpop.f32.mrb[12].mxu0 }
 0x153   : > { %v7661_v53 = vadd.f32 %v664_v51, %v7545_v3  ;;  %v666_v54 = vpop.f32.mrb[13].mxu0  ;;  %929 = vrot.lane.b32.xlu1 %v12814_v48, %s7259_s22  ;;  %927 = vrot.lane.b32.xlu0 %v12812_v47, %s7259_s22  ;;  %v7855_v48 = vpop.permute.xlu1 %1350 }
 0x154   : > { %v668_v55 = vpop.f32.mrb[14].mxu0  ;;  %v7675_v61 = vadd.f32 %v666_v54, %v7552_v5 }
 0x155   : > { %v12810_v60 = vmax.f32 %v7661_v53, 0.0  ;;  %v670_v63 = vpop.f32.mrb[15].mxu0  ;;  %v7686_v4 = vadd.f32 %v668_v55, %v7545_v3 }
 0x156   : > { %v12808_v2 = vmax.f32 %v7675_v61, 0.0  ;;  %v7699_v14 = vadd.f32 %v670_v63, %v7552_v5 }
 0x157   : > { %869 = vrot.lane.b32.xlu1 %v12810_v60, %s7259_s22  ;;  %867 = vrot.lane.b32.xlu0 %v12807_v57, %s7259_s22  ;;  %v12803_v11 = vmax.f32 %v7686_v4, 0.0 }
 0x158   : > { %v12801_v22 = vmax.f32 %v7699_v14, 0.0 }
 0x15a   : > { %v674_v6 = vpop.f32.mrb[16].mxu0 }
 0x15b   : > { %v7689_v7 = vadd.f32 %v674_v6, %v7545_v3  ;;  %v676_v9 = vpop.f32.mrb[17].mxu0  ;;  %933 = vrot.lane.b32.xlu1 %v12808_v2, %s7259_s22  ;;  %931 = vrot.lane.b32.xlu0 %v12806_v0, %s7259_s22  ;;  %v6891_v0 = vld [vmem:[%s12782_s3 + $0x10] ss:$8 sps:$4 sm:$0xff]  }
 0x15c   : > { %v678_v10 = vpop.f32.mrb[18].mxu0  ;;  %v7703_v18 = vadd.f32 %v676_v9, %v7552_v5  ;;  %v1325_v2 = vld [vmem:[#allocation2 + $0x70] sm:$0xff] }
 0x15d   : > { %v12805_v15 = vmax.f32 %v7689_v7, 0.0  ;;  %v680_v21 = vpop.f32.mrb[19].mxu0  ;;  %v7714_v25 = vadd.f32 %v678_v10, %v7545_v3 }
 0x15e   : > { %v12804_v24 = vmax.f32 %v7703_v18, 0.0  ;;  %v7727_v36 = vadd.f32 %v680_v21, %v7552_v5 }
 0x15f   : > { %873 = vrot.lane.b32.xlu1 %v12805_v15, %s7259_s22  ;;  %871 = vrot.lane.b32.xlu0 %v12803_v11, %s7259_s22  ;;  %13185 = vst [vmem:[#allocation8_spill] sm:$0xff] %v7714_v25  ;;  %v12797_v35 = vmax.f32 %v7714_v25, 0.0 }
 0x160   : > { %13187 = vst [vmem:[#allocation10_spill] sm:$0xff] %v7727_v36  ;;  %v12795_v45 = vmax.f32 %v7727_v36, 0.0 }
 0x162   : > { %v684_v29 = vpop.f32.mrb[20].mxu0 }
 0x163   : > { %v7717_v30 = vadd.f32 %v684_v29, %v7545_v3  ;;  %v686_v31 = vpop.f32.mrb[21].mxu0  ;;  %937 = vrot.lane.b32.xlu1 %v12804_v24, %s7259_s22  ;;  %935 = vrot.lane.b32.xlu0 %v12801_v22, %s7259_s22 }
 0x164   : > { %v688_v34 = vpop.f32.mrb[22].mxu0  ;;  %v7731_v39 = vadd.f32 %v686_v31, %v7552_v5 }
 0x165   : > { %13186 = vst [vmem:[#allocation9_spill] sm:$0xff] %v7717_v30  ;;  %v12799_v38 = vmax.f32 %v7717_v30, 0.0  ;;  %v690_v44 = vpop.f32.mrb[23].mxu0  ;;  %v7742_v50 = vadd.f32 %v688_v34, %v7545_v3 }
 0x166   : > { %13188 = vst [vmem:[#allocation11_spill] sm:$0xff] %v7731_v39  ;;  %v12798_v46 = vmax.f32 %v7731_v39, 0.0  ;;  %v7757_v6 = vadd.f32 %v690_v44, %v7552_v5  ;;  %v1321_v44 = vld [vmem:[#allocation2 + $0x50] sm:$0xff] }
 0x167   : > { %877 = vrot.lane.b32.xlu1 %v12799_v38, %s7259_s22  ;;  %875 = vrot.lane.b32.xlu0 %v12797_v35, %s7259_s22  ;;  %13189 = vst [vmem:[#allocation12_spill] sm:$0xff] %v7742_v50  ;;  %v12794_v63 = vmax.f32 %v7742_v50, 0.0  ;;  %v6886_v38 = vld [vmem:[%s12782_s3 + $0x4] ss:$8 sps:$4 sm:$0xff]  }
 0x168   : > { %13191 = vst [vmem:[#allocation14_spill] sm:$0xff] %v7757_v6  ;;  %v12796_v21 = vmax.f32 %v7757_v6, 0.0  ;;  %1985 = vmatprep.subr.bf16.mxu1 %v6886_v38  ;;  %v1331_v6 = vld [vmem:[#allocation2 + $0xa0] sm:$0xff] }
 0x16a   : > { %v694_v51 = vpop.f32.mrb[24].mxu0 }
 0x16b   : > { %v7745_v52 = vadd.f32 %v694_v51, %v7545_v3  ;;  %v7747_v54 = vpop.f32.mrb[25].mxu0  ;;  %941 = vrot.lane.b32.xlu1 %v12798_v46, %s7259_s22  ;;  %939 = vrot.lane.b32.xlu0 %v12795_v45, %s7259_s22 }
 0x16c   : > { %v698_v55 = vpop.f32.mrb[26].mxu0 }
 0x16d   : > { %13190 = vst [vmem:[#allocation13_spill] sm:$0xff] %v7745_v52  ;;  %v12793_v9 = vmax.f32 %v7745_v52, 0.0  ;;  %v700_v10 = vpop.f32.mrb[27].mxu0  ;;  %v7775_v51 = vadd.f32 %v698_v55, %v7545_v3 }
 0x16f   : > { %881 = vrot.lane.b32.xlu1 %v12793_v9, %s7259_s22  ;;  %879 = vrot.lane.b32.xlu0 %v12794_v63, %s7259_s22  ;;  %13192 = vst [vmem:[#allocation15_spill] sm:$0xff] %v7775_v51  ;;  %v12800_v62 = vmax.f32 %v7775_v51, 0.0  ;;  %v7779_v9 = vadd.f32 %v700_v10, %v7552_v5 }
 0x171   : > { %13193 = vst [vmem:[#allocation16_spill] sm:$0xff] %v7779_v9  ;;  %v12802_v35 = vmax.f32 %v7779_v9, 0.0 }
 0x172   : > { %v7767_v29 = vpop.f32.mrb[28].mxu0 }
 0x173   : > { %v7769_v31 = vpop.f32.mrb[29].mxu0  ;;  %943 = vrot.lane.b32.xlu0 %v12796_v21, %s7259_s22 }
 0x174   : > { %v708_v34 = vpop.f32.mrb[30].mxu0 }
 0x175   : > { %v710_v1 = vpop.f32.mrb[31].mxu0  ;;  %v7793_v10 = vadd.f32 %v708_v34, %v7545_v3 }
 0x176   : > { %v7810_v24 = vadd.f32 %v710_v1, %v7552_v5 }
 0x177   : > { %1395 = vperm.xlu0 %6636, %v1321_v44   ;;  %v1323_v44 = vld [vmem:[#allocation2 + $0x60] sm:$0xff]  ;;  %13194 = vst [vmem:[#allocation17_spill] sm:$0xff] %v7793_v10  ;;  %v12809_v34 = vmax.f32 %v7793_v10, 0.0 }
 0x178   : > { %13195 = vst [vmem:[#allocation18_spill] sm:$0xff] %v7810_v24  ;;  %v12811_v38 = vmax.f32 %v7810_v24, 0.0  ;;  %v6910_v24 = vld [vmem:[%s12782_s3 + $0x84] ss:$8 sps:$4 sm:$0xff]  }
 0x17a   : > { %v7781_v63 = vpop.f32.mrb[32].mxu0 }
 0x17b   : > { %v7783_v45 = vpop.f32.mrb[33].mxu0  ;;  %883 = vrot.lane.b32.xlu0 %v12800_v62, %s7259_s22  ;;  %v6888_v62 = vld [vmem:[%s12782_s3] ss:$8 sps:$4 sm:$0xff]  }
 0x17c   : > { %v718_v21 = vpop.f32.mrb[34].mxu0  ;;  %1986 = vmatpush1.bf16.msra.mxu1 %v6888_v62  ;;  %v6894_v62 = vld [vmem:[%s12782_s3 + $0x20] ss:$8 sps:$4 sm:$0xff]  }
 0x17d   : > { %v720_v55 = vpop.f32.mrb[35].mxu0 }
 0x17e   : > { %v7848_v47 = vadd.f32 %v720_v55, %v7552_v5  ;;  %v7865_v55 = vpop.permute.xlu0 %1345 }
 0x17f   : > { %947 = vrot.lane.b32.xlu0 %v12802_v35, %s7259_s22  ;;  %v6889_v35 = vld [vmem:[%s12782_s3 + $0x14] ss:$8 sps:$4 sm:$0xff]  }
 0x180   : > { %1987 = vmatprep.subr.bf16.mxu1 %v6889_v35  ;;  %13197 = vst [vmem:[#allocation20_spill] sm:$0xff] %v7848_v47  ;;  %v12822_v42 = vmax.f32 %v7848_v47, 0.0 }
 0x181   : > { %1988 = vmatpush1.bf16.msra.mxu1 %v6891_v0  ;;  %v6895_v0 = vld [vmem:[%s12782_s3 + $0x34] ss:$8 sps:$4 sm:$0xff]  }
 0x182   : > { %v7795_v46 = vpop.f32.mrb[36].mxu0  ;;  %v7883_v26 = vpop.permute.xlu0 %1355 }
 0x183   : > { %v7803_v22 = vpop.f32.mrb[37].mxu0  ;;  %1405 = vperm.xlu0 %6636, %v1323_v44   ;;  %v6892_v44 = vld [vmem:[%s12782_s3 + $0x24] ss:$8 sps:$4 sm:$0xff]  }
 0x184   : > { %v728_v11 = vpop.f32.mrb[38].mxu0  ;;  %1989 = vmatprep.subr.bf16.mxu1 %v6892_v44  ;;  %v6897_v44 = vld [vmem:[%s12782_s3 + $0x30] ss:$8 sps:$4 sm:$0xff]  }
 0x185   : > { %v730_v15 = vpop.f32.mrb[39].mxu0  ;;  %1990 = vmatpush1.bf16.msra.mxu1 %v6894_v62  ;;  %v6900_v62 = vld [vmem:[%s12782_s3 + $0x40] ss:$8 sps:$4 sm:$0xff]   ;;  %v7881_v17 = vadd.f32 %v728_v11, %v7545_v3  ;;  %v6907_v11 = vld [vmem:[%s12782_s3 + $0x74] ss:$8 sps:$4 sm:$0xff]  }
 0x186   : > { %1991 = vmatprep.subr.bf16.mxu1 %v6895_v0  ;;  %v7902_v56 = vadd.f32 %v730_v15, %v7552_v5  ;;  %v7917_v15 = vpop.permute.xlu0 %1365 }
 0x187   : > { %887 = vrot.lane.b32.xlu0 %v12809_v34, %s7259_s22  ;;  %v7833_v34 = vadd.f32 %v718_v21, %v7545_v3  ;;  %13199 = vst [vmem:[#allocation22_spill] sm:$0xff] %v7881_v17 }
 0x188   : > { %13201 = vst [vmem:[#allocation24_spill] sm:$0xff] %v7902_v56 }
 0x189   : > { %13196 = vst [vmem:[#allocation19_spill] sm:$0xff] %v7833_v34  ;;  %v12818_v21 = vmax.f32 %v7833_v34, 0.0  ;;  %1992 = vmatpush1.bf16.msra.mxu1 %v6897_v44  ;;  %v6909_v34 = vld [vmem:[%s12782_s3 + $0x70] ss:$8 sps:$4 sm:$0xff]  }
 0x18a   : > { %v7825_v1 = vpop.f32.mrb[40].mxu0  ;;  %v7939_v51 = vpop.permute.xlu0 %1375 }
 0x18b   : > { %v7827_v57 = vpop.f32.mrb[41].mxu0  ;;  %951 = vrot.lane.b32.xlu0 %v12811_v38, %s7259_s22  ;;  %v6898_v38 = vld [vmem:[%s12782_s3 + $0x44] ss:$8 sps:$4 sm:$0xff]  }
 0x18c   : > { %v738_v35 = vpop.f32.mrb[42].mxu0  ;;  %1993 = vmatprep.subr.bf16.mxu1 %v6898_v38  ;;  %v6903_v38 = vld [vmem:[%s12782_s3 + $0x50] ss:$8 sps:$4 sm:$0xff]  }
 0x18d   : > { %v7835_v60 = vpop.f32.mrb[43].mxu0  ;;  %1994 = vmatpush1.bf16.msra.mxu1 %v6900_v62  ;;  %v6904_v62 = vld [vmem:[%s12782_s3 + $0x64] ss:$8 sps:$4 sm:$0xff]  }
 0x18e   : > { %v7953_v52 = vadd.f32 %v7835_v60, %v7552_v5  ;;  %v6919_v60 = vld [vmem:[%s12782_s3 + $0xb4] ss:$8 sps:$4 sm:$0xff]  }
 0x18f   : > { %1415 = vperm.xlu0 %6636, %v1325_v2   ;;  %v6901_v2 = vld [vmem:[%s12782_s3 + $0x54] ss:$8 sps:$4 sm:$0xff]  }
 0x190   : > { %1995 = vmatprep.subr.bf16.mxu1 %v6901_v2  ;;  %v6906_v2 = vld [vmem:[%s12782_s3 + $0x60] ss:$8 sps:$4 sm:$0xff]   ;;  %13205 = vst [vmem:[#allocation28_spill] sm:$0xff] %v7953_v52 }
 0x191   : > { %1996 = vmatpush1.bf16.msra.mxu1 %v6903_v38  ;;  %v12830_v38 = vmax.f32 %v7881_v17, 0.0 }
 0x192   : > { %v7853_v40 = vpop.f32.mrb[44].mxu0  ;;  %1997 = vmatprep.subr.bf16.mxu1 %v6904_v62  ;;  %v12834_v62 = vmax.f32 %v7902_v56, 0.0  ;;  %v6916_v56 = vld [vmem:[%s12782_s3 + $0xa4] ss:$8 sps:$4 sm:$0xff]  }
 0x193   : > { %v7860_v0 = vpop.f32.mrb[45].mxu0  ;;  %891 = vrot.lane.b32.xlu0 %v12818_v21, %s7259_s22  ;;  %v7878_v21 = vpop.permute.xlu1 %1500 }
 0x194   : > { %v7867_v44 = vpop.f32.mrb[46].mxu0  ;;  %13198 = vst [vmem:[#allocation21_spill] sm:$0xff] %v7878_v21 }
 0x195   : > { %v7870_v32 = vpop.f32.mrb[47].mxu0  ;;  %1998 = vmatpush1.bf16.msra.mxu1 %v6906_v2  ;;  %v6912_v2 = vld [vmem:[%s12782_s3 + $0x80] ss:$8 sps:$4 sm:$0xff]  }
 0x196   : > { %1999 = vmatprep.subr.bf16.mxu1 %v6907_v11 }
 0x197   : > { %955 = vrot.lane.b32.xlu0 %v12822_v42, %s7259_s22 }
 0x199   : > { %2000 = vmatpush1.bf16.msra.mxu1 %v6909_v34  ;;  %v7935_v34 = vadd.f32 %v738_v35, %v7545_v3 }
 0x19a   : > { %v7885_v19 = vpop.f32.mrb[48].mxu0  ;;  %2001 = vmatprep.subr.bf16.mxu1 %v6910_v24  ;;  %v6913_v24 = vld [vmem:[%s12782_s3 + $0x94] ss:$8 sps:$4 sm:$0xff]  }
 0x19b   : > { %v7893_v42 = vpop.f32.mrb[49].mxu0  ;;  %1425 = vperm.xlu0 %6636, %v1327_v27   ;;  %v7909_v27 = vpop.permute.xlu1 %1360  ;;  %13204 = vst [vmem:[#allocation27_spill] sm:$0xff] %v7935_v34  ;;  %v12838_v35 = vmax.f32 %v7935_v34, 0.0  ;;  %v13210_v34 = vlaneseq }
 0x19c   : > { %13200 = vst [vmem:[#allocation23_spill] sm:$0xff] %v7893_v42  ;;  %v7898_v12 = vpop.f32.mrb[50].mxu0  ;;  %v12842_v42 = vmax.f32 %v7953_v52, 0.0 }
 0x19d   : > { %v7904_v47 = vpop.f32.mrb[51].mxu0  ;;  %2002 = vmatpush1.bf16.msra.mxu1 %v6912_v2  ;;  %v6918_v2 = vld [vmem:[%s12782_s3 + $0xa0] ss:$8 sps:$4 sm:$0xff]  }
 0x19e   : > { %2003 = vmatprep.subr.bf16.mxu1 %v6913_v24  ;;  %v7967_v24 = vpop.permute.xlu0 %1385 }
 0x19f   : > { %895 = vrot.lane.b32.xlu0 %v12830_v38, %s7259_s22  ;;  %v1329_v38 = vld [vmem:[#allocation2 + $0x90] sm:$0xff]  ;;  %v7932_v21 = vpop.permute.xlu1 %1370  ;;  %13209 = vst [vmem:[#allocation32_spill] sm:$0xff] %v7967_v24 }
 0x1a2   : > { %v7923_v10 = vpop.f32.mrb[52].mxu0 }
 0x1a3   : > { %13202 = vst [vmem:[#allocation25_spill] sm:$0xff] %v7923_v10  ;;  %v7925_v11 = vpop.f32.mrb[53].mxu0  ;;  %959 = vrot.lane.b32.xlu0 %v12834_v62, %s7259_s22  ;;  %v6915_v62 = vld [vmem:[%s12782_s3 + $0x90] ss:$8 sps:$4 sm:$0xff]   ;;  %v7960_v10 = vpop.permute.xlu1 %1380 }
 0x1a4   : > { %13203 = vst [vmem:[#allocation26_spill] sm:$0xff] %v7925_v11  ;;  %v7930_v17 = vpop.f32.mrb[54].mxu0  ;;  %2004 = vmatpush1.bf16.msra.mxu1 %v6915_v62  ;;  %13207 = vst [vmem:[#allocation30_spill] sm:$0xff] %v7960_v10 }
 0x1a5   : > { %v7937_v9 = vpop.f32.mrb[55].mxu0  ;;  %2005 = vmatprep.subr.bf16.mxu1 %v6916_v56  ;;  %v6921_v56 = vld [vmem:[%s12782_s3 + $0xb0] ss:$8 sps:$4 sm:$0xff]  }
 0x1a7   : > { %1435 = vperm.xlu0 %6636, %v1329_v38   ;;  %v7994_v50 = vpop.permute.xlu1 %1390 }
 0x1a8   : > { %2006 = vmatpush1.bf16.msra.mxu1 %v6918_v2  ;;  %v7992_v2 = vadd.f32 %v7867_v44, %v7545_v3  ;;  %13214 = vst [vmem:[#allocation36_spill] sm:$0xff] %v7994_v50  ;;  %v8009_v44 = vadd.f32 %v7769_v31, %v7552_v5  ;;  %v8033_v50 = vadd.f32 %v7803_v22, %v7552_v5 }
 0x1a9   : > { %2007 = vmatprep.subr.bf16.mxu1 %v6919_v60 }
 0x1aa   : > { %v7958_v11 = vpop.f32.mrb[56].mxu0  ;;  %13213 = vst [vmem:[#allocation35_spill] sm:$0xff] %v7992_v2  ;;  %13218 = vst [vmem:[#allocation40_spill] sm:$0xff] %v8009_v44  ;;  %v13227_v39 = vmax.f32 %v7992_v2, 0.0  ;;  %v13230_v2 = vmax.f32 %v7558_v8, 0.0 }
 0x1ab   : > { %13206 = vst [vmem:[#allocation29_spill] sm:$0xff] %v7958_v11  ;;  %v7962_v38 = vpop.f32.mrb[57].mxu0  ;;  %899 = vrot.lane.b32.xlu0 %v12838_v35, %s7259_s22  ;;  %v7981_v35 = vand.u32 127, %v13210_v34  ;;  %v8001_v34 = vadd.f32 %v7767_v29, %v7545_v3  ;;  %v8017_v29 = vadd.f32 %v7783_v45, %v7552_v5  ;;  %13224 = vst [vmem:[#allocation46_spill] sm:$0xff] %v8033_v50 }
 0x1ac   : > { %13208 = vst [vmem:[#allocation31_spill] sm:$0xff] %v7962_v38  ;;  %v7972_v62 = vpop.f32.mrb[58].mxu0  ;;  %v7988_v38 = vadd.f32 %v7747_v54, %v7552_v5  ;;  %2008 = vmatpush1.bf16.msra.mxu1 %v6921_v56  ;;  %v8013_v56 = vadd.f32 %v7781_v63, %v7545_v3  ;;  %v8029_v63 = vadd.f32 %v7795_v46, %v7545_v3 }
 0x1ad   : > { %v7975_v11 = vpop.f32.mrb[59].mxu0  ;;  %13211 = vst [vmem:[#allocation33_spill] sm:$0xff] %v7981_v35  ;;  %vm987_vm0 = vcmp.lt.s32.totalorder %v7981_v35, 112  ;;  %13216 = vst [vmem:[#allocation38_spill] sm:$0xff] %v8001_v34  ;;  %v8045_v46 = vadd.f32 %v7825_v1, %v7545_v3  ;;  %v8061_v1 = vadd.f32 %v7827_v57, %v7552_v5 }
 0x1ae   : > { %13212 = vst [vmem:[#allocation34_spill] sm:$0xff] %v7988_v38  ;;  %13219 = vst [vmem:[#allocation41_spill] sm:$0xff] %v8013_v56 }
 0x1af   : > { %963 = vrot.lane.b32.xlu0 %v12842_v42, %s7259_s22  ;;  %13220 = vst [vmem:[#allocation42_spill] sm:$0xff] %v8017_v29  ;;  %13223 = vst [vmem:[#allocation45_spill] sm:$0xff] %v8029_v63 }
 0x1b0   : > { %13225 = vst [vmem:[#allocation47_spill] sm:$0xff] %v8045_v46  ;;  %13228 = vst [vmem:[#allocation49_spill] sm:$0xff] %v8061_v1 }
 0x1b1   : > { %v858_v24 = vpop.permute.xlu0 %857 }
 0x1b2   : > { %v7996_v60 = vpop.f32.mrb[60].mxu0 }
 0x1b3   : > { %13215 = vst [vmem:[#allocation37_spill] sm:$0xff] %v7996_v60  ;;  %v8003_v42 = vpop.f32.mrb[61].mxu0  ;;  %1445 = vperm.xlu0 %6636, %v1331_v6   ;;  %v8022_v6 = vadd.f32 %v7870_v32, %v7552_v5 }
 0x1b4   : > { %13217 = vst [vmem:[#allocation39_spill] sm:$0xff] %v8003_v42  ;;  %v788_v52 = vpop.f32.mrb[62].mxu0  ;;  %v924_v22 = vpop.permute.xlu1 %923 }
 0x1b5   : > { %13221 = vst [vmem:[#allocation43_spill] sm:$0xff] %v8022_v6  ;;  %v8025_v54 = vadd.f32 %v788_v52, %v7545_v3  ;;  %v790_v31 = vpop.f32.mrb[63].mxu0  ;;  %v922_v60 = vpop.permute.xlu0 %921  ;;  %v6922_v52 = vld [vmem:[%s12782_s3 + $0xc4] ss:$8 sps:$4 sm:$0xff]  }
 0x1b6   : > { %v988_v45 = vsel %vm987_vm0, %v858_v24, %v922_v60  ;;  %v1020_v32 = vsel %vm987_vm0, %v922_v60, %v858_v24  ;;  %v8049_v25 = vadd.f32 %v790_v31, %v7552_v5  ;;  %v6924_v24 = vld [vmem:[%s12782_s3 + $0xc0] ss:$8 sps:$4 sm:$0xff]   ;;  %v8065_v31 = vadd.f32 %v7853_v40, %v7545_v3  ;;  %2009 = vmatprep.subr.bf16.mxu1 %v6922_v52 }
 0x1b7   : > { %13222 = vst [vmem:[#allocation44_spill] sm:$0xff] %v8025_v54  ;;  %903 = vrot.lane.b32.xlu0 %v13227_v39, %s7259_s22  ;;  %v12851_v39 = vmax.f32 %v8022_v6, 0.0  ;;  %v8071_v30 = vmax.f32 %v13230_v2, %v988_v45  ;;  %v13232_v60 = vmax.f32 %v7565_v13, 0.0  ;;  %v13234_v57 = vmax.f32 %v8025_v54, 0.0  ;;  %2010 = vmatpush1.bf16.msra.mxu1 %v6924_v24  ;;  %v6925_v13 = vld [vmem:[%s12782_s3 + $0xd4] ss:$8 sps:$4 sm:$0xff]  }
 0x1b8   : > { %13226 = vst [vmem:[#allocation48_spill] sm:$0xff] %v8049_v25  ;;  %13229 = vst [vmem:[#allocation50_spill] sm:$0xff] %v8065_v31  ;;  %v12852_v45 = vmax.f32 %v8049_v25, 0.0  ;;  %2011 = vmatprep.subr.bf16.mxu1 %v6925_v13  ;;  %v6930_v13 = vld [vmem:[%s12782_s3 + $0xe0] ss:$8 sps:$4 sm:$0xff]   ;;  %v8134_v52 = vadd.f32 %v7930_v17, %v7545_v3  ;;  %v13241_v6 = vmax.f32 %v7591_v23, 0.0  ;;  %v8162_v25 = vadd.f32 %v7937_v9, %v7552_v5 }
 0x1b9   : > { %13231 = vst [vmem:[#allocation51_spill] sm:$0xff] %v8071_v30  ;;  %v8075_v42 = vmax.f32 %v13232_v60, %v1020_v32  ;;  %919 = vrot.lane.b32.xlu1 %v13234_v57, %s7259_s22  ;;  %v860_v10 = vpop.permute.xlu0 %859  ;;  %v13235_v32 = vmax.f32 %v7582_v20, 0.0  ;;  %v13236_v60 = vmax.f32 %v7571_v16, 0.0  ;;  %v8109_v20 = vadd.f32 %v7860_v0, %v7552_v5 }
 0x1ba   : > { %v989_v36 = vsel %vm987_vm0, %v860_v10, %v924_v22  ;;  %v1021_v8 = vsel %vm987_vm0, %v924_v22, %v860_v10  ;;  %v6927_v10 = vld [vmem:[%s12782_s3 + $0xd0] ss:$8 sps:$4 sm:$0xff]   ;;  %v8113_v16 = vadd.f32 %v7898_v12, %v7545_v3  ;;  %v8130_v22 = vadd.f32 %v7904_v47, %v7552_v5  ;;  %13240 = vst [vmem:[#allocation56_spill] sm:$0xff] %v8134_v52 }
 0x1bb   : > { %13233 = vst [vmem:[#allocation52_spill] sm:$0xff] %v8075_v42  ;;  %v8093_v24 = vmax.f32 %v13235_v32, %v989_v36  ;;  %v8097_v57 = vmax.f32 %v13236_v60, %v1021_v8  ;;  %967 = vrot.lane.b32.xlu0 %v12851_v39, %s7259_s22  ;;  %13237 = vst [vmem:[#allocation53_spill] sm:$0xff] %v8109_v20  ;;  %v1333_v36 = vld [vmem:[#allocation2 + $0xb0] sm:$0xff]  ;;  %v6928_v8 = vld [vmem:[%s12782_s3 + $0xe4] ss:$8 sps:$4 sm:$0xff]   ;;  %v12855_v32 = vrot.slane %v8071_v30, 1  ;;  %v862_v39 = vpop.permute.xlu1 %861  ;;  %2012 = vmatpush1.bf16.msra.mxu1 %v6927_v10 }
 0x1bc   : > { %13238 = vst [vmem:[#allocation54_spill] sm:$0xff] %v8113_v16  ;;  %v12857_v60 = vrot.slane %v8075_v42, 1  ;;  %13239 = vst [vmem:[#allocation55_spill] sm:$0xff] %v8130_v22  ;;  %2013 = vmatprep.subr.bf16.mxu1 %v6928_v8  ;;  %v6931_v10 = vld [vmem:[%s12782_s3 + $0xf4] ss:$8 sps:$4 sm:$0xff]   ;;  %v13242_v8 = vmax.f32 %v7599_v28, 0.0  ;;  %v8173_v28 = vadd.f32 %v7975_v11, %v7552_v5  ;;  %v8186_v11 = vadd.f32 %v7885_v19, %v7545_v3 }
 0x1bd   : > { %v1118_v2 = vrot.slane %v8093_v24, 1  ;;  %v1119_v0 = vrot.slane %v8097_v57, 1  ;;  %983 = vrot.lane.b32.xlu1 %v12852_v45, %s7259_s22  ;;  %v926_v12 = vpop.permute.xlu0 %925  ;;  %13243 = vst [vmem:[#allocation57_spill] sm:$0xff] %v8162_v25  ;;  %v13246_v9 = vmax.f32 %v7988_v38, 0.0 }
 0x1be   : > { %v990_v40 = vsel %vm987_vm0, %v862_v39, %v926_v12  ;;  %v1022_v45 = vsel %vm987_vm0, %v926_v12, %v862_v39  ;;  %13245 = vst [vmem:[#allocation59_spill] sm:$0xff] %v8173_v28  ;;  %13247 = vst [vmem:[#allocation60_spill] sm:$0xff] %v8186_v11 }
 0x1bf   : > { %v1243_v47 = vsel %vm1182_vm1, %v12855_v32, %v1118_v2  ;;  %v1244_v17 = vsel %vm1182_vm1, %v12857_v60, %v1119_v0  ;;  %v8154_v39 = vmax.f32 %v13241_v6, %v990_v40  ;;  %v8158_v12 = vmax.f32 %v13242_v8, %v1022_v45  ;;  %1455 = vperm.xlu0 %6636, %v1333_v36   ;;  %v6933_v36 = vld [vmem:[%s12782_s3 + $0xf0] ss:$8 sps:$4 sm:$0xff]  }
 0x1c0   : > { %v8166_v32 = vadd.f32 %v7972_v62, %v7545_v3  ;;  %v1247_v54 = vmax.f32 %v8071_v30, %v1243_v47  ;;  %v1248_v60 = vmax.f32 %v8075_v42, %v1244_v17  ;;  %2014 = vmatpush1.bf16.msra.mxu1 %v6930_v13 }
 0x1c1   : > { %v12858_v6 = vrot.slane %v8154_v39, 1  ;;  %v12860_v40 = vrot.slane %v8158_v12, 1  ;;  %945 = vrot.lane.b32.xlu1 %v13246_v9, %s7259_s22  ;;  %v866_v62 = vpop.permute.xlu1 %865  ;;  %v864_v45 = vpop.permute.xlu0 %863  ;;  %v1322_v9 = vld [vmem:[#allocation2 + $0x58] sm:$0xff]  ;;  %2015 = vmatprep.subr.bf16.mxu1 %v6931_v10 }
 0x1c2   : > { %13244 = vst [vmem:[#allocation58_spill] sm:$0xff] %v8166_v32  ;;  %v8189_v17 = vmul.f32 %v7865_v55, %v1247_v54  ;;  %v8192_v8 = vmul.f32 %v7865_v55, %v1248_v60  ;;  %v13250_v55 = vmax.f32 %v8113_v16, 0.0 }
 0x1c3   : > { %v1241_v47 = vsel %vm1182_vm1, %v1118_v2, %v12858_v6  ;;  %v1242_v19 = vsel %vm1182_vm1, %v1119_v0, %v12860_v40 }
 0x1c4   : > { %13248 = vst [vmem:[#allocation61_spill] sm:$0xff] %v8189_v17  ;;  %13249 = vst [vmem:[#allocation62_spill] sm:$0xff] %v8192_v8  ;;  %907 = vrot.lane.b32.xlu0 %v13250_v55, %s7259_s22  ;;  %v1249_v10 = vmax.f32 %v8093_v24, %v1241_v47  ;;  %v1250_v23 = vmax.f32 %v8097_v57, %v1242_v19  ;;  %v12861_v38 = vrot.slane %v8192_v8, 4  ;;  %v12862_v0 = vrot.slane %v8189_v17, 4 }
 0x1c5   : > { %1400 = vperm.xlu1 %6637, %v1322_v9   ;;  %v930_v2 = vpop.permute.xlu1 %929  ;;  %v928_v6 = vpop.permute.xlu0 %927  ;;  %2016 = vmatpush1.bf16.msra.mxu1 %v6933_v36  ;;  %v13253_v47 = vmax.f32 %v7624_v37, 0.0  ;;  %v13254_v36 = vmax.f32 %v7635_v43, 0.0  ;;  %v13257_v37 = vmax.f32 %v7631_v41, 0.0 }
 0x1c6   : > { %v8216_v54 = vmul.f32 %v7855_v48, %v1249_v10  ;;  %v8219_v60 = vmul.f32 %v7855_v48, %v1250_v23  ;;  %v992_v24 = vsel %vm987_vm0, %v866_v62, %v930_v2  ;;  %v1024_v57 = vsel %vm987_vm0, %v930_v2, %v866_v62 }
 0x1c7   : > { %v8227_v9 = vmax.f32 %v13253_v47, %v992_v24  ;;  %v8231_v19 = vmax.f32 %v13254_v36, %v1024_v57  ;;  %v991_v10 = vsel %vm987_vm0, %v864_v45, %v928_v6  ;;  %v1023_v48 = vsel %vm987_vm0, %v928_v6, %v864_v45  ;;  %v1335_v47 = vld [vmem:[#allocation2 + $0xc0] sm:$0xff] }
 0x1c8   : > { %13251 = vst [vmem:[#allocation63_spill] sm:$0xff] %v8216_v54  ;;  %13252 = vst [vmem:[#allocation64_spill] sm:$0xff] %v8219_v60  ;;  %v13255_v23 = vmax.f32 %v8130_v22, 0.0  ;;  %v13256_v62 = vmax.f32 %v7615_v33, 0.0  ;;  %v1059_v24 = vmax.f32 %v13257_v37, %v1023_v48  ;;  %v1635_v43 = vrot.slane %v8219_v60, 4 }
 0x1c9   : > { %v1634_v57 = vrot.slane %v8216_v54, 4  ;;  %v1124_v36 = vrot.slane %v8227_v9, 1  ;;  %v1125_v55 = vrot.slane %v8231_v19, 1  ;;  %v13258_v6 = vmax.f32 %v8001_v34, 0.0  ;;  %v870_v45 = vpop.permute.xlu1 %869 }
 0x1ca   : > { %971 = vrot.lane.b32.xlu0 %v13255_v23, %s7259_s22  ;;  %v1058_v2 = vmax.f32 %v13256_v62, %v991_v10  ;;  %v868_v23 = vpop.permute.xlu0 %867  ;;  %v1123_v48 = vrot.slane %v1059_v24, 1  ;;  %v8259_v62 = vsel %vm1696_vm2, %v12861_v38, %v1635_v43  ;;  %v13262_v34 = vmax.f32 %v8009_v44, 0.0 }
 0x1cb   : > { %885 = vrot.lane.b32.xlu1 %v13258_v6, %s7259_s22  ;;  %v8266_v6 = vsel %vm1696_vm2, %v12862_v0, %v1634_v57  ;;  %v13261_v0 = vrot.slane %v8158_v12, 1 }
 0x1cc   : > { %v1122_v10 = vrot.slane %v1058_v2, 1  ;;  %13259 = vst [vmem:[#allocation65_spill] sm:$0xff] %v8266_v6  ;;  %v1238_v38 = vsel %vm1182_vm1, %v1123_v48, %v1125_v55 }
 0x1cd   : > { %v1240_v33 = vsel %vm1182_vm1, %v13261_v0, %v1123_v48  ;;  %v1254_v16 = vmax.f32 %v1059_v24, %v1238_v38  ;;  %v934_v42 = vpop.permute.xlu1 %933  ;;  %v13268_v24 = vmax.f32 %v7661_v53, 0.0 }
 0x1ce   : > { %1465 = vperm.xlu0 %6636, %v1335_v47   ;;  %v1237_v40 = vsel %vm1182_vm1, %v1122_v10, %v1124_v36  ;;  %v13260_v47 = vrot.slane %v8154_v39, 1  ;;  %v1252_v13 = vmax.f32 %v8158_v12, %v1240_v33  ;;  %v932_v30 = vpop.permute.xlu0 %931  ;;  %v1324_v12 = vld [vmem:[#allocation2 + $0x68] sm:$0xff] }
 0x1cf   : > { %v1253_v22 = vmax.f32 %v1058_v2, %v1237_v40  ;;  %949 = vrot.lane.b32.xlu1 %v13262_v34, %s7259_s22  ;;  %v993_v0 = vsel %vm987_vm0, %v868_v23, %v932_v30  ;;  %v8306_v2 = vmul.f32 %v7909_v27, %v1254_v16 }
 0x1d0   : > { %v1239_v37 = vsel %vm1182_vm1, %v13260_v47, %v1122_v10  ;;  %v994_v10 = vsel %vm987_vm0, %v870_v45, %v934_v42  ;;  %v1026_v47 = vsel %vm987_vm0, %v934_v42, %v870_v45  ;;  %v8300_v34 = vmul.f32 %v7883_v26, %v1252_v13 }
 0x1d1   : > { %v1251_v41 = vmax.f32 %v8154_v39, %v1239_v37  ;;  %v1025_v39 = vsel %vm987_vm0, %v932_v30, %v868_v23  ;;  %v8303_v40 = vmul.f32 %v7909_v27, %v1253_v22  ;;  %13266 = vst [vmem:[#allocation69_spill] sm:$0xff] %v8306_v2  ;;  %v13267_v42 = vmax.f32 %v8134_v52, 0.0  ;;  %v874_v27 = vpop.permute.xlu1 %873 }
 0x1d2   : > { %13264 = vst [vmem:[#allocation67_spill] sm:$0xff] %v8300_v34  ;;  %v8313_v30 = vmax.f32 %v13268_v24, %v994_v10  ;;  %v13269_v45 = vmax.f32 %v7675_v61, 0.0  ;;  %v13271_v22 = vmax.f32 %v7671_v58, 0.0  ;;  %v872_v16 = vpop.permute.xlu0 %871  ;;  %v1639_v53 = vrot.slane %v8306_v2, 4 }
 0x1d3   : > { %v8297_v38 = vmul.f32 %v7883_v26, %v1251_v41  ;;  %13265 = vst [vmem:[#allocation68_spill] sm:$0xff] %v8303_v40  ;;  %911 = vrot.lane.b32.xlu0 %v13267_v42, %s7259_s22  ;;  %v13270_v26 = vmax.f32 %v7652_v49, 0.0  ;;  %1410 = vperm.xlu1 %6637, %v1324_v12   ;;  %v1637_v41 = vrot.slane %v8300_v34, 4  ;;  %v1638_v37 = vrot.slane %v8303_v40, 4 }
 0x1d4   : > { %v8317_v23 = vmax.f32 %v13269_v45, %v1026_v47  ;;  %v1063_v33 = vmax.f32 %v13271_v22, %v1025_v39  ;;  %v1128_v61 = vrot.slane %v8313_v30, 1  ;;  %v13272_v58 = vmax.f32 %v8162_v25, 0.0 }
 0x1d5   : > { %13263 = vst [vmem:[#allocation66_spill] sm:$0xff] %v8297_v38  ;;  %v1062_v13 = vmax.f32 %v13270_v26, %v993_v0  ;;  %v1636_v48 = vrot.slane %v8297_v38, 4  ;;  %v8334_v0 = vsel %vm1696_vm2, %v1635_v43, %v1637_v41  ;;  %v8342_v12 = vsel %vm1696_vm2, %v1637_v41, %v1639_v53  ;;  %v1337_v26 = vld [vmem:[#allocation2 + $0xd0] sm:$0xff]  ;;  %v938_v52 = vpop.permute.xlu1 %937 }
 0x1d6   : > { %v1129_v10 = vrot.slane %v8317_v23, 1  ;;  %v1127_v47 = vrot.slane %v1063_v33, 1  ;;  %v13273_v25 = vmax.f32 %v8013_v56, 0.0  ;;  %v936_v44 = vpop.permute.xlu0 %935 }
 0x1d7   : > { %v1126_v49 = vrot.slane %v1062_v13, 1  ;;  %975 = vrot.lane.b32.xlu0 %v13272_v58, %s7259_s22  ;;  %v8338_v39 = vsel %vm1696_vm2, %v1634_v57, %v1636_v48  ;;  %v8346_v42 = vsel %vm1696_vm2, %v1636_v48, %v1638_v37 }
 0x1d8   : > { %v1234_v45 = vsel %vm1182_vm1, %v1127_v47, %v1129_v10  ;;  %v1236_v57 = vsel %vm1182_vm1, %v1125_v55, %v1127_v47  ;;  %889 = vrot.lane.b32.xlu1 %v13273_v25, %s7259_s22  ;;  %v996_v55 = vsel %vm987_vm0, %v874_v27, %v938_v52 }
 0x1d9   : > { %v1233_v24 = vsel %vm1182_vm1, %v1126_v49, %v1128_v61  ;;  %v1235_v43 = vsel %vm1182_vm1, %v1124_v36, %v1126_v49  ;;  %v1256_v41 = vmax.f32 %v8231_v19, %v1236_v57  ;;  %v1258_v48 = vmax.f32 %v1063_v33, %v1234_v45  ;;  %v6936_v36 = vld [vmem:[%s12782_s3 + $0x204] ss:$8 sps:$4 sm:$0xff]  }
 0x1da   : > { %v1255_v22 = vmax.f32 %v8227_v9, %v1235_v43  ;;  %v1257_v58 = vmax.f32 %v1062_v13, %v1233_v24  ;;  %v1028_v9 = vsel %vm987_vm0, %v938_v52, %v874_v27  ;;  %v3754_v19 = vpack.c.bf16 %v8334_v0, %v8259_v62  ;;  %2338 = vmatprep.subr.bf16.mxu1 %v6936_v36 }
 0x1db   : > { %v995_v13 = vsel %vm987_vm0, %v872_v16, %v936_v44  ;;  %v8376_v33 = vmul.f32 %v7917_v15, %v1256_v41  ;;  %v8382_v47 = vmul.f32 %v7932_v21, %v1258_v48  ;;  %1475 = vperm.xlu0 %6636, %v1337_v26   ;;  %v13278_v52 = vmax.f32 %v7689_v7, 0.0  ;;  %v876_v41 = vpop.permute.xlu0 %875 }
 0x1dc   : > { %v8373_v25 = vmul.f32 %v7917_v15, %v1255_v22  ;;  %v8379_v49 = vmul.f32 %v7932_v21, %v1257_v58  ;;  %v13279_v24 = vmax.f32 %v7703_v18, 0.0  ;;  %4010 = vmatprep.mubr.bf16.mxu0 %v3754_v19  ;;  %v1027_v15 = vsel %vm987_vm0, %v936_v44, %v872_v16  ;;  %v878_v18 = vpop.permute.xlu1 %877  ;;  %v1326_v16 = vld [vmem:[#allocation2 + $0x78] sm:$0xff] }
 0x1dd   : > { %13275 = vst [vmem:[#allocation71_spill] sm:$0xff] %v8376_v33  ;;  %13277 = vst [vmem:[#allocation73_spill] sm:$0xff] %v8382_v47  ;;  %v8386_v27 = vmax.f32 %v13278_v52, %v996_v55  ;;  %v13280_v43 = vmax.f32 %v7686_v4, 0.0  ;;  %v13281_v22 = vmax.f32 %v7699_v14, 0.0  ;;  %v3753_v26 = vpack.c.bf16 %v8338_v39, %v8266_v6 }
 0x1de   : > { %13274 = vst [vmem:[#allocation70_spill] sm:$0xff] %v8373_v25  ;;  %13276 = vst [vmem:[#allocation72_spill] sm:$0xff] %v8379_v49  ;;  %v8390_v45 = vmax.f32 %v13279_v24, %v1028_v9  ;;  %v13282_v7 = vmax.f32 %v8017_v29, 0.0  ;;  %v1641_v58 = vrot.slane %v8376_v33, 4  ;;  %v1640_v48 = vrot.slane %v8373_v25, 4 }
 0x1df   : > { %v1066_v57 = vmax.f32 %v13280_v43, %v995_v13  ;;  %v1067_v21 = vmax.f32 %v13281_v22, %v1027_v15  ;;  %v1132_v4 = vrot.slane %v8386_v27, 1  ;;  %v1643_v55 = vrot.slane %v8382_v47, 4  ;;  %4011 = vmatmul.mubr.bf16.vlgmr.msra.gmra.mrb[64].mxu0 %v3753_v26 }
 0x1e0   : > { %953 = vrot.lane.b32.xlu1 %v13282_v7, %s7259_s22  ;;  %v1133_v44 = vrot.slane %v8390_v45, 1  ;;  %v13283_v19 = vmax.f32 %v8166_v32, 0.0  ;;  %v8413_v13 = vsel %vm1696_vm2, %v1639_v53, %v1641_v58  ;;  %v8417_v36 = vsel %vm1696_vm2, %v1638_v37, %v1640_v48  ;;  %v940_v32 = vpop.permute.xlu0 %939 }
 0x1e1   : > { %v1130_v14 = vrot.slane %v1066_v57, 1  ;;  %v1131_v9 = vrot.slane %v1067_v21, 1  ;;  %v1642_v52 = vrot.slane %v8379_v49, 4  ;;  %v3756_v43 = vpack.c.bf16 %v8413_v13, %v8342_v12 }
 0x1e2   : > { %915 = vrot.lane.b32.xlu0 %v13283_v19, %s7259_s22  ;;  %v3755_v22 = vpack.c.bf16 %v8417_v36, %v8346_v42  ;;  %v942_v19 = vpop.permute.xlu1 %941 }
 0x1e3   : > { %v1229_v24 = vsel %vm1182_vm1, %v1130_v14, %v1132_v4  ;;  %v1231_v15 = vsel %vm1182_vm1, %v1128_v61, %v1130_v14  ;;  %v1230_v53 = vsel %vm1182_vm1, %v1131_v9, %v1133_v44  ;;  %v1232_v37 = vsel %vm1182_vm1, %v1129_v10, %v1131_v9  ;;  %4020 = vmatprep.mubr.bf16.mxu0 %v3756_v43  ;;  %v13285_v10 = vld [vmem:[#allocation30_spill] sm:$0xff] }
 0x1e4   : > { %v1259_v26 = vmax.f32 %v8313_v30, %v1231_v15  ;;  %v1261_v7 = vmax.f32 %v1066_v57, %v1229_v24  ;;  %1420 = vperm.xlu1 %6637, %v1326_v16   ;;  %v1260_v61 = vmax.f32 %v8317_v23, %v1232_v37  ;;  %v1262_v14 = vmax.f32 %v1067_v21, %v1230_v53  ;;  %v13287_v30 = vld [vmem:[#allocation9_spill] sm:$0xff]  ;;  %v13289_v24 = vld [vmem:[#allocation11_spill] sm:$0xff]  ;;  %v1339_v37 = vld [vmem:[#allocation2 + $0xe0] sm:$0xff] }
 0x1e5   : > { %v998_v29 = vsel %vm987_vm0, %v878_v18, %v942_v19  ;;  %v1030_v56 = vsel %vm987_vm0, %v942_v19, %v878_v18  ;;  %v13288_v57 = vmax.f32 %v13287_v30, 0.0  ;;  %v13290_v23 = vmax.f32 %v13289_v24, 0.0 }
 0x1e6   : > { %v8439_v6 = vmul.f32 %v7939_v51, %v1259_v26  ;;  %v8442_v9 = vmul.f32 %v13285_v10, %v1261_v7  ;;  %v13291_v15 = vmax.f32 %v8173_v28, 0.0  ;;  %v8456_v18 = vmul.f32 %v7939_v51, %v1260_v61  ;;  %v13294_v7 = vld [vmem:[#allocation8_spill] sm:$0xff] }
 0x1e7   : > { %v8446_v16 = vmax.f32 %v13288_v57, %v998_v29  ;;  %v8450_v21 = vmax.f32 %v13290_v23, %v1030_v56  ;;  %v8459_v43 = vmul.f32 %v13285_v10, %v1262_v14  ;;  %v997_v53 = vsel %vm987_vm0, %v876_v41, %v940_v32  ;;  %v13296_v57 = vld [vmem:[#allocation10_spill] sm:$0xff]  ;;  %v880_v10 = vpop.permute.xlu0 %879  ;;  %4021 = vmatmul.mubr.bf16.gmra.mrb[68].mxu0 %v3755_v22 }
 0x1e8   : > { %13284 = vst [vmem:[#allocation74_spill] sm:$0xff] %v8439_v6  ;;  %13286 = vst [vmem:[#allocation30_spill] sm:$0xff] %v8442_v9  ;;  %979 = vrot.lane.b32.xlu0 %v13291_v15, %s7259_s22  ;;  %v1029_v29 = vsel %vm987_vm0, %v940_v32, %v876_v41  ;;  %v13295_v19 = vmax.f32 %v13294_v7, 0.0  ;;  %v13297_v51 = vmax.f32 %v13296_v57, 0.0  ;;  %v13298_v14 = vmax.f32 %v8029_v63, 0.0  ;;  %v1341_v57 = vld [vmem:[#allocation2 + $0xf0] sm:$0xff] }
 0x1e9   : > { %13292 = vst [vmem:[#allocation9_spill] sm:$0xff] %v8456_v18  ;;  %13293 = vst [vmem:[#allocation11_spill] sm:$0xff] %v8459_v43  ;;  %v12875_v56 = vrot.slane %v8446_v16, 1  ;;  %v12878_v26 = vrot.slane %v8450_v21, 1  ;;  %v1645_v24 = vrot.slane %v8456_v18, 4  ;;  %v8477_v32 = vsel %vm1696_vm2, %v1641_v58, %v1643_v55 }
 0x1ea   : > { %v1070_v30 = vmax.f32 %v13295_v19, %v997_v53  ;;  %v1071_v61 = vmax.f32 %v13297_v51, %v1029_v29  ;;  %893 = vrot.lane.b32.xlu1 %v13298_v14, %s7259_s22  ;;  %v1644_v41 = vrot.slane %v8439_v6, 4  ;;  %v8482_v23 = vsel %vm1696_vm2, %v1640_v48, %v1642_v52 }
 0x1eb   : > { %v1647_v29 = vrot.slane %v8459_v43, 4  ;;  %v1646_v7 = vrot.slane %v8442_v9, 4  ;;  %v8488_v19 = vsel %vm1696_vm2, %v1643_v55, %v1645_v24  ;;  %v13300_v14 = vmax.f32 %v8033_v50, 0.0  ;;  %v944_v22 = vpop.permute.xlu0 %943 }
 0x1ec   : > { %v1134_v15 = vrot.slane %v1070_v30, 1  ;;  %v1135_v53 = vrot.slane %v1071_v61, 1  ;;  %1485 = vperm.xlu0 %6636, %v1339_v37   ;;  %v8492_v58 = vsel %vm1696_vm2, %v1642_v52, %v1644_v41  ;;  %v2544_v50 = vrot.slane %v8456_v18, 6 }
 0x1ed   : > { %13299 = vst [vmem:[#allocation8_spill] sm:$0xff] %v8492_v58 }
 0x1ee   : > { %v1225_v37 = vsel %vm1182_vm1, %v1134_v15, %v12875_v56  ;;  %v1226_v55 = vsel %vm1182_vm1, %v1135_v53, %v12878_v26  ;;  %v1227_v52 = vsel %vm1182_vm1, %v1132_v4, %v1134_v15  ;;  %v1228_v51 = vsel %vm1182_vm1, %v1133_v44, %v1135_v53  ;;  %957 = vrot.lane.b32.xlu1 %v13300_v14, %s7259_s22  ;;  %v1328_v26 = vld [vmem:[#allocation2 + $0x88] sm:$0xff]  ;;  %v13301_v14 = vld [vmem:[#allocation32_spill] sm:$0xff] }
 0x1ef   : > { %v1263_v48 = vmax.f32 %v8386_v27, %v1227_v52  ;;  %v1264_v56 = vmax.f32 %v8390_v45, %v1228_v51  ;;  %v1265_v63 = vmax.f32 %v1070_v30, %v1225_v37  ;;  %v1266_v28 = vmax.f32 %v1071_v61, %v1226_v55  ;;  %v13304_v30 = vld [vmem:[#allocation36_spill] sm:$0xff] }
 0x1f0   : > { %v3758_v4 = vpack.c.bf16 %v8488_v19, %v8477_v32  ;;  %v999_v44 = vsel %vm987_vm0, %v880_v10, %v944_v22  ;;  %v1031_v15 = vsel %vm987_vm0, %v944_v22, %v880_v10  ;;  %v3757_v53 = vpack.c.bf16 %v8492_v58, %v8482_v23  ;;  %1495 = vperm.xlu0 %6636, %v1341_v57   ;;  %v13307_v55 = vld [vmem:[#allocation12_spill] sm:$0xff]  ;;  %v13309_v22 = vld [vmem:[#allocation14_spill] sm:$0xff] }
 0x1f1   : > { %v8525_v27 = vmul.f32 %v13301_v14, %v1263_v48  ;;  %v8528_v45 = vmul.f32 %v13301_v14, %v1264_v56  ;;  %v8531_v61 = vmul.f32 %v13304_v30, %v1265_v63  ;;  %v8534_v37 = vmul.f32 %v13304_v30, %v1266_v28 }
 0x1f2   : > { %4030 = vmatprep.mubr.bf16.mxu0 %v3758_v4  ;;  %v13308_v52 = vmax.f32 %v13307_v55, 0.0  ;;  %v13310_v51 = vmax.f32 %v13309_v22, 0.0  ;;  %1430 = vperm.xlu1 %6637, %v1328_v26   ;;  %v8546_v56 = vsel %vm1696_vm2, %v1645_v24, %v1647_v29  ;;  %v2536_v63 = vrot.slane %v8300_v34, 6 }
 0x1f3   : > { %13302 = vst [vmem:[#allocation10_spill] sm:$0xff] %v8525_v27  ;;  %13303 = vst [vmem:[#allocation32_spill] sm:$0xff] %v8528_v45  ;;  %v1649_v48 = vrot.slane %v8528_v45, 4  ;;  %v1648_v28 = vrot.slane %v8525_v27, 4  ;;  %v8553_v4 = vsel %vm1696_vm2, %v1644_v41, %v1646_v7  ;;  %4031 = vmatmul.mubr.bf16.gmra.mrb[72].mxu0 %v3757_v53  ;;  %v12882_v24 = vrot.slane %v8531_v61, 4 }
 0x1f4   : > { %13305 = vst [vmem:[#allocation36_spill] sm:$0xff] %v8531_v61  ;;  %13306 = vst [vmem:[#allocation75_spill] sm:$0xff] %v8534_v37  ;;  %v8538_v10 = vmax.f32 %v13308_v52, %v999_v44  ;;  %v8542_v57 = vmax.f32 %v13310_v51, %v1031_v15  ;;  %v12879_v44 = vrot.slane %v8534_v37, 4  ;;  %v13314_v52 = vmax.f32 %v8045_v46, 0.0 }
 0x1f5   : > { %13311 = vst [vmem:[#allocation12_spill] sm:$0xff] %v8553_v4  ;;  %v8563_v30 = vsel %vm1696_vm2, %v1647_v29, %v1649_v48  ;;  %v8567_v41 = vsel %vm1696_vm2, %v1646_v7, %v1648_v28  ;;  %v13315_v22 = vrot.slane %v8446_v16, 1  ;;  %v13327_v46 = vrot.slane %v8216_v54, 6 }
 0x1f6   : > { %v12880_v15 = vrot.slane %v8538_v10, 1  ;;  %v12881_v26 = vrot.slane %v8542_v57, 1  ;;  %13312 = vst [vmem:[#allocation14_spill] sm:$0xff] %v8563_v30  ;;  %13313 = vst [vmem:[#allocation76_spill] sm:$0xff] %v8567_v41  ;;  %v8573_v55 = vsel %vm1696_vm2, %v1649_v48, %v12879_v44  ;;  %897 = vrot.lane.b32.xlu1 %v13314_v52, %s7259_s22  ;;  %v3760_v29 = vpack.c.bf16 %v8563_v30, %v8546_v56  ;;  %v1396_v58 = vpop.permute.xlu0 %1395 }
 0x1f7   : > { %v3759_v7 = vpack.c.bf16 %v8567_v41, %v8553_v4  ;;  %v13316_v48 = vrot.slane %v8450_v21, 1  ;;  %v8602_v44 = vsel %vm1696_vm2, %v1648_v28, %v12882_v24  ;;  %v2540_v24 = vrot.slane %v8376_v33, 6 }
 0x1f8   : > { %v1223_v51 = vsel %vm1182_vm1, %v13315_v22, %v12880_v15  ;;  %4040 = vmatprep.mubr.bf16.mxu0 %v3760_v29  ;;  %v13319_v29 = vrot.slane %v8192_v8, 6  ;;  %v1330_v15 = vld [vmem:[#allocation2 + $0x98] sm:$0xff]  ;;  %v13322_v22 = vrot.slane %v8189_v17, 6  ;;  %v2543_v4 = vrot.slane %v8439_v6, 6 }
 0x1f9   : > { %v1224_v52 = vsel %vm1182_vm1, %v13316_v48, %v12881_v26  ;;  %v1267_v53 = vmax.f32 %v8446_v16, %v1223_v51  ;;  %v13317_v48 = vmax.f32 %v8061_v1, 0.0  ;;  %v13318_v51 = vrot.slane %v8219_v60, 6 }
 0x1fa   : > { %v1268_v14 = vmax.f32 %v8450_v21, %v1224_v52  ;;  %v2538_v21 = vrot.slane %v8306_v2, 6  ;;  %v2542_v1 = vrot.slane %v8382_v47, 6 }
 0x1fb   : > { %961 = vrot.lane.b32.xlu1 %v13317_v48, %s7259_s22  ;;  %v8637_v52 = vsel %vm2595_vm3, %v13319_v29, %v13318_v51  ;;  %v13321_v48 = vrot.slane %v8216_v54, 6  ;;  %v13324_v28 = vmov %v13318_v51  ;;  %v2535_v51 = vrot.slane %v8297_v38, 6  ;;  %4041 = vmatmul.mubr.bf16.gmra.mrb[76].mxu0 %v3759_v7 }
 0x1fc   : > { %13320 = vst [vmem:[#allocation77_spill] sm:$0xff] %v8637_v52  ;;  %v8652_v26 = vsel %vm2595_vm3, %v13324_v28, %v2536_v63  ;;  %v2537_v29 = vrot.slane %v8303_v40, 6  ;;  %v2541_v7 = vrot.slane %v8379_v49, 6  ;;  %v8680_v30 = vsel %vm2595_vm3, %v2540_v24, %v2542_v1 }
 0x1fd   : > { %v8645_v16 = vsel %vm2595_vm3, %v13322_v22, %v13321_v48  ;;  %13325 = vst [vmem:[#allocation79_spill] sm:$0xff] %v8652_v26  ;;  %v2539_v22 = vrot.slane %v8373_v25, 6  ;;  %v8661_v48 = vsel %vm2595_vm3, %v2536_v63, %v2538_v21  ;;  %v8667_v28 = vsel %vm2595_vm3, %v13327_v46, %v2535_v51  ;;  %13330 = vst [vmem:[#allocation83_spill] sm:$0xff] %v8680_v30 }
 0x1fe   : > { %13323 = vst [vmem:[#allocation78_spill] sm:$0xff] %v8645_v16  ;;  %13326 = vst [vmem:[#allocation80_spill] sm:$0xff] %v8661_v48  ;;  %v8676_v63 = vsel %vm2595_vm3, %v2535_v51, %v2537_v29  ;;  %v8684_v46 = vsel %vm2595_vm3, %v2538_v21, %v2540_v24  ;;  %v8698_v26 = vmul.f32 %v1396_v58, %v1267_v53  ;;  %v2546_v21 = vrot.slane %v8459_v43, 6  ;;  %v8722_v24 = vpop.permute.xlu0 %883  ;;  %v13443_v16 = vld [vmem:[#allocation24_spill] sm:$0xff] }
 0x1ff   : > { %13328 = vst [vmem:[#allocation81_spill] sm:$0xff] %v8667_v28  ;;  %1440 = vperm.xlu1 %6637, %v1330_v15   ;;  %13329 = vst [vmem:[#allocation82_spill] sm:$0xff] %v8676_v63  ;;  %v8692_v41 = vsel %vm2595_vm3, %v2539_v22, %v2541_v7  ;;  %v8696_v51 = vsel %vm2595_vm3, %v2537_v29, %v2539_v22  ;;  %v8700_v48 = vmul.f32 %v1396_v58, %v1268_v14 }
 0x200   : > { %13331 = vst [vmem:[#allocation84_spill] sm:$0xff] %v8684_v46  ;;  %13332 = vst [vmem:[#allocation85_spill] sm:$0xff] %v8692_v41  ;;  %v8707_v15 = vsel %vm2595_vm3, %v2542_v1, %v2544_v50  ;;  %v2545_v46 = vrot.slane %v8442_v9, 6  ;;  %v2548_v29 = vrot.slane %v8528_v45, 6  ;;  %v13337_v53 = vmax.f32 %v8065_v31, 0.0 }
 0x201   : > { %13333 = vst [vmem:[#allocation86_spill] sm:$0xff] %v8696_v51  ;;  %13334 = vst [vmem:[#allocation87_spill] sm:$0xff] %v8698_v26  ;;  %v12898_v58 = vrot.slane %v8700_v48, 4  ;;  %v8719_v22 = vsel %vm2595_vm3, %v2544_v50, %v2546_v21  ;;  %v3144_v1 = vrot.slane %v8216_v54, 2  ;;  %v13341_v50 = vrot.slane %v8534_v37, 4 }
 0x202   : > { %13335 = vst [vmem:[#allocation88_spill] sm:$0xff] %v8700_v48  ;;  %13336 = vst [vmem:[#allocation89_spill] sm:$0xff] %v8707_v15  ;;  %v8728_v41 = vsel %vm2595_vm3, %v2543_v4, %v2545_v46  ;;  %v13342_v51 = vrot.slane %v8698_v26, 4  ;;  %v13343_v15 = vrot.slane %v8531_v61, 4  ;;  %v13352_v63 = vrot.slane %v8219_v60, 2 }
 0x203   : > { %901 = vrot.lane.b32.xlu1 %v13337_v53, %s7259_s22  ;;  %13338 = vst [vmem:[#allocation90_spill] sm:$0xff] %v8719_v22  ;;  %13339 = vst [vmem:[#allocation91_spill] sm:$0xff] %v8728_v41  ;;  %v8732_v53 = vsel %vm2595_vm3, %v2541_v7, %v2543_v4  ;;  %v8741_v30 = vsel %vm1696_vm2, %v13341_v50, %v12898_v58  ;;  %v8755_v7 = vsel %vm2595_vm3, %v2546_v21, %v2548_v29 }
 0x204   : > { %13340 = vst [vmem:[#allocation92_spill] sm:$0xff] %v8732_v53  ;;  %v8749_v22 = vsel %vm1696_vm2, %v13343_v15, %v13342_v51  ;;  %13344 = vst [vmem:[#allocation93_spill] sm:$0xff] %v8755_v7  ;;  %v3762_v14 = vpack.c.bf16 %v8741_v30, %v8573_v55  ;;  %v13345_v58 = vrot.slane %v8534_v37, 6  ;;  %v2547_v15 = vrot.slane %v8525_v27, 6  ;;  %v13347_v51 = vld [vmem:[#allocation23_spill] sm:$0xff] }
 0x205   : > { %v3761_v50 = vpack.c.bf16 %v8749_v22, %v8602_v44  ;;  %v8770_v4 = vadd.f32 %v13347_v51, %v7552_v5  ;;  %v13349_v21 = vmax.f32 %v8109_v20, 0.0  ;;  %v12906_v41 = vrot.slane %v8531_v61, 6 }
 0x206   : > { %v8765_v28 = vsel %vm2595_vm3, %v2548_v29, %v13345_v58  ;;  %4050 = vmatprep.mubr.bf16.mxu0 %v3762_v14  ;;  %v8779_v29 = vpop.permute.xlu0 %947  ;;  %v1332_v58 = vld [vmem:[#allocation2 + $0xa8] sm:$0xff]  ;;  %v8783_v54 = vsel %vm2595_vm3, %v2545_v46, %v2547_v15  ;;  %v3147_v51 = vrot.slane %v8300_v34, 2  ;;  %v12908_v20 = vrot.slane %v8189_v17, 2 }
 0x207   : > { %13346 = vst [vmem:[#allocation94_spill] sm:$0xff] %v8765_v28  ;;  %13348 = vst [vmem:[#allocation23_spill] sm:$0xff] %v8770_v4  ;;  %965 = vrot.lane.b32.xlu1 %v13349_v21, %s7259_s22  ;;  %v3146_v21 = vrot.slane %v8297_v38, 2  ;;  %4051 = vmatmul.mubr.bf16.gmra.mrb[80].mxu0 %v3761_v50  ;;  %v8792_v53 = vsel %vm2595_vm3, %v2547_v15, %v12906_v41  ;;  %v13353_v46 = vrot.slane %v8192_v8, 2  ;;  %v13356_v15 = vmov %v13352_v63 }
 0x208   : > { %13350 = vst [vmem:[#allocation95_spill] sm:$0xff] %v8783_v54  ;;  %13351 = vst [vmem:[#allocation96_spill] sm:$0xff] %v8792_v53  ;;  %v8808_v50 = vsel %vm3206_vm4, %v12908_v20, %v3144_v1  ;;  %v8814_v14 = vsel %vm3206_vm4, %v13356_v15, %v3147_v51  ;;  %v3148_v54 = vrot.slane %v8303_v40, 2  ;;  %v3150_v20 = vrot.slane %v8373_v25, 2  ;;  %v13394_v40 = vld [vmem:[#allocation48_spill] sm:$0xff] }
 0x209   : > { %v8802_v7 = vsel %vm3206_vm4, %v13353_v46, %v13352_v63  ;;  %13355 = vst [vmem:[#allocation98_spill] sm:$0xff] %v8808_v50  ;;  %13357 = vst [vmem:[#allocation99_spill] sm:$0xff] %v8814_v14  ;;  %v8818_v41 = vsel %vm3206_vm4, %v3144_v1, %v3146_v21  ;;  %v3149_v63 = vrot.slane %v8306_v2, 2  ;;  %v3151_v46 = vrot.slane %v8376_v33, 2 }
 0x20a   : > { %13354 = vst [vmem:[#allocation97_spill] sm:$0xff] %v8802_v7  ;;  %13358 = vst [vmem:[#allocation100_spill] sm:$0xff] %v8818_v41  ;;  %v8824_v53 = vpop.permute.xlu0 %1405  ;;  %v3155_v7 = vrot.slane %v8456_v18, 2  ;;  %v3152_v15 = vrot.slane %v8379_v49, 2  ;;  %v13361_v50 = vmax.f32 %v8186_v11, 0.0  ;;  %v3154_v33 = vrot.slane %v8439_v6, 2 }
 0x20b   : > { %1450 = vperm.xlu1 %6637, %v1332_v58   ;;  %v8832_v1 = vsel %vm3206_vm4, %v3149_v63, %v3151_v46  ;;  %v8836_v28 = vsel %vm3206_vm4, %v3147_v51, %v3149_v63  ;;  %v3153_v58 = vrot.slane %v8382_v47, 2  ;;  %v8850_v51 = vsel %vm3206_vm4, %v3148_v54, %v3150_v20  ;;  %v13408_v11 = vld [vmem:[#allocation16_spill] sm:$0xff] }
 0x20c   : > { %13359 = vst [vmem:[#allocation101_spill] sm:$0xff] %v8832_v1  ;;  %13360 = vst [vmem:[#allocation102_spill] sm:$0xff] %v8836_v28  ;;  %v8854_v63 = vsel %vm3206_vm4, %v3146_v21, %v3148_v54  ;;  %v3157_v28 = vrot.slane %v8459_v43, 2  ;;  %v8872_v54 = vsel %vm3206_vm4, %v3150_v20, %v3152_v15  ;;  %v8878_v6 = vsel %vm3206_vm4, %v3152_v15, %v3154_v33  ;;  %v882_v43 = vpop.permute.xlu1 %881 }
 0x20d   : > { %13362 = vst [vmem:[#allocation103_spill] sm:$0xff] %v8850_v51  ;;  %13363 = vst [vmem:[#allocation104_spill] sm:$0xff] %v8854_v63  ;;  %v8868_v14 = vsel %vm3206_vm4, %v3151_v46, %v3153_v58  ;;  %v3159_v41 = vrot.slane %v8528_v45, 2  ;;  %v3158_v20 = vrot.slane %v8525_v27, 2  ;;  %v3161_v51 = vrot.slane %v8534_v37, 2  ;;  %v13374_v46 = vld [vmem:[#allocation25_spill] sm:$0xff] }
 0x20e   : > { %v8858_v1 = vpop.permute.xlu0 %887  ;;  %13365 = vst [vmem:[#allocation106_spill] sm:$0xff] %v8868_v14  ;;  %13366 = vst [vmem:[#allocation107_spill] sm:$0xff] %v8872_v54  ;;  %v8883_v63 = vsel %vm3206_vm4, %v3155_v7, %v3157_v28  ;;  %v13369_v21 = vmax.f32 %v8770_v4, 0.0  ;;  %v3160_v14 = vrot.slane %v8531_v61, 2  ;;  %v13395_v34 = vmax.f32 %v13394_v40, 0.0 }
 0x20f   : > { %905 = vrot.lane.b32.xlu1 %v13361_v50, %s7259_s22  ;;  %v8864_v50 = vsel %vm3206_vm4, %v3153_v58, %v3155_v7  ;;  %13367 = vst [vmem:[#allocation108_spill] sm:$0xff] %v8878_v6  ;;  %13368 = vst [vmem:[#allocation109_spill] sm:$0xff] %v8883_v63  ;;  %v3156_v58 = vrot.slane %v8442_v9, 2  ;;  %v8895_v15 = vsel %vm3206_vm4, %v3157_v28, %v3159_v41  ;;  %v1334_v6 = vld [vmem:[#allocation2 + $0xb8] sm:$0xff]  ;;  %v13409_v31 = vmax.f32 %v13408_v11, 0.0 }
 0x210   : > { %13364 = vst [vmem:[#allocation105_spill] sm:$0xff] %v8864_v50  ;;  %13370 = vst [vmem:[#allocation110_spill] sm:$0xff] %v8895_v15  ;;  %v8918_v7 = vadd.f32 %v13374_v46, %v7545_v3  ;;  %v13376_v50 = vrot.slane %v8700_v48, 2  ;;  %v8938_v46 = vsel %vm3206_vm4, %v3158_v20, %v3160_v14  ;;  %v13389_v9 = vld [vmem:[#allocation39_spill] sm:$0xff]  ;;  %v1001_v60 = vsel %vm987_vm0, %v8722_v24, %v8779_v29 }
 0x211   : > { %v8906_v27 = vsel %vm3206_vm4, %v3156_v58, %v3158_v20  ;;  %v8910_v28 = vsel %vm3206_vm4, %v3154_v33, %v3156_v58  ;;  %v13378_v58 = vrot.slane %v8698_v26, 2  ;;  %13380 = vst [vmem:[#allocation116_spill] sm:$0xff] %v8938_v46  ;;  %v13381_v33 = vld [vmem:[#allocation26_spill] sm:$0xff]  ;;  %v8991_v18 = vadd.f32 %v13389_v9, %v7552_v5 }
 0x212   : > { %v8900_v54 = vpop.permute.xlu0 %951  ;;  %13371 = vst [vmem:[#allocation111_spill] sm:$0xff] %v8906_v27  ;;  %13372 = vst [vmem:[#allocation112_spill] sm:$0xff] %v8910_v28  ;;  %v8926_v63 = vsel %vm3206_vm4, %v3161_v51, %v13376_v50  ;;  %v12930_v50 = vmax.f32 %v8918_v7, 0.0  ;;  %v13387_v27 = vld [vmem:[#allocation37_spill] sm:$0xff] }
 0x213   : > { %969 = vrot.lane.b32.xlu1 %v13369_v21, %s7259_s22  ;;  %v8914_v21 = vsel %vm3206_vm4, %v3159_v41, %v3161_v51  ;;  %13375 = vst [vmem:[#allocation25_spill] sm:$0xff] %v8918_v7  ;;  %13377 = vst [vmem:[#allocation114_spill] sm:$0xff] %v8926_v63  ;;  %v8934_v41 = vsel %vm3206_vm4, %v3160_v14, %v13378_v58  ;;  %v1336_v58 = vld [vmem:[#allocation2 + $0xc8] sm:$0xff]  ;;  %v8984_v15 = vadd.f32 %v13387_v27, %v7545_v3 }
 0x214   : > { %13373 = vst [vmem:[#allocation113_spill] sm:$0xff] %v8914_v21  ;;  %13379 = vst [vmem:[#allocation115_spill] sm:$0xff] %v8934_v41  ;;  %v8947_v21 = vadd.f32 %v13381_v33, %v7552_v5  ;;  %v13383_v51 = vld [vmem:[#allocation29_spill] sm:$0xff]  ;;  %v13385_v41 = vld [vmem:[#allocation31_spill] sm:$0xff]  ;;  %v12950_v25 = vmax.f32 %v8991_v18, 0.0 }
 0x215   : > { %v8962_v46 = vadd.f32 %v13383_v51, %v7545_v3  ;;  %v8969_v63 = vadd.f32 %v13385_v41, %v7552_v5  ;;  %13388 = vst [vmem:[#allocation37_spill] sm:$0xff] %v8984_v15  ;;  %13390 = vst [vmem:[#allocation39_spill] sm:$0xff] %v8991_v18  ;;  %v13400_v18 = vld [vmem:[#allocation52_spill] sm:$0xff] }
 0x216   : > { %v8940_v45 = vpop.permute.xlu0 %1415  ;;  %13382 = vst [vmem:[#allocation26_spill] sm:$0xff] %v8947_v21  ;;  %v12933_v14 = vmax.f32 %v8947_v21, 0.0  ;;  %v13404_v21 = vld [vmem:[#allocation34_spill] sm:$0xff] }
 0x217   : > { %1460 = vperm.xlu1 %6637, %v1334_v6   ;;  %13384 = vst [vmem:[#allocation29_spill] sm:$0xff] %v8962_v46  ;;  %13386 = vst [vmem:[#allocation31_spill] sm:$0xff] %v8969_v63  ;;  %v12941_v28 = vmax.f32 %v8969_v63, 0.0  ;;  %v13405_v7 = vmax.f32 %v13404_v21, 0.0 }
 0x21a   : > { %v8952_v6 = vpop.permute.xlu0 %891 }
 0x21b   : > { %909 = vrot.lane.b32.xlu1 %v12930_v50, %s7259_s22  ;;  %v12937_v50 = vmax.f32 %v8962_v46, 0.0 }
 0x21e   : > { %v8958_v20 = vpop.permute.xlu0 %955 }
 0x21f   : > { %973 = vrot.lane.b32.xlu1 %v12933_v14, %s7259_s22 }
 0x222   : > { %v8964_v33 = vpop.permute.xlu0 %1425 }
 0x223   : > { %1470 = vperm.xlu1 %6637, %v1336_v58   ;;  %v1338_v58 = vld [vmem:[#allocation2 + $0xd8] sm:$0xff] }
 0x226   : > { %v8974_v14 = vpop.permute.xlu0 %895 }
 0x227   : > { %913 = vrot.lane.b32.xlu1 %v12937_v50, %s7259_s22  ;;  %v12944_v50 = vmax.f32 %v8984_v15, 0.0  ;;  %v13402_v15 = vld [vmem:[#allocation13_spill] sm:$0xff] }
 0x228   : > { %v13403_v63 = vmax.f32 %v13402_v15, 0.0  ;;  %v12964_v15 = vrot.slane %v8700_v48, 6 }
 0x22a   : > { %v8980_v51 = vpop.permute.xlu0 %959 }
 0x22b   : > { %977 = vrot.lane.b32.xlu1 %v12941_v28, %s7259_s22  ;;  %v920_v3 = vpop.permute.xlu1 %919 }
 0x22e   : > { %v8986_v41 = vpop.permute.xlu0 %1435 }
 0x22f   : > { %1480 = vperm.xlu1 %6637, %v1338_v58   ;;  %v1340_v58 = vld [vmem:[#allocation2 + $0xe8] sm:$0xff]  ;;  %v984_v49 = vpop.permute.xlu1 %983 }
 0x230   : > { %v1019_v5 = vsel %vm987_vm0, %v920_v3, %v984_v49  ;;  %v1051_v9 = vsel %vm987_vm0, %v984_v49, %v920_v3  ;;  %v1033_v49 = vsel %vm987_vm0, %v8779_v29, %v8722_v24  ;;  %v13401_v24 = vrot.slane %v13400_v18, 1 }
 0x231   : > { %v9014_v2 = vmax.f32 %v13395_v34, %v1051_v9 }
 0x232   : > { %v8996_v28 = vpop.permute.xlu0 %899 }
 0x233   : > { %917 = vrot.lane.b32.xlu1 %v12944_v50, %s7259_s22  ;;  %v13391_v50 = vld [vmem:[#allocation44_spill] sm:$0xff]  ;;  %13396 = vst [vmem:[#allocation48_spill] sm:$0xff] %v9014_v2  ;;  %v946_v40 = vpop.permute.xlu1 %945 }
 0x234   : > { %v13392_v47 = vmax.f32 %v13391_v50, 0.0  ;;  %v12963_v50 = vrot.slane %v9014_v2, 1  ;;  %v1000_v34 = vsel %vm987_vm0, %v882_v43, %v946_v40  ;;  %v1032_v3 = vsel %vm987_vm0, %v946_v40, %v882_v43  ;;  %v13406_v40 = vld [vmem:[#allocation15_spill] sm:$0xff] }
 0x235   : > { %v1076_v46 = vmax.f32 %v13403_v63, %v1000_v34  ;;  %v1077_v43 = vmax.f32 %v13405_v7, %v1032_v3  ;;  %v1003_v63 = vsel %vm987_vm0, %v8858_v1, %v8900_v54  ;;  %v13410_v7 = vld [vmem:[#allocation21_spill] sm:$0xff] }
 0x236   : > { %v9002_v27 = vpop.permute.xlu0 %963  ;;  %v9010_v38 = vmax.f32 %v13392_v47, %v1019_v5  ;;  %v1246_v29 = vsel %vm1182_vm1, %v12963_v50, %v13401_v24  ;;  %v13417_v50 = vld [vmem:[#allocation18_spill] sm:$0xff] }
 0x237   : > { %981 = vrot.lane.b32.xlu1 %v12950_v25, %s7259_s22  ;;  %v1141_v21 = vrot.slane %v1077_v43, 1  ;;  %v13418_v24 = vmax.f32 %v13417_v50, 0.0  ;;  %v1037_v50 = vsel %vm987_vm0, %v8958_v20, %v8952_v6 }
 0x238   : > { %13393 = vst [vmem:[#allocation44_spill] sm:$0xff] %v9010_v38  ;;  %v12961_v47 = vrot.slane %v9010_v38, 1 }
 0x23a   : > { %v9016_v25 = vpop.permute.xlu0 %1445 }
 0x23b   : > { %1490 = vperm.xlu1 %6637, %v1340_v58   ;;  %13397 = vst [vmem:[#allocation117_spill] sm:$0xff] %v9016_v25  ;;  %v13398_v58 = vld [vmem:[#allocation51_spill] sm:$0xff] }
 0x23c   : > { %v13399_v5 = vrot.slane %v13398_v58, 1  ;;  %v13407_v58 = vmax.f32 %v13406_v40, 0.0  ;;  %v13413_v40 = vld [vmem:[#allocation17_spill] sm:$0xff] }
 0x23e   : > { %v1245_v9 = vsel %vm1182_vm1, %v12961_v47, %v13399_v5  ;;  %v9050_v4 = vmax.f32 %v13407_v58, %v1001_v60  ;;  %v9054_v5 = vmax.f32 %v13409_v31, %v1033_v49  ;;  %v1310_v47 = vmax.f32 %v9014_v2, %v1246_v29  ;;  %v9058_v25 = vpop.permute.xlu0 %903  ;;  %v6939_v2 = vld [vmem:[%s12782_s3 + $0x214] ss:$8 sps:$4 sm:$0xff]  }
 0x23f   : > { %v1309_v18 = vmax.f32 %v9010_v38, %v1245_v9  ;;  %v1140_v31 = vrot.slane %v1076_v46, 1  ;;  %v1035_v49 = vsel %vm987_vm0, %v8900_v54, %v8858_v1  ;;  %v13414_v58 = vmax.f32 %v13413_v40, 0.0 }
 0x240   : > { %v9069_v11 = vmul.f32 %v13410_v7, %v1310_v47  ;;  %v12965_v34 = vrot.slane %v9050_v4, 1  ;;  %v13415_v1 = vrot.slane %v8534_v37, 6  ;;  %v9095_v3 = vmax.f32 %v13418_v24, %v1035_v49 }
 0x241   : > { %v9066_v60 = vmul.f32 %v13410_v7, %v1309_v18  ;;  %v9081_v47 = vmax.f32 %v13414_v58, %v1003_v63  ;;  %v1005_v63 = vsel %vm987_vm0, %v8952_v6, %v8958_v20  ;;  %v13419_v58 = vrot.slane %v9054_v5, 1  ;;  %v6934_v18 = vld [vmem:[%s12782_s3 + $0x200] ss:$8 sps:$4 sm:$0xff]  }
 0x242   : > { %13412 = vst [vmem:[#allocation52_spill] sm:$0xff] %v9069_v11  ;;  %v968_v9 = vpop.permute.xlu0 %967  ;;  %v9091_v54 = vsel %vm2595_vm3, %v13415_v1, %v12964_v15  ;;  %v1219_v40 = vsel %vm1182_vm1, %v1140_v31, %v12965_v34  ;;  %v13420_v49 = vrot.slane %v8192_v8, 4  ;;  %v13421_v24 = vrot.slane %v9069_v11, 4 }
 0x243   : > { %13411 = vst [vmem:[#allocation51_spill] sm:$0xff] %v9066_v60  ;;  %v12966_v7 = vrot.slane %v9066_v60, 4  ;;  %13416 = vst [vmem:[#allocation13_spill] sm:$0xff] %v9091_v54  ;;  %v1220_v1 = vsel %vm1182_vm1, %v1141_v21, %v13419_v58  ;;  %v13423_v34 = vrot.slane %v8189_v17, 4  ;;  %v1007_v6 = vsel %vm987_vm0, %v8974_v14, %v8980_v51 }
 0x244   : > { %v9119_v15 = vsel %vm1696_vm2, %v13421_v24, %v13420_v49  ;;  %v1039_v20 = vsel %vm987_vm0, %v8980_v51, %v8974_v14  ;;  %v1271_v29 = vmax.f32 %v1076_v46, %v1219_v40  ;;  %v1272_v37 = vmax.f32 %v1077_v43, %v1220_v1 }
 0x245   : > { %13422 = vst [vmem:[#allocation34_spill] sm:$0xff] %v9119_v15  ;;  %v9127_v58 = vsel %vm1696_vm2, %v12966_v7, %v13423_v34  ;;  %v1762_v24 = vpack.c.bf16 %v8259_v62, %v9119_v15  ;;  %v13425_v34 = vld [vmem:[#allocation65_spill] sm:$0xff]  ;;  %v13426_v14 = vrot.slane %v8192_v8, 6  ;;  %v13427_v51 = vrot.slane %v9069_v11, 6  ;;  %v13441_v15 = vld [vmem:[#allocation22_spill] sm:$0xff] }
 0x246   : > { %13424 = vst [vmem:[#allocation15_spill] sm:$0xff] %v9127_v58  ;;  %v9138_v49 = vpop.permute.xlu0 %1455  ;;  %v1761_v7 = vpack.c.bf16 %v13425_v34, %v9127_v58  ;;  %v13429_v34 = vrot.slane %v8189_v17, 6  ;;  %v13430_v58 = vrot.slane %v9066_v60, 6  ;;  %v13432_v43 = vrot.slane %v8538_v10, 1  ;;  %v13434_v17 = vld [vmem:[#allocation19_spill] sm:$0xff] }
 0x247   : > { %v9156_v62 = vsel %vm2595_vm3, %v13427_v51, %v13426_v14  ;;  %2017 = vmatprep.mubr.bf16.mxu1 %v1762_v24  ;;  %v13433_v1 = vrot.slane %v8542_v57, 1  ;;  %v13436_v24 = vrot.slane %v8698_v26, 6  ;;  %v13442_v51 = vmax.f32 %v13441_v15, 0.0 }
 0x248   : > { %13428 = vst [vmem:[#allocation16_spill] sm:$0xff] %v9156_v62  ;;  %v9164_v46 = vsel %vm2595_vm3, %v13430_v58, %v13429_v34  ;;  %v1221_v40 = vsel %vm1182_vm1, %v13432_v43, %v1140_v31  ;;  %v13435_v58 = vmax.f32 %v13434_v17, 0.0  ;;  %v1009_v31 = vsel %vm987_vm0, %v8996_v28, %v9002_v27  ;;  %2018 = vmatmul.mubr.bf16.vlgmr.msra.gmra.mrb[0].mxu1 %v1761_v7 }
 0x249   : > { %13431 = vst [vmem:[#allocation21_spill] sm:$0xff] %v9164_v46  ;;  %v1222_v14 = vsel %vm1182_vm1, %v13433_v1, %v1141_v21  ;;  %v1041_v21 = vsel %vm987_vm0, %v9002_v27, %v8996_v28  ;;  %v13437_v43 = vrot.slane %v8531_v61, 6  ;;  %v9204_v46 = vmax.f32 %v13442_v51, %v1007_v6  ;;  %2339 = vmatpush1.bf16.msra.mxu1 %v6934_v18  ;;  %v13448_v51 = vld [vmem:[#allocation28_spill] sm:$0xff] }
 0x24a   : > { %v9180_v34 = vmax.f32 %v13435_v58, %v1005_v63  ;;  %v13439_v63 = vld [vmem:[#allocation20_spill] sm:$0xff]  ;;  %v13444_v62 = vmax.f32 %v13443_v16, 0.0  ;;  %v13445_v27 = vpack.c.bf16 %v8342_v12, %v8334_v0  ;;  %v908_v7 = vpop.permute.xlu0 %907  ;;  %v9220_v15 = vmul.f32 %v8824_v53, %v1272_v37  ;;  %2340 = vmatprep.subr.bf16.mxu1 %v6939_v2 }
 0x24b   : > { %v9196_v17 = vsel %vm2595_vm3, %v13437_v43, %v13436_v24  ;;  %v13440_v1 = vmax.f32 %v13439_v63, 0.0  ;;  %v6937_v24 = vld [vmem:[%s12782_s3 + $0x210] ss:$8 sps:$4 sm:$0xff]   ;;  %v1269_v16 = vmax.f32 %v8538_v10, %v1221_v40  ;;  %v1270_v6 = vmax.f32 %v8542_v57, %v1222_v14  ;;  %v6942_v0 = vld [vmem:[%s12782_s3 + $0x224] ss:$8 sps:$4 sm:$0xff]   ;;  %v1401_v10 = vpop.permute.xlu1 %1400 }
 0x24c   : > { %13438 = vst [vmem:[#allocation17_spill] sm:$0xff] %v9196_v17  ;;  %v9208_v28 = vmax.f32 %v13444_v62, %v1039_v20  ;;  %2027 = vmatprep.mubr.bf16.mxu1 %v13445_v27  ;;  %v13446_v20 = vld [vmem:[#allocation27_spill] sm:$0xff]  ;;  %v13449_v37 = vmax.f32 %v13448_v51, 0.0  ;;  %v1011_v2 = vsel %vm987_vm0, %v9058_v25, %v968_v9  ;;  %v1043_v57 = vsel %vm987_vm0, %v968_v9, %v9058_v25  ;;  %v6940_v27 = vld [vmem:[%s12782_s3 + $0x220] ss:$8 sps:$4 sm:$0xff]  }
 0x24d   : > { %v9200_v58 = vmax.f32 %v13440_v1, %v1037_v50  ;;  %v9217_v50 = vmul.f32 %v8824_v53, %v1271_v29  ;;  %v13447_v62 = vmax.f32 %v13446_v20, 0.0  ;;  %v9243_v40 = vmul.f32 %v1401_v10, %v1269_v16  ;;  %2341 = vmatpush1.bf16.msra.mxu1 %v6937_v24  ;;  %v6945_v20 = vld [vmem:[%s12782_s3 + $0x234] ss:$8 sps:$4 sm:$0xff]  }
 0x24e   : > { %v9235_v53 = vmax.f32 %v13449_v37, %v1041_v21  ;;  %v9245_v14 = vmul.f32 %v1401_v10, %v1270_v6  ;;  %v972_v1 = vpop.permute.xlu0 %971  ;;  %v12977_v9 = vrot.slane %v9220_v15, 4  ;;  %2342 = vmatprep.subr.bf16.mxu1 %v6942_v0  ;;  %v13452_v51 = vld [vmem:[#allocation35_spill] sm:$0xff]  ;;  %v13456_v0 = vpack.c.bf16 %v8346_v42, %v8338_v39 }
 0x24f   : > { %v9231_v29 = vmax.f32 %v13447_v62, %v1009_v31  ;;  %13450 = vst [vmem:[#allocation18_spill] sm:$0xff] %v9243_v40  ;;  %v1654_v16 = vrot.slane %v9243_v40, 4  ;;  %v12976_v6 = vrot.slane %v9217_v50, 4  ;;  %v13453_v37 = vmax.f32 %v13452_v51, 0.0  ;;  %v13454_v63 = vld [vmem:[#allocation43_spill] sm:$0xff]  ;;  %v886_v31 = vpop.permute.xlu1 %885 }
 0x250   : > { %13451 = vst [vmem:[#allocation65_spill] sm:$0xff] %v9245_v14  ;;  %v1655_v25 = vrot.slane %v9245_v14, 4  ;;  %v13455_v21 = vmax.f32 %v13454_v63, 0.0  ;;  %2028 = vmatmul.mubr.bf16.gmra.mrb[4].mxu1 %v13456_v0  ;;  %v13457_v24 = vrot.slane %v8700_v48, 4  ;;  %v13458_v39 = vrot.slane %v8698_v26, 4 }
 0x251   : > { %v9265_v10 = vmax.f32 %v13453_v37, %v1011_v2  ;;  %2343 = vmatpush1.bf16.msra.mxu1 %v6940_v27  ;;  %v6943_v51 = vld [vmem:[%s12782_s3 + $0x230] ss:$8 sps:$4 sm:$0xff]   ;;  %v2553_v0 = vrot.slane %v9243_v40, 6  ;;  %v3164_v18 = vrot.slane %v9243_v40, 2  ;;  %v13460_v27 = vrot.slane %v8700_v48, 6  ;;  %v13466_v40 = vld [vmem:[#allocation40_spill] sm:$0xff] }
 0x252   : > { %v9269_v43 = vmax.f32 %v13455_v21, %v1043_v57  ;;  %v9278_v62 = vsel %vm1696_vm2, %v1655_v25, %v12977_v9  ;;  %v9284_v2 = vsel %vm1696_vm2, %v13457_v24, %v1655_v25  ;;  %v9290_v57 = vsel %vm1696_vm2, %v1654_v16, %v12976_v6  ;;  %v9301_v63 = vpop.permute.xlu0 %1465  ;;  %2344 = vmatprep.subr.bf16.mxu1 %v6945_v20 }
 0x253   : > { %v9296_v42 = vsel %vm1696_vm2, %v13458_v39, %v1654_v16  ;;  %v13459_v21 = vpack.c.bf16 %v8477_v32, %v8413_v13  ;;  %v3764_v25 = vpack.c.bf16 %v9278_v62, %v9284_v2  ;;  %v6948_v13 = vld [vmem:[%s12782_s3 + $0x244] ss:$8 sps:$4 sm:$0xff]   ;;  %v2554_v32 = vrot.slane %v9245_v14, 6  ;;  %v950_v9 = vpop.permute.xlu1 %949 }
 0x254   : > { %v3763_v24 = vpack.c.bf16 %v9290_v57, %v9296_v42  ;;  %v1045_v6 = vsel %vm987_vm0, %v972_v1, %v908_v7  ;;  %v3165_v20 = vrot.slane %v9245_v14, 2  ;;  %v1002_v12 = vsel %vm987_vm0, %v886_v31, %v950_v9 }
 0x255   : > { %2037 = vmatprep.mubr.bf16.mxu1 %v13459_v21  ;;  %v1013_v21 = vsel %vm987_vm0, %v908_v7, %v972_v1  ;;  %4060 = vmatprep.mubr.bf16.mxu0 %v3764_v25  ;;  %v1034_v39 = vsel %vm987_vm0, %v950_v9, %v886_v31  ;;  %v9333_v37 = vsel %vm2595_vm3, %v13460_v27, %v2554_v32  ;;  %v13462_v7 = vrot.slane %v8698_v26, 6  ;;  %v13464_v25 = vld [vmem:[#allocation38_spill] sm:$0xff]  ;;  %v6946_v27 = vld [vmem:[%s12782_s3 + $0x240] ss:$8 sps:$4 sm:$0xff]  }
 0x256   : > { %4061 = vmatmul.mubr.bf16.gmra.mrb[84].mxu0 %v3763_v24  ;;  %13461 = vst [vmem:[#allocation19_spill] sm:$0xff] %v9333_v37  ;;  %v13465_v16 = vmax.f32 %v13464_v25, 0.0  ;;  %v13467_v61 = vmax.f32 %v13466_v40, 0.0  ;;  %v912_v31 = vpop.permute.xlu0 %911  ;;  %2345 = vmatpush1.bf16.msra.mxu1 %v6943_v51  ;;  %v13472_v51 = vrot.slane %v9220_v15, 2  ;;  %v13476_v24 = vrot.slane %v9217_v50, 2 }
 0x257   : > { %v9339_v1 = vsel %vm2595_vm3, %v13462_v7, %v2553_v0  ;;  %2346 = vmatprep.subr.bf16.mxu1 %v6948_v13  ;;  %v13468_v7 = vrot.slane %v9220_v15, 6  ;;  %v13474_v13 = vrot.slane %v8700_v48, 2  ;;  %v13482_v48 = vpack.c.bf16 %v8482_v23, %v8417_v36 }
 0x258   : > { %13463 = vst [vmem:[#allocation20_spill] sm:$0xff] %v9339_v1  ;;  %v1080_v52 = vmax.f32 %v13465_v16, %v1002_v12  ;;  %v1081_v14 = vmax.f32 %v13467_v61, %v1034_v39  ;;  %v13470_v61 = vrot.slane %v9217_v50, 6  ;;  %v9368_v16 = vsel %vm3206_vm4, %v3165_v20, %v13472_v51  ;;  %v13480_v1 = vld [vmem:[#allocation55_spill] sm:$0xff] }
 0x259   : > { %v9356_v12 = vsel %vm2595_vm3, %v2554_v32, %v13468_v7  ;;  %13473 = vst [vmem:[#allocation27_spill] sm:$0xff] %v9368_v16  ;;  %v9374_v39 = vsel %vm3206_vm4, %v13474_v13, %v3165_v20  ;;  %v1411_v7 = vpop.permute.xlu1 %1410  ;;  %v9385_v51 = vsel %vm3206_vm4, %v3164_v18, %v13476_v24  ;;  %v13478_v20 = vld [vmem:[#allocation54_spill] sm:$0xff]  ;;  %v13481_v54 = vmax.f32 %v13480_v1, 0.0  ;;  %2038 = vmatmul.mubr.bf16.gmra.mrb[8].mxu1 %v13482_v48 }
 0x25a   : > { %13469 = vst [vmem:[#allocation22_spill] sm:$0xff] %v9356_v12  ;;  %v9362_v40 = vsel %vm2595_vm3, %v2553_v0, %v13470_v61  ;;  %13475 = vst [vmem:[#allocation28_spill] sm:$0xff] %v9374_v39  ;;  %v1144_v32 = vrot.slane %v1080_v52, 1  ;;  %v1145_v25 = vrot.slane %v1081_v14, 1  ;;  %v6951_v0 = vld [vmem:[%s12782_s3 + $0x254] ss:$8 sps:$4 sm:$0xff]   ;;  %v976_v1 = vpop.permute.xlu0 %975  ;;  %2347 = vmatpush1.bf16.msra.mxu1 %v6946_v27 }
 0x25b   : > { %13471 = vst [vmem:[#allocation24_spill] sm:$0xff] %v9362_v40  ;;  %13477 = vst [vmem:[#allocation35_spill] sm:$0xff] %v9385_v51  ;;  %v13479_v13 = vmax.f32 %v13478_v20, 0.0  ;;  %v9394_v37 = vmax.f32 %v13481_v54, %v1045_v6  ;;  %v13483_v61 = vrot.slane %v8698_v26, 2  ;;  %v13485_v9 = vrot.slane %v9081_v47, 1  ;;  %2348 = vmatprep.subr.bf16.mxu1 %v6951_v0 }
 0x25c   : > { %v13486_v20 = vrot.slane %v9095_v3, 1  ;;  %v13487_v6 = vrot.slane %v9050_v4, 1  ;;  %v13488_v23 = vrot.slane %v9054_v5, 1  ;;  %v13511_v39 = vrot.slane %v9180_v34, 1 }
 0x25d   : > { %v9390_v17 = vmax.f32 %v13479_v13, %v1013_v21  ;;  %v9403_v24 = vsel %vm3206_vm4, %v13483_v61, %v3164_v18  ;;  %v1215_v21 = vsel %vm1182_vm1, %v1144_v32, %v13485_v9  ;;  %v13489_v18 = vpack.c.bf16 %v8546_v56, %v8488_v19  ;;  %v890_v56 = vpop.permute.xlu1 %889 }
 0x25e   : > { %13484 = vst [vmem:[#allocation43_spill] sm:$0xff] %v9403_v24  ;;  %v1216_v54 = vsel %vm1182_vm1, %v1145_v25, %v13486_v20  ;;  %v1217_v36 = vsel %vm1182_vm1, %v13487_v6, %v1144_v32  ;;  %v1218_v48 = vsel %vm1182_vm1, %v13488_v23, %v1145_v25  ;;  %v1275_v9 = vmax.f32 %v1080_v52, %v1215_v21  ;;  %v6949_v32 = vld [vmem:[%s12782_s3 + $0x250] ss:$8 sps:$4 sm:$0xff]   ;;  %v6954_v52 = vld [vmem:[%s12782_s3 + $0x264] ss:$8 sps:$4 sm:$0xff]  }
 0x25f   : > { %2047 = vmatprep.mubr.bf16.mxu1 %v13489_v18  ;;  %v1276_v61 = vmax.f32 %v1081_v14, %v1216_v54  ;;  %v1273_v13 = vmax.f32 %v9050_v4, %v1217_v36  ;;  %v1274_v20 = vmax.f32 %v9054_v5, %v1218_v48  ;;  %v1015_v25 = vsel %vm987_vm0, %v912_v31, %v976_v1  ;;  %v13490_v54 = vld [vmem:[#allocation56_spill] sm:$0xff]  ;;  %v9455_v48 = vpop.permute.xlu0 %1475  ;;  %v6957_v4 = vld [vmem:[%s12782_s3 + $0x274] ss:$8 sps:$4 sm:$0xff]  }
 0x260   : > { %v1047_v19 = vsel %vm987_vm0, %v976_v1, %v912_v31  ;;  %v9440_v5 = vmul.f32 %v8940_v45, %v1275_v9  ;;  %v13491_v36 = vmax.f32 %v13490_v54, 0.0  ;;  %13492 = vst [vmem:[#allocation38_spill] sm:$0xff] %v9455_v48  ;;  %2349 = vmatpush1.bf16.msra.mxu1 %v6949_v32  ;;  %v13496_v31 = vld [vmem:[#allocation8_spill] sm:$0xff]  ;;  %v13498_v32 = vrot.slane %v9220_v15, 4 }
 0x261   : > { %v9443_v14 = vmul.f32 %v8940_v45, %v1276_v61  ;;  %v9445_v27 = vmul.f32 %v1411_v7, %v1273_v13  ;;  %v9447_v21 = vmul.f32 %v1411_v7, %v1274_v20  ;;  %v6952_v61 = vld [vmem:[%s12782_s3 + $0x260] ss:$8 sps:$4 sm:$0xff]   ;;  %v954_v54 = vpop.permute.xlu1 %953  ;;  %2350 = vmatprep.subr.bf16.mxu1 %v6954_v52  ;;  %v13512_v26 = vrot.slane %v9200_v58, 1 }
 0x262   : > { %v9453_v23 = vmax.f32 %v13491_v36, %v1015_v25  ;;  %v13493_v13 = vld [vmem:[#allocation57_spill] sm:$0xff]  ;;  %v13505_v51 = vrot.slane %v9440_v5, 4  ;;  %v13513_v8 = vrot.slane %v9081_v47, 1  ;;  %v13514_v60 = vrot.slane %v9095_v3, 1 }
 0x263   : > { %v1659_v45 = vrot.slane %v9447_v21, 4  ;;  %v12988_v1 = vrot.slane %v9443_v14, 4  ;;  %v1658_v7 = vrot.slane %v9445_v27, 4  ;;  %v13494_v20 = vmax.f32 %v13493_v13, 0.0  ;;  %v13499_v36 = vld [vmem:[#allocation41_spill] sm:$0xff] }
 0x264   : > { %v1004_v13 = vsel %vm987_vm0, %v890_v56, %v954_v54  ;;  %v13500_v18 = vmax.f32 %v13499_v36, 0.0  ;;  %2351 = vmatpush1.bf16.msra.mxu1 %v6952_v61  ;;  %v13507_v61 = vrot.slane %v9220_v15, 6  ;;  %v13542_v40 = vrot.slane %v9200_v58, 1 }
 0x265   : > { %v9468_v25 = vmax.f32 %v13494_v20, %v1047_v19  ;;  %v1036_v19 = vsel %vm987_vm0, %v954_v54, %v890_v56  ;;  %v13495_v20 = vld [vmem:[#allocation12_spill] sm:$0xff]  ;;  %v9490_v52 = vsel %vm1696_vm2, %v1659_v45, %v12988_v1  ;;  %v9496_v0 = vsel %vm1696_vm2, %v13498_v32, %v1659_v45  ;;  %v13501_v56 = vld [vmem:[#allocation42_spill] sm:$0xff]  ;;  %2352 = vmatprep.subr.bf16.mxu1 %v6957_v4 }
 0x266   : > { %v13497_v6 = vpack.c.bf16 %v13495_v20, %v13496_v31  ;;  %v1084_v9 = vmax.f32 %v13500_v18, %v1004_v13  ;;  %v13502_v54 = vmax.f32 %v13501_v56, 0.0  ;;  %v916_v20 = vpop.permute.xlu0 %915  ;;  %v3766_v1 = vpack.c.bf16 %v9490_v52, %v9496_v0 }
 0x267   : > { %v9511_v45 = vsel %vm1696_vm2, %v1658_v7, %v13505_v51  ;;  %v13506_v18 = vrot.slane %v9217_v50, 4  ;;  %v2558_v13 = vrot.slane %v9447_v21, 6  ;;  %v13509_v51 = vrot.slane %v9217_v50, 6 }
 0x268   : > { %2048 = vmatmul.mubr.bf16.gmra.mrb[12].mxu1 %v13497_v6  ;;  %v1085_v24 = vmax.f32 %v13502_v54, %v1036_v19  ;;  %v13503_v6 = vld [vmem:[#allocation14_spill] sm:$0xff]  ;;  %v2557_v19 = vrot.slane %v9445_v27, 6  ;;  %v1148_v56 = vrot.slane %v1084_v9, 1  ;;  %4070 = vmatprep.mubr.bf16.mxu0 %v3766_v1 }
 0x269   : > { %v13504_v31 = vpack.c.bf16 %v8573_v55, %v13503_v6  ;;  %v9518_v32 = vsel %vm1696_vm2, %v13506_v18, %v1658_v7  ;;  %v6955_v55 = vld [vmem:[%s12782_s3 + $0x270] ss:$8 sps:$4 sm:$0xff]   ;;  %v1421_v6 = vpop.permute.xlu1 %1420  ;;  %v6960_v7 = vld [vmem:[%s12782_s3 + $0x284] ss:$8 sps:$4 sm:$0xff]   ;;  %v9535_v18 = vsel %vm2595_vm3, %v13507_v61, %v2558_v13 }
 0x26a   : > { %v1149_v54 = vrot.slane %v1085_v24, 1  ;;  %13508 = vst [vmem:[#allocation40_spill] sm:$0xff] %v9535_v18  ;;  %v9541_v36 = vsel %vm2595_vm3, %v13509_v51, %v2557_v19  ;;  %v1211_v16 = vsel %vm1182_vm1, %v1148_v56, %v13511_v39  ;;  %v1213_v51 = vsel %vm1182_vm1, %v13513_v8, %v1148_v56  ;;  %v980_v1 = vpop.permute.xlu0 %979  ;;  %2353 = vmatpush1.bf16.msra.mxu1 %v6955_v55 }
 0x26b   : > { %2057 = vmatprep.mubr.bf16.mxu1 %v13504_v31  ;;  %v3765_v31 = vpack.c.bf16 %v9511_v45, %v9518_v32  ;;  %13510 = vst [vmem:[#allocation54_spill] sm:$0xff] %v9541_v36  ;;  %v1279_v11 = vmax.f32 %v1084_v9, %v1211_v16  ;;  %v1277_v39 = vmax.f32 %v9081_v47, %v1213_v51  ;;  %v6963_v16 = vld [vmem:[%s12782_s3 + $0x294] ss:$8 sps:$4 sm:$0xff]  }
 0x26c   : > { %v1212_v61 = vsel %vm1182_vm1, %v1149_v54, %v13512_v26  ;;  %v1214_v4 = vsel %vm1182_vm1, %v13514_v60, %v1149_v54  ;;  %v6958_v26 = vld [vmem:[%s12782_s3 + $0x280] ss:$8 sps:$4 sm:$0xff]   ;;  %v1017_v8 = vsel %vm987_vm0, %v916_v20, %v980_v1  ;;  %v1049_v56 = vsel %vm987_vm0, %v980_v1, %v916_v20  ;;  %2354 = vmatprep.subr.bf16.mxu1 %v6960_v7  ;;  %v13517_v7 = vld [vmem:[#allocation58_spill] sm:$0xff] }
 0x26d   : > { %4071 = vmatmul.mubr.bf16.gmra.mrb[88].mxu0 %v3765_v31  ;;  %v1280_v38 = vmax.f32 %v1085_v24, %v1212_v61  ;;  %v1278_v48 = vmax.f32 %v9095_v3, %v1214_v4  ;;  %v894_v60 = vpop.permute.xlu1 %893  ;;  %v9578_v24 = vmul.f32 %v8964_v33, %v1279_v11  ;;  %v9583_v55 = vmul.f32 %v1421_v6, %v1277_v39  ;;  %v13515_v54 = vld [vmem:[#allocation76_spill] sm:$0xff] }
 0x26e   : > { %v13516_v31 = vpack.c.bf16 %v8602_v44, %v13515_v54  ;;  %v13518_v1 = vmax.f32 %v13517_v7, 0.0  ;;  %v13520_v61 = vpack.c.bf16 %v9284_v2, %v8741_v30  ;;  %v13523_v44 = vrot.slane %v9440_v5, 6  ;;  %2355 = vmatpush1.bf16.msra.mxu1 %v6958_v26  ;;  %v6966_v54 = vld [vmem:[%s12782_s3 + $0x2a4] ss:$8 sps:$4 sm:$0xff]  }
 0x26f   : > { %v9581_v9 = vmul.f32 %v8964_v33, %v1280_v38  ;;  %v9585_v20 = vmul.f32 %v1421_v6, %v1278_v48  ;;  %v1774_v38 = vpack.c.bf16 %v9496_v0, %v9278_v62  ;;  %v13521_v33 = vrot.slane %v9443_v14, 6  ;;  %v6961_v0 = vld [vmem:[%s12782_s3 + $0x290] ss:$8 sps:$4 sm:$0xff]   ;;  %2356 = vmatprep.subr.bf16.mxu1 %v6963_v16 }
 0x270   : > { %2058 = vmatmul.mubr.bf16.gmra.mrb[16].mxu1 %v13516_v31  ;;  %v9592_v4 = vmax.f32 %v13518_v1, %v1017_v8  ;;  %v9609_v48 = vsel %vm2595_vm3, %v2557_v19, %v13523_v44  ;;  %v1662_v2 = vrot.slane %v9583_v55, 4  ;;  %v13001_v62 = vrot.slane %v9578_v24, 4  ;;  %v6964_v31 = vld [vmem:[%s12782_s3 + $0x2a0] ss:$8 sps:$4 sm:$0xff]  }
 0x271   : > { %2067 = vmatprep.mubr.bf16.mxu1 %v13520_v61  ;;  %v9603_v11 = vsel %vm2595_vm3, %v2558_v13, %v13521_v33  ;;  %13524 = vst [vmem:[#allocation57_spill] sm:$0xff] %v9609_v48  ;;  %v1663_v6 = vrot.slane %v9585_v20, 4  ;;  %v13002_v30 = vrot.slane %v9581_v9, 4  ;;  %v13525_v13 = vld [vmem:[#allocation59_spill] sm:$0xff]  ;;  %v958_v8 = vpop.permute.xlu1 %957  ;;  %v13528_v1 = vrot.slane %v9443_v14, 4  ;;  %v13529_v33 = vld [vmem:[#allocation45_spill] sm:$0xff] }
 0x272   : > { %13519 = vst [vmem:[#allocation55_spill] sm:$0xff] %v9592_v4  ;;  %13522 = vst [vmem:[#allocation56_spill] sm:$0xff] %v9603_v11  ;;  %v13526_v51 = vmax.f32 %v13525_v13, 0.0  ;;  %v1006_v7 = vsel %vm987_vm0, %v894_v60, %v958_v8  ;;  %v13530_v44 = vmax.f32 %v13529_v33, 0.0  ;;  %2357 = vmatpush1.bf16.msra.mxu1 %v6961_v0  ;;  %v6969_v0 = vld [vmem:[%s12782_s3 + $0x2b4] ss:$8 sps:$4 sm:$0xff]  }
 0x273   : > { %v9639_v16 = vsel %vm1696_vm2, %v1663_v6, %v13002_v30  ;;  %v9645_v61 = vsel %vm1696_vm2, %v13528_v1, %v1663_v6  ;;  %v13533_v6 = vrot.slane %v9440_v5, 4  ;;  %2358 = vmatprep.subr.bf16.mxu1 %v6966_v54  ;;  %v2564_v54 = vrot.slane %v9581_v9, 6 }
 0x274   : > { %v9620_v39 = vmax.f32 %v13526_v51, %v1049_v56  ;;  %v1038_v56 = vsel %vm987_vm0, %v958_v8, %v894_v60  ;;  %v1088_v13 = vmax.f32 %v13530_v44, %v1006_v7  ;;  %v13531_v51 = vld [vmem:[#allocation46_spill] sm:$0xff]  ;;  %v3768_v60 = vpack.c.bf16 %v9639_v16, %v9645_v61 }
 0x275   : > { %v13532_v47 = vmax.f32 %v13531_v51, 0.0  ;;  %v9657_v8 = vsel %vm1696_vm2, %v1662_v2, %v13001_v62  ;;  %v9664_v1 = vsel %vm1696_vm2, %v13533_v6, %v1662_v2  ;;  %v2561_v7 = vrot.slane %v9583_v55, 6  ;;  %v1431_v51 = vpop.permute.xlu1 %1430 }
 0x276   : > { %13527 = vst [vmem:[#allocation12_spill] sm:$0xff] %v9620_v39  ;;  %v1152_v33 = vrot.slane %v1088_v13, 1  ;;  %4080 = vmatprep.mubr.bf16.mxu0 %v3768_v60  ;;  %v3767_v26 = vpack.c.bf16 %v9657_v8, %v9664_v1  ;;  %v13534_v2 = vpack.c.bf16 %v9296_v42, %v8749_v22  ;;  %v13535_v6 = vrot.slane %v9443_v14, 6  ;;  %2359 = vmatpush1.bf16.msra.mxu1 %v6964_v31 }
 0x277   : > { %v1089_v3 = vmax.f32 %v13532_v47, %v1038_v56  ;;  %v2562_v47 = vrot.slane %v9585_v20, 6  ;;  %v13537_v56 = vrot.slane %v9440_v5, 6  ;;  %v2563_v22 = vrot.slane %v9578_v24, 6  ;;  %2360 = vmatprep.subr.bf16.mxu1 %v6969_v0 }
 0x278   : > { %2068 = vmatmul.mubr.bf16.gmra.mrb[20].mxu1 %v13534_v2  ;;  %v13539_v42 = vrot.slane %v9204_v46, 1  ;;  %v13540_v30 = vrot.slane %v9208_v28, 1  ;;  %v13541_v19 = vrot.slane %v9180_v34, 1  ;;  %4081 = vmatmul.mubr.bf16.gmra.mrb[92].mxu0 %v3767_v26  ;;  %v1776_v31 = vpack.c.bf16 %v9645_v61, %v9490_v52  ;;  %v6970_v61 = vld [vmem:[%s12782_s3 + $0x2c0] ss:$8 sps:$4 sm:$0xff]  }
 0x279   : > { %v1153_v44 = vrot.slane %v1089_v3, 1  ;;  %v9684_v60 = vsel %vm2595_vm3, %v13535_v6, %v2562_v47  ;;  %v9690_v62 = vsel %vm2595_vm3, %v13537_v56, %v2561_v7  ;;  %2077 = vmatprep.mubr.bf16.mxu1 %v1774_v38  ;;  %v898_v4 = vpop.permute.xlu1 %897 }
 0x27a   : > { %13536 = vst [vmem:[#allocation8_spill] sm:$0xff] %v9684_v60  ;;  %13538 = vst [vmem:[#allocation41_spill] sm:$0xff] %v9690_v62  ;;  %v1207_v2 = vsel %vm1182_vm1, %v1152_v33, %v13539_v42  ;;  %v1209_v56 = vsel %vm1182_vm1, %v13541_v19, %v1152_v33  ;;  %v6972_v33 = vld [vmem:[%s12782_s3 + $0x2c4] ss:$8 sps:$4 sm:$0xff]   ;;  %v1486_v60 = vpop.permute.xlu0 %1485 }
 0x27b   : > { %v1208_v6 = vsel %vm1182_vm1, %v1153_v44, %v13540_v30  ;;  %v1210_v36 = vsel %vm1182_vm1, %v13542_v40, %v1153_v44  ;;  %v1283_v12 = vmax.f32 %v1088_v13, %v1207_v2  ;;  %v1281_v42 = vmax.f32 %v9180_v34, %v1209_v56  ;;  %v6967_v30 = vld [vmem:[%s12782_s3 + $0x2b0] ss:$8 sps:$4 sm:$0xff]  }
 0x27c   : > { %v1284_v18 = vmax.f32 %v1089_v3, %v1208_v6  ;;  %v1282_v39 = vmax.f32 %v9200_v58, %v1210_v36  ;;  %v9721_v3 = vsel %vm2595_vm3, %v2562_v47, %v2564_v54  ;;  %v9725_v34 = vsel %vm2595_vm3, %v2561_v7, %v2563_v22  ;;  %2361 = vmatpush1.bf16.msra.mxu1 %v6967_v30 }
 0x27d   : > { %13543 = vst [vmem:[#allocation42_spill] sm:$0xff] %v9721_v3  ;;  %13544 = vst [vmem:[#allocation14_spill] sm:$0xff] %v9725_v34  ;;  %v9728_v58 = vmul.f32 %v8986_v41, %v1283_v12  ;;  %v9733_v38 = vmul.f32 %v1431_v51, %v1281_v42  ;;  %v3169_v47 = vrot.slane %v9447_v21, 2  ;;  %v962_v52 = vpop.permute.xlu1 %961  ;;  %v13546_v42 = vpack.c.bf16 %v9518_v32, %v9290_v57  ;;  %v13550_v57 = vld [vmem:[#allocation49_spill] sm:$0xff] }
 0x27e   : > { %v9731_v36 = vmul.f32 %v8986_v41, %v1284_v18  ;;  %v9735_v26 = vmul.f32 %v1431_v51, %v1282_v39  ;;  %v1008_v6 = vsel %vm987_vm0, %v898_v4, %v962_v52  ;;  %v1040_v56 = vsel %vm987_vm0, %v962_v52, %v898_v4  ;;  %v6975_v51 = vld [vmem:[%s12782_s3 + $0x2d4] ss:$8 sps:$4 sm:$0xff]   ;;  %2362 = vmatprep.subr.bf16.mxu1 %v6972_v33 }
 0x27f   : > { %13545 = vst [vmem:[#allocation76_spill] sm:$0xff] %v9733_v38  ;;  %v1666_v18 = vrot.slane %v9733_v38, 4  ;;  %v13012_v39 = vrot.slane %v9728_v58, 4  ;;  %v2565_v2 = vrot.slane %v9733_v38, 6  ;;  %v13547_v40 = vrot.slane %v9581_v9, 4  ;;  %v13548_v4 = vld [vmem:[#allocation47_spill] sm:$0xff] }
 0x280   : > { %v1667_v12 = vrot.slane %v9735_v26, 4  ;;  %v13011_v41 = vrot.slane %v9731_v36, 4  ;;  %v2566_v0 = vrot.slane %v9735_v26, 6  ;;  %2078 = vmatmul.mubr.bf16.gmra.mrb[24].mxu1 %v13546_v42  ;;  %v13549_v52 = vmax.f32 %v13548_v4, 0.0 }
 0x281   : > { %v13551_v32 = vmax.f32 %v13550_v57, 0.0  ;;  %2087 = vmatprep.mubr.bf16.mxu1 %v1776_v31  ;;  %v1441_v57 = vpop.permute.xlu1 %1440  ;;  %2363 = vmatpush1.bf16.msra.mxu1 %v6970_v61  ;;  %v13555_v33 = vrot.slane %v9231_v29, 1 }
 0x282   : > { %v9770_v30 = vsel %vm1696_vm2, %v1667_v12, %v13011_v41  ;;  %v1726_v19 = vsel %vm1696_vm2, %v13547_v40, %v1667_v12  ;;  %v1092_v44 = vmax.f32 %v13549_v52, %v1008_v6  ;;  %v9788_v41 = vsel %vm1696_vm2, %v1666_v18, %v13012_v39  ;;  %2364 = vmatprep.subr.bf16.mxu1 %v6975_v51 }
 0x283   : > { %v1093_v42 = vmax.f32 %v13551_v32, %v1040_v56  ;;  %v3770_v13 = vpack.c.bf16 %v9770_v30, %v1726_v19  ;;  %v13552_v40 = vrot.slane %v9578_v24, 4  ;;  %v1778_v6 = vpack.c.bf16 %v1726_v19, %v9639_v16  ;;  %v6973_v16 = vld [vmem:[%s12782_s3 + $0x2d0] ss:$8 sps:$4 sm:$0xff]  }
 0x284   : > { %v9799_v31 = vsel %vm2595_vm3, %v2564_v54, %v2566_v0  ;;  %v9803_v56 = vsel %vm2595_vm3, %v2563_v22, %v2565_v2  ;;  %v1156_v4 = vrot.slane %v1092_v44, 1  ;;  %v2568_v19 = vrot.slane %v9731_v36, 6 }
 0x285   : > { %v9794_v12 = vsel %vm1696_vm2, %v13552_v40, %v1666_v18  ;;  %13553 = vst [vmem:[#allocation58_spill] sm:$0xff] %v9799_v31  ;;  %13554 = vst [vmem:[#allocation59_spill] sm:$0xff] %v9803_v56  ;;  %v1157_v52 = vrot.slane %v1093_v42, 1  ;;  %4090 = vmatprep.mubr.bf16.mxu0 %v3770_v13  ;;  %v2567_v13 = vrot.slane %v9728_v58, 6  ;;  %v13556_v40 = vrot.slane %v9235_v53, 1  ;;  %v902_v3 = vpop.permute.xlu1 %901  ;;  %2365 = vmatpush1.bf16.msra.mxu1 %v6973_v16 }
 0x286   : > { %v3769_v32 = vpack.c.bf16 %v9788_v41, %v9794_v12  ;;  %v1203_v61 = vsel %vm1182_vm1, %v1156_v4, %v13555_v33  ;;  %v13557_v18 = vrot.slane %v9204_v46, 1  ;;  %v13558_v22 = vrot.slane %v9208_v28, 1  ;;  %v6978_v33 = vld [vmem:[%s12782_s3 + $0x2e4] ss:$8 sps:$4 sm:$0xff]  }
 0x287   : > { %v1204_v51 = vsel %vm1182_vm1, %v1157_v52, %v13556_v40  ;;  %v1287_v7 = vmax.f32 %v1092_v44, %v1203_v61  ;;  %v13561_v44 = vrot.slane %v9443_v14, 2  ;;  %2366 = vmatprep.subr.bf16.mxu1 %v6978_v33  ;;  %v6984_v33 = vld [vmem:[%s12782_s3 + $0x104] ss:$8 sps:$4 sm:$0xff]  }
 0x288   : > { %v1205_v54 = vsel %vm1182_vm1, %v13557_v18, %v1156_v4  ;;  %v1206_v39 = vsel %vm1182_vm1, %v13558_v22, %v1157_v52  ;;  %4091 = vmatmul.mubr.bf16.gmra.mrb[96].mxu0 %v3769_v32  ;;  %v1288_v34 = vmax.f32 %v1093_v42, %v1204_v51  ;;  %v6976_v4 = vld [vmem:[%s12782_s3 + $0x2e0] ss:$8 sps:$4 sm:$0xff]   ;;  %v9844_v52 = vsel %vm2595_vm3, %v2566_v0, %v2568_v19  ;;  %v6981_v22 = vld [vmem:[%s12782_s3 + $0x2f4] ss:$8 sps:$4 sm:$0xff]  }
 0x289   : > { %v1285_v56 = vmax.f32 %v9204_v46, %v1205_v54  ;;  %v1286_v40 = vmax.f32 %v9208_v28, %v1206_v39  ;;  %13559 = vst [vmem:[#allocation45_spill] sm:$0xff] %v9844_v52  ;;  %v9848_v32 = vsel %vm2595_vm3, %v2565_v2, %v2567_v13  ;;  %v9854_v46 = vsel %vm3206_vm4, %v3169_v47, %v13561_v44  ;;  %v13565_v42 = vld [vmem:[#allocation117_spill] sm:$0xff]  ;;  %v966_v51 = vpop.permute.xlu1 %965 }
 0x28a   : > { %13560 = vst [vmem:[#allocation46_spill] sm:$0xff] %v9848_v32  ;;  %13562 = vst [vmem:[#allocation47_spill] sm:$0xff] %v9854_v46  ;;  %v13563_v28 = vrot.slane %v9220_v15, 2  ;;  %v9863_v18 = vmul.f32 %v13565_v42, %v1287_v7  ;;  %v9866_v0 = vmul.f32 %v13565_v42, %v1288_v34  ;;  %v13568_v54 = vpack.c.bf16 %v9664_v1, %v9511_v45 }
 0x28b   : > { %v9868_v2 = vmul.f32 %v1441_v57, %v1285_v56  ;;  %v9870_v16 = vmul.f32 %v1441_v57, %v1286_v40  ;;  %v3168_v34 = vrot.slane %v9445_v27, 2  ;;  %2367 = vmatpush1.bf16.msra.mxu1 %v6976_v4  ;;  %v1010_v42 = vsel %vm987_vm0, %v902_v3, %v966_v51  ;;  %v13570_v56 = vld [vmem:[#allocation50_spill] sm:$0xff] }
 0x28c   : > { %v9860_v39 = vsel %vm3206_vm4, %v13563_v28, %v3169_v47  ;;  %13566 = vst [vmem:[#allocation117_spill] sm:$0xff] %v9863_v18  ;;  %2088 = vmatmul.mubr.bf16.gmra.mrb[28].mxu1 %v13568_v54  ;;  %v13018_v45 = vrot.slane %v9866_v0, 4  ;;  %v1042_v4 = vsel %vm987_vm0, %v966_v51, %v902_v3  ;;  %v13569_v47 = vrot.slane %v9731_v36, 4  ;;  %2368 = vmatprep.subr.bf16.mxu1 %v6981_v22  ;;  %v13572_v3 = vld [vmem:[#allocation53_spill] sm:$0xff] }
 0x28d   : > { %13564 = vst [vmem:[#allocation49_spill] sm:$0xff] %v9860_v39  ;;  %13567 = vst [vmem:[#allocation118_spill] sm:$0xff] %v9868_v2  ;;  %2097 = vmatprep.mubr.bf16.mxu1 %v1778_v6  ;;  %v1671_v57 = vrot.slane %v9870_v16, 4  ;;  %v1670_v1 = vrot.slane %v9868_v2, 4  ;;  %v6979_v6 = vld [vmem:[%s12782_s3 + $0x2f0] ss:$8 sps:$4 sm:$0xff]  }
 0x28e   : > { %v2570_v44 = vrot.slane %v9870_v16, 6  ;;  %v2569_v28 = vrot.slane %v9868_v2, 6  ;;  %v13571_v7 = vmax.f32 %v13570_v56, 0.0  ;;  %v13573_v51 = vmax.f32 %v13572_v3, 0.0 }
 0x28f   : > { %v9904_v54 = vsel %vm1696_vm2, %v1671_v57, %v13018_v45  ;;  %v1722_v40 = vsel %vm1696_vm2, %v13569_v47, %v1671_v57  ;;  %v13574_v31 = vrot.slane %v9863_v18, 4  ;;  %v13575_v22 = vrot.slane %v9728_v58, 4  ;;  %2369 = vmatpush1.bf16.msra.mxu1 %v6979_v6 }
 0x290   : > { %v1096_v61 = vmax.f32 %v13571_v7, %v1010_v42  ;;  %v1097_v39 = vmax.f32 %v13573_v51, %v1042_v4  ;;  %v3772_v46 = vpack.c.bf16 %v9904_v54, %v1722_v40  ;;  %v1780_v45 = vpack.c.bf16 %v1722_v40, %v9770_v30  ;;  %v1451_v42 = vpop.permute.xlu1 %1450  ;;  %2885 = vmatprep.subr.bf16.mxu1 %v6984_v33 }
 0x291   : > { %v9923_v47 = vsel %vm1696_vm2, %v1670_v1, %v13574_v31  ;;  %v1721_v57 = vsel %vm1696_vm2, %v13575_v22, %v1670_v1  ;;  %v9931_v7 = vsel %vm2595_vm3, %v2568_v19, %v2570_v44  ;;  %v9935_v56 = vsel %vm2595_vm3, %v2567_v13, %v2569_v28 }
 0x292   : > { %13576 = vst [vmem:[#allocation50_spill] sm:$0xff] %v9931_v7  ;;  %13577 = vst [vmem:[#allocation53_spill] sm:$0xff] %v9935_v56  ;;  %v1160_v30 = vrot.slane %v1096_v61, 1  ;;  %v1161_v40 = vrot.slane %v1097_v39, 1  ;;  %4100 = vmatprep.mubr.bf16.mxu0 %v3772_v46  ;;  %v3771_v31 = vpack.c.bf16 %v9923_v47, %v1721_v57  ;;  %v1779_v4 = vpack.c.bf16 %v1721_v57, %v9788_v41 }
 0x293   : > { %v13578_v1 = vpack.c.bf16 %v9794_v12, %v9657_v8  ;;  %v2572_v3 = vrot.slane %v9866_v0, 6  ;;  %v2571_v46 = vrot.slane %v9863_v18, 6  ;;  %v13579_v51 = vrot.slane %v9265_v10, 1 }
 0x294   : > { %v13580_v6 = vrot.slane %v9269_v43, 1  ;;  %v13581_v12 = vrot.slane %v9231_v29, 1  ;;  %v13582_v22 = vrot.slane %v9235_v53, 1  ;;  %4101 = vmatmul.mubr.bf16.gmra.mrb[100].mxu0 %v3771_v31  ;;  %v906_v32 = vpop.permute.xlu1 %905  ;;  %v13598_v52 = vrot.slane %v9863_v18, 4 }
 0x295   : > { %2098 = vmatmul.mubr.bf16.gmra.mrb[32].mxu1 %v13578_v1  ;;  %v1199_v41 = vsel %vm1182_vm1, %v1160_v30, %v13579_v51 }
 0x296   : > { %v1200_v8 = vsel %vm1182_vm1, %v1161_v40, %v13580_v6  ;;  %v1201_v33 = vsel %vm1182_vm1, %v13581_v12, %v1160_v30  ;;  %v1202_v57 = vsel %vm1182_vm1, %v13582_v22, %v1161_v40  ;;  %2107 = vmatprep.mubr.bf16.mxu1 %v1780_v45  ;;  %v1291_v1 = vmax.f32 %v1096_v61, %v1199_v41 }
 0x297   : > { %v1292_v13 = vmax.f32 %v1097_v39, %v1200_v8  ;;  %v1289_v51 = vmax.f32 %v9231_v29, %v1201_v33  ;;  %v1290_v19 = vmax.f32 %v9235_v53, %v1202_v57  ;;  %v9968_v6 = vsel %vm2595_vm3, %v2570_v44, %v2572_v3  ;;  %v13593_v57 = vld [vmem:[#allocation60_spill] sm:$0xff] }
 0x298   : > { %13583 = vst [vmem:[#allocation119_spill] sm:$0xff] %v9968_v6  ;;  %v9972_v30 = vsel %vm2595_vm3, %v2569_v28, %v2571_v46  ;;  %v13585_v12 = vrot.slane %v9440_v5, 2  ;;  %v13587_v29 = vrot.slane %v9217_v50, 2  ;;  %v9987_v39 = vmul.f32 %v9138_v49, %v1291_v1  ;;  %v970_v22 = vpop.permute.xlu1 %969 }
 0x299   : > { %13584 = vst [vmem:[#allocation120_spill] sm:$0xff] %v9972_v30  ;;  %v9990_v61 = vmul.f32 %v9138_v49, %v1292_v13  ;;  %v9992_v44 = vmul.f32 %v1451_v42, %v1289_v51  ;;  %v9994_v28 = vmul.f32 %v1451_v42, %v1290_v19  ;;  %v13589_v41 = vrot.slane %v9585_v20, 2 }
 0x29a   : > { %v9978_v45 = vsel %vm3206_vm4, %v3168_v34, %v13585_v12  ;;  %v9984_v53 = vsel %vm3206_vm4, %v13587_v29, %v3168_v34  ;;  %v13590_v34 = vrot.slane %v9443_v14, 2  ;;  %v3172_v49 = vrot.slane %v9583_v55, 2 }
 0x29b   : > { %13586 = vst [vmem:[#allocation121_spill] sm:$0xff] %v9978_v45  ;;  %13588 = vst [vmem:[#allocation122_spill] sm:$0xff] %v9984_v53  ;;  %v1675_v13 = vrot.slane %v9994_v28, 4  ;;  %v13025_v42 = vrot.slane %v9990_v61, 4  ;;  %v1674_v19 = vrot.slane %v9992_v44, 4  ;;  %v2574_v51 = vrot.slane %v9994_v28, 6 }
 0x29c   : > { %v10005_v8 = vsel %vm3206_vm4, %v13590_v34, %v13589_v41  ;;  %v2573_v12 = vrot.slane %v9992_v44, 6  ;;  %v1012_v29 = vsel %vm987_vm0, %v906_v32, %v970_v22  ;;  %v1044_v41 = vsel %vm987_vm0, %v970_v22, %v906_v32  ;;  %v13595_v53 = vld [vmem:[#allocation23_spill] sm:$0xff] }
 0x29d   : > { %13591 = vst [vmem:[#allocation123_spill] sm:$0xff] %v10005_v8  ;;  %2108 = vmatmul.mubr.bf16.gmra.mrb[36].mxu1 %v1779_v4  ;;  %v13592_v34 = vrot.slane %v9866_v0, 4  ;;  %v10030_v1 = vsel %vm1696_vm2, %v1675_v13, %v13025_v42  ;;  %v13594_v31 = vmax.f32 %v13593_v57, 0.0  ;;  %v13596_v45 = vmax.f32 %v13595_v53, 0.0  ;;  %v13616_v8 = vld [vmem:[#allocation26_spill] sm:$0xff] }
 0x29e   : > { %v13597_v22 = vrot.slane %v9987_v39, 4 }
 0x29f   : > { %v1718_v40 = vsel %vm1696_vm2, %v13592_v34, %v1675_v13  ;;  %v1100_v33 = vmax.f32 %v13594_v31, %v1012_v29  ;;  %v1101_v56 = vmax.f32 %v13596_v45, %v1044_v41  ;;  %v1717_v13 = vsel %vm1696_vm2, %v13598_v52, %v1674_v19 }
 0x2a0   : > { %v1782_v32 = vpack.c.bf16 %v1718_v40, %v9904_v54  ;;  %v3774_v4 = vpack.c.bf16 %v10030_v1, %v1718_v40  ;;  %v10042_v34 = vsel %vm1696_vm2, %v1674_v19, %v13597_v22  ;;  %v10050_v31 = vsel %vm2595_vm3, %v2572_v3, %v2574_v51  ;;  %v1461_v40 = vpop.permute.xlu1 %1460 }
 0x2a1   : > { %13599 = vst [vmem:[#allocation60_spill] sm:$0xff] %v10050_v31  ;;  %v10054_v54 = vsel %vm2595_vm3, %v2571_v46, %v2573_v12  ;;  %v1164_v45 = vrot.slane %v1100_v33, 1  ;;  %v1165_v53 = vrot.slane %v1101_v56, 1  ;;  %v3773_v57 = vpack.c.bf16 %v10042_v34, %v1717_v13 }
 0x2a2   : > { %13600 = vst [vmem:[#allocation23_spill] sm:$0xff] %v10054_v54  ;;  %2117 = vmatprep.mubr.bf16.mxu1 %v1782_v32  ;;  %4110 = vmatprep.mubr.bf16.mxu0 %v3774_v4  ;;  %v1781_v29 = vpack.c.bf16 %v1717_v13, %v9923_v47  ;;  %v2576_v19 = vrot.slane %v9990_v61, 6  ;;  %v2575_v46 = vrot.slane %v9987_v39, 6  ;;  %v13601_v41 = vrot.slane %v9390_v17, 1 }
 0x2a3   : > { %v13602_v4 = vrot.slane %v9394_v37, 1  ;;  %v13603_v22 = vrot.slane %v9265_v10, 1  ;;  %v13604_v3 = vrot.slane %v9269_v43, 1  ;;  %4111 = vmatmul.mubr.bf16.gmra.mrb[104].mxu0 %v3773_v57 }
 0x2a4   : > { %v1195_v32 = vsel %vm1182_vm1, %v1164_v45, %v13601_v41  ;;  %v910_v6 = vpop.permute.xlu1 %909 }
 0x2a5   : > { %v1196_v47 = vsel %vm1182_vm1, %v1165_v53, %v13602_v4  ;;  %v1197_v13 = vsel %vm1182_vm1, %v13603_v22, %v1164_v45  ;;  %v1198_v52 = vsel %vm1182_vm1, %v13604_v3, %v1165_v53  ;;  %v1295_v42 = vmax.f32 %v1100_v33, %v1195_v32  ;;  %2118 = vmatmul.mubr.bf16.gmra.mrb[40].mxu1 %v1781_v29 }
 0x2a6   : > { %v1296_v30 = vmax.f32 %v1101_v56, %v1196_v47  ;;  %v1293_v41 = vmax.f32 %v9265_v10, %v1197_v13  ;;  %v1294_v54 = vmax.f32 %v9269_v43, %v1198_v52  ;;  %v10084_v4 = vsel %vm2595_vm3, %v2574_v51, %v2576_v19  ;;  %v13614_v47 = vld [vmem:[#allocation25_spill] sm:$0xff] }
 0x2a7   : > { %13605 = vst [vmem:[#allocation124_spill] sm:$0xff] %v10084_v4  ;;  %v10088_v45 = vsel %vm2595_vm3, %v2573_v12, %v2575_v46  ;;  %v13607_v22 = vrot.slane %v9581_v9, 2  ;;  %v13608_v53 = vrot.slane %v9585_v20, 2  ;;  %v13029_v10 = vrot.slane %v9578_v24, 2 }
 0x2a8   : > { %13606 = vst [vmem:[#allocation125_spill] sm:$0xff] %v10088_v45  ;;  %v10100_v43 = vmul.f32 %v9301_v63, %v1295_v42  ;;  %v10103_v33 = vmul.f32 %v9301_v63, %v1296_v30  ;;  %v10105_v51 = vmul.f32 %v1461_v40, %v1293_v41  ;;  %v10107_v12 = vmul.f32 %v1461_v40, %v1294_v54  ;;  %v974_v32 = vpop.permute.xlu1 %973 }
 0x2a9   : > { %v10096_v56 = vsel %vm3206_vm4, %v13608_v53, %v13607_v22  ;;  %v10115_v52 = vsel %vm3206_vm4, %v3172_v49, %v13029_v10  ;;  %v13611_v42 = vrot.slane %v9440_v5, 2  ;;  %v3177_v30 = vrot.slane %v9735_v26, 2 }
 0x2aa   : > { %13609 = vst [vmem:[#allocation126_spill] sm:$0xff] %v10096_v56  ;;  %13610 = vst [vmem:[#allocation127_spill] sm:$0xff] %v10115_v52  ;;  %v1679_v54 = vrot.slane %v10107_v12, 4  ;;  %v13035_v40 = vrot.slane %v10103_v33, 4  ;;  %v1678_v29 = vrot.slane %v10105_v51, 4  ;;  %v2577_v41 = vrot.slane %v10105_v51, 6 }
 0x2ab   : > { %v10121_v63 = vsel %vm3206_vm4, %v13611_v42, %v3172_v49  ;;  %v2578_v49 = vrot.slane %v10107_v12, 6  ;;  %v1014_v22 = vsel %vm987_vm0, %v910_v6, %v974_v32  ;;  %v1046_v53 = vsel %vm987_vm0, %v974_v32, %v910_v6 }
 0x2ac   : > { %13612 = vst [vmem:[#allocation128_spill] sm:$0xff] %v10121_v63  ;;  %v13613_v42 = vrot.slane %v9990_v61, 4  ;;  %v10146_v13 = vsel %vm1696_vm2, %v1679_v54, %v13035_v40  ;;  %v13615_v10 = vmax.f32 %v13614_v47, 0.0  ;;  %v13617_v56 = vmax.f32 %v13616_v8, 0.0  ;;  %v13635_v63 = vld [vmem:[#allocation31_spill] sm:$0xff] }
 0x2ad   : > { %v13618_v32 = vrot.slane %v9987_v39, 4  ;;  %v13619_v48 = vrot.slane %v10100_v43, 4  ;;  %v10170_v8 = vsel %vm2595_vm3, %v2575_v46, %v2577_v41  ;;  %v2579_v46 = vrot.slane %v10100_v43, 6 }
 0x2ae   : > { %v1714_v57 = vsel %vm1696_vm2, %v13613_v42, %v1679_v54  ;;  %v1104_v3 = vmax.f32 %v13615_v10, %v1014_v22  ;;  %v1105_v31 = vmax.f32 %v13617_v56, %v1046_v53  ;;  %v10166_v10 = vsel %vm2595_vm3, %v2576_v19, %v2578_v49  ;;  %13621 = vst [vmem:[#allocation26_spill] sm:$0xff] %v10170_v8 }
 0x2af   : > { %v1784_v7 = vpack.c.bf16 %v1714_v57, %v10030_v1  ;;  %v3776_v6 = vpack.c.bf16 %v10146_v13, %v1714_v57  ;;  %v1713_v42 = vsel %vm1696_vm2, %v13618_v32, %v1678_v29  ;;  %v10162_v54 = vsel %vm1696_vm2, %v1678_v29, %v13619_v48  ;;  %13620 = vst [vmem:[#allocation25_spill] sm:$0xff] %v10166_v10  ;;  %v1471_v57 = vpop.permute.xlu1 %1470 }
 0x2b0   : > { %v1168_v1 = vrot.slane %v1104_v3, 1  ;;  %v1169_v56 = vrot.slane %v1105_v31, 1  ;;  %v1783_v47 = vpack.c.bf16 %v1713_v42, %v10042_v34  ;;  %v3775_v22 = vpack.c.bf16 %v10162_v54, %v1713_v42 }
 0x2b1   : > { %2127 = vmatprep.mubr.bf16.mxu1 %v1784_v7  ;;  %4120 = vmatprep.mubr.bf16.mxu0 %v3776_v6  ;;  %v2580_v29 = vrot.slane %v10103_v33, 6  ;;  %v13622_v53 = vrot.slane %v9453_v23, 1  ;;  %v13623_v6 = vrot.slane %v9468_v25, 1  ;;  %v13624_v32 = vrot.slane %v9390_v17, 1 }
 0x2b2   : > { %v13625_v19 = vrot.slane %v9394_v37, 1  ;;  %2128 = vmatmul.mubr.bf16.gmra.mrb[44].mxu1 %v1783_v47  ;;  %4121 = vmatmul.mubr.bf16.gmra.mrb[108].mxu0 %v3775_v22  ;;  %v13636_v52 = vmax.f32 %v13635_v63, 0.0 }
 0x2b3   : > { %v1191_v7 = vsel %vm1182_vm1, %v1168_v1, %v13622_v53  ;;  %v1192_v34 = vsel %vm1182_vm1, %v1169_v56, %v13623_v6  ;;  %v1193_v42 = vsel %vm1182_vm1, %v13624_v32, %v1168_v1  ;;  %v914_v4 = vpop.permute.xlu1 %913  ;;  %v10200_v6 = vsel %vm2595_vm3, %v2578_v49, %v2580_v29  ;;  %v13633_v32 = vld [vmem:[#allocation29_spill] sm:$0xff] }
 0x2b4   : > { %v1194_v48 = vsel %vm1182_vm1, %v13625_v19, %v1169_v56  ;;  %v1299_v40 = vmax.f32 %v1104_v3, %v1191_v7  ;;  %v1300_v45 = vmax.f32 %v1105_v31, %v1192_v34  ;;  %v1297_v53 = vmax.f32 %v9390_v17, %v1193_v42  ;;  %13626 = vst [vmem:[#allocation129_spill] sm:$0xff] %v10200_v6  ;;  %v13628_v31 = vld [vmem:[#allocation38_spill] sm:$0xff] }
 0x2b5   : > { %v1298_v8 = vmax.f32 %v9394_v37, %v1194_v48  ;;  %v10204_v1 = vsel %vm2595_vm3, %v2577_v41, %v2579_v46  ;;  %v13039_v3 = vrot.slane %v9731_v36, 2  ;;  %v13630_v41 = vrot.slane %v9581_v9, 2 }
 0x2b6   : > { %13627 = vst [vmem:[#allocation130_spill] sm:$0xff] %v10204_v1  ;;  %v10210_v47 = vmul.f32 %v13628_v31, %v1299_v40  ;;  %v10213_v17 = vmul.f32 %v13628_v31, %v1300_v45  ;;  %v10215_v37 = vmul.f32 %v1471_v57, %v1297_v53  ;;  %v3176_v40 = vrot.slane %v9733_v38, 2 }
 0x2b7   : > { %v10217_v22 = vmul.f32 %v1471_v57, %v1298_v8  ;;  %v10223_v49 = vsel %vm3206_vm4, %v3177_v30, %v13039_v3  ;;  %v10229_v48 = vsel %vm3206_vm4, %v13630_v41, %v3177_v30  ;;  %v978_v34 = vpop.permute.xlu1 %977  ;;  %v13632_v56 = vrot.slane %v10103_v33, 4 }
 0x2b8   : > { %13629 = vst [vmem:[#allocation38_spill] sm:$0xff] %v10223_v49  ;;  %13631 = vst [vmem:[#allocation131_spill] sm:$0xff] %v10229_v48  ;;  %v13045_v8 = vrot.slane %v10213_v17, 4  ;;  %v1682_v57 = vrot.slane %v10215_v37, 4  ;;  %v2581_v53 = vrot.slane %v10215_v37, 6  ;;  %v1016_v31 = vsel %vm987_vm0, %v914_v4, %v978_v34 }
 0x2b9   : > { %v1683_v19 = vrot.slane %v10217_v22, 4  ;;  %v2582_v42 = vrot.slane %v10217_v22, 6  ;;  %v1048_v41 = vsel %vm987_vm0, %v978_v34, %v914_v4  ;;  %v13634_v45 = vmax.f32 %v13633_v32, 0.0 }
 0x2ba   : > { %v1109_v10 = vmax.f32 %v13636_v52, %v1048_v41  ;;  %v13637_v34 = vrot.slane %v10100_v43, 4  ;;  %v13638_v11 = vrot.slane %v10210_v47, 4  ;;  %v10279_v52 = vsel %vm2595_vm3, %v2579_v46, %v2581_v53  ;;  %v13641_v41 = vld [vmem:[#allocation55_spill] sm:$0xff] }
 0x2bb   : > { %v1710_v3 = vsel %vm1696_vm2, %v13632_v56, %v1683_v19  ;;  %v10255_v30 = vsel %vm1696_vm2, %v1683_v19, %v13045_v8  ;;  %v1108_v7 = vmax.f32 %v13634_v45, %v1016_v31  ;;  %v10275_v45 = vsel %vm2595_vm3, %v2580_v29, %v2582_v42  ;;  %13640 = vst [vmem:[#allocation31_spill] sm:$0xff] %v10279_v52 }
 0x2bc   : > { %v1786_v62 = vpack.c.bf16 %v1710_v3, %v10146_v13  ;;  %v3778_v4 = vpack.c.bf16 %v10255_v30, %v1710_v3  ;;  %v1709_v56 = vsel %vm1696_vm2, %v13637_v34, %v1682_v57  ;;  %v10271_v19 = vsel %vm1696_vm2, %v1682_v57, %v13638_v11  ;;  %13639 = vst [vmem:[#allocation29_spill] sm:$0xff] %v10275_v45  ;;  %v1481_v3 = vpop.permute.xlu1 %1480 }
 0x2bd   : > { %v1172_v63 = vrot.slane %v1108_v7, 1  ;;  %v1173_v13 = vrot.slane %v1109_v10, 1  ;;  %v1785_v32 = vpack.c.bf16 %v1709_v56, %v10162_v54  ;;  %v3777_v31 = vpack.c.bf16 %v10271_v19, %v1709_v56 }
 0x2be   : > { %2137 = vmatprep.mubr.bf16.mxu1 %v1786_v62  ;;  %4130 = vmatprep.mubr.bf16.mxu0 %v3778_v4  ;;  %v2584_v57 = vrot.slane %v10213_v17, 6  ;;  %v2583_v46 = vrot.slane %v10210_v47, 6  ;;  %v13642_v34 = vrot.slane %v13641_v41, 1  ;;  %v13643_v4 = vld [vmem:[#allocation12_spill] sm:$0xff]  ;;  %v13645_v56 = vrot.slane %v9453_v23, 1 }
 0x2bf   : > { %v13644_v8 = vrot.slane %v13643_v4, 1  ;;  %v13646_v29 = vrot.slane %v9468_v25, 1  ;;  %2138 = vmatmul.mubr.bf16.gmra.mrb[48].mxu1 %v1785_v32  ;;  %4131 = vmatmul.mubr.bf16.gmra.mrb[112].mxu0 %v3777_v31  ;;  %v3181_v31 = vrot.slane %v9870_v16, 2 }
 0x2c0   : > { %v1187_v62 = vsel %vm1182_vm1, %v1172_v63, %v13642_v34  ;;  %v1189_v11 = vsel %vm1182_vm1, %v13645_v56, %v1172_v63  ;;  %v10309_v38 = vsel %vm2595_vm3, %v2582_v42, %v2584_v57  ;;  %v10313_v63 = vsel %vm2595_vm3, %v2581_v53, %v2583_v46 }
 0x2c1   : > { %v1188_v54 = vsel %vm1182_vm1, %v1173_v13, %v13644_v8  ;;  %v1190_v1 = vsel %vm1182_vm1, %v13646_v29, %v1173_v13  ;;  %v1303_v52 = vmax.f32 %v1108_v7, %v1187_v62  ;;  %v1301_v34 = vmax.f32 %v9453_v23, %v1189_v11  ;;  %v918_v8 = vpop.permute.xlu1 %917  ;;  %13647 = vst [vmem:[#allocation55_spill] sm:$0xff] %v10309_v38  ;;  %v13658_v11 = vld [vmem:[#allocation37_spill] sm:$0xff] }
 0x2c2   : > { %v1304_v6 = vmax.f32 %v1109_v10, %v1188_v54  ;;  %v1302_v45 = vmax.f32 %v9468_v25, %v1190_v1  ;;  %13648 = vst [vmem:[#allocation12_spill] sm:$0xff] %v10313_v63  ;;  %v13649_v10 = vrot.slane %v9728_v58, 2  ;;  %v13651_v53 = vrot.slane %v9578_v24, 2 }
 0x2c3   : > { %v10323_v25 = vmul.f32 %v1486_v60, %v1303_v52  ;;  %v10325_v1 = vmul.f32 %v1481_v3, %v1301_v34  ;;  %v13655_v13 = vrot.slane %v10210_v47, 4  ;;  %v13659_v62 = vmax.f32 %v13658_v11, 0.0 }
 0x2c4   : > { %v10321_v23 = vsel %vm3206_vm4, %v3176_v40, %v13649_v10  ;;  %v10327_v7 = vmul.f32 %v1481_v3, %v1302_v45  ;;  %v10329_v42 = vmul.f32 %v1486_v60, %v1304_v6  ;;  %v10335_v32 = vsel %vm3206_vm4, %v13651_v53, %v3176_v40  ;;  %v10367_v6 = vpop.f32.mrb[64].mxu0 }
 0x2c5   : > { %13650 = vst [vmem:[#allocation132_spill] sm:$0xff] %v10321_v23  ;;  %13652 = vst [vmem:[#allocation133_spill] sm:$0xff] %v10335_v32  ;;  %v1686_v52 = vrot.slane %v10325_v1, 4  ;;  %v3180_v45 = vrot.slane %v9868_v2, 2  ;;  %v982_v60 = vpop.permute.xlu1 %981  ;;  %v2585_v54 = vrot.slane %v10325_v1, 6  ;;  %v13653_v10 = vrot.slane %v10213_v17, 4 }
 0x2c6   : > { %v13056_v29 = vrot.slane %v10327_v7, 4  ;;  %v2586_v3 = vrot.slane %v10327_v7, 6  ;;  %v1018_v56 = vsel %vm987_vm0, %v918_v8, %v982_v60  ;;  %v1050_v34 = vsel %vm987_vm0, %v982_v60, %v918_v8  ;;  %13657 = vst [vmem:[#allocation136_spill] sm:$0xff] %v10367_v6  ;;  %v13660_v8 = vld [vmem:[#allocation39_spill] sm:$0xff] }
 0x2c7   : > { %v10365_v40 = vsel %vm1696_vm2, %v13655_v13, %v1686_v52  ;;  %v1112_v35 = vmax.f32 %v13659_v62, %v1018_v56  ;;  %v13661_v60 = vmax.f32 %v13660_v8, 0.0  ;;  %v1689_v2 = vrot.slane %v10329_v42, 4 }
 0x2c8   : > { %v10359_v53 = vsel %vm1696_vm2, %v13653_v10, %v13056_v29  ;;  %13656 = vst [vmem:[#allocation135_spill] sm:$0xff] %v10365_v40  ;;  %v1787_v10 = vpack.c.bf16 %v10365_v40, %v10271_v19  ;;  %v10377_v29 = vpop.f32.mrb[65].mxu0  ;;  %v13663_v13 = vrot.slane %v10323_v25, 4  ;;  %v10388_v11 = vsel %vm2595_vm3, %v2584_v57, %v2586_v3 }
 0x2c9   : > { %13654 = vst [vmem:[#allocation134_spill] sm:$0xff] %v10359_v53  ;;  %v1113_v48 = vmax.f32 %v13661_v60, %v1050_v34  ;;  %v1788_v49 = vpack.c.bf16 %v10359_v53, %v10255_v30  ;;  %13662 = vst [vmem:[#allocation37_spill] sm:$0xff] %v10377_v29  ;;  %v10392_v30 = vsel %vm2595_vm3, %v2583_v46, %v2585_v54  ;;  %v10394_v62 = vpop.f32.mrb[66].mxu0  ;;  %v1176_v19 = vrot.slane %v1112_v35, 1  ;;  %v13671_v34 = vld [vmem:[#allocation44_spill] sm:$0xff]  ;;  %v1491_v63 = vpop.permute.xlu1 %1490 }
 0x2ca   : > { %v10384_v6 = vsel %vm1696_vm2, %v1686_v52, %v13663_v13  ;;  %13665 = vst [vmem:[#allocation137_spill] sm:$0xff] %v10388_v11  ;;  %13666 = vst [vmem:[#allocation138_spill] sm:$0xff] %v10392_v30  ;;  %v10400_v8 = vpop.f32.mrb[67].mxu0  ;;  %v2588_v46 = vrot.slane %v10329_v42, 6  ;;  %v13669_v13 = vrot.slane %v9866_v0, 2  ;;  %v13675_v29 = vrot.slane %v13641_v41, 1 }
 0x2cb   : > { %13664 = vst [vmem:[#allocation39_spill] sm:$0xff] %v10384_v6  ;;  %13667 = vst [vmem:[#allocation139_spill] sm:$0xff] %v10394_v62  ;;  %v1177_v56 = vrot.slane %v1113_v48, 1  ;;  %2147 = vmatprep.mubr.bf16.mxu1 %v1788_v49  ;;  %v13672_v62 = vrot.slane %v13671_v34, 1  ;;  %v13676_v40 = vrot.slane %v13643_v4, 1  ;;  %v2587_v30 = vrot.slane %v10323_v25, 6 }
 0x2cc   : > { %13668 = vst [vmem:[#allocation140_spill] sm:$0xff] %v10400_v8  ;;  %2148 = vmatmul.mubr.bf16.gmra.mrb[52].mxu1 %v1787_v10  ;;  %v10411_v49 = vsel %vm3206_vm4, %v3181_v31, %v13669_v13  ;;  %v13673_v10 = vld [vmem:[#allocation48_spill] sm:$0xff]  ;;  %v1185_v60 = vsel %vm1182_vm1, %v13675_v29, %v1176_v19  ;;  %v13677_v29 = vrot.slane %v9731_v36, 2  ;;  %v3193_v53 = vrot.slane %v10217_v22, 2 }
 0x2cd   : > { %13670 = vst [vmem:[#allocation141_spill] sm:$0xff] %v10411_v49  ;;  %v1183_v52 = vsel %vm1182_vm1, %v1176_v19, %v13672_v62  ;;  %v13674_v8 = vrot.slane %v13673_v10, 1  ;;  %v1186_v13 = vsel %vm1182_vm1, %v13676_v40, %v1177_v56  ;;  %v1305_v23 = vmax.f32 %v13641_v41, %v1185_v60  ;;  %v1496_v10 = vpop.permute.xlu0 %1495 }
 0x2ce   : > { %v1307_v32 = vmax.f32 %v1112_v35, %v1183_v52  ;;  %v1306_v62 = vmax.f32 %v13643_v4, %v1186_v13  ;;  %v10440_v19 = vsel %vm3206_vm4, %v13677_v29, %v3181_v31  ;;  %v3182_v35 = vrot.slane %v9863_v18, 2 }
 0x2cf   : > { %v1184_v57 = vsel %vm1182_vm1, %v1177_v56, %v13674_v8  ;;  %v10433_v8 = vsel %vm2595_vm3, %v2586_v3, %v2588_v46  ;;  %13678 = vst [vmem:[#allocation44_spill] sm:$0xff] %v10440_v19  ;;  %v10447_v4 = vmul.f32 %v1491_v63, %v1305_v23  ;;  %v10451_v3 = vpop.f32.mrb[68].mxu0  ;;  %v10455_v56 = vsel %vm2595_vm3, %v2585_v54, %v2587_v30  ;;  %v13696_v19 = vld [vmem:[#allocation51_spill] sm:$0xff] }
 0x2d0   : > { %v1308_v34 = vmax.f32 %v1113_v48, %v1184_v57  ;;  %v10443_v48 = vmul.f32 %v1496_v10, %v1307_v32  ;;  %v10449_v40 = vmul.f32 %v1491_v63, %v1306_v62  ;;  %13679 = vst [vmem:[#allocation48_spill] sm:$0xff] %v10451_v3  ;;  %13680 = vst [vmem:[#allocation142_spill] sm:$0xff] %v10455_v56  ;;  %v13682_v32 = vrot.slane %v9728_v58, 2  ;;  %v10469_v63 = vpop.f32.mrb[69].mxu0 }
 0x2d1   : > { %v10461_v52 = vsel %vm3206_vm4, %v3180_v45, %v3182_v35  ;;  %13684 = vst [vmem:[#allocation145_spill] sm:$0xff] %v10469_v63  ;;  %v1690_v54 = vrot.slane %v10447_v4, 4  ;;  %v13686_v62 = vrot.slane %v10327_v7, 4  ;;  %v13697_v49 = vrot.slane %v13696_v19, 4 }
 0x2d2   : > { %v10445_v41 = vmul.f32 %v1496_v10, %v1308_v34  ;;  %13681 = vst [vmem:[#allocation143_spill] sm:$0xff] %v10461_v52  ;;  %v10467_v23 = vsel %vm3206_vm4, %v13682_v32, %v3180_v45  ;;  %v1691_v57 = vrot.slane %v10449_v40, 4  ;;  %v1692_v13 = vrot.slane %v10443_v48, 4  ;;  %v10475_v34 = vpop.f32.mrb[70].mxu0 }
 0x2d3   : > { %13683 = vst [vmem:[#allocation144_spill] sm:$0xff] %v10467_v23  ;;  %13685 = vst [vmem:[#allocation146_spill] sm:$0xff] %v10475_v34  ;;  %v10481_v10 = vsel %vm1696_vm2, %v13686_v62, %v1689_v2  ;;  %v10487_v32 = vpop.f32.mrb[71].mxu0  ;;  %v13690_v34 = vrot.slane %v10323_v25, 4  ;;  %v13692_v62 = vld [vmem:[#allocation52_spill] sm:$0xff]  ;;  %v3185_v18 = vrot.slane %v9994_v28, 2 }
 0x2d4   : > { %v1693_v60 = vrot.slane %v10445_v41, 4  ;;  %13687 = vst [vmem:[#allocation147_spill] sm:$0xff] %v10481_v10  ;;  %13688 = vst [vmem:[#allocation148_spill] sm:$0xff] %v10487_v32  ;;  %v10491_v31 = vsel %vm1696_vm2, %v1689_v2, %v1691_v57  ;;  %v13693_v3 = vrot.slane %v13692_v62, 4  ;;  %v10519_v38 = vsel %vm1696_vm2, %v1692_v13, %v13697_v49  ;;  %v10552_v23 = vpop.f32.mrb[72].mxu0 }
 0x2d5   : > { %13689 = vst [vmem:[#allocation149_spill] sm:$0xff] %v10491_v31  ;;  %v10497_v63 = vsel %vm1696_vm2, %v13690_v34, %v1690_v54  ;;  %v1790_v2 = vpack.c.bf16 %v10491_v31, %v10481_v10  ;;  %13698 = vst [vmem:[#allocation51_spill] sm:$0xff] %v10519_v38  ;;  %v2592_v11 = vrot.slane %v10445_v41, 6  ;;  %v13704_v52 = vrot.slane %v13696_v19, 6 }
 0x2d6   : > { %13691 = vst [vmem:[#allocation150_spill] sm:$0xff] %v10497_v63  ;;  %v10503_v45 = vsel %vm1696_vm2, %v1693_v60, %v13693_v3  ;;  %v10507_v29 = vsel %vm1696_vm2, %v1691_v57, %v1693_v60  ;;  %v1789_v32 = vpack.c.bf16 %v10497_v63, %v10384_v6  ;;  %v10523_v3 = vsel %vm1696_vm2, %v1690_v54, %v1692_v13 }
 0x2d7   : > { %13694 = vst [vmem:[#allocation52_spill] sm:$0xff] %v10503_v45  ;;  %13695 = vst [vmem:[#allocation151_spill] sm:$0xff] %v10507_v29  ;;  %v1792_v34 = vpack.c.bf16 %v10503_v45, %v10507_v29  ;;  %v2590_v57 = vrot.slane %v10449_v40, 6  ;;  %v2589_v60 = vrot.slane %v10447_v4, 6  ;;  %2157 = vmatprep.mubr.bf16.mxu1 %v1790_v2  ;;  %v1791_v45 = vpack.c.bf16 %v10519_v38, %v10523_v3  ;;  %v13729_v29 = vld [vmem:[#allocation61_spill] sm:$0xff] }
 0x2d8   : > { %13699 = vst [vmem:[#allocation152_spill] sm:$0xff] %v10523_v3  ;;  %v2591_v6 = vrot.slane %v10443_v48, 6  ;;  %2158 = vmatmul.mubr.bf16.gmra.mrb[56].mxu1 %v1789_v32  ;;  %v13700_v2 = vrot.slane %v13692_v62, 6  ;;  %13703 = vst [vmem:[#allocation155_spill] sm:$0xff] %v10552_v23  ;;  %v3184_v32 = vrot.slane %v9992_v44, 2  ;;  %v3195_v10 = vrot.slane %v10213_v17, 2 }
 0x2d9   : > { %v10536_v54 = vsel %vm2595_vm3, %v2588_v46, %v2590_v57  ;;  %v10540_v13 = vsel %vm2595_vm3, %v2587_v30, %v2589_v60  ;;  %v10550_v49 = vsel %vm2595_vm3, %v2590_v57, %v2592_v11  ;;  %2167 = vmatprep.mubr.bf16.mxu1 %v1792_v34  ;;  %v3187_v57 = vrot.slane %v9990_v61, 2 }
 0x2da   : > { %v10546_v38 = vsel %vm2595_vm3, %v2592_v11, %v13700_v2  ;;  %13702 = vst [vmem:[#allocation154_spill] sm:$0xff] %v10550_v49  ;;  %v10564_v2 = vsel %vm2595_vm3, %v2591_v6, %v13704_v52  ;;  %v10566_v11 = vpop.f32.mrb[73].mxu0  ;;  %v10570_v34 = vsel %vm2595_vm3, %v2589_v60, %v2591_v6  ;;  %v13708_v46 = vrot.slane %v9866_v0, 2 }
 0x2db   : > { %13701 = vst [vmem:[#allocation153_spill] sm:$0xff] %v10546_v38  ;;  %13705 = vst [vmem:[#allocation156_spill] sm:$0xff] %v10564_v2  ;;  %v10580_v23 = vpop.f32.mrb[74].mxu0  ;;  %v3189_v6 = vrot.slane %v10107_v12, 2  ;;  %v3191_v60 = vrot.slane %v10103_v33, 2  ;;  %v10591_v38 = vsel %vm3206_vm4, %v3185_v18, %v3187_v57  ;;  %v3197_v52 = vrot.slane %v10327_v7, 2 }
 0x2dc   : > { %13706 = vst [vmem:[#allocation157_spill] sm:$0xff] %v10566_v11  ;;  %13707 = vst [vmem:[#allocation158_spill] sm:$0xff] %v10570_v34  ;;  %v10577_v30 = vsel %vm3206_vm4, %v13708_v46, %v3185_v18  ;;  %v3186_v11 = vrot.slane %v9987_v39, 2  ;;  %v10587_v49 = vpop.f32.mrb[75].mxu0  ;;  %v10595_v46 = vsel %vm3206_vm4, %v3182_v35, %v3184_v32  ;;  %v3190_v34 = vrot.slane %v10100_v43, 2 }
 0x2dd   : > { %13709 = vst [vmem:[#allocation159_spill] sm:$0xff] %v10577_v30  ;;  %13710 = vst [vmem:[#allocation160_spill] sm:$0xff] %v10580_v23  ;;  %v3188_v23 = vrot.slane %v10105_v51, 2  ;;  %v10608_v18 = vsel %vm3206_vm4, %v3189_v6, %v3191_v60  ;;  %v10612_v35 = vsel %vm3206_vm4, %v3187_v57, %v3189_v6  ;;  %v3192_v30 = vrot.slane %v10215_v37, 2 }
 0x2de   : > { %13711 = vst [vmem:[#allocation161_spill] sm:$0xff] %v10587_v49  ;;  %13712 = vst [vmem:[#allocation162_spill] sm:$0xff] %v10591_v38  ;;  %v10604_v2 = vsel %vm3206_vm4, %v3184_v32, %v3186_v11  ;;  %v3194_v57 = vrot.slane %v10210_v47, 2  ;;  %v3199_v49 = vrot.slane %v10329_v42, 2 }
 0x2df   : > { %13713 = vst [vmem:[#allocation163_spill] sm:$0xff] %v10595_v46  ;;  %13714 = vst [vmem:[#allocation164_spill] sm:$0xff] %v10604_v2  ;;  %v10621_v32 = vsel %vm3206_vm4, %v3186_v11, %v3188_v23  ;;  %v10629_v6 = vsel %vm3206_vm4, %v3188_v23, %v3190_v34  ;;  %v3196_v11 = vrot.slane %v10325_v1, 2  ;;  %v13719_v46 = vld [vmem:[#allocation62_spill] sm:$0xff]  ;;  %v10647_v23 = vsel %vm3206_vm4, %v3191_v60, %v3193_v53 }
 0x2e0   : > { %13715 = vst [vmem:[#allocation165_spill] sm:$0xff] %v10608_v18  ;;  %13716 = vst [vmem:[#allocation166_spill] sm:$0xff] %v10612_v35  ;;  %2168 = vmatmul.mubr.bf16.gmra.mrb[60].mxu1 %v1791_v45  ;;  %v10634_v35 = vpop.f32.mrb[76].mxu0  ;;  %v13718_v18 = vld [vmem:[#allocation64_spill] sm:$0xff]  ;;  %v10643_v45 = vsel %vm3206_vm4, %v3193_v53, %v3195_v10  ;;  %v10651_v56 = vsel %vm3206_vm4, %v3192_v30, %v3194_v57  ;;  %v10663_v38 = vsel %vm3206_vm4, %v3197_v52, %v3199_v49 }
 0x2e1   : > { %13717 = vst [vmem:[#allocation167_spill] sm:$0xff] %v10634_v35  ;;  %v13720_v2 = vpack.c.bf16 %v13718_v18, %v13719_v46  ;;  %13721 = vst [vmem:[#allocation64_spill] sm:$0xff] %v10647_v23  ;;  %v10653_v35 = vpop.f32.mrb[77].mxu0  ;;  %v10659_v18 = vsel %vm3206_vm4, %v3190_v34, %v3192_v30  ;;  %v10667_v53 = vsel %vm3206_vm4, %v3195_v10, %v3197_v52  ;;  %v3198_v46 = vrot.slane %v10323_v25, 2  ;;  %v6987_v10 = vld [vmem:[%s12782_s3 + $0x114] ss:$8 sps:$4 sm:$0xff]  }
 0x2e2   : > { %13722 = vst [vmem:[#allocation168_spill] sm:$0xff] %v10653_v35  ;;  %13723 = vst [vmem:[#allocation169_spill] sm:$0xff] %v10667_v53  ;;  %v10669_v60 = vpop.f32.mrb[78].mxu0  ;;  %v10678_v30 = vsel %vm3206_vm4, %v3194_v57, %v3196_v11  ;;  %v3201_v23 = vrot.slane %v10449_v40, 2  ;;  %v13092_v57 = vrot.slane %v10445_v41, 2  ;;  %v13728_v52 = vld [vmem:[#allocation63_spill] sm:$0xff] }
 0x2e3   : > { %2370 = vmatprep.mubr.bf16.mxu1 %v13720_v2  ;;  %13724 = vst [vmem:[#allocation170_spill] sm:$0xff] %v10669_v60  ;;  %13725 = vst [vmem:[#allocation171_spill] sm:$0xff] %v10678_v30  ;;  %v10680_v34 = vpop.f32.mrb[79].mxu0  ;;  %v6982_v2 = vld [vmem:[%s12782_s3 + $0x100] ss:$8 sps:$4 sm:$0xff]   ;;  %v10692_v35 = vsel %vm3206_vm4, %v3196_v11, %v3198_v46  ;;  %v13095_v60 = vrot.slane %v10443_v48, 2 }
 0x2e4   : > { %13726 = vst [vmem:[#allocation172_spill] sm:$0xff] %v10680_v34  ;;  %13727 = vst [vmem:[#allocation173_spill] sm:$0xff] %v10692_v35  ;;  %v3200_v34 = vrot.slane %v10447_v4, 2  ;;  %v10704_v63 = vsel %vm3206_vm4, %v3199_v49, %v3201_v23  ;;  %v10710_v11 = vsel %vm3206_vm4, %v3201_v23, %v13092_v57  ;;  %v13730_v49 = vpack.c.bf16 %v13728_v52, %v13729_v29  ;;  %v13731_v57 = vld [vmem:[#allocation69_spill] sm:$0xff]  ;;  %v13732_v35 = vld [vmem:[#allocation67_spill] sm:$0xff]  ;;  %v10738_v52 = vpop.f32.mrb[80].mxu0 }
 0x2e5   : > { %v13733_v53 = vpack.c.bf16 %v13731_v57, %v13732_v35  ;;  %13734 = vst [vmem:[#allocation63_spill] sm:$0xff] %v10738_v52  ;;  %v6993_v35 = vld [vmem:[%s12782_s3 + $0x134] ss:$8 sps:$4 sm:$0xff]  }
 0x2e6   : > { %v10716_v3 = vsel %vm3206_vm4, %v3200_v34, %v13095_v60  ;;  %v10720_v31 = vsel %vm3206_vm4, %v3198_v46, %v3200_v34  ;;  %v6985_v46 = vld [vmem:[%s12782_s3 + $0x110] ss:$8 sps:$4 sm:$0xff]   ;;  %v6990_v34 = vld [vmem:[%s12782_s3 + $0x124] ss:$8 sps:$4 sm:$0xff]   ;;  %v10743_v60 = vpop.f32.mrb[81].mxu0 }
 0x2e7   : > { %v13741_v30 = vld [vmem:[#allocation71_spill] sm:$0xff] }
 0x2e8   : > { %2371 = vmatmul.mubr.bf16.vlgmr.msra.gmra.mrb[0].mxu1 %v13730_v49  ;;  %v6988_v49 = vld [vmem:[%s12782_s3 + $0x120] ss:$8 sps:$4 sm:$0xff]  }
 0x2e9   : > { %2380 = vmatprep.mubr.bf16.mxu1 %v13733_v53  ;;  %2886 = vmatpush1.bf16.msra.mxu1 %v6982_v2  ;;  %v10748_v2 = vpop.f32.mrb[82].mxu0  ;;  %v13736_v53 = vld [vmem:[#allocation68_spill] sm:$0xff] }
 0x2ea   : > { %2887 = vmatprep.subr.bf16.mxu1 %v6987_v10  ;;  %13735 = vst [vmem:[#allocation61_spill] sm:$0xff] %v10748_v2  ;;  %v13737_v10 = vld [vmem:[#allocation66_spill] sm:$0xff]  ;;  %v10753_v23 = vpop.f32.mrb[83].mxu0  ;;  %v6996_v2 = vld [vmem:[%s12782_s3 + $0x144] ss:$8 sps:$4 sm:$0xff]  }
 0x2eb   : > { %v13738_v57 = vpack.c.bf16 %v13736_v53, %v13737_v10  ;;  %13739 = vst [vmem:[#allocation69_spill] sm:$0xff] %v10753_v23  ;;  %v6994_v53 = vld [vmem:[%s12782_s3 + $0x140] ss:$8 sps:$4 sm:$0xff]   ;;  %v13761_v23 = vld [vmem:[#allocation18_spill] sm:$0xff] }
 0x2ed   : > { %2888 = vmatpush1.bf16.msra.mxu1 %v6985_v46  ;;  %v13740_v46 = vld [vmem:[#allocation73_spill] sm:$0xff] }
 0x2ee   : > { %2889 = vmatprep.subr.bf16.mxu1 %v6990_v34  ;;  %v13742_v52 = vpack.c.bf16 %v13740_v46, %v13741_v30  ;;  %v6991_v34 = vld [vmem:[%s12782_s3 + $0x130] ss:$8 sps:$4 sm:$0xff]   ;;  %v6999_v30 = vld [vmem:[%s12782_s3 + $0x154] ss:$8 sps:$4 sm:$0xff]  }
 0x2f0   : > { %2381 = vmatmul.mubr.bf16.gmra.mrb[4].mxu1 %v13738_v57  ;;  %v13746_v57 = vld [vmem:[#allocation11_spill] sm:$0xff] }
 0x2f1   : > { %2390 = vmatprep.mubr.bf16.mxu1 %v13742_v52  ;;  %2890 = vmatpush1.bf16.msra.mxu1 %v6988_v49  ;;  %v13743_v52 = vld [vmem:[#allocation72_spill] sm:$0xff]  ;;  %v13744_v49 = vld [vmem:[#allocation70_spill] sm:$0xff] }
 0x2f2   : > { %2891 = vmatprep.subr.bf16.mxu1 %v6993_v35  ;;  %v13745_v10 = vpack.c.bf16 %v13743_v52, %v13744_v49  ;;  %v13747_v35 = vld [vmem:[#allocation9_spill] sm:$0xff]  ;;  %v7005_v49 = vld [vmem:[%s12782_s3 + $0x174] ss:$8 sps:$4 sm:$0xff]  }
 0x2f3   : > { %v13748_v46 = vpack.c.bf16 %v13746_v57, %v13747_v35  ;;  %v7000_v52 = vld [vmem:[%s12782_s3 + $0x160] ss:$8 sps:$4 sm:$0xff]   ;;  %v13752_v35 = vld [vmem:[#allocation75_spill] sm:$0xff] }
 0x2f5   : > { %2892 = vmatpush1.bf16.msra.mxu1 %v6991_v34  ;;  %v6997_v34 = vld [vmem:[%s12782_s3 + $0x150] ss:$8 sps:$4 sm:$0xff]  }
 0x2f6   : > { %2893 = vmatprep.subr.bf16.mxu1 %v6996_v2  ;;  %v7002_v2 = vld [vmem:[%s12782_s3 + $0x164] ss:$8 sps:$4 sm:$0xff]  }
 0x2f8   : > { %2391 = vmatmul.mubr.bf16.gmra.mrb[8].mxu1 %v13745_v10  ;;  %v13750_v10 = vld [vmem:[#allocation74_spill] sm:$0xff] }
 0x2f9   : > { %2400 = vmatprep.mubr.bf16.mxu1 %v13748_v46  ;;  %2894 = vmatpush1.bf16.msra.mxu1 %v6994_v53  ;;  %v13749_v53 = vld [vmem:[#allocation30_spill] sm:$0xff] }
 0x2fa   : > { %2895 = vmatprep.subr.bf16.mxu1 %v6999_v30  ;;  %v13751_v57 = vpack.c.bf16 %v13749_v53, %v13750_v10  ;;  %v13753_v30 = vld [vmem:[#allocation32_spill] sm:$0xff]  ;;  %v7011_v10 = vld [vmem:[%s12782_s3 + $0x194] ss:$8 sps:$4 sm:$0xff]  }
 0x2fb   : > { %v13754_v46 = vpack.c.bf16 %v13752_v35, %v13753_v30  ;;  %v7006_v53 = vld [vmem:[%s12782_s3 + $0x180] ss:$8 sps:$4 sm:$0xff]  }
 0x2fc   : > { %v13757_v30 = vld [vmem:[#allocation36_spill] sm:$0xff] }
 0x2fd   : > { %2896 = vmatpush1.bf16.msra.mxu1 %v6997_v34  ;;  %v7003_v34 = vld [vmem:[%s12782_s3 + $0x170] ss:$8 sps:$4 sm:$0xff]  }
 0x2fe   : > { %2897 = vmatprep.subr.bf16.mxu1 %v7002_v2  ;;  %v7008_v2 = vld [vmem:[%s12782_s3 + $0x184] ss:$8 sps:$4 sm:$0xff]  }
 0x300   : > { %2401 = vmatmul.mubr.bf16.gmra.mrb[12].mxu1 %v13751_v57  ;;  %v13756_v57 = vld [vmem:[#allocation65_spill] sm:$0xff] }
 0x301   : > { %2410 = vmatprep.mubr.bf16.mxu1 %v13754_v46  ;;  %2898 = vmatpush1.bf16.msra.mxu1 %v7000_v52  ;;  %v13755_v52 = vld [vmem:[#allocation88_spill] sm:$0xff]  ;;  %v13758_v46 = vld [vmem:[#allocation10_spill] sm:$0xff] }
 0x302   : > { %2899 = vmatprep.subr.bf16.mxu1 %v7005_v49  ;;  %v1578_v35 = vpack.c.bf16 %v13756_v57, %v13755_v52  ;;  %v13759_v49 = vpack.c.bf16 %v13757_v30, %v13758_v46  ;;  %v7012_v52 = vld [vmem:[%s12782_s3 + $0x1a0] ss:$8 sps:$4 sm:$0xff]   ;;  %v13760_v57 = vld [vmem:[#allocation87_spill] sm:$0xff] }
 0x303   : > { %v1577_v30 = vpack.c.bf16 %v13761_v23, %v13760_v57  ;;  %v7020_v23 = vld [vmem:[%s12782_s3 + $0x1c4] ss:$8 sps:$4 sm:$0xff]   ;;  %v7018_v46 = vld [vmem:[%s12782_s3 + $0x1c0] ss:$8 sps:$4 sm:$0xff]  }
 0x304   : > { %v7032_v57 = vld [vmem:[%s12782_s3 + $0x304] ss:$8 sps:$4 sm:$0xff]  }
 0x305   : > { %2900 = vmatpush1.bf16.msra.mxu1 %v7003_v34  ;;  %v7009_v34 = vld [vmem:[%s12782_s3 + $0x190] ss:$8 sps:$4 sm:$0xff]  }
 0x306   : > { %2901 = vmatprep.subr.bf16.mxu1 %v7008_v2  ;;  %v7014_v2 = vld [vmem:[%s12782_s3 + $0x1a4] ss:$8 sps:$4 sm:$0xff]  }
 0x308   : > { %2411 = vmatmul.mubr.bf16.gmra.mrb[16].mxu1 %v13759_v49  ;;  %v13764_v49 = vpack.c.bf16 %v9585_v20, %v9443_v14  ;;  %v7029_v14 = vld [vmem:[%s12782_s3 + $0x1f4] ss:$8 sps:$4 sm:$0xff]   ;;  %v13766_v20 = vpack.c.bf16 %v9735_v26, %v9581_v9  ;;  %v13769_v9 = vpack.c.bf16 %v9870_v16, %v9731_v36 }
 0x309   : > { %2420 = vmatprep.mubr.bf16.mxu1 %v1578_v35  ;;  %2902 = vmatpush1.bf16.msra.mxu1 %v7006_v53  ;;  %v7017_v53 = vld [vmem:[%s12782_s3 + $0x1b4] ss:$8 sps:$4 sm:$0xff]   ;;  %v7015_v35 = vld [vmem:[%s12782_s3 + $0x1b0] ss:$8 sps:$4 sm:$0xff]  }
 0x30a   : > { %2903 = vmatprep.subr.bf16.mxu1 %v7011_v10  ;;  %v13762_v10 = vpack.c.bf16 %v9447_v21, %v9220_v15  ;;  %v7023_v15 = vld [vmem:[%s12782_s3 + $0x1d4] ss:$8 sps:$4 sm:$0xff]   ;;  %v13763_v21 = vpack.c.bf16 %v9445_v27, %v9217_v50  ;;  %v7024_v50 = vld [vmem:[%s12782_s3 + $0x1e0] ss:$8 sps:$4 sm:$0xff]   ;;  %v13765_v27 = vpack.c.bf16 %v9583_v55, %v9440_v5 }
 0x30b   : > { %v13770_v55 = vld [vmem:[#allocation118_spill] sm:$0xff] }
 0x30c   : > { %v13771_v26 = vpack.c.bf16 %v13770_v55, %v9728_v58  ;;  %v7036_v55 = vld [vmem:[%s12782_s3 + $0x320] ss:$8 sps:$4 sm:$0xff]  }
 0x30d   : > { %2904 = vmatpush1.bf16.msra.mxu1 %v7009_v34  ;;  %v7021_v34 = vld [vmem:[%s12782_s3 + $0x1d0] ss:$8 sps:$4 sm:$0xff]  }
 0x30e   : > { %2905 = vmatprep.subr.bf16.mxu1 %v7014_v2  ;;  %v7026_v2 = vld [vmem:[%s12782_s3 + $0x1e4] ss:$8 sps:$4 sm:$0xff]  }
 0x310   : > { %2421 = vmatmul.mubr.bf16.gmra.mrb[20].mxu1 %v1577_v30  ;;  %v13767_v30 = vld [vmem:[#allocation76_spill] sm:$0xff] }
 0x311   : > { %2430 = vmatprep.mubr.bf16.mxu1 %v13762_v10  ;;  %2906 = vmatpush1.bf16.msra.mxu1 %v7012_v52  ;;  %v7027_v52 = vld [vmem:[%s12782_s3 + $0x1f0] ss:$8 sps:$4 sm:$0xff]   ;;  %v13768_v5 = vpack.c.bf16 %v13767_v30, %v9578_v24  ;;  %v13773_v10 = vld [vmem:[#allocation117_spill] sm:$0xff]  ;;  %v13775_v24 = vpack.c.bf16 %v10107_v12, %v9990_v61  ;;  %v13778_v61 = vpack.c.bf16 %v10215_v37, %v10100_v43 }
 0x312   : > { %2907 = vmatprep.subr.bf16.mxu1 %v7017_v53  ;;  %v13772_v53 = vpack.c.bf16 %v9994_v28, %v9866_v0  ;;  %v13776_v0 = vpack.c.bf16 %v10105_v51, %v9987_v39  ;;  %v13779_v28 = vpack.c.bf16 %v10327_v7, %v10213_v17  ;;  %v13781_v43 = vpack.c.bf16 %v10449_v40, %v10329_v42  ;;  %v13783_v42 = vld [vmem:[#allocation77_spill] sm:$0xff]  ;;  %v13784_v40 = vld [vmem:[#allocation16_spill] sm:$0xff] }
 0x313   : > { %v1598_v51 = vpack.c.bf16 %v13692_v62, %v10445_v41  ;;  %v13782_v17 = vpack.c.bf16 %v10447_v4, %v10323_v25  ;;  %v7030_v4 = vld [vmem:[%s12782_s3 + $0x300] ss:$8 sps:$4 sm:$0xff]  }
 0x315   : > { %2908 = vmatpush1.bf16.msra.mxu1 %v7015_v35  ;;  %v13774_v35 = vpack.c.bf16 %v9992_v44, %v13773_v10  ;;  %v13777_v44 = vpack.c.bf16 %v10217_v22, %v10103_v33  ;;  %v13780_v33 = vpack.c.bf16 %v10325_v1, %v10210_v47  ;;  %v1597_v1 = vpack.c.bf16 %v13696_v19, %v10443_v48  ;;  %v13793_v10 = vld [vmem:[#allocation81_spill] sm:$0xff] }
 0x316   : > { %2909 = vmatprep.subr.bf16.mxu1 %v7020_v23 }
 0x318   : > { %2431 = vmatmul.mubr.bf16.gmra.mrb[24].mxu1 %v13763_v21  ;;  %v13785_v21 = vpack.c.bf16 %v13783_v42, %v13784_v40  ;;  %v7047_v42 = vld [vmem:[%s12782_s3 + $0x354] ss:$8 sps:$4 sm:$0xff]   ;;  %v13798_v40 = vld [vmem:[#allocation85_spill] sm:$0xff] }
 0x319   : > { %2440 = vmatprep.mubr.bf16.mxu1 %v13764_v49  ;;  %2910 = vmatpush1.bf16.msra.mxu1 %v7018_v46 }
 0x31a   : > { %2911 = vmatprep.subr.bf16.mxu1 %v7023_v15 }
 0x31d   : > { %2912 = vmatpush1.bf16.msra.mxu1 %v7021_v34 }
 0x31e   : > { %2913 = vmatprep.subr.bf16.mxu1 %v7026_v2  ;;  %v7035_v2 = vld [vmem:[%s12782_s3 + $0x314] ss:$8 sps:$4 sm:$0xff]  }
 0x320   : > { %2441 = vmatmul.mubr.bf16.gmra.mrb[28].mxu1 %v13765_v27  ;;  %v13787_v27 = vld [vmem:[#allocation21_spill] sm:$0xff] }
 0x321   : > { %2450 = vmatprep.mubr.bf16.mxu1 %v13766_v20  ;;  %2914 = vmatpush1.bf16.msra.mxu1 %v7024_v50 }
 0x322   : > { %2915 = vmatprep.subr.bf16.mxu1 %v7029_v14  ;;  %v13786_v14 = vld [vmem:[#allocation78_spill] sm:$0xff] }
 0x323   : > { %v13788_v20 = vpack.c.bf16 %v13786_v14, %v13787_v27  ;;  %v13802_v14 = vld [vmem:[#allocation89_spill] sm:$0xff] }
 0x325   : > { %2916 = vmatpush1.bf16.msra.mxu1 %v7027_v52  ;;  %v13789_v52 = vld [vmem:[#allocation80_spill] sm:$0xff] }
 0x326   : > { %3496 = vmatprep.subr.bf16.mxu1 %v7032_v57  ;;  %v13790_v57 = vld [vmem:[#allocation79_spill] sm:$0xff] }
 0x327   : > { %v13791_v30 = vpack.c.bf16 %v13789_v52, %v13790_v57  ;;  %v7050_v52 = vld [vmem:[%s12782_s3 + $0x364] ss:$8 sps:$4 sm:$0xff]  }
 0x328   : > { %2451 = vmatmul.mubr.bf16.gmra.mrb[32].mxu1 %v13768_v5  ;;  %v7033_v5 = vld [vmem:[%s12782_s3 + $0x310] ss:$8 sps:$4 sm:$0xff]  }
 0x329   : > { %2460 = vmatprep.mubr.bf16.mxu1 %v13769_v9  ;;  %v10888_v23 = vpop.f32.mrb[84].mxu0  ;;  %v7038_v9 = vld [vmem:[%s12782_s3 + $0x324] ss:$8 sps:$4 sm:$0xff]  }
 0x32a   : > { %v10890_v36 = vpop.f32.mrb[85].mxu0 }
 0x32b   : > { %v10892_v16 = vpop.f32.mrb[86].mxu0 }
 0x32c   : > { %v10894_v58 = vpop.f32.mrb[87].mxu0 }
 0x330   : > { %2461 = vmatmul.mubr.bf16.gmra.mrb[36].mxu1 %v13771_v26  ;;  %v7041_v26 = vld [vmem:[%s12782_s3 + $0x334] ss:$8 sps:$4 sm:$0xff]  }
 0x331   : > { %2470 = vmatprep.mubr.bf16.mxu1 %v13772_v53  ;;  %v13792_v53 = vld [vmem:[#allocation82_spill] sm:$0xff] }
 0x338   : > { %2471 = vmatmul.mubr.bf16.gmra.mrb[40].mxu1 %v13774_v35  ;;  %v13794_v35 = vpack.c.bf16 %v13792_v53, %v13793_v10  ;;  %v13804_v53 = vld [vmem:[#allocation91_spill] sm:$0xff]  ;;  %v13805_v10 = vld [vmem:[#allocation92_spill] sm:$0xff] }
 0x339   : > { %2480 = vmatprep.mubr.bf16.mxu1 %v13775_v24 }
 0x340   : > { %2481 = vmatmul.mubr.bf16.gmra.mrb[44].mxu1 %v13776_v0  ;;  %v10908_v12 = vpop.f32.mrb[88].mxu0  ;;  %v13795_v0 = vld [vmem:[#allocation83_spill] sm:$0xff] }
 0x341   : > { %2490 = vmatprep.mubr.bf16.mxu1 %v13777_v44  ;;  %v10910_v46 = vpop.f32.mrb[89].mxu0  ;;  %v13796_v44 = vld [vmem:[#allocation84_spill] sm:$0xff] }
 0x342   : > { %v10912_v15 = vpop.f32.mrb[90].mxu0 }
 0x343   : > { %v10914_v39 = vpop.f32.mrb[91].mxu0 }
 0x348   : > { %2491 = vmatmul.mubr.bf16.gmra.mrb[48].mxu1 %v13778_v61  ;;  %v13797_v61 = vpack.c.bf16 %v13795_v0, %v13796_v44  ;;  %v13807_v0 = vld [vmem:[#allocation94_spill] sm:$0xff]  ;;  %v13808_v44 = vld [vmem:[#allocation93_spill] sm:$0xff] }
 0x349   : > { %2500 = vmatprep.mubr.bf16.mxu1 %v13779_v28  ;;  %v7039_v28 = vld [vmem:[%s12782_s3 + $0x330] ss:$8 sps:$4 sm:$0xff]  }
 0x34b   : > { %v10927_v37 = vpop.f32.mrb[92].mxu0 }
 0x34c   : > { %v10929_v22 = vpop.f32.mrb[93].mxu0 }
 0x34d   : > { %v10931_v7 = vpop.f32.mrb[94].mxu0 }
 0x34e   : > { %v10933_v47 = vpop.f32.mrb[95].mxu0 }
 0x350   : > { %2501 = vmatmul.mubr.bf16.gmra.mrb[52].mxu1 %v13780_v33 }
 0x351   : > { %2510 = vmatprep.mubr.bf16.mxu1 %v13781_v43  ;;  %v7044_v43 = vld [vmem:[%s12782_s3 + $0x344] ss:$8 sps:$4 sm:$0xff]  }
 0x358   : > { %2511 = vmatmul.mubr.bf16.gmra.mrb[56].mxu1 %v13782_v17 }
 0x359   : > { %2520 = vmatprep.mubr.bf16.mxu1 %v1598_v51 }
 0x35b   : > { %v10940_v49 = vpop.f32.mrb[96].mxu0 }
 0x35c   : > { %v10942_v25 = vpop.f32.mrb[97].mxu0 }
 0x35d   : > { %v10947_v34 = vpop.f32.mrb[98].mxu0 }
 0x35e   : > { %v10952_v50 = vpop.f32.mrb[99].mxu0 }
 0x360   : > { %2521 = vmatmul.mubr.bf16.gmra.mrb[60].mxu1 %v1597_v1  ;;  %v7042_v1 = vld [vmem:[%s12782_s3 + $0x340] ss:$8 sps:$4 sm:$0xff]  }
 0x361   : > { %2917 = vmatprep.mubr.bf16.mxu1 %v13785_v21  ;;  %v13799_v21 = vld [vmem:[#allocation86_spill] sm:$0xff] }
 0x367   : > { %v10975_v24 = vpop.f32.mrb[100].mxu0 }
 0x368   : > { %2918 = vmatmul.mubr.bf16.vlgmr.msra.gmra.mrb[0].mxu1 %v13788_v20  ;;  %v10983_v33 = vpop.f32.mrb[101].mxu0  ;;  %v7045_v20 = vld [vmem:[%s12782_s3 + $0x350] ss:$8 sps:$4 sm:$0xff]  }
 0x369   : > { %2927 = vmatprep.mubr.bf16.mxu1 %v13791_v30  ;;  %3497 = vmatpush1.bf16.msra.mxu1 %v7030_v4  ;;  %v10988_v51 = vpop.f32.mrb[102].mxu0  ;;  %v13800_v4 = vpack.c.bf16 %v13798_v40, %v13799_v21  ;;  %v13810_v40 = vld [vmem:[#allocation96_spill] sm:$0xff]  ;;  %v13811_v21 = vld [vmem:[#allocation95_spill] sm:$0xff] }
 0x36a   : > { %3498 = vmatprep.subr.bf16.mxu1 %v7035_v2  ;;  %v10990_v17 = vpop.f32.mrb[103].mxu0  ;;  %v13801_v2 = vld [vmem:[#allocation90_spill] sm:$0xff] }
 0x36b   : > { %v13803_v27 = vpack.c.bf16 %v13801_v2, %v13802_v14  ;;  %v13813_v14 = vld [vmem:[#allocation19_spill] sm:$0xff] }
 0x36d   : > { %3499 = vmatpush1.bf16.msra.mxu1 %v7033_v5  ;;  %v7048_v5 = vld [vmem:[%s12782_s3 + $0x360] ss:$8 sps:$4 sm:$0xff]  }
 0x36e   : > { %3500 = vmatprep.subr.bf16.mxu1 %v7038_v9 }
 0x370   : > { %2928 = vmatmul.mubr.bf16.gmra.mrb[4].mxu1 %v13794_v35  ;;  %v13806_v35 = vpack.c.bf16 %v13804_v53, %v13805_v10 }
 0x371   : > { %2937 = vmatprep.mubr.bf16.mxu1 %v13797_v61  ;;  %3501 = vmatpush1.bf16.msra.mxu1 %v7036_v55  ;;  %v7053_v55 = vld [vmem:[%s12782_s3 + $0x374] ss:$8 sps:$4 sm:$0xff]   ;;  %v13809_v61 = vpack.c.bf16 %v13807_v0, %v13808_v44  ;;  %v13817_v44 = vld [vmem:[#allocation20_spill] sm:$0xff] }
 0x372   : > { %3502 = vmatprep.subr.bf16.mxu1 %v7041_v26  ;;  %v7065_v0 = vld [vmem:[%s12782_s3 + $0x3b4] ss:$8 sps:$4 sm:$0xff]  }
 0x375   : > { %3503 = vmatpush1.bf16.msra.mxu1 %v7039_v28  ;;  %v7051_v28 = vld [vmem:[%s12782_s3 + $0x370] ss:$8 sps:$4 sm:$0xff]  }
 0x376   : > { %3504 = vmatprep.subr.bf16.mxu1 %v7044_v43  ;;  %v11010_v57 = vpop.f32.mrb[104].mxu0  ;;  %v7056_v43 = vld [vmem:[%s12782_s3 + $0x384] ss:$8 sps:$4 sm:$0xff]  }
 0x377   : > { %v11012_v30 = vpop.f32.mrb[105].mxu0 }
 0x378   : > { %2938 = vmatmul.mubr.bf16.gmra.mrb[8].mxu1 %v13800_v4  ;;  %v11017_v9 = vpop.f32.mrb[106].mxu0  ;;  %v13812_v4 = vpack.c.bf16 %v13810_v40, %v13811_v21  ;;  %v7063_v40 = vld [vmem:[%s12782_s3 + $0x3b0] ss:$8 sps:$4 sm:$0xff]   ;;  %v7068_v21 = vld [vmem:[%s12782_s3 + $0x3c4] ss:$8 sps:$4 sm:$0xff]  }
 0x379   : > { %2947 = vmatprep.mubr.bf16.mxu1 %v13803_v27  ;;  %3505 = vmatpush1.bf16.msra.mxu1 %v7042_v1  ;;  %v11022_v26 = vpop.f32.mrb[107].mxu0  ;;  %v7054_v1 = vld [vmem:[%s12782_s3 + $0x380] ss:$8 sps:$4 sm:$0xff]  }
 0x37a   : > { %3506 = vmatprep.subr.bf16.mxu1 %v7047_v42  ;;  %v7059_v42 = vld [vmem:[%s12782_s3 + $0x394] ss:$8 sps:$4 sm:$0xff]   ;;  %v13814_v27 = vld [vmem:[#allocation13_spill] sm:$0xff] }
 0x37d   : > { %3507 = vmatpush1.bf16.msra.mxu1 %v7045_v20  ;;  %v13815_v20 = vpack.c.bf16 %v13813_v14, %v13814_v27  ;;  %v7066_v14 = vld [vmem:[%s12782_s3 + $0x3c0] ss:$8 sps:$4 sm:$0xff]  }
 0x37e   : > { %3508 = vmatprep.subr.bf16.mxu1 %v7050_v52  ;;  %v7057_v52 = vld [vmem:[%s12782_s3 + $0x390] ss:$8 sps:$4 sm:$0xff]  }
 0x380   : > { %2948 = vmatmul.mubr.bf16.gmra.mrb[12].mxu1 %v13806_v35  ;;  %v7060_v35 = vld [vmem:[%s12782_s3 + $0x3a0] ss:$8 sps:$4 sm:$0xff]  }
 0x381   : > { %2957 = vmatprep.mubr.bf16.mxu1 %v13809_v61  ;;  %3509 = vmatpush1.bf16.msra.mxu1 %v7048_v5  ;;  %v13818_v61 = vld [vmem:[#allocation17_spill] sm:$0xff] }
 0x382   : > { %3510 = vmatprep.subr.bf16.mxu1 %v7053_v55  ;;  %v7062_v55 = vld [vmem:[%s12782_s3 + $0x3a4] ss:$8 sps:$4 sm:$0xff]  }
 0x385   : > { %3511 = vmatpush1.bf16.msra.mxu1 %v7051_v28  ;;  %v11045_v2 = vpop.f32.mrb[108].mxu0  ;;  %v13819_v28 = vpack.c.bf16 %v13817_v44, %v13818_v61  ;;  %v13830_v61 = vld [vmem:[#allocation8_spill] sm:$0xff] }
 0x386   : > { %3512 = vmatprep.subr.bf16.mxu1 %v7056_v43  ;;  %v11053_v5 = vpop.f32.mrb[109].mxu0  ;;  %v13820_v43 = vld [vmem:[#allocation40_spill] sm:$0xff] }
 0x387   : > { %v11058_v53 = vpop.f32.mrb[110].mxu0 }
 0x388   : > { %2958 = vmatmul.mubr.bf16.gmra.mrb[16].mxu1 %v13812_v4  ;;  %v11060_v10 = vpop.f32.mrb[111].mxu0 }
 0x389   : > { %2967 = vmatprep.mubr.bf16.mxu1 %v13815_v20  ;;  %3513 = vmatpush1.bf16.msra.mxu1 %v7054_v1  ;;  %13816 = vst [vmem:[#allocation67_spill] sm:$0xff] %v11060_v10  ;;  %v13821_v1 = vld [vmem:[#allocation22_spill] sm:$0xff]  ;;  %v13855_v10 = vld [vmem:[#allocation124_spill] sm:$0xff] }
 0x38a   : > { %3514 = vmatprep.subr.bf16.mxu1 %v7059_v42  ;;  %v13822_v42 = vpack.c.bf16 %v13820_v43, %v13821_v1  ;;  %v7071_v20 = vld [vmem:[%s12782_s3 + $0x3d4] ss:$8 sps:$4 sm:$0xff]   ;;  %v7069_v1 = vld [vmem:[%s12782_s3 + $0x3d0] ss:$8 sps:$4 sm:$0xff]  }
 0x38d   : > { %3515 = vmatpush1.bf16.msra.mxu1 %v7057_v52 }
 0x38e   : > { %3516 = vmatprep.subr.bf16.mxu1 %v7062_v55 }
 0x390   : > { %2968 = vmatmul.mubr.bf16.gmra.mrb[20].mxu1 %v13819_v28  ;;  %v13831_v28 = vld [vmem:[#allocation56_spill] sm:$0xff] }
 0x391   : > { %2977 = vmatprep.mubr.bf16.mxu1 %v13822_v42  ;;  %3517 = vmatpush1.bf16.msra.mxu1 %v7060_v35  ;;  %v13827_v35 = vld [vmem:[#allocation54_spill] sm:$0xff]  ;;  %v13832_v43 = vpack.c.bf16 %v13830_v61, %v13831_v28  ;;  %v7074_v42 = vld [vmem:[%s12782_s3 + $0x3e4] ss:$8 sps:$4 sm:$0xff]  }
 0x392   : > { %3518 = vmatprep.subr.bf16.mxu1 %v7065_v0  ;;  %v11080_v4 = vpop.f32.mrb[112].mxu0  ;;  %v13828_v0 = vld [vmem:[#allocation24_spill] sm:$0xff]  ;;  %v7075_v28 = vld [vmem:[%s12782_s3 + $0x3f0] ss:$8 sps:$4 sm:$0xff]  }
 0x393   : > { %13823 = vst [vmem:[#allocation68_spill] sm:$0xff] %v11080_v4  ;;  %v11085_v27 = vpop.f32.mrb[113].mxu0  ;;  %v13829_v44 = vpack.c.bf16 %v13827_v35, %v13828_v0  ;;  %v13834_v35 = vld [vmem:[#allocation57_spill] sm:$0xff] }
 0x394   : > { %13824 = vst [vmem:[#allocation66_spill] sm:$0xff] %v11085_v27  ;;  %v11090_v52 = vpop.f32.mrb[114].mxu0  ;;  %v13852_v27 = vld [vmem:[#allocation120_spill] sm:$0xff] }
 0x395   : > { %3519 = vmatpush1.bf16.msra.mxu1 %v7063_v40  ;;  %13825 = vst [vmem:[#allocation73_spill] sm:$0xff] %v11090_v52  ;;  %v11092_v55 = vpop.f32.mrb[115].mxu0  ;;  %v7072_v40 = vld [vmem:[%s12782_s3 + $0x3e0] ss:$8 sps:$4 sm:$0xff]   ;;  %v13851_v52 = vld [vmem:[#allocation23_spill] sm:$0xff] }
 0x396   : > { %3520 = vmatprep.subr.bf16.mxu1 %v7068_v21  ;;  %13826 = vst [vmem:[#allocation71_spill] sm:$0xff] %v11092_v55  ;;  %v7077_v21 = vld [vmem:[%s12782_s3 + $0x3f4] ss:$8 sps:$4 sm:$0xff]   ;;  %v13848_v55 = vld [vmem:[#allocation60_spill] sm:$0xff]  ;;  %v13853_v4 = vpack.c.bf16 %v13851_v52, %v13852_v27 }
 0x397   : > { %v13870_v52 = vld [vmem:[#allocation12_spill] sm:$0xff] }
 0x398   : > { %2978 = vmatmul.mubr.bf16.gmra.mrb[24].mxu1 %v13829_v44  ;;  %v13836_v44 = vld [vmem:[#allocation58_spill] sm:$0xff] }
 0x399   : > { %2987 = vmatprep.mubr.bf16.mxu1 %v13832_v43  ;;  %3521 = vmatpush1.bf16.msra.mxu1 %v7066_v14  ;;  %v13833_v14 = vld [vmem:[#allocation41_spill] sm:$0xff] }
 0x39a   : > { %3522 = vmatprep.subr.bf16.mxu1 %v7071_v20  ;;  %v13835_v0 = vpack.c.bf16 %v13833_v14, %v13834_v35  ;;  %v13837_v20 = vld [vmem:[#allocation42_spill] sm:$0xff]  ;;  %v7150_v43 = vld [vmem:[%s12782_s3 + $0x404] ss:$8 sps:$4 sm:$0xff]  }
 0x39b   : > { %v13838_v61 = vpack.c.bf16 %v13836_v44, %v13837_v20  ;;  %v13842_v35 = vld [vmem:[#allocation50_spill] sm:$0xff] }
 0x39c   : > { %v13846_v20 = vld [vmem:[#allocation46_spill] sm:$0xff] }
 0x39d   : > { %3523 = vmatpush1.bf16.msra.mxu1 %v7069_v1  ;;  %v13839_v1 = vld [vmem:[#allocation59_spill] sm:$0xff] }
 0x39e   : > { %3524 = vmatprep.subr.bf16.mxu1 %v7074_v42  ;;  %v13840_v42 = vld [vmem:[#allocation14_spill] sm:$0xff] }
 0x39f   : > { %v13841_v14 = vpack.c.bf16 %v13839_v1, %v13840_v42  ;;  %v13857_v42 = vld [vmem:[#allocation26_spill] sm:$0xff] }
 0x3a0   : > { %2988 = vmatmul.mubr.bf16.gmra.mrb[28].mxu1 %v13835_v0  ;;  %v13843_v0 = vld [vmem:[#allocation45_spill] sm:$0xff] }
 0x3a1   : > { %2997 = vmatprep.mubr.bf16.mxu1 %v13838_v61  ;;  %3525 = vmatpush1.bf16.msra.mxu1 %v7072_v40  ;;  %v13844_v44 = vpack.c.bf16 %v13842_v35, %v13843_v0  ;;  %v13845_v40 = vld [vmem:[#allocation53_spill] sm:$0xff] }
 0x3a2   : > { %3526 = vmatprep.subr.bf16.mxu1 %v7077_v21  ;;  %v13847_v61 = vpack.c.bf16 %v13845_v40, %v13846_v20  ;;  %v13849_v21 = vld [vmem:[#allocation119_spill] sm:$0xff]  ;;  %v13860_v0 = vld [vmem:[#allocation29_spill] sm:$0xff] }
 0x3a3   : > { %v13863_v20 = vld [vmem:[#allocation31_spill] sm:$0xff] }
 0x3a5   : > { %3527 = vmatpush1.bf16.msra.mxu1 %v7075_v28  ;;  %v13850_v28 = vpack.c.bf16 %v13848_v55, %v13849_v21  ;;  %v13866_v21 = vld [vmem:[#allocation137_spill] sm:$0xff] }
 0x3a6   : > { %6314 = vmatprep.subr.bf16.mxu1 %v7150_v43  ;;  %v13854_v43 = vld [vmem:[#allocation25_spill] sm:$0xff] }
 0x3a7   : > { %v13856_v1 = vpack.c.bf16 %v13854_v43, %v13855_v10  ;;  %v13872_v43 = vpack.c.bf16 %v10536_v54, %v10433_v8  ;;  %v13887_v54 = vld [vmem:[#allocation101_spill] sm:$0xff] }
 0x3a8   : > { %2998 = vmatmul.mubr.bf16.gmra.mrb[32].mxu1 %v13841_v14  ;;  %v13858_v14 = vld [vmem:[#allocation125_spill] sm:$0xff] }
 0x3a9   : > { %3007 = vmatprep.mubr.bf16.mxu1 %v13844_v44  ;;  %v13859_v35 = vpack.c.bf16 %v13857_v42, %v13858_v14  ;;  %v13861_v44 = vld [vmem:[#allocation129_spill] sm:$0xff] }
 0x3aa   : > { %v13862_v40 = vpack.c.bf16 %v13860_v0, %v13861_v44  ;;  %v13875_v14 = vld [vmem:[#allocation153_spill] sm:$0xff]  ;;  %v13878_v44 = vld [vmem:[#allocation156_spill] sm:$0xff] }
 0x3b0   : > { %3008 = vmatmul.mubr.bf16.gmra.mrb[36].mxu1 %v13847_v61  ;;  %v13864_v61 = vld [vmem:[#allocation130_spill] sm:$0xff] }
 0x3b1   : > { %3017 = vmatprep.mubr.bf16.mxu1 %v13850_v28  ;;  %v13865_v55 = vpack.c.bf16 %v13863_v20, %v13864_v61  ;;  %v13867_v28 = vld [vmem:[#allocation55_spill] sm:$0xff] }
 0x3b2   : > { %v13868_v27 = vpack.c.bf16 %v13866_v21, %v13867_v28  ;;  %v13881_v61 = vld [vmem:[#allocation99_spill] sm:$0xff]  ;;  %v13884_v28 = vld [vmem:[#allocation100_spill] sm:$0xff] }
 0x3b8   : > { %3018 = vmatmul.mubr.bf16.gmra.mrb[40].mxu1 %v13853_v4  ;;  %v13869_v4 = vld [vmem:[#allocation138_spill] sm:$0xff] }
 0x3b9   : > { %3027 = vmatprep.mubr.bf16.mxu1 %v13856_v1  ;;  %v13871_v10 = vpack.c.bf16 %v13869_v4, %v13870_v52  ;;  %v13873_v1 = vld [vmem:[#allocation142_spill] sm:$0xff]  ;;  %v7151_v52 = vld [vmem:[%s12782_s3 + $0x400] ss:$8 sps:$4 sm:$0xff]  }
 0x3ba   : > { %v13874_v42 = vpack.c.bf16 %v10540_v13, %v13873_v1  ;;  %v13888_v4 = vld [vmem:[#allocation102_spill] sm:$0xff]  ;;  %v7154_v1 = vld [vmem:[%s12782_s3 + $0x424] ss:$8 sps:$4 sm:$0xff]  }
 0x3bb   : > { %v13889_v13 = vpack.c.bf16 %v13887_v54, %v13888_v4  ;;  %v13899_v54 = vld [vmem:[#allocation110_spill] sm:$0xff]  ;;  %v13900_v4 = vld [vmem:[#allocation109_spill] sm:$0xff] }
 0x3c0   : > { %3028 = vmatmul.mubr.bf16.gmra.mrb[44].mxu1 %v13859_v35  ;;  %v13876_v35 = vld [vmem:[#allocation154_spill] sm:$0xff] }
 0x3c1   : > { %3037 = vmatprep.mubr.bf16.mxu1 %v13862_v40  ;;  %v13877_v0 = vpack.c.bf16 %v13875_v14, %v13876_v35  ;;  %v13879_v40 = vld [vmem:[#allocation158_spill] sm:$0xff]  ;;  %v13891_v14 = vld [vmem:[#allocation104_spill] sm:$0xff] }
 0x3c2   : > { %v13880_v20 = vpack.c.bf16 %v13878_v44, %v13879_v40  ;;  %v13894_v44 = vld [vmem:[#allocation106_spill] sm:$0xff] }
 0x3c8   : > { %3038 = vmatmul.mubr.bf16.gmra.mrb[48].mxu1 %v13865_v55  ;;  %v13882_v55 = vld [vmem:[#allocation97_spill] sm:$0xff] }
 0x3c9   : > { %3047 = vmatprep.mubr.bf16.mxu1 %v13868_v27  ;;  %v13883_v21 = vpack.c.bf16 %v13881_v61, %v13882_v55  ;;  %v13885_v27 = vld [vmem:[#allocation98_spill] sm:$0xff] }
 0x3ca   : > { %v13886_v8 = vpack.c.bf16 %v13884_v28, %v13885_v27  ;;  %v7156_v61 = vld [vmem:[%s12782_s3 + $0x434] ss:$8 sps:$4 sm:$0xff]   ;;  %v7157_v55 = vld [vmem:[%s12782_s3 + $0x430] ss:$8 sps:$4 sm:$0xff]   ;;  %v13896_v28 = vld [vmem:[#allocation108_spill] sm:$0xff] }
 0x3cb   : > { %v13897_v27 = vld [vmem:[#allocation107_spill] sm:$0xff] }
 0x3d0   : > { %3048 = vmatmul.mubr.bf16.gmra.mrb[52].mxu1 %v13871_v10  ;;  %v7152_v10 = vld [vmem:[%s12782_s3 + $0x414] ss:$8 sps:$4 sm:$0xff]  }
 0x3d1   : > { %3057 = vmatprep.mubr.bf16.mxu1 %v13872_v43  ;;  %v7153_v43 = vld [vmem:[%s12782_s3 + $0x410] ss:$8 sps:$4 sm:$0xff]  }
 0x3d8   : > { %3058 = vmatmul.mubr.bf16.gmra.mrb[56].mxu1 %v13874_v42  ;;  %v13890_v42 = vld [vmem:[#allocation103_spill] sm:$0xff] }
 0x3d9   : > { %3067 = vmatprep.mubr.bf16.mxu1 %v13877_v0  ;;  %v13892_v35 = vpack.c.bf16 %v13890_v42, %v13891_v14  ;;  %v13893_v0 = vld [vmem:[#allocation105_spill] sm:$0xff]  ;;  %v13902_v42 = vld [vmem:[#allocation111_spill] sm:$0xff]  ;;  %v13903_v14 = vld [vmem:[#allocation112_spill] sm:$0xff] }
 0x3da   : > { %v13895_v40 = vpack.c.bf16 %v13893_v0, %v13894_v44  ;;  %v13905_v0 = vld [vmem:[#allocation114_spill] sm:$0xff]  ;;  %v13906_v44 = vld [vmem:[#allocation113_spill] sm:$0xff] }
 0x3e0   : > { %3068 = vmatmul.mubr.bf16.gmra.mrb[60].mxu1 %v13880_v20  ;;  %v7155_v20 = vld [vmem:[%s12782_s3 + $0x420] ss:$8 sps:$4 sm:$0xff]  }
 0x3e1   : > { %3528 = vmatprep.mubr.bf16.mxu1 %v13883_v21  ;;  %v7158_v21 = vld [vmem:[%s12782_s3 + $0x444] ss:$8 sps:$4 sm:$0xff]  }
 0x3e8   : > { %3529 = vmatmul.mubr.bf16.vlgmr.msra.gmra.mrb[0].mxu1 %v13886_v8  ;;  %v13898_v8 = vpack.c.bf16 %v13896_v28, %v13897_v27  ;;  %v13908_v28 = vld [vmem:[#allocation115_spill] sm:$0xff]  ;;  %v13909_v27 = vld [vmem:[#allocation116_spill] sm:$0xff] }
 0x3e9   : > { %3538 = vmatprep.mubr.bf16.mxu1 %v13889_v13  ;;  %6330 = vmatpush1.bf16.msra.mxu1 %v7151_v52  ;;  %v13901_v13 = vpack.c.bf16 %v13899_v54, %v13900_v4  ;;  %v7159_v52 = vld [vmem:[%s12782_s3 + $0x440] ss:$8 sps:$4 sm:$0xff]   ;;  %v13911_v54 = vld [vmem:[#allocation27_spill] sm:$0xff] }
 0x3ea   : > { %6315 = vmatprep.subr.bf16.mxu1 %v7152_v10  ;;  %v7160_v10 = vld [vmem:[%s12782_s3 + $0x454] ss:$8 sps:$4 sm:$0xff]   ;;  %v13912_v4 = vld [vmem:[#allocation28_spill] sm:$0xff] }
 0x3ed   : > { %6331 = vmatpush1.bf16.msra.mxu1 %v7153_v43  ;;  %v7161_v43 = vld [vmem:[%s12782_s3 + $0x450] ss:$8 sps:$4 sm:$0xff]  }
 0x3ee   : > { %6316 = vmatprep.subr.bf16.mxu1 %v7154_v1  ;;  %v7162_v1 = vld [vmem:[%s12782_s3 + $0x464] ss:$8 sps:$4 sm:$0xff]  }
 0x3f0   : > { %3539 = vmatmul.mubr.bf16.gmra.mrb[4].mxu1 %v13892_v35  ;;  %v13904_v35 = vpack.c.bf16 %v13902_v42, %v13903_v14  ;;  %v13914_v42 = vld [vmem:[#allocation35_spill] sm:$0xff] }
 0x3f1   : > { %3548 = vmatprep.mubr.bf16.mxu1 %v13895_v40  ;;  %6332 = vmatpush1.bf16.msra.mxu1 %v7155_v20  ;;  %v13907_v40 = vpack.c.bf16 %v13905_v0, %v13906_v44  ;;  %v7163_v20 = vld [vmem:[%s12782_s3 + $0x460] ss:$8 sps:$4 sm:$0xff]   ;;  %v13915_v14 = vld [vmem:[#allocation43_spill] sm:$0xff] }
 0x3f2   : > { %6317 = vmatprep.subr.bf16.mxu1 %v7156_v61  ;;  %v7164_v61 = vld [vmem:[%s12782_s3 + $0x474] ss:$8 sps:$4 sm:$0xff]   ;;  %v13918_v44 = vld [vmem:[#allocation49_spill] sm:$0xff] }
 0x3f3   : > { %v13917_v0 = vld [vmem:[#allocation47_spill] sm:$0xff] }
 0x3f5   : > { %6333 = vmatpush1.bf16.msra.mxu1 %v7157_v55  ;;  %v7165_v55 = vld [vmem:[%s12782_s3 + $0x470] ss:$8 sps:$4 sm:$0xff]  }
 0x3f6   : > { %6318 = vmatprep.subr.bf16.mxu1 %v7158_v21  ;;  %v7166_v21 = vld [vmem:[%s12782_s3 + $0x484] ss:$8 sps:$4 sm:$0xff]  }
 0x3f8   : > { %3549 = vmatmul.mubr.bf16.gmra.mrb[8].mxu1 %v13898_v8  ;;  %v13910_v8 = vpack.c.bf16 %v13908_v28, %v13909_v27  ;;  %v13920_v28 = vld [vmem:[#allocation121_spill] sm:$0xff]  ;;  %v13921_v27 = vld [vmem:[#allocation122_spill] sm:$0xff] }
 0x3f9   : > { %3558 = vmatprep.mubr.bf16.mxu1 %v13901_v13  ;;  %6334 = vmatpush1.bf16.msra.mxu1 %v7159_v52  ;;  %v13913_v13 = vpack.c.bf16 %v13911_v54, %v13912_v4  ;;  %v7167_v52 = vld [vmem:[%s12782_s3 + $0x480] ss:$8 sps:$4 sm:$0xff]   ;;  %v13923_v54 = vld [vmem:[#allocation126_spill] sm:$0xff]  ;;  %v13924_v4 = vld [vmem:[#allocation123_spill] sm:$0xff] }
 0x3fa   : > { %6319 = vmatprep.subr.bf16.mxu1 %v7160_v10  ;;  %v7168_v10 = vld [vmem:[%s12782_s3 + $0x494] ss:$8 sps:$4 sm:$0xff]  }
 0x3fd   : > { %6335 = vmatpush1.bf16.msra.mxu1 %v7161_v43  ;;  %v7169_v43 = vld [vmem:[%s12782_s3 + $0x490] ss:$8 sps:$4 sm:$0xff]  }
 0x3fe   : > { %6320 = vmatprep.subr.bf16.mxu1 %v7162_v1  ;;  %v7170_v1 = vld [vmem:[%s12782_s3 + $0x4a4] ss:$8 sps:$4 sm:$0xff]  }
 0x400   : > { %3559 = vmatmul.mubr.bf16.gmra.mrb[12].mxu1 %v13904_v35  ;;  %v13916_v35 = vpack.c.bf16 %v13914_v42, %v13915_v14  ;;  %v13926_v42 = vld [vmem:[#allocation127_spill] sm:$0xff]  ;;  %v13927_v14 = vld [vmem:[#allocation128_spill] sm:$0xff] }
 0x401   : > { %3568 = vmatprep.mubr.bf16.mxu1 %v13907_v40  ;;  %6336 = vmatpush1.bf16.msra.mxu1 %v7163_v20  ;;  %v13919_v40 = vpack.c.bf16 %v13917_v0, %v13918_v44  ;;  %v7171_v20 = vld [vmem:[%s12782_s3 + $0x4a0] ss:$8 sps:$4 sm:$0xff]   ;;  %v13929_v0 = vld [vmem:[#allocation38_spill] sm:$0xff]  ;;  %v13930_v44 = vld [vmem:[#allocation131_spill] sm:$0xff] }
 0x402   : > { %6321 = vmatprep.subr.bf16.mxu1 %v7164_v61  ;;  %v7172_v61 = vld [vmem:[%s12782_s3 + $0x4b4] ss:$8 sps:$4 sm:$0xff]  }
 0x405   : > { %6337 = vmatpush1.bf16.msra.mxu1 %v7165_v55  ;;  %v7173_v55 = vld [vmem:[%s12782_s3 + $0x4b0] ss:$8 sps:$4 sm:$0xff]  }
 0x406   : > { %6322 = vmatprep.subr.bf16.mxu1 %v7166_v21  ;;  %v7174_v21 = vld [vmem:[%s12782_s3 + $0x4c4] ss:$8 sps:$4 sm:$0xff]  }
 0x408   : > { %3569 = vmatmul.mubr.bf16.gmra.mrb[16].mxu1 %v13910_v8  ;;  %v13922_v8 = vpack.c.bf16 %v13920_v28, %v13921_v27  ;;  %v13933_v28 = vld [vmem:[#allocation133_spill] sm:$0xff] }
 0x409   : > { %3578 = vmatprep.mubr.bf16.mxu1 %v13913_v13  ;;  %6338 = vmatpush1.bf16.msra.mxu1 %v7167_v52  ;;  %v13925_v13 = vpack.c.bf16 %v13923_v54, %v13924_v4  ;;  %v7175_v52 = vld [vmem:[%s12782_s3 + $0x4c0] ss:$8 sps:$4 sm:$0xff]  }
 0x40a   : > { %6323 = vmatprep.subr.bf16.mxu1 %v7168_v10  ;;  %v7176_v10 = vld [vmem:[%s12782_s3 + $0x4d4] ss:$8 sps:$4 sm:$0xff]   ;;  %v13936_v54 = vld [vmem:[#allocation44_spill] sm:$0xff] }
 0x40d   : > { %6339 = vmatpush1.bf16.msra.mxu1 %v7169_v43  ;;  %v7177_v43 = vld [vmem:[%s12782_s3 + $0x4d0] ss:$8 sps:$4 sm:$0xff]  }
 0x40e   : > { %6324 = vmatprep.subr.bf16.mxu1 %v7170_v1  ;;  %v7178_v1 = vld [vmem:[%s12782_s3 + $0x4e4] ss:$8 sps:$4 sm:$0xff]  }
 0x410   : > { %3579 = vmatmul.mubr.bf16.gmra.mrb[20].mxu1 %v13916_v35  ;;  %v13928_v35 = vpack.c.bf16 %v13926_v42, %v13927_v14  ;;  %v13944_v14 = vld [vmem:[#allocation164_spill] sm:$0xff] }
 0x411   : > { %3588 = vmatprep.mubr.bf16.mxu1 %v13919_v40  ;;  %6340 = vmatpush1.bf16.msra.mxu1 %v7171_v20  ;;  %v13931_v40 = vpack.c.bf16 %v13929_v0, %v13930_v44  ;;  %v7179_v20 = vld [vmem:[%s12782_s3 + $0x4e0] ss:$8 sps:$4 sm:$0xff]  }
 0x412   : > { %6325 = vmatprep.subr.bf16.mxu1 %v7172_v61  ;;  %v7180_v61 = vld [vmem:[%s12782_s3 + $0x4f4] ss:$8 sps:$4 sm:$0xff]   ;;  %v13947_v44 = vld [vmem:[#allocation165_spill] sm:$0xff] }
 0x415   : > { %6341 = vmatpush1.bf16.msra.mxu1 %v7173_v55  ;;  %v7181_v55 = vld [vmem:[%s12782_s3 + $0x4f0] ss:$8 sps:$4 sm:$0xff]  }
 0x416   : > { %6326 = vmatprep.subr.bf16.mxu1 %v7174_v21  ;;  %v13932_v21 = vld [vmem:[#allocation132_spill] sm:$0xff] }
 0x417   : > { %v13934_v27 = vpack.c.bf16 %v13932_v21, %v13933_v28  ;;  %v13953_v28 = vpack.c.bf16 %v10651_v56, %v10659_v18  ;;  %v13961_v18 = vld [vmem:[#allocation62_spill] sm:$0xff] }
 0x418   : > { %3589 = vmatmul.mubr.bf16.gmra.mrb[24].mxu1 %v13922_v8  ;;  %v13935_v8 = vld [vmem:[#allocation141_spill] sm:$0xff] }
 0x419   : > { %3598 = vmatprep.mubr.bf16.mxu1 %v13925_v13  ;;  %6342 = vmatpush1.bf16.msra.mxu1 %v7175_v52  ;;  %v13937_v4 = vpack.c.bf16 %v13935_v8, %v13936_v54  ;;  %v13938_v13 = vld [vmem:[#allocation143_spill] sm:$0xff]  ;;  %v13939_v52 = vld [vmem:[#allocation144_spill] sm:$0xff]  ;;  %v13956_v54 = vld [vmem:[#allocation173_spill] sm:$0xff] }
 0x41a   : > { %6327 = vmatprep.subr.bf16.mxu1 %v7176_v10  ;;  %v13940_v10 = vpack.c.bf16 %v13938_v13, %v13939_v52  ;;  %v13962_v52 = vrot.slane %v13961_v18, 2 }
 0x41d   : > { %6343 = vmatpush1.bf16.msra.mxu1 %v7177_v43  ;;  %v13941_v43 = vld [vmem:[#allocation162_spill] sm:$0xff] }
 0x41e   : > { %6328 = vmatprep.subr.bf16.mxu1 %v7178_v1  ;;  %v13942_v1 = vld [vmem:[#allocation159_spill] sm:$0xff] }
 0x41f   : > { %v13943_v42 = vpack.c.bf16 %v13941_v43, %v13942_v1  ;;  %v13963_v43 = vpack.c.bf16 %v10716_v3, %v10720_v31  ;;  %v13969_v31 = vld [vmem:[#allocation39_spill] sm:$0xff] }
 0x420   : > { %3599 = vmatmul.mubr.bf16.gmra.mrb[28].mxu1 %v13928_v35  ;;  %v13945_v35 = vld [vmem:[#allocation163_spill] sm:$0xff] }
 0x421   : > { %3608 = vmatprep.mubr.bf16.mxu1 %v13931_v40  ;;  %6344 = vmatpush1.bf16.msra.mxu1 %v7179_v20  ;;  %v13946_v0 = vpack.c.bf16 %v13944_v14, %v13945_v35  ;;  %v13948_v40 = vld [vmem:[#allocation166_spill] sm:$0xff]  ;;  %v13966_v14 = vld [vmem:[#allocation147_spill] sm:$0xff] }
 0x422   : > { %6329 = vmatprep.subr.bf16.mxu1 %v7180_v61  ;;  %v13949_v20 = vpack.c.bf16 %v13947_v44, %v13948_v40  ;;  %v13950_v61 = vpack.c.bf16 %v10629_v6, %v10621_v32  ;;  %v13959_v32 = vpack.c.bf16 %v10710_v11, %v10704_v63  ;;  %v3205_v6 = vrot.slane %v13692_v62, 2  ;;  %v13967_v35 = vld [vmem:[#allocation134_spill] sm:$0xff]  ;;  %v13970_v3 = vld [vmem:[#allocation135_spill] sm:$0xff] }
 0x423   : > { %v3204_v63 = vrot.slane %v13696_v19, 2  ;;  %v13964_v62 = vrot.slane %v10443_v48, 2  ;;  %v13965_v11 = vrot.slane %v13729_v29, 2  ;;  %v13971_v44 = vpack.c.bf16 %v13969_v31, %v13970_v3  ;;  %v13972_v19 = vld [vmem:[#allocation151_spill] sm:$0xff]  ;;  %v13973_v48 = vld [vmem:[#allocation149_spill] sm:$0xff] }
 0x424   : > { %v13974_v40 = vpack.c.bf16 %v13972_v19, %v13973_v48  ;;  %v13988_v19 = vld [vmem:[#allocation48_spill] sm:$0xff] }
 0x425   : > { %6345 = vmatpush1.bf16.msra.mxu1 %v7181_v55  ;;  %v13951_v55 = vld [vmem:[#allocation64_spill] sm:$0xff]  ;;  %v3269_v1 = vsel %vm3206_vm4, %v3204_v63, %v13965_v11 }
 0x426   : > { %v13952_v21 = vpack.c.bf16 %v10643_v45, %v13951_v55  ;;  %v13960_v45 = vrot.slane %v10445_v41, 2  ;;  %v3207_v41 = vsel %vm3206_vm4, %v13964_v62, %v3204_v63  ;;  %v13977_v55 = vld [vmem:[#allocation152_spill] sm:$0xff]  ;;  %v13985_v63 = vld [vmem:[#allocation139_spill] sm:$0xff] }
 0x427   : > { %v13986_v11 = vld [vmem:[#allocation140_spill] sm:$0xff] }
 0x428   : > { %3609 = vmatmul.mubr.bf16.gmra.mrb[32].mxu1 %v13934_v27  ;;  %v13954_v27 = vld [vmem:[#allocation169_spill] sm:$0xff]  ;;  %v3208_v56 = vsel %vm3206_vm4, %v13960_v45, %v3205_v6  ;;  %v13983_v45 = vld [vmem:[#allocation136_spill] sm:$0xff] }
 0x429   : > { %3618 = vmatprep.mubr.bf16.mxu1 %v13937_v4  ;;  %v13955_v8 = vpack.c.bf16 %v10663_v38, %v13954_v27  ;;  %v13957_v4 = vld [vmem:[#allocation171_spill] sm:$0xff]  ;;  %v3270_v38 = vsel %vm3206_vm4, %v3205_v6, %v13962_v52  ;;  %v13984_v52 = vld [vmem:[#allocation37_spill] sm:$0xff] }
 0x42a   : > { %v13958_v13 = vpack.c.bf16 %v13956_v54, %v13957_v4  ;;  %v13980_v27 = vld [vmem:[#allocation51_spill] sm:$0xff]  ;;  %v4235_v4 = vld [vmem:[%s12783_s4] sm:$0x3] }
 0x430   : > { %3619 = vmatmul.mubr.bf16.gmra.mrb[36].mxu1 %v13940_v10  ;;  %v3302_v10 = vpack.c.bf16 %v3270_v38, %v3208_v56 }
 0x431   : > { %3628 = vmatprep.mubr.bf16.mxu1 %v13943_v42  ;;  %v3301_v42 = vpack.c.bf16 %v3269_v1, %v3207_v41 }
 0x438   : > { %3629 = vmatmul.mubr.bf16.gmra.mrb[40].mxu1 %v13946_v0  ;;  %v13968_v0 = vpack.c.bf16 %v13966_v14, %v13967_v35 }
 0x439   : > { %3638 = vmatprep.mubr.bf16.mxu1 %v13949_v20  ;;  %v13975_v20 = vld [vmem:[#allocation52_spill] sm:$0xff] }
 0x440   : > { %3639 = vmatmul.mubr.bf16.gmra.mrb[44].mxu1 %v13950_v61  ;;  %v13976_v61 = vld [vmem:[#allocation34_spill] sm:$0xff] }
 0x441   : > { %3648 = vmatprep.mubr.bf16.mxu1 %v13952_v21  ;;  %v3784_v29 = vpack.c.bf16 %v13976_v61, %v13975_v20  ;;  %v13978_v21 = vld [vmem:[#allocation150_spill] sm:$0xff] }
 0x448   : > { %3649 = vmatmul.mubr.bf16.gmra.mrb[48].mxu1 %v13953_v28  ;;  %v13979_v28 = vpack.c.bf16 %v13977_v55, %v13978_v21 }
 0x449   : > { %3658 = vmatprep.mubr.bf16.mxu1 %v13955_v8  ;;  %v13981_v8 = vld [vmem:[#allocation15_spill] sm:$0xff] }
 0x44a   : > { %v3783_v54 = vpack.c.bf16 %v13981_v8, %v13980_v27  ;;  %v13990_v27 = vld [vmem:[#allocation146_spill] sm:$0xff] }
 0x450   : > { %3659 = vmatmul.mubr.bf16.gmra.mrb[52].mxu1 %v13958_v13  ;;  %v13982_v13 = vsub.s32 0, %v7524_v59 }
 0x451   : > { %3668 = vmatprep.mubr.bf16.mxu1 %v13959_v32 }
 0x452   : > { %v11391_v32 = vrot.slane %v4235_v4, %v13982_v13  ;;  %v13991_v13 = vld [vmem:[#allocation148_spill] sm:$0xff] }
 0x458   : > { %3669 = vmatmul.mubr.bf16.gmra.mrb[56].mxu1 %v13963_v43 }
 0x459   : > { %3678 = vmatprep.mubr.bf16.mxu1 %v3302_v10 }
 0x460   : > { %3679 = vmatmul.mubr.bf16.gmra.mrb[60].mxu1 %v3301_v42  ;;  %v13987_v42 = vsub.s32 1, %v7524_v59 }
 0x461   : > { %4140 = vmatprep.mubr.bf16.mxu1 %v13968_v0 }
 0x462   : > { %v11402_v14 = vrot.slane %v4235_v4, %v13987_v42 }
 0x468   : > { %4141 = vmatmul.mubr.bf16.vlgmr.msra.gmra.mrb[52].mxu1 %v13971_v44 }
 0x469   : > { %4150 = vmatprep.mubr.bf16.mxu1 %v13974_v40 }
 0x470   : > { %4151 = vmatmul.mubr.bf16.gmra.mrb[56].mxu1 %v13979_v28 }
 0x471   : > { %4160 = vmatprep.mubr.bf16.mxu1 %v3784_v29  ;;  %v13989_v29 = vld [vmem:[#allocation145_spill] sm:$0xff] }
 0x478   : > { %4161 = vmatmul.mubr.bf16.gmra.mrb[60].mxu1 %v3783_v54 }
 0x4bb   : > { %v3530_v6 = vpop.f32.mrb[0].mxu1 }
 0x4bc   : > { %v6346_v56 = vadd.f32 %v13983_v45, %v3530_v6  ;;  %v3532_v18 = vpop.f32.mrb[1].mxu1 }
 0x4bd   : > { %v6347_v38 = vadd.f32 %v13984_v52, %v3532_v18  ;;  %v3534_v10 = vpop.f32.mrb[2].mxu1 }
 0x4be   : > { %v11396_v43 = vadd.f32 %v6346_v56, %v11391_v32  ;;  %v6348_v62 = vadd.f32 %v13985_v63, %v3534_v10  ;;  %v3536_v41 = vpop.f32.mrb[3].mxu1 }
 0x4bf   : > { %v6349_v1 = vadd.f32 %v13986_v11, %v3536_v41  ;;  %v11410_v44 = vadd.f32 %v6347_v38, %v11402_v14  ;;  %v13992_v41 = vld [vmem:[#allocation155_spill] sm:$0xff] }
 0x4c0   : > { %v11405_v35 = vadd.f32 %v6348_v62, %v11391_v32  ;;  %v13137_v0 = vmax.f32 %v11396_v43, 0.0 }
 0x4c1   : > { %v11418_v61 = vadd.f32 %v6349_v1, %v11402_v14  ;;  %v13136_v45 = vmax.f32 %v11410_v44, 0.0 }
 0x4c2   : > { %v13101_v31 = vmax.f32 %v11405_v35, 0.0 }
 0x4c3   : > { %v3540_v3 = vpop.f32.mrb[4].mxu1  ;;  %v13100_v18 = vmax.f32 %v11418_v61, 0.0 }
 0x4c4   : > { %v6350_v48 = vadd.f32 %v13988_v19, %v3540_v3  ;;  %v3542_v40 = vpop.f32.mrb[5].mxu1  ;;  %v6638_v20 = vpack.i.bf16 %v13101_v31, %v13137_v0  ;;  %v13993_v3 = vld [vmem:[#allocation157_spill] sm:$0xff]  ;;  %v14018_v0 = vld [vmem:[#allocation66_spill] sm:$0xff] }
 0x4c5   : > { %v6351_v55 = vadd.f32 %v13989_v29, %v3542_v40  ;;  %v3544_v21 = vpop.f32.mrb[6].mxu1 }
 0x4c6   : > { %v11422_v28 = vadd.f32 %v6350_v48, %v11391_v32  ;;  %v6352_v8 = vadd.f32 %v13990_v27, %v3544_v21  ;;  %6639 = vrot.lane.b32.xlu1 %v6638_v20, %s7260_s17  ;;  %v3546_v54 = vpop.f32.mrb[7].mxu1  ;;  %v13994_v20 = vld [vmem:[#allocation160_spill] sm:$0xff]  ;;  %v13995_v27 = vld [vmem:[#allocation161_spill] sm:$0xff] }
 0x4c7   : > { %v11427_v4 = vadd.f32 %v6351_v55, %v11402_v14  ;;  %v6353_v6 = vadd.f32 %v13991_v13, %v3546_v54 }
 0x4c8   : > { %v13107_v56 = vmax.f32 %v11422_v28, 0.0  ;;  %v11443_v62 = vadd.f32 %v6352_v8, %v11391_v32 }
 0x4c9   : > { %v13106_v52 = vmax.f32 %v11427_v4, 0.0  ;;  %v11448_v42 = vadd.f32 %v6353_v6, %v11402_v14 }
 0x4ca   : > { %v6643_v38 = vpack.i.bf16 %v13136_v45, %v13107_v56  ;;  %v13096_v54 = vmax.f32 %v11443_v62, 0.0 }
 0x4cb   : > { %v6648_v10 = vpack.i.bf16 %v13106_v52, %v13100_v18  ;;  %v3550_v63 = vpop.f32.mrb[8].mxu1  ;;  %v13097_v6 = vmax.f32 %v11448_v42, 0.0 }
 0x4cc   : > { %v6354_v11 = vadd.f32 %v13992_v41, %v3550_v63  ;;  %6644 = vrot.lane.b32.xlu0 %v6643_v38, %s7260_s17  ;;  %v3552_v1 = vpop.f32.mrb[9].mxu1 }
 0x4cd   : > { %v6355_v19 = vadd.f32 %v13993_v3, %v3552_v1  ;;  %6649 = vrot.lane.b32.xlu1 %v6648_v10, %s7260_s17  ;;  %v3554_v48 = vpop.f32.mrb[10].mxu1  ;;  %v13996_v1 = vld [vmem:[#allocation167_spill] sm:$0xff] }
 0x4ce   : > { %v11453_v40 = vadd.f32 %v6354_v11, %v11391_v32  ;;  %v6356_v29 = vadd.f32 %v13994_v20, %v3554_v48  ;;  %v3556_v55 = vpop.f32.mrb[11].mxu1  ;;  %v13997_v20 = vld [vmem:[#allocation168_spill] sm:$0xff] }
 0x4cf   : > { %v11457_v21 = vadd.f32 %v6355_v19, %v11402_v14  ;;  %v6357_v8 = vadd.f32 %v13995_v27, %v3556_v55 }
 0x4d0   : > { %v13099_v13 = vmax.f32 %v11453_v40, 0.0  ;;  %v11473_v11 = vadd.f32 %v6356_v29, %v11391_v32 }
 0x4d1   : > { %v13098_v38 = vmax.f32 %v11457_v21, 0.0  ;;  %v11478_v48 = vadd.f32 %v6357_v8, %v11402_v14 }
 0x4d2   : > { %v6653_v10 = vpack.i.bf16 %v13099_v13, %v13096_v54 }
 0x4d3   : > { %v6658_v63 = vpack.i.bf16 %v13098_v38, %v13097_v6  ;;  %v3560_v41 = vpop.f32.mrb[12].mxu1  ;;  %v13998_v6 = vld [vmem:[#allocation170_spill] sm:$0xff] }
 0x4d4   : > { %v6358_v3 = vadd.f32 %v13996_v1, %v3560_v41  ;;  %6654 = vrot.lane.b32.xlu0 %v6653_v10, %s7260_s17  ;;  %v3562_v19 = vpop.f32.mrb[13].mxu1  ;;  %v13999_v41 = vld [vmem:[#allocation172_spill] sm:$0xff]  ;;  %v13102_v1 = vmax.f32 %v11473_v11, 0.0 }
 0x4d5   : > { %v6359_v55 = vadd.f32 %v13997_v20, %v3562_v19  ;;  %6659 = vrot.lane.b32.xlu1 %v6658_v63, %s7260_s17  ;;  %v3564_v27 = vpop.f32.mrb[14].mxu1  ;;  %v13104_v19 = vmax.f32 %v11478_v48, 0.0 }
 0x4d6   : > { %v11483_v54 = vadd.f32 %v6358_v3, %v11391_v32  ;;  %v6360_v38 = vadd.f32 %v13998_v6, %v3564_v27  ;;  %v3566_v29 = vpop.f32.mrb[15].mxu1  ;;  %v14000_v27 = vld [vmem:[#allocation63_spill] sm:$0xff] }
 0x4d7   : > { %v11487_v13 = vadd.f32 %v6359_v55, %v11402_v14  ;;  %v6361_v10 = vadd.f32 %v13999_v41, %v3566_v29 }
 0x4d8   : > { %v13103_v8 = vmax.f32 %v11483_v54, 0.0  ;;  %v11503_v55 = vadd.f32 %v6360_v38, %v11391_v32 }
 0x4d9   : > { %v13105_v63 = vmax.f32 %v11487_v13, 0.0  ;;  %v11508_v18 = vadd.f32 %v6361_v10, %v11402_v14 }
 0x4da   : > { %v6663_v3 = vpack.i.bf16 %v13103_v8, %v13102_v1 }
 0x4db   : > { %v6668_v6 = vpack.i.bf16 %v13105_v63, %v13104_v19  ;;  %v3570_v20 = vpop.f32.mrb[16].mxu1  ;;  %v14001_v19 = vld [vmem:[#allocation61_spill] sm:$0xff] }
 0x4dc   : > { %v6362_v29 = vadd.f32 %v14000_v27, %v3570_v20  ;;  %6664 = vrot.lane.b32.xlu0 %v6663_v3, %s7260_s17  ;;  %v3572_v41 = vpop.f32.mrb[17].mxu1  ;;  %v14002_v20 = vld [vmem:[#allocation69_spill] sm:$0xff]  ;;  %v13108_v27 = vmax.f32 %v11503_v55, 0.0 }
 0x4dd   : > { %v6363_v31 = vadd.f32 %v10743_v60, %v3572_v41  ;;  %6669 = vrot.lane.b32.xlu1 %v6668_v6, %s7260_s17  ;;  %v3574_v1 = vpop.f32.mrb[18].mxu1  ;;  %v13110_v60 = vmax.f32 %v11508_v18, 0.0 }
 0x4de   : > { %v11513_v8 = vadd.f32 %v6362_v29, %v11391_v32  ;;  %v6364_v63 = vadd.f32 %v14001_v19, %v3574_v1  ;;  %v3576_v38 = vpop.f32.mrb[19].mxu1 }
 0x4df   : > { %v11517_v52 = vadd.f32 %v6363_v31, %v11402_v14  ;;  %v6365_v3 = vadd.f32 %v14002_v20, %v3576_v38 }
 0x4e0   : > { %v13109_v10 = vmax.f32 %v11513_v8, 0.0  ;;  %v11533_v19 = vadd.f32 %v6364_v63, %v11391_v32 }
 0x4e1   : > { %v13111_v6 = vmax.f32 %v11517_v52, 0.0  ;;  %v11538_v20 = vadd.f32 %v6365_v3, %v11402_v14 }
 0x4e2   : > { %v6673_v29 = vpack.i.bf16 %v13109_v10, %v13108_v27 }
 0x4e3   : > { %v6678_v31 = vpack.i.bf16 %v13111_v6, %v13110_v60  ;;  %v3580_v1 = vpop.f32.mrb[20].mxu1 }
 0x4e4   : > { %v6366_v41 = vadd.f32 %v10888_v23, %v3580_v1  ;;  %6674 = vrot.lane.b32.xlu0 %v6673_v29, %s7260_s17  ;;  %v3582_v38 = vpop.f32.mrb[21].mxu1  ;;  %v13112_v29 = vmax.f32 %v11533_v19, 0.0 }
 0x4e5   : > { %v6367_v56 = vadd.f32 %v10890_v36, %v3582_v38  ;;  %6679 = vrot.lane.b32.xlu1 %v6678_v31, %s7260_s17  ;;  %v3584_v27 = vpop.f32.mrb[22].mxu1  ;;  %v13114_v36 = vmax.f32 %v11538_v20, 0.0 }
 0x4e6   : > { %v11543_v10 = vadd.f32 %v6366_v41, %v11391_v32  ;;  %v6368_v60 = vadd.f32 %v10892_v16, %v3584_v27  ;;  %v3586_v63 = vpop.f32.mrb[23].mxu1 }
 0x4e7   : > { %v11547_v6 = vadd.f32 %v6367_v56, %v11402_v14  ;;  %v6369_v23 = vadd.f32 %v10894_v58, %v3586_v63 }
 0x4e8   : > { %v13113_v3 = vmax.f32 %v11543_v10, 0.0  ;;  %v11563_v58 = vadd.f32 %v6368_v60, %v11391_v32 }
 0x4e9   : > { %v13115_v31 = vmax.f32 %v11547_v6, 0.0  ;;  %v11568_v38 = vadd.f32 %v6369_v23, %v11402_v14 }
 0x4ea   : > { %v6683_v1 = vpack.i.bf16 %v13113_v3, %v13112_v29 }
 0x4eb   : > { %v6688_v16 = vpack.i.bf16 %v13115_v31, %v13114_v36  ;;  %v3590_v56 = vpop.f32.mrb[24].mxu1 }
 0x4ec   : > { %v6370_v27 = vadd.f32 %v10908_v12, %v3590_v56  ;;  %6684 = vrot.lane.b32.xlu0 %v6683_v1, %s7260_s17  ;;  %v3592_v41 = vpop.f32.mrb[25].mxu1  ;;  %v13116_v1 = vmax.f32 %v11563_v58, 0.0 }
 0x4ed   : > { %v6371_v63 = vadd.f32 %v10910_v46, %v3592_v41  ;;  %6689 = vrot.lane.b32.xlu1 %v6688_v16, %s7260_s17  ;;  %v3594_v29 = vpop.f32.mrb[26].mxu1  ;;  %v13118_v46 = vmax.f32 %v11568_v38, 0.0 }
 0x4ee   : > { %v11573_v3 = vadd.f32 %v6370_v27, %v11391_v32  ;;  %v6372_v36 = vadd.f32 %v10912_v15, %v3594_v29  ;;  %v3596_v60 = vpop.f32.mrb[27].mxu1 }
 0x4ef   : > { %v11577_v31 = vadd.f32 %v6371_v63, %v11402_v14  ;;  %v6373_v12 = vadd.f32 %v10914_v39, %v3596_v60 }
 0x4f0   : > { %v13117_v23 = vmax.f32 %v11573_v3, 0.0  ;;  %v11593_v39 = vadd.f32 %v6372_v36, %v11391_v32 }
 0x4f1   : > { %v13119_v16 = vmax.f32 %v11577_v31, 0.0  ;;  %v11598_v63 = vadd.f32 %v6373_v12, %v11402_v14 }
 0x4f2   : > { %v6693_v56 = vpack.i.bf16 %v13117_v23, %v13116_v1 }
 0x4f3   : > { %v6698_v15 = vpack.i.bf16 %v13119_v16, %v13118_v46  ;;  %v3600_v29 = vpop.f32.mrb[28].mxu1 }
 0x4f4   : > { %v6374_v27 = vadd.f32 %v10927_v37, %v3600_v29  ;;  %6694 = vrot.lane.b32.xlu0 %v6693_v56, %s7260_s17  ;;  %v3602_v41 = vpop.f32.mrb[29].mxu1  ;;  %v13120_v56 = vmax.f32 %v11593_v39, 0.0 }
 0x4f5   : > { %v6375_v60 = vadd.f32 %v10929_v22, %v3602_v41  ;;  %6699 = vrot.lane.b32.xlu1 %v6698_v15, %s7260_s17  ;;  %v3604_v1 = vpop.f32.mrb[30].mxu1  ;;  %v13122_v22 = vmax.f32 %v11598_v63, 0.0 }
 0x4f6   : > { %v11603_v23 = vadd.f32 %v6374_v27, %v11391_v32  ;;  %v6376_v46 = vadd.f32 %v10931_v7, %v3604_v1  ;;  %v3606_v36 = vpop.f32.mrb[31].mxu1 }
 0x4f7   : > { %v11607_v16 = vadd.f32 %v6375_v60, %v11402_v14  ;;  %v6377_v37 = vadd.f32 %v10933_v47, %v3606_v36 }
 0x4f8   : > { %v13121_v12 = vmax.f32 %v11603_v23, 0.0  ;;  %v11623_v47 = vadd.f32 %v6376_v46, %v11391_v32 }
 0x4f9   : > { %v13123_v15 = vmax.f32 %v11607_v16, 0.0  ;;  %v11628_v60 = vadd.f32 %v6377_v37, %v11402_v14 }
 0x4fa   : > { %v6703_v29 = vpack.i.bf16 %v13121_v12, %v13120_v56 }
 0x4fb   : > { %v6708_v7 = vpack.i.bf16 %v13123_v15, %v13122_v22  ;;  %v3610_v1 = vpop.f32.mrb[32].mxu1 }
 0x4fc   : > { %v6378_v27 = vadd.f32 %v10940_v49, %v3610_v1  ;;  %6704 = vrot.lane.b32.xlu0 %v6703_v29, %s7260_s17  ;;  %v3612_v41 = vpop.f32.mrb[33].mxu1  ;;  %v13124_v29 = vmax.f32 %v11623_v47, 0.0 }
 0x4fd   : > { %v6379_v36 = vadd.f32 %v10942_v25, %v3612_v41  ;;  %6709 = vrot.lane.b32.xlu1 %v6708_v7, %s7260_s17  ;;  %v3614_v56 = vpop.f32.mrb[34].mxu1  ;;  %v13126_v25 = vmax.f32 %v11628_v60, 0.0 }
 0x4fe   : > { %v11633_v12 = vadd.f32 %v6378_v27, %v11391_v32  ;;  %v6380_v22 = vadd.f32 %v10947_v34, %v3614_v56  ;;  %v3616_v46 = vpop.f32.mrb[35].mxu1 }
 0x4ff   : > { %v11637_v15 = vadd.f32 %v6379_v36, %v11402_v14  ;;  %v6381_v49 = vadd.f32 %v10952_v50, %v3616_v46 }
 0x500   : > { %v13125_v37 = vmax.f32 %v11633_v12, 0.0  ;;  %v11653_v50 = vadd.f32 %v6380_v22, %v11391_v32 }
 0x501   : > { %v13127_v7 = vmax.f32 %v11637_v15, 0.0  ;;  %v11658_v36 = vadd.f32 %v6381_v49, %v11402_v14 }
 0x502   : > { %v6713_v1 = vpack.i.bf16 %v13125_v37, %v13124_v29  ;;  %14003 = vst [vmem:[#allocation72_spill] sm:$0xff] %v11653_v50 }
 0x503   : > { %v6718_v34 = vpack.i.bf16 %v13127_v7, %v13126_v25  ;;  %v3620_v56 = vpop.f32.mrb[36].mxu1  ;;  %14004 = vst [vmem:[#allocation70_spill] sm:$0xff] %v11658_v36 }
 0x504   : > { %v6382_v27 = vadd.f32 %v10975_v24, %v3620_v56  ;;  %6714 = vrot.lane.b32.xlu0 %v6713_v1, %s7260_s17  ;;  %v3622_v41 = vpop.f32.mrb[37].mxu1  ;;  %v13128_v1 = vmax.f32 %v11653_v50, 0.0 }
 0x505   : > { %v6383_v46 = vadd.f32 %v10983_v33, %v3622_v41  ;;  %6719 = vrot.lane.b32.xlu1 %v6718_v34, %s7260_s17  ;;  %v3624_v29 = vpop.f32.mrb[38].mxu1  ;;  %v13130_v33 = vmax.f32 %v11658_v36, 0.0 }
 0x506   : > { %v11663_v37 = vadd.f32 %v6382_v27, %v11391_v32  ;;  %v6384_v25 = vadd.f32 %v10988_v51, %v3624_v29  ;;  %v3626_v22 = vpop.f32.mrb[39].mxu1 }
 0x507   : > { %v11667_v7 = vadd.f32 %v6383_v46, %v11402_v14  ;;  %v6385_v24 = vadd.f32 %v10990_v17, %v3626_v22 }
 0x508   : > { %v13129_v49 = vmax.f32 %v11663_v37, 0.0  ;;  %v11683_v17 = vadd.f32 %v6384_v25, %v11391_v32 }
 0x509   : > { %14005 = vst [vmem:[#allocation11_spill] sm:$0xff] %v11667_v7  ;;  %v13131_v34 = vmax.f32 %v11667_v7, 0.0  ;;  %v11688_v46 = vadd.f32 %v6385_v24, %v11402_v14 }
 0x50a   : > { %v6723_v56 = vpack.i.bf16 %v13129_v49, %v13128_v1  ;;  %14006 = vst [vmem:[#allocation9_spill] sm:$0xff] %v11683_v17 }
 0x50b   : > { %v6728_v51 = vpack.i.bf16 %v13131_v34, %v13130_v33  ;;  %v3630_v29 = vpop.f32.mrb[40].mxu1  ;;  %14007 = vst [vmem:[#allocation30_spill] sm:$0xff] %v11688_v46 }
 0x50c   : > { %v6386_v27 = vadd.f32 %v11010_v57, %v3630_v29  ;;  %6724 = vrot.lane.b32.xlu0 %v6723_v56, %s7260_s17  ;;  %v3632_v41 = vpop.f32.mrb[41].mxu1  ;;  %v13132_v56 = vmax.f32 %v11683_v17, 0.0 }
 0x50d   : > { %v6387_v22 = vadd.f32 %v11012_v30, %v3632_v41  ;;  %6729 = vrot.lane.b32.xlu1 %v6728_v51, %s7260_s17  ;;  %v3634_v1 = vpop.f32.mrb[42].mxu1  ;;  %v13134_v30 = vmax.f32 %v11688_v46, 0.0 }
 0x50e   : > { %v11693_v49 = vadd.f32 %v6386_v27, %v11391_v32  ;;  %v6388_v33 = vadd.f32 %v11017_v9, %v3634_v1  ;;  %v3636_v25 = vpop.f32.mrb[43].mxu1 }
 0x50f   : > { %v11697_v34 = vadd.f32 %v6387_v22, %v11402_v14  ;;  %v6389_v57 = vadd.f32 %v11022_v26, %v3636_v25 }
 0x510   : > { %14008 = vst [vmem:[#allocation74_spill] sm:$0xff] %v11693_v49  ;;  %v13133_v24 = vmax.f32 %v11693_v49, 0.0  ;;  %v11713_v26 = vadd.f32 %v6388_v33, %v11391_v32 }
 0x511   : > { %14009 = vst [vmem:[#allocation75_spill] sm:$0xff] %v11697_v34  ;;  %v13135_v51 = vmax.f32 %v11697_v34, 0.0  ;;  %v11718_v22 = vadd.f32 %v6389_v57, %v11402_v14 }
 0x512   : > { %v6733_v29 = vpack.i.bf16 %v13133_v24, %v13132_v56  ;;  %14010 = vst [vmem:[#allocation32_spill] sm:$0xff] %v11713_v26 }
 0x513   : > { %v6738_v9 = vpack.i.bf16 %v13135_v51, %v13134_v30  ;;  %v3640_v1 = vpop.f32.mrb[44].mxu1  ;;  %14011 = vst [vmem:[#allocation88_spill] sm:$0xff] %v11718_v22 }
 0x514   : > { %v6390_v27 = vadd.f32 %v11045_v2, %v3640_v1  ;;  %6734 = vrot.lane.b32.xlu0 %v6733_v29, %s7260_s17  ;;  %v3642_v41 = vpop.f32.mrb[45].mxu1  ;;  %v14014_v2 = vld [vmem:[#allocation67_spill] sm:$0xff]  ;;  %v13139_v1 = vmax.f32 %v11713_v26, 0.0 }
 0x515   : > { %v6391_v25 = vadd.f32 %v11053_v5, %v3642_v41  ;;  %6739 = vrot.lane.b32.xlu1 %v6738_v9, %s7260_s17  ;;  %v3644_v56 = vpop.f32.mrb[46].mxu1  ;;  %v13141_v5 = vmax.f32 %v11718_v22, 0.0 }
 0x516   : > { %v11723_v24 = vadd.f32 %v6390_v27, %v11391_v32  ;;  %v6392_v30 = vadd.f32 %v11058_v53, %v3644_v56  ;;  %v3646_v33 = vpop.f32.mrb[47].mxu1 }
 0x517   : > { %v11727_v51 = vadd.f32 %v6391_v25, %v11402_v14  ;;  %v6393_v29 = vadd.f32 %v14014_v2, %v3646_v33  ;;  %v14016_v25 = vld [vmem:[#allocation68_spill] sm:$0xff] }
 0x518   : > { %14012 = vst [vmem:[#allocation65_spill] sm:$0xff] %v11723_v24  ;;  %v13140_v57 = vmax.f32 %v11723_v24, 0.0  ;;  %v11743_v41 = vadd.f32 %v6392_v30, %v11391_v32 }
 0x519   : > { %14013 = vst [vmem:[#allocation36_spill] sm:$0xff] %v11727_v51  ;;  %v13142_v9 = vmax.f32 %v11727_v51, 0.0  ;;  %v11748_v45 = vadd.f32 %v6393_v29, %v11402_v14 }
 0x51a   : > { %v6743_v27 = vpack.i.bf16 %v13140_v57, %v13139_v1  ;;  %14015 = vst [vmem:[#allocation10_spill] sm:$0xff] %v11743_v41 }
 0x51b   : > { %v6748_v53 = vpack.i.bf16 %v13142_v9, %v13141_v5  ;;  %v3650_v56 = vpop.f32.mrb[48].mxu1  ;;  %14017 = vst [vmem:[#allocation87_spill] sm:$0xff] %v11748_v45  ;;  %v14020_v5 = vld [vmem:[#allocation73_spill] sm:$0xff] }
 0x51c   : > { %v6394_v33 = vadd.f32 %v14016_v25, %v3650_v56  ;;  %6744 = vrot.lane.b32.xlu0 %v6743_v27, %s7260_s17  ;;  %v3652_v2 = vpop.f32.mrb[49].mxu1  ;;  %v14022_v56 = vld [vmem:[#allocation71_spill] sm:$0xff]  ;;  %v13144_v25 = vmax.f32 %v11743_v41, 0.0 }
 0x51d   : > { %v6395_v26 = vadd.f32 %v14018_v0, %v3652_v2  ;;  %6749 = vrot.lane.b32.xlu1 %v6748_v53, %s7260_s17  ;;  %v3654_v1 = vpop.f32.mrb[50].mxu1  ;;  %v13146_v0 = vmax.f32 %v11748_v45, 0.0 }
 0x51e   : > { %v11753_v57 = vadd.f32 %v6394_v33, %v11391_v32  ;;  %v6396_v9 = vadd.f32 %v14020_v5, %v3654_v1  ;;  %v3656_v30 = vpop.f32.mrb[51].mxu1 }
 0x51f   : > { %v11757_v22 = vadd.f32 %v6395_v26, %v11402_v14  ;;  %v6397_v27 = vadd.f32 %v14022_v56, %v3656_v30 }
 0x520   : > { %14019 = vst [vmem:[#allocation18_spill] sm:$0xff] %v11753_v57  ;;  %v13145_v29 = vmax.f32 %v11753_v57, 0.0  ;;  %v11775_v1 = vadd.f32 %v6396_v9, %v11391_v32 }
 0x521   : > { %14021 = vst [vmem:[#allocation76_spill] sm:$0xff] %v11757_v22  ;;  %v13147_v53 = vmax.f32 %v11757_v22, 0.0  ;;  %v11778_v5 = vadd.f32 %v6397_v27, %v11402_v14 }
 0x522   : > { %v6753_v33 = vpack.i.bf16 %v13145_v29, %v13144_v25  ;;  %14023 = vst [vmem:[#allocation118_spill] sm:$0xff] %v11775_v1  ;;  %v14026_v29 = vld [vmem:[#allocation33_spill] sm:$0xff] }
 0x523   : > { %v6758_v26 = vpack.i.bf16 %v13147_v53, %v13146_v0  ;;  %14024 = vst [vmem:[#allocation117_spill] sm:$0xff] %v11778_v5  ;;  %vm4503_vm5 = vcmp.lt.s32.totalorder %v14026_v29, 96  ;;  %v14029_v34 = vmax.f32 %v11778_v5, 0.0 }
 0x524   : > { %6754 = vrot.lane.b32.xlu0 %v6753_v33, %s7260_s17 }
 0x525   : > { %6759 = vrot.lane.b32.xlu1 %v6758_v26, %s7260_s17  ;;  %v13159_v26 = vmax.f32 %v11775_v1, 0.0 }
 0x538   : > { %v6640_v2 = vpop.permute.xlu1 %6639 }
 0x539   : > { %v6642_v53 = vunpack.i.h.bf16 %v6640_v2  ;;  %v6641_v22 = vunpack.i.l.bf16 %v6640_v2 }
 0x53b   : > { %v4142_v30 = vpop.f32.mrb[52].mxu1 }
 0x53c   : > { %v11781_v56 = vadd.f32 %v11391_v32, %v4142_v30  ;;  %v4144_v25 = vpop.f32.mrb[53].mxu1 }
 0x53d   : > { %v11785_v0 = vadd.f32 %v11402_v14, %v4144_v25  ;;  %v4146_v33 = vpop.f32.mrb[54].mxu1 }
 0x53e   : > { %14025 = vst [vmem:[#allocation77_spill] sm:$0xff] %v11781_v56  ;;  %v13160_v27 = vmax.f32 %v11781_v56, 0.0  ;;  %v6645_v45 = vpop.permute.xlu0 %6644  ;;  %v4148_v41 = vpop.f32.mrb[55].mxu1  ;;  %v11796_v46 = vadd.f32 %v11391_v32, %v4146_v33 }
 0x53f   : > { %14027 = vst [vmem:[#allocation16_spill] sm:$0xff] %v11785_v0  ;;  %v13161_v30 = vmax.f32 %v11785_v0, 0.0  ;;  %v6647_v57 = vunpack.i.h.bf16 %v6645_v45  ;;  %v6646_v51 = vunpack.i.l.bf16 %v6645_v45  ;;  %v6650_v24 = vpop.permute.xlu1 %6649  ;;  %v11807_v1 = vadd.f32 %v11402_v14, %v4148_v41 }
 0x540   : > { %v6763_v25 = vpack.i.bf16 %v13160_v27, %v13159_v26  ;;  %14028 = vst [vmem:[#allocation78_spill] sm:$0xff] %v11796_v46  ;;  %v6652_v9 = vunpack.i.h.bf16 %v6650_v24  ;;  %v6651_v17 = vunpack.i.l.bf16 %v6650_v24  ;;  %v14031_v26 = vmax.f32 %v11396_v43, 0.0 }
 0x541   : > { %v6768_v2 = vpack.i.bf16 %v13161_v30, %v14029_v34  ;;  %v4504_v49 = vsel %vm4503_vm5, %v6641_v22, %v6647_v57  ;;  %v4536_v45 = vsel %vm4503_vm5, %v6647_v57, %v6641_v22  ;;  %14030 = vst [vmem:[#allocation21_spill] sm:$0xff] %v11807_v1  ;;  %v14033_v24 = vmax.f32 %v11410_v44, 0.0 }
 0x542   : > { %v11811_v33 = vmax.f32 %v14031_v26, %v4504_v49  ;;  %v4506_v34 = vsel %vm4503_vm5, %v6646_v51, %v6652_v9  ;;  %v4538_v30 = vsel %vm4503_vm5, %v6652_v9, %v6646_v51  ;;  %6764 = vrot.lane.b32.xlu0 %v6763_v25, %s7260_s17  ;;  %v14035_v22 = vmax.f32 %v11422_v28, 0.0 }
 0x543   : > { %v11815_v27 = vmax.f32 %v14033_v24, %v4536_v45  ;;  %v14036_v43 = vmax.f32 %v11427_v4, 0.0  ;;  %v4505_v44 = vsel %vm4503_vm5, %v6642_v53, %v6651_v17  ;;  %v4537_v41 = vsel %vm4503_vm5, %v6651_v17, %v6642_v53  ;;  %6769 = vrot.lane.b32.xlu1 %v6768_v2, %s7260_s17  ;;  %v4152_v26 = vpop.f32.mrb[56].mxu1 }
 0x544   : > { %14032 = vst [vmem:[#allocation80_spill] sm:$0xff] %v11811_v33  ;;  %v11824_v57 = vmax.f32 %v14035_v22, %v4506_v34  ;;  %v14037_v9 = vmax.f32 %v11405_v35, 0.0  ;;  %v14038_v25 = vmax.f32 %v11418_v61, 0.0  ;;  %v11845_v34 = vadd.f32 %v11391_v32, %v4152_v26 }
 0x545   : > { %14034 = vst [vmem:[#allocation79_spill] sm:$0xff] %v11815_v27  ;;  %v11828_v49 = vmax.f32 %v14036_v43, %v4538_v30  ;;  %v4154_v30 = vpop.f32.mrb[57].mxu1 }
 0x546   : > { %v11838_v28 = vmax.f32 %v14037_v9, %v4505_v44  ;;  %v4571_v4 = vmax.f32 %v14038_v25, %v4537_v41  ;;  %v13166_v45 = vrot.slane %v11824_v57, 2  ;;  %v11848_v17 = vadd.f32 %v11402_v14, %v4154_v30  ;;  %v4156_v53 = vpop.f32.mrb[58].mxu1  ;;  %v6655_v43 = vpop.permute.xlu0 %6654 }
 0x547   : > { %v13169_v24 = vrot.slane %v11828_v49, 2  ;;  %v4158_v44 = vpop.f32.mrb[59].mxu1  ;;  %v11857_v25 = vadd.f32 %v11391_v32, %v4156_v53  ;;  %v6660_v30 = vpop.permute.xlu1 %6659  ;;  %v6657_v51 = vunpack.i.h.bf16 %v6655_v43  ;;  %v6656_v41 = vunpack.i.l.bf16 %v6655_v43 }
 0x548   : > { %14039 = vst [vmem:[#allocation82_spill] sm:$0xff] %v11848_v17  ;;  %v4634_v22 = vrot.slane %v11838_v28, 2  ;;  %v4635_v61 = vrot.slane %v4571_v4, 2  ;;  %v14040_v9 = vmax.f32 %v11796_v46, 0.0  ;;  %v14041_v26 = vmax.f32 %v11845_v34, 0.0 }
 0x549   : > { %v14042_v53 = vmax.f32 %v11807_v1, 0.0  ;;  %v14043_v0 = vmax.f32 %v11848_v17, 0.0  ;;  %v11876_v36 = vadd.f32 %v11402_v14, %v4158_v44  ;;  %v6662_v50 = vunpack.i.h.bf16 %v6660_v30 }
 0x54a   : > { %v4754_v2 = vsel %vm3206_vm4, %v4634_v22, %v13166_v45  ;;  %v4755_v35 = vsel %vm3206_vm4, %v4635_v61, %v13169_v24  ;;  %v6773_v5 = vpack.i.bf16 %v14041_v26, %v14040_v9  ;;  %v6661_v7 = vunpack.i.l.bf16 %v6660_v30 }
 0x54b   : > { %v6778_v56 = vpack.i.bf16 %v14043_v0, %v14042_v53  ;;  %v4763_v45 = vmax.f32 %v4571_v4, %v4755_v35  ;;  %v14044_v24 = vrot.slane %v11815_v27, 2  ;;  %v4762_v46 = vmax.f32 %v11838_v28, %v4754_v2  ;;  %v4162_v0 = vpop.f32.mrb[60].mxu1 }
 0x54c   : > { %6774 = vrot.lane.b32.xlu0 %v6773_v5, %s7260_s17  ;;  %v14045_v4 = vrot.slane %v11811_v33, 2  ;;  %v4508_v26 = vsel %vm4503_vm5, %v6657_v51, %v6662_v50  ;;  %v4540_v28 = vsel %vm4503_vm5, %v6662_v50, %v6657_v51  ;;  %v4539_v5 = vsel %vm4503_vm5, %v6661_v7, %v6656_v41 }
 0x54d   : > { %v4757_v43 = vsel %vm3206_vm4, %v14044_v24, %v4635_v61  ;;  %6779 = vrot.lane.b32.xlu1 %v6778_v56, %s7260_s17  ;;  %v4507_v24 = vsel %vm4503_vm5, %v6656_v41, %v6661_v7  ;;  %v4164_v56 = vpop.f32.mrb[61].mxu1  ;;  %v14046_v2 = vmax.f32 %v11453_v40, 0.0  ;;  %v14047_v30 = vmax.f32 %v11457_v21, 0.0 }
 0x54e   : > { %v4761_v44 = vmax.f32 %v11815_v27, %v4757_v43  ;;  %v4756_v35 = vsel %vm3206_vm4, %v14045_v4, %v4634_v22  ;;  %v14048_v53 = vmax.f32 %v11443_v62, 0.0  ;;  %v14049_v50 = vmax.f32 %v11448_v42, 0.0  ;;  %v4166_v4 = vpop.f32.mrb[62].mxu1  ;;  %v6665_v21 = vpop.permute.xlu0 %6664 }
 0x54f   : > { %v11901_v61 = vmax.f32 %v14046_v2, %v4508_v26  ;;  %v11905_v22 = vmax.f32 %v14047_v30, %v4540_v28  ;;  %v11912_v9 = vadd.f32 %v11391_v32, %v4162_v0  ;;  %v11915_v7 = vadd.f32 %v11402_v14, %v4164_v56  ;;  %v4168_v26 = vpop.f32.mrb[63].mxu1 }
 0x550   : > { %v4574_v43 = vmax.f32 %v14048_v53, %v4507_v24  ;;  %v4575_v51 = vmax.f32 %v14049_v50, %v4539_v5  ;;  %v11917_v40 = vpack.c.bf16 %v4763_v45, %v4761_v44  ;;  %v11920_v41 = vadd.f32 %v11391_v32, %v4166_v4  ;;  %v6670_v32 = vpop.permute.xlu1 %6669 }
 0x551   : > { %v4640_v62 = vrot.slane %v11901_v61, 2  ;;  %v4641_v28 = vrot.slane %v11905_v22, 2  ;;  %v4371_v0 = vmax.f32 %v11912_v9, 0.0  ;;  %v4760_v45 = vmax.f32 %v11811_v33, %v4756_v35 }
 0x552   : > { %14050 = vst [vmem:[#allocation81_spill] sm:$0xff] %v11917_v40  ;;  %v4638_v42 = vrot.slane %v4574_v43, 2  ;;  %v4639_v24 = vrot.slane %v4575_v51, 2  ;;  %4864 = vmatprep.subr.bf16.mxu0 %v11917_v40  ;;  %v6667_v30 = vunpack.i.h.bf16 %v6665_v21  ;;  %v6666_v53 = vunpack.i.l.bf16 %v6665_v21 }
 0x553   : > { %v14051_v4 = vmax.f32 %v11857_v25, 0.0  ;;  %v14052_v56 = vmax.f32 %v11876_v36, 0.0  ;;  %v14053_v40 = vmax.f32 %v11915_v7, 0.0  ;;  %v4373_v27 = vmax.f32 %v11920_v41, 0.0  ;;  %v14130_v41 = vld [vmem:[#allocation80_spill] sm:$0xff] }
 0x554   : > { %v4750_v44 = vsel %vm3206_vm4, %v4638_v42, %v4640_v62  ;;  %v4751_v2 = vsel %vm3206_vm4, %v4639_v24, %v4641_v28  ;;  %v11942_v33 = vpack.c.bf16 %v4762_v46, %v4760_v45  ;;  %v11945_v1 = vadd.f32 %v11402_v14, %v4168_v26 }
 0x555   : > { %v4766_v50 = vmax.f32 %v4574_v43, %v4750_v44  ;;  %v6783_v5 = vpack.i.bf16 %v4371_v0, %v14051_v4  ;;  %v6788_v35 = vpack.i.bf16 %v14053_v40, %v14052_v56  ;;  %v6672_v17 = vunpack.i.h.bf16 %v6670_v32 }
 0x556   : > { %v6671_v21 = vunpack.i.l.bf16 %v6670_v32  ;;  %v4767_v43 = vmax.f32 %v4575_v51, %v4751_v2  ;;  %v14054_v44 = vrot.slane %v11828_v49, 2  ;;  %v14055_v40 = vrot.slane %v11824_v57, 2  ;;  %4865 = vmatpush1.bf16.msra.mxu0 %v11942_v33 }
 0x557   : > { %6784 = vrot.lane.b32.xlu0 %v6783_v5, %s7260_s17  ;;  %6789 = vrot.lane.b32.xlu1 %v6788_v35, %s7260_s17  ;;  %v13177_v14 = vmax.f32 %v11945_v1, 0.0  ;;  %v4510_v51 = vsel %vm4503_vm5, %v6667_v30, %v6672_v17  ;;  %v4542_v26 = vsel %vm4503_vm5, %v6672_v17, %v6667_v30  ;;  %v14057_v45 = vmax.f32 %v11487_v13, 0.0 }
 0x558   : > { %v4753_v4 = vsel %vm3206_vm4, %v14054_v44, %v4639_v24  ;;  %v4752_v46 = vsel %vm3206_vm4, %v14055_v40, %v4638_v42  ;;  %v4509_v5 = vsel %vm4503_vm5, %v6666_v53, %v6671_v21  ;;  %v14056_v24 = vmax.f32 %v11483_v54, 0.0  ;;  %v6675_v44 = vpop.permute.xlu0 %6674 }
 0x559   : > { %v11971_v42 = vmax.f32 %v14057_v45, %v4542_v26  ;;  %v4541_v32 = vsel %vm4503_vm5, %v6671_v21, %v6666_v53  ;;  %v14058_v2 = vmax.f32 %v11473_v11, 0.0  ;;  %v6793_v17 = vpack.i.bf16 %v13177_v14, %v4373_v27 }
 0x55a   : > { %v11967_v56 = vmax.f32 %v14056_v24, %v4510_v51  ;;  %v14059_v54 = vmax.f32 %v11478_v48, 0.0  ;;  %v4765_v40 = vmax.f32 %v11828_v49, %v4753_v4  ;;  %v4764_v13 = vmax.f32 %v11824_v57, %v4752_v46  ;;  %v6680_v51 = vpop.permute.xlu1 %6679 }
 0x55b   : > { %v4578_v35 = vmax.f32 %v14058_v2, %v4509_v5  ;;  %v4645_v53 = vrot.slane %v11971_v42, 2  ;;  %v6677_v21 = vunpack.i.h.bf16 %v6675_v44  ;;  %v6676_v2 = vunpack.i.l.bf16 %v6675_v44  ;;  %6794 = vrot.lane.b32.xlu0 %v6793_v17, %s7260_s17 }
 0x55c   : > { %v4579_v30 = vmax.f32 %v14059_v54, %v4541_v32  ;;  %v4644_v26 = vrot.slane %v11967_v56, 2  ;;  %v11987_v24 = vpack.c.bf16 %v4767_v43, %v4765_v40  ;;  %v11989_v45 = vpack.c.bf16 %v4766_v50, %v4764_v13 }
 0x55d   : > { %v4642_v11 = vrot.slane %v4578_v35, 2  ;;  %v6682_v49 = vunpack.i.h.bf16 %v6680_v51  ;;  %v6681_v57 = vunpack.i.l.bf16 %v6680_v51 }
 0x55e   : > { %v4643_v5 = vrot.slane %v4579_v30, 2  ;;  %4866 = vmatprep.subr.bf16.mxu0 %v11987_v24 }
 0x55f   : > { %v4746_v48 = vsel %vm3206_vm4, %v4642_v11, %v4644_v26  ;;  %v4748_v4 = vsel %vm3206_vm4, %v4640_v62, %v4642_v11  ;;  %4867 = vmatpush1.bf16.msra.mxu0 %v11989_v45  ;;  %v4512_v17 = vsel %vm4503_vm5, %v6677_v21, %v6682_v49  ;;  %v4544_v62 = vsel %vm4503_vm5, %v6682_v49, %v6677_v21  ;;  %v12026_v49 = vld [vmem:[#allocation4] sm:$0xff] }
 0x560   : > { %v4747_v46 = vsel %vm3206_vm4, %v4643_v5, %v4645_v53  ;;  %v4770_v32 = vmax.f32 %v4578_v35, %v4746_v48  ;;  %v4749_v50 = vsel %vm3206_vm4, %v4641_v28, %v4643_v5  ;;  %v4768_v43 = vmax.f32 %v11901_v61, %v4748_v4 }
 0x561   : > { %v4771_v44 = vmax.f32 %v4579_v30, %v4747_v46  ;;  %v4511_v54 = vsel %vm4503_vm5, %v6676_v2, %v6681_v57  ;;  %v14060_v35 = vmax.f32 %v11513_v8, 0.0  ;;  %v14061_v28 = vmax.f32 %v11517_v52, 0.0  ;;  %v6685_v8 = vpop.permute.xlu0 %6684 }
 0x562   : > { %v4543_v61 = vsel %vm4503_vm5, %v6681_v57, %v6676_v2  ;;  %v14062_v30 = vmax.f32 %v11503_v55, 0.0  ;;  %v14063_v11 = vmax.f32 %v11508_v18, 0.0  ;;  %v4769_v5 = vmax.f32 %v11905_v22, %v4749_v50  ;;  %v6690_v2 = vpop.permute.xlu1 %6689 }
 0x563   : > { %v12011_v40 = vmax.f32 %v14060_v35, %v4512_v17  ;;  %v12015_v13 = vmax.f32 %v14061_v28, %v4544_v62  ;;  %v12024_v48 = vpack.c.bf16 %v4770_v32, %v4768_v43  ;;  %v6687_v17 = vunpack.i.h.bf16 %v6685_v8 }
 0x564   : > { %v4582_v51 = vmax.f32 %v14062_v30, %v4511_v54  ;;  %v4583_v21 = vmax.f32 %v14063_v11, %v4543_v61  ;;  %v12030_v55 = vpack.c.bf16 %v4771_v44, %v4769_v5  ;;  %v6686_v62 = vunpack.i.l.bf16 %v6685_v8 }
 0x565   : > { %v4648_v52 = vrot.slane %v12011_v40, 2  ;;  %v4649_v4 = vrot.slane %v12015_v13, 2  ;;  %v6692_v18 = vunpack.i.h.bf16 %v6690_v2  ;;  %v6691_v32 = vunpack.i.l.bf16 %v6690_v2 }
 0x566   : > { %v4646_v46 = vrot.slane %v4582_v51, 2  ;;  %v4647_v57 = vrot.slane %v4583_v21, 2  ;;  %v6152_v43 = vcombine.high %v12026_v49, %v12026_v49  ;;  %4868 = vmatprep.subr.bf16.mxu0 %v12030_v55  ;;  %v14065_v11 = vmax.f32 %v11547_v6, 0.0 }
 0x567   : > { %v4514_v44 = vsel %vm4503_vm5, %v6687_v17, %v6692_v18  ;;  %v4546_v28 = vsel %vm4503_vm5, %v6692_v18, %v6687_v17  ;;  %4869 = vmatpush1.bf16.msra.mxu0 %v12024_v48  ;;  %v4545_v8 = vsel %vm4503_vm5, %v6691_v32, %v6686_v62  ;;  %v14067_v18 = vmax.f32 %v11538_v20, 0.0 }
 0x568   : > { %v4742_v22 = vsel %vm3206_vm4, %v4646_v46, %v4648_v52  ;;  %v4744_v50 = vsel %vm3206_vm4, %v4644_v26, %v4646_v46  ;;  %v4743_v54 = vsel %vm3206_vm4, %v4647_v57, %v4649_v4  ;;  %v14064_v26 = vmax.f32 %v11543_v10, 0.0  ;;  %4896 = vmatprep.mubr.bf16.mxu0 %v6152_v43 }
 0x569   : > { %v4774_v35 = vmax.f32 %v4582_v51, %v4742_v22  ;;  %v4775_v61 = vmax.f32 %v4583_v21, %v4743_v54  ;;  %v12052_v5 = vmax.f32 %v14065_v11, %v4546_v28  ;;  %v4513_v51 = vsel %vm4503_vm5, %v6686_v62, %v6691_v32 }
 0x56a   : > { %v12048_v30 = vmax.f32 %v14064_v26, %v4514_v44  ;;  %v14066_v46 = vmax.f32 %v11533_v19, 0.0  ;;  %v4745_v21 = vsel %vm3206_vm4, %v4645_v53, %v4647_v57  ;;  %v4772_v10 = vmax.f32 %v11967_v56, %v4744_v50  ;;  %v6695_v19 = vpop.permute.xlu0 %6694  ;;  %v6700_v56 = vpop.permute.xlu1 %6699 }
 0x56b   : > { %v4653_v6 = vrot.slane %v12052_v5, 2  ;;  %v4587_v22 = vmax.f32 %v14067_v18, %v4545_v8  ;;  %v4773_v54 = vmax.f32 %v11971_v42, %v4745_v21  ;;  %v6697_v53 = vunpack.i.h.bf16 %v6695_v19 }
 0x56c   : > { %v4586_v17 = vmax.f32 %v14066_v46, %v4513_v51  ;;  %v4652_v2 = vrot.slane %v12048_v30, 2  ;;  %v12068_v62 = vpack.c.bf16 %v4774_v35, %v4772_v10  ;;  %v6696_v57 = vunpack.i.l.bf16 %v6695_v19 }
 0x56d   : > { %v4651_v32 = vrot.slane %v4587_v22, 2  ;;  %v12070_v28 = vpack.c.bf16 %v4775_v61, %v4773_v54  ;;  %v6702_v43 = vunpack.i.h.bf16 %v6700_v56  ;;  %v6701_v26 = vunpack.i.l.bf16 %v6700_v56 }
 0x56e   : > { %v4650_v44 = vrot.slane %v4586_v17, 2  ;;  %v14070_v18 = vmax.f32 %v11563_v58, 0.0  ;;  %v14071_v54 = vmax.f32 %v11568_v38, 0.0 }
 0x56f   : > { %v4739_v42 = vsel %vm3206_vm4, %v4651_v32, %v4653_v6  ;;  %4870 = vmatprep.subr.bf16.mxu0 %v12070_v28  ;;  %v4741_v61 = vsel %vm3206_vm4, %v4649_v4, %v4651_v32  ;;  %v4516_v8 = vsel %vm4503_vm5, %v6697_v53, %v6702_v43  ;;  %v4515_v46 = vsel %vm4503_vm5, %v6696_v57, %v6701_v26  ;;  %v6710_v38 = vpop.permute.xlu1 %6709 }
 0x570   : > { %v4738_v50 = vsel %vm3206_vm4, %v4650_v44, %v4652_v2  ;;  %v4740_v20 = vsel %vm3206_vm4, %v4648_v52, %v4650_v44  ;;  %v4779_v51 = vmax.f32 %v4587_v22, %v4739_v42  ;;  %4871 = vmatpush1.bf16.msra.mxu0 %v12068_v62  ;;  %v4548_v52 = vsel %vm4503_vm5, %v6702_v43, %v6697_v53  ;;  %v6705_v43 = vpop.permute.xlu0 %6704 }
 0x571   : > { %v4778_v35 = vmax.f32 %v4586_v17, %v4738_v50  ;;  %v4776_v11 = vmax.f32 %v12011_v40, %v4740_v20  ;;  %v14068_v17 = vmax.f32 %v11573_v3, 0.0  ;;  %v14069_v4 = vmax.f32 %v11577_v31, 0.0 }
 0x572   : > { %v4547_v40 = vsel %vm4503_vm5, %v6701_v26, %v6696_v57  ;;  %v4590_v22 = vmax.f32 %v14070_v18, %v4515_v46  ;;  %v4777_v19 = vmax.f32 %v12015_v13, %v4741_v61  ;;  %v6707_v57 = vunpack.i.h.bf16 %v6705_v43 }
 0x573   : > { %v12091_v21 = vmax.f32 %v14068_v17, %v4516_v8  ;;  %v12095_v10 = vmax.f32 %v14069_v4, %v4548_v52  ;;  %v4591_v44 = vmax.f32 %v14071_v54, %v4547_v40  ;;  %v12106_v56 = vpack.c.bf16 %v4778_v35, %v4776_v11 }
 0x574   : > { %v4654_v53 = vrot.slane %v4590_v22, 2  ;;  %v12108_v50 = vpack.c.bf16 %v4779_v51, %v4777_v19  ;;  %v6706_v26 = vunpack.i.l.bf16 %v6705_v43  ;;  %v6712_v35 = vunpack.i.h.bf16 %v6710_v38 }
 0x575   : > { %v4656_v32 = vrot.slane %v12091_v21, 2  ;;  %v4657_v3 = vrot.slane %v12095_v10, 2  ;;  %v4655_v31 = vrot.slane %v4591_v44, 2  ;;  %v6711_v61 = vunpack.i.l.bf16 %v6710_v38 }
 0x576   : > { %v4736_v13 = vsel %vm3206_vm4, %v4652_v2, %v4654_v53  ;;  %4872 = vmatprep.subr.bf16.mxu0 %v12108_v50  ;;  %v4518_v52 = vsel %vm4503_vm5, %v6707_v57, %v6712_v35  ;;  %v4550_v2 = vsel %vm4503_vm5, %v6712_v35, %v6707_v57  ;;  %v14072_v4 = vmax.f32 %v11603_v23, 0.0 }
 0x577   : > { %v4734_v58 = vsel %vm3206_vm4, %v4654_v53, %v4656_v32  ;;  %v4735_v20 = vsel %vm3206_vm4, %v4655_v31, %v4657_v3  ;;  %4873 = vmatpush1.bf16.msra.mxu0 %v12106_v56  ;;  %v4737_v51 = vsel %vm3206_vm4, %v4653_v6, %v4655_v31  ;;  %v4780_v8 = vmax.f32 %v12048_v30, %v4736_v13 }
 0x578   : > { %v4782_v42 = vmax.f32 %v4590_v22, %v4734_v58  ;;  %v4783_v11 = vmax.f32 %v4591_v44, %v4735_v20  ;;  %v4517_v46 = vsel %vm4503_vm5, %v6706_v26, %v6711_v61  ;;  %v4549_v17 = vsel %vm4503_vm5, %v6711_v61, %v6706_v26 }
 0x579   : > { %v12131_v40 = vmax.f32 %v14072_v4, %v4518_v52  ;;  %v14073_v6 = vmax.f32 %v11607_v16, 0.0  ;;  %v14074_v30 = vmax.f32 %v11593_v39, 0.0  ;;  %v14075_v54 = vmax.f32 %v11598_v63, 0.0  ;;  %v6715_v16 = vpop.permute.xlu0 %6714 }
 0x57a   : > { %v4781_v19 = vmax.f32 %v12052_v5, %v4737_v51  ;;  %v12142_v53 = vpack.c.bf16 %v4782_v42, %v4780_v8  ;;  %v6717_v26 = vunpack.i.h.bf16 %v6715_v16  ;;  %v6716_v38 = vunpack.i.l.bf16 %v6715_v16  ;;  %v6720_v5 = vpop.permute.xlu1 %6719 }
 0x57b   : > { %v12135_v18 = vmax.f32 %v14073_v6, %v4550_v2  ;;  %v4594_v22 = vmax.f32 %v14074_v30, %v4517_v46  ;;  %v4595_v44 = vmax.f32 %v14075_v54, %v4549_v17  ;;  %v4660_v31 = vrot.slane %v12131_v40, 2 }
 0x57c   : > { %v12146_v57 = vpack.c.bf16 %v4783_v11, %v4781_v19  ;;  %v6722_v13 = vunpack.i.h.bf16 %v6720_v5  ;;  %v6721_v20 = vunpack.i.l.bf16 %v6720_v5  ;;  %v14076_v46 = vmax.f32 %v11633_v12, 0.0 }
 0x57d   : > { %v4661_v23 = vrot.slane %v12135_v18, 2  ;;  %v4658_v43 = vrot.slane %v4594_v22, 2  ;;  %v4659_v58 = vrot.slane %v4595_v44, 2  ;;  %v14079_v30 = vmax.f32 %v11628_v60, 0.0 }
 0x57e   : > { %4874 = vmatprep.subr.bf16.mxu0 %v12146_v57  ;;  %v4520_v51 = vsel %vm4503_vm5, %v6717_v26, %v6722_v13  ;;  %v4552_v8 = vsel %vm4503_vm5, %v6722_v13, %v6717_v26  ;;  %v4519_v52 = vsel %vm4503_vm5, %v6716_v38, %v6721_v20  ;;  %v4551_v2 = vsel %vm4503_vm5, %v6721_v20, %v6716_v38 }
 0x57f   : > { %v4730_v39 = vsel %vm3206_vm4, %v4658_v43, %v4660_v31  ;;  %v4731_v63 = vsel %vm3206_vm4, %v4659_v58, %v4661_v23  ;;  %4875 = vmatpush1.bf16.msra.mxu0 %v12142_v53  ;;  %v4733_v61 = vsel %vm3206_vm4, %v4657_v3, %v4659_v58  ;;  %v4732_v11 = vsel %vm3206_vm4, %v4656_v32, %v4658_v43 }
 0x580   : > { %v4786_v42 = vmax.f32 %v4594_v22, %v4730_v39  ;;  %v4787_v35 = vmax.f32 %v4595_v44, %v4731_v63  ;;  %v12168_v17 = vmax.f32 %v14076_v46, %v4520_v51  ;;  %v14077_v3 = vmax.f32 %v11637_v15, 0.0  ;;  %v6725_v39 = vpop.permute.xlu0 %6724 }
 0x581   : > { %v14078_v32 = vmax.f32 %v11623_v47, 0.0  ;;  %v4599_v22 = vmax.f32 %v14079_v30, %v4551_v2  ;;  %v4785_v54 = vmax.f32 %v12095_v10, %v4733_v61  ;;  %v4784_v44 = vmax.f32 %v12091_v21, %v4732_v11  ;;  %v6730_v21 = vpop.permute.xlu1 %6729 }
 0x582   : > { %v12172_v4 = vmax.f32 %v14077_v3, %v4552_v8  ;;  %v4664_v19 = vrot.slane %v12168_v17, 2  ;;  %v6727_v10 = vunpack.i.h.bf16 %v6725_v39  ;;  %v6726_v63 = vunpack.i.l.bf16 %v6725_v39 }
 0x583   : > { %v4598_v6 = vmax.f32 %v14078_v32, %v4519_v52  ;;  %v4663_v58 = vrot.slane %v4599_v22, 2  ;;  %v12182_v16 = vpack.c.bf16 %v4787_v35, %v4785_v54  ;;  %v12184_v15 = vpack.c.bf16 %v4786_v42, %v4784_v44 }
 0x584   : > { %v4665_v12 = vrot.slane %v12172_v4, 2  ;;  %v6732_v26 = vunpack.i.h.bf16 %v6730_v21  ;;  %v6731_v38 = vunpack.i.l.bf16 %v6730_v21  ;;  %v14080_v8 = vmax.f32 %v11663_v37, 0.0 }
 0x585   : > { %v4662_v43 = vrot.slane %v4598_v6, 2  ;;  %4876 = vmatprep.subr.bf16.mxu0 %v12182_v16  ;;  %v4729_v20 = vsel %vm3206_vm4, %v4661_v23, %v4663_v58  ;;  %v14081_v23 = vld [vmem:[#allocation11_spill] sm:$0xff] }
 0x586   : > { %v4727_v60 = vsel %vm3206_vm4, %v4663_v58, %v4665_v12  ;;  %4877 = vmatpush1.bf16.msra.mxu0 %v12184_v15  ;;  %v4522_v35 = vsel %vm4503_vm5, %v6727_v10, %v6732_v26  ;;  %v4554_v61 = vsel %vm4503_vm5, %v6732_v26, %v6727_v10  ;;  %v4521_v11 = vsel %vm4503_vm5, %v6726_v63, %v6731_v38  ;;  %v6735_v10 = vpop.permute.xlu0 %6734 }
 0x587   : > { %v4726_v47 = vsel %vm3206_vm4, %v4662_v43, %v4664_v19  ;;  %v4791_v13 = vmax.f32 %v4599_v22, %v4727_v60  ;;  %v4728_v42 = vsel %vm3206_vm4, %v4660_v31, %v4662_v43  ;;  %v4553_v51 = vsel %vm4503_vm5, %v6731_v38, %v6726_v63  ;;  %v14083_v31 = vld [vmem:[#allocation72_spill] sm:$0xff] }
 0x588   : > { %v4790_v5 = vmax.f32 %v4598_v6, %v4726_v47  ;;  %v12206_v52 = vmax.f32 %v14080_v8, %v4522_v35  ;;  %v14082_v2 = vmax.f32 %v14081_v23, 0.0  ;;  %v14084_v3 = vmax.f32 %v14083_v31, 0.0  ;;  %v14085_v6 = vld [vmem:[#allocation70_spill] sm:$0xff] }
 0x589   : > { %v14086_v30 = vmax.f32 %v14085_v6, 0.0  ;;  %v4789_v54 = vmax.f32 %v12135_v18, %v4729_v20  ;;  %v4788_v44 = vmax.f32 %v12131_v40, %v4728_v42  ;;  %v6737_v18 = vunpack.i.h.bf16 %v6735_v10  ;;  %v6740_v40 = vpop.permute.xlu1 %6739  ;;  %v14087_v23 = vld [vmem:[#allocation74_spill] sm:$0xff] }
 0x58a   : > { %v12210_v46 = vmax.f32 %v14082_v2, %v4554_v61  ;;  %v4602_v32 = vmax.f32 %v14084_v3, %v4521_v11  ;;  %v4668_v43 = vrot.slane %v12206_v52, 2  ;;  %v6736_v26 = vunpack.i.l.bf16 %v6735_v10 }
 0x58b   : > { %v4603_v22 = vmax.f32 %v14086_v30, %v4553_v51  ;;  %v12220_v47 = vpack.c.bf16 %v4791_v13, %v4789_v54  ;;  %v12222_v60 = vpack.c.bf16 %v4790_v5, %v4788_v44  ;;  %v6742_v38 = vunpack.i.h.bf16 %v6740_v40 }
 0x58c   : > { %v4669_v37 = vrot.slane %v12210_v46, 2  ;;  %v4666_v58 = vrot.slane %v4602_v32, 2  ;;  %v6741_v20 = vunpack.i.l.bf16 %v6740_v40  ;;  %v14088_v2 = vmax.f32 %v14087_v23, 0.0 }
 0x58d   : > { %v4667_v39 = vrot.slane %v4603_v22, 2  ;;  %4878 = vmatprep.subr.bf16.mxu0 %v12220_v47  ;;  %v4524_v61 = vsel %vm4503_vm5, %v6737_v18, %v6742_v38  ;;  %v4556_v11 = vsel %vm4503_vm5, %v6742_v38, %v6737_v18 }
 0x58e   : > { %v4722_v63 = vsel %vm3206_vm4, %v4666_v58, %v4668_v43  ;;  %4879 = vmatpush1.bf16.msra.mxu0 %v12222_v60  ;;  %v4724_v13 = vsel %vm3206_vm4, %v4664_v19, %v4666_v58  ;;  %v4523_v51 = vsel %vm4503_vm5, %v6736_v26, %v6741_v20  ;;  %v4555_v8 = vsel %vm4503_vm5, %v6741_v20, %v6736_v26  ;;  %v14091_v19 = vld [vmem:[#allocation9_spill] sm:$0xff]  ;;  %v6745_v38 = vpop.permute.xlu0 %6744 }
 0x58f   : > { %v4723_v21 = vsel %vm3206_vm4, %v4667_v39, %v4669_v37  ;;  %v4794_v42 = vmax.f32 %v4602_v32, %v4722_v63  ;;  %v4725_v5 = vsel %vm3206_vm4, %v4665_v12, %v4667_v39  ;;  %v12244_v31 = vmax.f32 %v14088_v2, %v4524_v61  ;;  %v14089_v12 = vld [vmem:[#allocation75_spill] sm:$0xff] }
 0x590   : > { %v4795_v35 = vmax.f32 %v4603_v22, %v4723_v21  ;;  %v14090_v3 = vmax.f32 %v14089_v12, 0.0  ;;  %v14092_v6 = vmax.f32 %v14091_v19, 0.0  ;;  %v14093_v22 = vld [vmem:[#allocation30_spill] sm:$0xff]  ;;  %v4793_v58 = vmax.f32 %v12172_v4, %v4725_v5  ;;  %v14095_v19 = vld [vmem:[#allocation65_spill] sm:$0xff] }
 0x591   : > { %v14094_v54 = vmax.f32 %v14093_v22, 0.0  ;;  %v4792_v39 = vmax.f32 %v12168_v17, %v4724_v13  ;;  %v4672_v10 = vrot.slane %v12244_v31, 2  ;;  %v6747_v4 = vunpack.i.h.bf16 %v6745_v38  ;;  %v6750_v17 = vpop.permute.xlu1 %6749  ;;  %v14097_v22 = vld [vmem:[#allocation36_spill] sm:$0xff] }
 0x592   : > { %v12248_v32 = vmax.f32 %v14090_v3, %v4556_v11  ;;  %v4606_v30 = vmax.f32 %v14092_v6, %v4523_v51  ;;  %v12258_v26 = vpack.c.bf16 %v4795_v35, %v4793_v58  ;;  %v6746_v5 = vunpack.i.l.bf16 %v6745_v38 }
 0x593   : > { %v4607_v44 = vmax.f32 %v14094_v54, %v4555_v8  ;;  %v12260_v40 = vpack.c.bf16 %v4794_v42, %v4792_v39  ;;  %v6752_v13 = vunpack.i.h.bf16 %v6750_v17  ;;  %v6751_v11 = vunpack.i.l.bf16 %v6750_v17  ;;  %v14101_v39 = vld [vmem:[#allocation88_spill] sm:$0xff] }
 0x594   : > { %v4673_v63 = vrot.slane %v12248_v32, 2  ;;  %v4670_v21 = vrot.slane %v4606_v30, 2  ;;  %4880 = vmatprep.subr.bf16.mxu0 %v12258_v26  ;;  %v14096_v6 = vmax.f32 %v14095_v19, 0.0 }
 0x595   : > { %v4671_v18 = vrot.slane %v4607_v44, 2  ;;  %4881 = vmatpush1.bf16.msra.mxu0 %v12260_v40  ;;  %v4526_v23 = vsel %vm4503_vm5, %v6747_v4, %v6752_v13  ;;  %v4558_v2 = vsel %vm4503_vm5, %v6752_v13, %v6747_v4  ;;  %v4525_v12 = vsel %vm4503_vm5, %v6746_v5, %v6751_v11 }
 0x596   : > { %v4718_v20 = vsel %vm3206_vm4, %v4670_v21, %v4672_v10  ;;  %v4720_v35 = vsel %vm3206_vm4, %v4668_v43, %v4670_v21  ;;  %v4557_v3 = vsel %vm4503_vm5, %v6751_v11, %v6746_v5  ;;  %v14102_v21 = vmax.f32 %v14101_v39, 0.0 }
 0x597   : > { %v4719_v61 = vsel %vm3206_vm4, %v4671_v18, %v4673_v63  ;;  %v4798_v51 = vmax.f32 %v4606_v30, %v4718_v20  ;;  %v4721_v42 = vsel %vm3206_vm4, %v4669_v37, %v4671_v18  ;;  %v4612_v30 = vmax.f32 %v14096_v6, %v4526_v23  ;;  %v6755_v23 = vpop.permute.xlu0 %6754 }
 0x598   : > { %v4799_v8 = vmax.f32 %v4607_v44, %v4719_v61  ;;  %v14098_v37 = vmax.f32 %v14097_v22, 0.0  ;;  %v14099_v44 = vld [vmem:[#allocation32_spill] sm:$0xff]  ;;  %v4611_v18 = vmax.f32 %v14102_v21, %v4557_v3  ;;  %v4797_v38 = vmax.f32 %v12210_v46, %v4721_v42  ;;  %v6760_v46 = vpop.permute.xlu1 %6759 }
 0x599   : > { %v14100_v43 = vmax.f32 %v14099_v44, 0.0  ;;  %v4796_v20 = vmax.f32 %v12206_v52, %v4720_v35  ;;  %v4676_v61 = vrot.slane %v4612_v30, 2  ;;  %v6757_v3 = vunpack.i.h.bf16 %v6755_v23 }
 0x59a   : > { %v4613_v54 = vmax.f32 %v14098_v37, %v4558_v2  ;;  %v4675_v5 = vrot.slane %v4611_v18, 2  ;;  %v12290_v13 = vpack.c.bf16 %v4799_v8, %v4797_v38  ;;  %v6756_v19 = vunpack.i.l.bf16 %v6755_v23 }
 0x59b   : > { %v4610_v58 = vmax.f32 %v14100_v43, %v4525_v12  ;;  %v12292_v11 = vpack.c.bf16 %v4798_v51, %v4796_v20  ;;  %v6762_v52 = vunpack.i.h.bf16 %v6760_v46  ;;  %v6761_v42 = vunpack.i.l.bf16 %v6760_v46 }
 0x59c   : > { %v4677_v4 = vrot.slane %v4613_v54, 2  ;;  %4882 = vmatprep.subr.bf16.mxu0 %v12290_v13  ;;  %v4717_v51 = vsel %vm3206_vm4, %v4673_v63, %v4675_v5  ;;  %v14105_v63 = vld [vmem:[#allocation76_spill] sm:$0xff] }
 0x59d   : > { %v4674_v17 = vrot.slane %v4610_v58, 2  ;;  %4883 = vmatpush1.bf16.msra.mxu0 %v12292_v11  ;;  %v4528_v22 = vsel %vm4503_vm5, %v6757_v3, %v6762_v52  ;;  %v4560_v37 = vsel %vm4503_vm5, %v6762_v52, %v6757_v3  ;;  %v4527_v44 = vsel %vm4503_vm5, %v6756_v19, %v6761_v42 }
 0x59e   : > { %v4715_v12 = vsel %vm3206_vm4, %v4675_v5, %v4677_v4  ;;  %v4559_v43 = vsel %vm4503_vm5, %v6761_v42, %v6756_v19  ;;  %v14109_v5 = vld [vmem:[#allocation87_spill] sm:$0xff] }
 0x59f   : > { %v4714_v2 = vsel %vm3206_vm4, %v4674_v17, %v4676_v61  ;;  %v4803_v6 = vmax.f32 %v4611_v18, %v4715_v12  ;;  %v4716_v8 = vsel %vm3206_vm4, %v4672_v10, %v4674_v17  ;;  %v14106_v18 = vmax.f32 %v14105_v63, 0.0  ;;  %v14107_v10 = vld [vmem:[#allocation10_spill] sm:$0xff] }
 0x5a0   : > { %v4802_v35 = vmax.f32 %v4610_v58, %v4714_v2  ;;  %v14103_v58 = vld [vmem:[#allocation18_spill] sm:$0xff]  ;;  %v14108_v20 = vmax.f32 %v14107_v10, 0.0  ;;  %v14110_v23 = vmax.f32 %v14109_v5, 0.0  ;;  %v4801_v12 = vmax.f32 %v12248_v32, %v4717_v51 }
 0x5a1   : > { %v14104_v39 = vmax.f32 %v14103_v58, 0.0  ;;  %v12318_v38 = vmax.f32 %v14106_v18, %v4560_v37  ;;  %v4800_v3 = vmax.f32 %v12244_v31, %v4716_v8 }
 0x5a2   : > { %v4614_v17 = vmax.f32 %v14108_v20, %v4527_v44  ;;  %v4615_v2 = vmax.f32 %v14110_v23, %v4559_v43  ;;  %v14111_v23 = vld [vmem:[#allocation77_spill] sm:$0xff] }
 0x5a3   : > { %v12314_v21 = vmax.f32 %v14104_v39, %v4528_v22  ;;  %v4681_v46 = vrot.slane %v12318_v38, 2  ;;  %v12328_v22 = vpack.c.bf16 %v4803_v6, %v4801_v12  ;;  %v12330_v37 = vpack.c.bf16 %v4802_v35, %v4800_v3  ;;  %v14113_v3 = vld [vmem:[#allocation16_spill] sm:$0xff] }
 0x5a4   : > { %v4678_v52 = vrot.slane %v4614_v17, 2  ;;  %v4679_v42 = vrot.slane %v4615_v2, 2 }
 0x5a5   : > { %v4680_v19 = vrot.slane %v12314_v21, 2  ;;  %4884 = vmatprep.subr.bf16.mxu0 %v12328_v22 }
 0x5a6   : > { %v4711_v43 = vsel %vm3206_vm4, %v4679_v42, %v4681_v46  ;;  %v4713_v32 = vsel %vm3206_vm4, %v4677_v4, %v4679_v42  ;;  %v4712_v31 = vsel %vm3206_vm4, %v4676_v61, %v4678_v52  ;;  %4885 = vmatpush1.bf16.msra.mxu0 %v12330_v37 }
 0x5a7   : > { %v4710_v44 = vsel %vm3206_vm4, %v4678_v52, %v4680_v19  ;;  %v4807_v8 = vmax.f32 %v4615_v2, %v4711_v43  ;;  %v4805_v6 = vmax.f32 %v4613_v54, %v4713_v32  ;;  %v4804_v58 = vmax.f32 %v4612_v30, %v4712_v31  ;;  %v14117_v31 = vld [vmem:[#allocation117_spill] sm:$0xff] }
 0x5a8   : > { %v4806_v51 = vmax.f32 %v4614_v17, %v4710_v44  ;;  %v14112_v2 = vmax.f32 %v14111_v23, 0.0  ;;  %v14114_v52 = vmax.f32 %v14113_v3, 0.0  ;;  %v14115_v44 = vld [vmem:[#allocation118_spill] sm:$0xff] }
 0x5a9   : > { %v12342_v35 = vpack.c.bf16 %v4807_v8, %v4805_v6  ;;  %v14116_v43 = vmax.f32 %v14115_v44, 0.0 }
 0x5aa   : > { %v12344_v39 = vpack.c.bf16 %v4806_v51, %v4804_v58  ;;  %v14118_v51 = vmax.f32 %v14117_v31, 0.0 }
 0x5ab   : > { %4886 = vmatprep.subr.bf16.mxu0 %v12342_v35 }
 0x5ac   : > { %4887 = vmatpush1.bf16.msra.mxu0 %v12344_v39 }
 0x5b4   : > { %v6765_v4 = vpop.permute.xlu0 %6764 }
 0x5b5   : > { %v6767_v63 = vunpack.i.h.bf16 %v6765_v4  ;;  %v6766_v18 = vunpack.i.l.bf16 %v6765_v4  ;;  %v6770_v61 = vpop.permute.xlu1 %6769 }
 0x5b6   : > { %v6772_v10 = vunpack.i.h.bf16 %v6770_v61  ;;  %v6771_v20 = vunpack.i.l.bf16 %v6770_v61 }
 0x5b8   : > { %v4530_v54 = vsel %vm4503_vm5, %v6767_v63, %v6772_v10  ;;  %v4562_v30 = vsel %vm4503_vm5, %v6772_v10, %v6767_v63  ;;  %v4529_v17 = vsel %vm4503_vm5, %v6766_v18, %v6771_v20  ;;  %v4561_v5 = vsel %vm4503_vm5, %v6771_v20, %v6766_v18 }
 0x5b9   : > { %v12358_v12 = vmax.f32 %v14112_v2, %v4530_v54  ;;  %v12362_v42 = vmax.f32 %v14114_v52, %v4562_v30  ;;  %v4618_v32 = vmax.f32 %v14116_v43, %v4529_v17  ;;  %v4619_v8 = vmax.f32 %v14118_v51, %v4561_v5 }
 0x5bb   : > { %v4684_v6 = vrot.slane %v12358_v12, 2  ;;  %v4685_v58 = vrot.slane %v12362_v42, 2  ;;  %v4682_v4 = vrot.slane %v4618_v32, 2  ;;  %v4683_v63 = vrot.slane %v4619_v8, 2 }
 0x5bd   : > { %v4706_v18 = vsel %vm3206_vm4, %v4682_v4, %v4684_v6  ;;  %v4707_v61 = vsel %vm3206_vm4, %v4683_v63, %v4685_v58  ;;  %v4709_v54 = vsel %vm3206_vm4, %v4681_v46, %v4683_v63  ;;  %v4708_v30 = vsel %vm3206_vm4, %v4680_v19, %v4682_v4  ;;  %v14120_v4 = vld [vmem:[#allocation82_spill] sm:$0xff] }
 0x5be   : > { %v6775_v10 = vpop.permute.xlu0 %6774  ;;  %v4810_v17 = vmax.f32 %v4618_v32, %v4706_v18  ;;  %v4811_v5 = vmax.f32 %v4619_v8, %v4707_v61  ;;  %v4809_v44 = vmax.f32 %v12318_v38, %v4709_v54  ;;  %v4808_v43 = vmax.f32 %v12314_v21, %v4708_v30  ;;  %v14122_v21 = vld [vmem:[#allocation78_spill] sm:$0xff] }
 0x5bf   : > { %v6780_v20 = vpop.permute.xlu1 %6779  ;;  %v6777_v23 = vunpack.i.h.bf16 %v6775_v10  ;;  %v6776_v2 = vunpack.i.l.bf16 %v6775_v10  ;;  %v14119_v32 = vmax.f32 %v11845_v34, 0.0  ;;  %v14121_v38 = vmax.f32 %v14120_v4, 0.0  ;;  %v14124_v10 = vld [vmem:[#allocation21_spill] sm:$0xff] }
 0x5c0   : > { %v6782_v3 = vunpack.i.h.bf16 %v6780_v20  ;;  %v6781_v52 = vunpack.i.l.bf16 %v6780_v20  ;;  %v14123_v18 = vmax.f32 %v14122_v21, 0.0  ;;  %v14125_v20 = vmax.f32 %v14124_v10, 0.0 }
 0x5c1   : > { %v12398_v30 = vpack.c.bf16 %v4811_v5, %v4809_v44 }
 0x5c2   : > { %v4532_v31 = vsel %vm4503_vm5, %v6777_v23, %v6782_v3  ;;  %v4564_v51 = vsel %vm4503_vm5, %v6782_v3, %v6777_v23  ;;  %v4531_v46 = vsel %vm4503_vm5, %v6776_v2, %v6781_v52  ;;  %v4563_v19 = vsel %vm4503_vm5, %v6781_v52, %v6776_v2 }
 0x5c3   : > { %v12390_v8 = vmax.f32 %v14119_v32, %v4532_v31  ;;  %v4625_v63 = vmax.f32 %v14121_v38, %v4564_v51  ;;  %v4622_v61 = vmax.f32 %v14123_v18, %v4531_v46  ;;  %v4623_v54 = vmax.f32 %v14125_v20, %v4563_v19  ;;  %4888 = vmatprep.subr.bf16.mxu0 %v12398_v30 }
 0x5c4   : > { %v12400_v23 = vpack.c.bf16 %v4810_v17, %v4808_v43 }
 0x5c5   : > { %v4688_v3 = vrot.slane %v12390_v8, 2  ;;  %v4689_v2 = vrot.slane %v4625_v63, 2  ;;  %v4686_v52 = vrot.slane %v4622_v61, 2  ;;  %v4687_v34 = vrot.slane %v4623_v54, 2 }
 0x5c6   : > { %4889 = vmatpush1.bf16.msra.mxu0 %v12400_v23 }
 0x5c7   : > { %v4702_v31 = vsel %vm3206_vm4, %v4686_v52, %v4688_v3  ;;  %v4703_v51 = vsel %vm3206_vm4, %v4687_v34, %v4689_v2  ;;  %v4705_v17 = vsel %vm3206_vm4, %v4685_v58, %v4687_v34  ;;  %v4704_v44 = vsel %vm3206_vm4, %v4684_v6, %v4686_v52 }
 0x5c8   : > { %v4814_v43 = vmax.f32 %v4622_v61, %v4702_v31  ;;  %v4815_v19 = vmax.f32 %v4623_v54, %v4703_v51  ;;  %v4813_v18 = vmax.f32 %v12362_v42, %v4705_v17  ;;  %v4812_v10 = vmax.f32 %v12358_v12, %v4704_v44 }
 0x5c9   : > { %v6785_v46 = vpop.permute.xlu0 %6784  ;;  %v6790_v5 = vpop.permute.xlu1 %6789  ;;  %v14126_v54 = vmax.f32 %v11915_v7, 0.0  ;;  %v14127_v12 = vmax.f32 %v11857_v25, 0.0  ;;  %v14128_v34 = vmax.f32 %v11876_v36, 0.0 }
 0x5ca   : > { %v6787_v32 = vunpack.i.h.bf16 %v6785_v46  ;;  %v6786_v4 = vunpack.i.l.bf16 %v6785_v46  ;;  %v6792_v38 = vunpack.i.h.bf16 %v6790_v5  ;;  %v6791_v21 = vunpack.i.l.bf16 %v6790_v5 }
 0x5cb   : > { %v12431_v17 = vpack.c.bf16 %v4815_v19, %v4813_v18  ;;  %v12433_v44 = vpack.c.bf16 %v4814_v43, %v4812_v10  ;;  %v14129_v19 = vmax.f32 %v11945_v1, 0.0 }
 0x5cc   : > { %v4534_v20 = vsel %vm4503_vm5, %v6787_v32, %v6792_v38  ;;  %v4566_v14 = vsel %vm4503_vm5, %v6792_v38, %v6787_v32  ;;  %v4533_v58 = vsel %vm4503_vm5, %v6786_v4, %v6791_v21  ;;  %v4565_v6 = vsel %vm4503_vm5, %v6791_v21, %v6786_v4 }
 0x5cd   : > { %v4628_v61 = vmax.f32 %v4371_v0, %v4534_v20  ;;  %v4629_v42 = vmax.f32 %v14126_v54, %v4566_v14  ;;  %v4626_v52 = vmax.f32 %v14127_v12, %v4533_v58  ;;  %v4627_v31 = vmax.f32 %v14128_v34, %v4565_v6  ;;  %v6795_v51 = vpop.permute.xlu0 %6794  ;;  %4890 = vmatprep.subr.bf16.mxu0 %v12431_v17  ;;  %v14132_v12 = vld [vmem:[#allocation79_spill] sm:$0xff] }
 0x5ce   : > { %v6797_v46 = vunpack.i.h.bf16 %v6795_v51  ;;  %v6796_v5 = vunpack.i.l.bf16 %v6795_v51  ;;  %4891 = vmatpush1.bf16.msra.mxu0 %v12433_v44  ;;  %v14133_v34 = vrot.slane %v14132_v12, 2 }
 0x5cf   : > { %v4692_v32 = vrot.slane %v4628_v61, 2  ;;  %v4693_v4 = vrot.slane %v4629_v42, 2  ;;  %v4690_v9 = vrot.slane %v4626_v52, 2  ;;  %v4691_v0 = vrot.slane %v4627_v31, 2 }
 0x5d0   : > { %v4535_v7 = vsel %vm4503_vm5, %v6796_v5, %v6797_v46  ;;  %v4567_v25 = vsel %vm4503_vm5, %v6797_v46, %v6796_v5 }
 0x5d1   : > { %v4698_v36 = vsel %vm3206_vm4, %v4690_v9, %v4692_v32  ;;  %v4699_v14 = vsel %vm3206_vm4, %v4691_v0, %v4693_v4  ;;  %v4630_v43 = vmax.f32 %v4373_v27, %v4535_v7  ;;  %v4631_v38 = vmax.f32 %v14129_v19, %v4567_v25  ;;  %v7107_v19 = vld [vmem:[%s12784_s5 + $0x90] sm:$0xff]  }
 0x5d2   : > { %v4818_v21 = vmax.f32 %v4626_v52, %v4698_v36  ;;  %v4819_v18 = vmax.f32 %v4627_v31, %v4699_v14  ;;  %v4701_v29 = vsel %vm3206_vm4, %v4689_v2, %v4691_v0  ;;  %v4700_v10 = vsel %vm3206_vm4, %v4688_v3, %v4690_v9  ;;  %v4906_v0 = vld [vmem:[#allocation4 + $0x8] sm:$0xff] }
 0x5d3   : > { %v4694_v20 = vrot.slane %v4630_v43, 2  ;;  %v4695_v58 = vrot.slane %v4631_v38, 2  ;;  %v4817_v6 = vmax.f32 %v4625_v63, %v4701_v29  ;;  %v4816_v54 = vmax.f32 %v12390_v8, %v4700_v10  ;;  %v7111_v29 = vld [vmem:[%s12784_s5 + $0xa0] sm:$0xff]   ;;  %v7112_v10 = vld [vmem:[%s12784_s5 + $0xe8] sm:$0xff]  }
 0x5d4   : > { %v14131_v27 = vrot.slane %v14130_v41, 2  ;;  %v6151_v25 = vcombine.low %v12026_v49, %v12026_v49  ;;  %v6154_v59 = vcombine.high %v4906_v0, %v4906_v0  ;;  %v4956_v49 = vld [vmem:[#allocation4 + $0x10] sm:$0xff]  ;;  %v7117_v41 = vld [vmem:[%s12784_s5 + $0xb8] sm:$0xff]  }
 0x5d5   : > { %v4759_v52 = vsel %vm3206_vm4, %v4695_v58, %v14133_v34  ;;  %v12462_v31 = vpack.c.bf16 %v4819_v18, %v4817_v6  ;;  %v12464_v2 = vpack.c.bf16 %v4818_v21, %v4816_v54  ;;  %v4697_v63 = vsel %vm3206_vm4, %v4693_v4, %v4695_v58  ;;  %v5006_v4 = vld [vmem:[#allocation4 + $0x18] sm:$0xff]  ;;  %v7110_v18 = vld [vmem:[%s12784_s5 + $0xe0] sm:$0xff]   ;;  %v7114_v58 = vld [vmem:[%s12784_s5 + $0xf0] sm:$0xff]  }
 0x5d6   : > { %v4758_v1 = vsel %vm3206_vm4, %v4694_v20, %v14131_v27  ;;  %v4823_v51 = vmax.f32 %v4631_v38, %v4759_v52  ;;  %v4696_v8 = vsel %vm3206_vm4, %v4692_v32, %v4694_v20  ;;  %v4821_v46 = vmax.f32 %v4629_v42, %v4697_v63  ;;  %v14134_v32 = vld [vmem:[#allocation81_spill] sm:$0xff]  ;;  %v7108_v38 = vld [vmem:[%s12784_s5 + $0xd8] sm:$0xff]   ;;  %v7115_v6 = vld [vmem:[%s12784_s5 + $0xb0] sm:$0xff]  }
 0x5d7   : > { %v4822_v3 = vmax.f32 %v4630_v43, %v4758_v1  ;;  %4892 = vmatprep.subr.bf16.mxu0 %v12462_v31  ;;  %v4820_v5 = vmax.f32 %v4628_v61, %v4696_v8  ;;  %v6153_v61 = vcombine.low %v4906_v0, %v4906_v0  ;;  %v6156_v42 = vcombine.high %v4956_v49, %v4956_v49  ;;  %v7106_v43 = vld [vmem:[%s12784_s5 + $0xd0] sm:$0xff]   ;;  %v7109_v21 = vld [vmem:[%s12784_s5 + $0x98] sm:$0xff]   ;;  %v7113_v20 = vld [vmem:[%s12784_s5 + $0xa8] sm:$0xff]  }
 0x5d8   : > { %4893 = vmatpush1.bf16.msra.mxu0 %v12464_v2  ;;  %v12472_v9 = vpack.c.bf16 %v4823_v51, %v4821_v46  ;;  %v6155_v36 = vcombine.low %v4956_v49, %v4956_v49  ;;  %v6158_v14 = vcombine.high %v5006_v4, %v5006_v4  ;;  %v7116_v54 = vld [vmem:[%s12784_s5 + $0xf8] sm:$0xff]   ;;  %v7118_v27 = vld [vmem:[%s12784_s5 + $0x140] sm:$0xff]   ;;  %v7120_v51 = vld [vmem:[%s12784_s5 + $0x148] sm:$0xff]  }
 0x5d9   : > { %v12474_v7 = vpack.c.bf16 %v4822_v3, %v4820_v5  ;;  %v7121_v63 = vld [vmem:[%s12784_s5 + $0x108] sm:$0xff]   ;;  %v7122_v8 = vld [vmem:[%s12784_s5 + $0x150] sm:$0xff]   ;;  %v7124_v5 = vld [vmem:[%s12784_s5 + $0x158] sm:$0xff]  }
 0x5da   : > { %4894 = vmatprep.subr.bf16.mxu0 %v12472_v9  ;;  %v7123_v46 = vld [vmem:[%s12784_s5 + $0x110] sm:$0xff]   ;;  %v7126_v0 = vld [vmem:[%s12784_s5 + $0x160] sm:$0xff]  }
 0x5db   : > { %v7131_v49 = vld [vmem:[%s12784_s5 + $0x130] sm:$0xff]  }
 0x5dc   : > { %4895 = vmatpush1.bf16.msra.mxu0 %v12474_v7 }
 0x5dd   : > { %4914 = vmatprep.subr.bf16.mxu0 %v14134_v32 }
 0x5df   : > { %4897 = vmatmul.mubr.bf16.vlgmr.msra.gmra.mrb[116].mxu0 %v6151_v25  ;;  %v7128_v25 = vld [vmem:[%s12784_s5 + $0x168] sm:$0xff]  }
 0x5e0   : > { %4915 = vmatpush1.bf16.msra.mxu0 %v11942_v33  ;;  %4946 = vmatprep.mubr.bf16.mxu0 %v6154_v59  ;;  %v7129_v59 = vld [vmem:[%s12784_s5 + $0x128] sm:$0xff]  }
 0x5e1   : > { %4916 = vmatprep.subr.bf16.mxu0 %v11987_v24 }
 0x5e4   : > { %4917 = vmatpush1.bf16.msra.mxu0 %v11989_v45 }
 0x5e5   : > { %4918 = vmatprep.subr.bf16.mxu0 %v12030_v55 }
 0x5e8   : > { %4919 = vmatpush1.bf16.msra.mxu0 %v12024_v48 }
 0x5e9   : > { %4920 = vmatprep.subr.bf16.mxu0 %v12070_v28 }
 0x5ec   : > { %4921 = vmatpush1.bf16.msra.mxu0 %v12068_v62 }
 0x5ed   : > { %4922 = vmatprep.subr.bf16.mxu0 %v12108_v50 }
 0x5f0   : > { %4923 = vmatpush1.bf16.msra.mxu0 %v12106_v56 }
 0x5f1   : > { %4924 = vmatprep.subr.bf16.mxu0 %v12146_v57 }
 0x5f4   : > { %4925 = vmatpush1.bf16.msra.mxu0 %v12142_v53 }
 0x5f5   : > { %4926 = vmatprep.subr.bf16.mxu0 %v12182_v16 }
 0x5f8   : > { %4927 = vmatpush1.bf16.msra.mxu0 %v12184_v15 }
 0x5f9   : > { %4928 = vmatprep.subr.bf16.mxu0 %v12220_v47 }
 0x5fc   : > { %4929 = vmatpush1.bf16.msra.mxu0 %v12222_v60 }
 0x5fd   : > { %4930 = vmatprep.subr.bf16.mxu0 %v12258_v26 }
 0x600   : > { %4931 = vmatpush1.bf16.msra.mxu0 %v12260_v40 }
 0x601   : > { %4932 = vmatprep.subr.bf16.mxu0 %v12290_v13 }
 0x604   : > { %4933 = vmatpush1.bf16.msra.mxu0 %v12292_v11 }
 0x605   : > { %4934 = vmatprep.subr.bf16.mxu0 %v12328_v22 }
 0x608   : > { %4935 = vmatpush1.bf16.msra.mxu0 %v12330_v37 }
 0x609   : > { %4936 = vmatprep.subr.bf16.mxu0 %v12342_v35 }
 0x60c   : > { %4937 = vmatpush1.bf16.msra.mxu0 %v12344_v39 }
 0x60d   : > { %4938 = vmatprep.subr.bf16.mxu0 %v12398_v30 }
 0x610   : > { %4939 = vmatpush1.bf16.msra.mxu0 %v12400_v23 }
 0x611   : > { %4940 = vmatprep.subr.bf16.mxu0 %v12431_v17 }
 0x614   : > { %4941 = vmatpush1.bf16.msra.mxu0 %v12433_v44 }
 0x615   : > { %4942 = vmatprep.subr.bf16.mxu0 %v12462_v31 }
 0x618   : > { %4943 = vmatpush1.bf16.msra.mxu0 %v12464_v2 }
 0x619   : > { %4944 = vmatprep.subr.bf16.mxu0 %v12472_v9 }
 0x61c   : > { %4945 = vmatpush1.bf16.msra.mxu0 %v12474_v7 }
 0x61d   : > { %4964 = vmatprep.subr.bf16.mxu0 %v14134_v32 }
 0x61f   : > { %4947 = vmatmul.mubr.bf16.vlgmr.msra.gmra.mrb[120].mxu0 %v6153_v61  ;;  %v7132_v61 = vld [vmem:[%s12784_s5 + $0x178] sm:$0xff]  }
 0x620   : > { %4965 = vmatpush1.bf16.msra.mxu0 %v11942_v33  ;;  %4996 = vmatprep.mubr.bf16.mxu0 %v6156_v42  ;;  %v7133_v42 = vld [vmem:[%s12784_s5 + $0x138] sm:$0xff]  }
 0x621   : > { %4966 = vmatprep.subr.bf16.mxu0 %v11987_v24 }
 0x624   : > { %4967 = vmatpush1.bf16.msra.mxu0 %v11989_v45 }
 0x625   : > { %4968 = vmatprep.subr.bf16.mxu0 %v12030_v55 }
 0x628   : > { %4969 = vmatpush1.bf16.msra.mxu0 %v12024_v48 }
 0x629   : > { %4970 = vmatprep.subr.bf16.mxu0 %v12070_v28 }
 0x62c   : > { %4971 = vmatpush1.bf16.msra.mxu0 %v12068_v62 }
 0x62d   : > { %4972 = vmatprep.subr.bf16.mxu0 %v12108_v50 }
 0x630   : > { %4973 = vmatpush1.bf16.msra.mxu0 %v12106_v56 }
 0x631   : > { %4974 = vmatprep.subr.bf16.mxu0 %v12146_v57 }
 0x634   : > { %4975 = vmatpush1.bf16.msra.mxu0 %v12142_v53 }
 0x635   : > { %4976 = vmatprep.subr.bf16.mxu0 %v12182_v16 }
 0x638   : > { %4977 = vmatpush1.bf16.msra.mxu0 %v12184_v15 }
 0x639   : > { %4978 = vmatprep.subr.bf16.mxu0 %v12220_v47 }
 0x63c   : > { %4979 = vmatpush1.bf16.msra.mxu0 %v12222_v60 }
 0x63d   : > { %4980 = vmatprep.subr.bf16.mxu0 %v12258_v26 }
 0x640   : > { %4981 = vmatpush1.bf16.msra.mxu0 %v12260_v40 }
 0x641   : > { %4982 = vmatprep.subr.bf16.mxu0 %v12290_v13 }
 0x644   : > { %4983 = vmatpush1.bf16.msra.mxu0 %v12292_v11 }
 0x645   : > { %4984 = vmatprep.subr.bf16.mxu0 %v12328_v22 }
 0x648   : > { %4985 = vmatpush1.bf16.msra.mxu0 %v12330_v37 }
 0x649   : > { %4986 = vmatprep.subr.bf16.mxu0 %v12342_v35 }
 0x64c   : > { %4987 = vmatpush1.bf16.msra.mxu0 %v12344_v39 }
 0x64d   : > { %4988 = vmatprep.subr.bf16.mxu0 %v12398_v30 }
 0x650   : > { %4989 = vmatpush1.bf16.msra.mxu0 %v12400_v23 }
 0x651   : > { %4990 = vmatprep.subr.bf16.mxu0 %v12431_v17 }
 0x654   : > { %4991 = vmatpush1.bf16.msra.mxu0 %v12433_v44 }
 0x655   : > { %4992 = vmatprep.subr.bf16.mxu0 %v12462_v31 }
 0x658   : > { %4993 = vmatpush1.bf16.msra.mxu0 %v12464_v2 }
 0x659   : > { %4994 = vmatprep.subr.bf16.mxu0 %v12472_v9 }
 0x65c   : > { %4995 = vmatpush1.bf16.msra.mxu0 %v12474_v7 }
 0x65d   : > { %5014 = vmatprep.subr.bf16.mxu0 %v14134_v32  ;;  %v7130_v32 = vld [vmem:[%s12784_s5 + $0x170] sm:$0xff]  }
 0x65f   : > { %4997 = vmatmul.mubr.bf16.vlgmr.msra.gmra.mrb[124].mxu0 %v6155_v36 }
 0x660   : > { %5015 = vmatpush1.bf16.msra.mxu0 %v11942_v33  ;;  %5046 = vmatprep.mubr.bf16.mxu0 %v6158_v14  ;;  %v7086_v33 = vld [vmem:[%s12784_s5 + $0x40] sm:$0xff]  }
 0x661   : > { %5016 = vmatprep.subr.bf16.mxu0 %v11987_v24  ;;  %v6157_v24 = vcombine.low %v5006_v4, %v5006_v4  ;;  %v7134_v4 = vld [vmem:[%s12784_s5 + $0x1c0] sm:$0xff]  }
 0x664   : > { %5017 = vmatpush1.bf16.msra.mxu0 %v11989_v45  ;;  %v7087_v45 = vld [vmem:[%s12784_s5] sm:$0xff]  }
 0x665   : > { %5018 = vmatprep.subr.bf16.mxu0 %v12030_v55  ;;  %v7089_v55 = vld [vmem:[%s12784_s5 + $0x8] sm:$0xff]  }
 0x668   : > { %5019 = vmatpush1.bf16.msra.mxu0 %v12024_v48  ;;  %v7088_v48 = vld [vmem:[%s12784_s5 + $0x48] sm:$0xff]  }
 0x669   : > { %5020 = vmatprep.subr.bf16.mxu0 %v12070_v28  ;;  %v7091_v28 = vld [vmem:[%s12784_s5 + $0x10] sm:$0xff]  }
 0x66c   : > { %5021 = vmatpush1.bf16.msra.mxu0 %v12068_v62  ;;  %v7090_v62 = vld [vmem:[%s12784_s5 + $0x50] sm:$0xff]  }
 0x66d   : > { %5022 = vmatprep.subr.bf16.mxu0 %v12108_v50  ;;  %v7093_v50 = vld [vmem:[%s12784_s5 + $0x18] sm:$0xff]  }
 0x670   : > { %5023 = vmatpush1.bf16.msra.mxu0 %v12106_v56  ;;  %v7092_v56 = vld [vmem:[%s12784_s5 + $0x58] sm:$0xff]  }
 0x671   : > { %5024 = vmatprep.subr.bf16.mxu0 %v12146_v57  ;;  %v7095_v57 = vld [vmem:[%s12784_s5 + $0x20] sm:$0xff]  }
 0x674   : > { %5025 = vmatpush1.bf16.msra.mxu0 %v12142_v53  ;;  %v7094_v53 = vld [vmem:[%s12784_s5 + $0x60] sm:$0xff]  }
 0x675   : > { %5026 = vmatprep.subr.bf16.mxu0 %v12182_v16  ;;  %v7096_v16 = vld [vmem:[%s12784_s5 + $0x68] sm:$0xff]  }
 0x678   : > { %5027 = vmatpush1.bf16.msra.mxu0 %v12184_v15  ;;  %v7097_v15 = vld [vmem:[%s12784_s5 + $0x28] sm:$0xff]  }
 0x679   : > { %5028 = vmatprep.subr.bf16.mxu0 %v12220_v47  ;;  %v7098_v47 = vld [vmem:[%s12784_s5 + $0x70] sm:$0xff]  }
 0x67c   : > { %5029 = vmatpush1.bf16.msra.mxu0 %v12222_v60 }
 0x67d   : > { %5030 = vmatprep.subr.bf16.mxu0 %v12258_v26 }
 0x680   : > { %5031 = vmatpush1.bf16.msra.mxu0 %v12260_v40 }
 0x681   : > { %5032 = vmatprep.subr.bf16.mxu0 %v12290_v13 }
 0x684   : > { %5033 = vmatpush1.bf16.msra.mxu0 %v12292_v11  ;;  %v7099_v11 = vld [vmem:[%s12784_s5 + $0x30] sm:$0xff]  }
 0x685   : > { %5034 = vmatprep.subr.bf16.mxu0 %v12328_v22 }
 0x688   : > { %5035 = vmatpush1.bf16.msra.mxu0 %v12330_v37  ;;  %v7100_v37 = vld [vmem:[%s12784_s5 + $0x78] sm:$0xff]  }
 0x689   : > { %5036 = vmatprep.subr.bf16.mxu0 %v12342_v35  ;;  %v7101_v35 = vld [vmem:[%s12784_s5 + $0x38] sm:$0xff]  }
 0x68c   : > { %5037 = vmatpush1.bf16.msra.mxu0 %v12344_v39  ;;  %v7102_v39 = vld [vmem:[%s12784_s5 + $0xc0] sm:$0xff]  }
 0x68d   : > { %5038 = vmatprep.subr.bf16.mxu0 %v12398_v30  ;;  %v7103_v30 = vld [vmem:[%s12784_s5 + $0x80] sm:$0xff]  }
 0x690   : > { %5039 = vmatpush1.bf16.msra.mxu0 %v12400_v23 }
 0x691   : > { %5040 = vmatprep.subr.bf16.mxu0 %v12431_v17  ;;  %v7104_v17 = vld [vmem:[%s12784_s5 + $0xc8] sm:$0xff]  }
 0x694   : > { %5041 = vmatpush1.bf16.msra.mxu0 %v12433_v44  ;;  %v7105_v44 = vld [vmem:[%s12784_s5 + $0x88] sm:$0xff]  }
 0x695   : > { %5042 = vmatprep.subr.bf16.mxu0 %v12462_v31 }
 0x698   : > { %5043 = vmatpush1.bf16.msra.mxu0 %v12464_v2  ;;  %v7119_v2 = vld [vmem:[%s12784_s5 + $0x100] sm:$0xff]  }
 0x699   : > { %5044 = vmatprep.subr.bf16.mxu0 %v12472_v9  ;;  %v7125_v9 = vld [vmem:[%s12784_s5 + $0x118] sm:$0xff]  }
 0x69c   : > { %5045 = vmatpush1.bf16.msra.mxu0 %v12474_v7  ;;  %v7127_v7 = vld [vmem:[%s12784_s5 + $0x120] sm:$0xff]  }
 0x69d   : > { %6226 = vmatprep.subr.bf16.mxu0 %v7086_v33 }
 0x69f   : > { %5047 = vmatmul.mubr.bf16.vlgmr.msra.gmra.mrb[128].mxu0 %v6157_v24 }
 0x6a0   : > { %6227 = vmatpush3.bf16.msra.mxu0 %v7087_v45 }
 0x6a1   : > { %6228 = vmatprep.subr.bf16.mxu0 %v7088_v48  ;;  %v7135_v48 = vld [vmem:[%s12784_s5 + $0x180] sm:$0xff]  }
 0x6a4   : > { %6229 = vmatpush3.bf16.msra.mxu0 %v7089_v55 }
 0x6a5   : > { %6230 = vmatprep.subr.bf16.mxu0 %v7090_v62  ;;  %v7136_v62 = vld [vmem:[%s12784_s5 + $0x1c8] sm:$0xff]  }
 0x6a8   : > { %6231 = vmatpush3.bf16.msra.mxu0 %v7091_v28  ;;  %v7137_v28 = vld [vmem:[%s12784_s5 + $0x188] sm:$0xff]  }
 0x6a9   : > { %6232 = vmatprep.subr.bf16.mxu0 %v7092_v56  ;;  %v7138_v56 = vld [vmem:[%s12784_s5 + $0x1d0] sm:$0xff]  }
 0x6ac   : > { %6233 = vmatpush3.bf16.msra.mxu0 %v7093_v50  ;;  %v7139_v50 = vld [vmem:[%s12784_s5 + $0x190] sm:$0xff]  }
 0x6ad   : > { %6234 = vmatprep.subr.bf16.mxu0 %v7094_v53  ;;  %v7140_v53 = vld [vmem:[%s12784_s5 + $0x1d8] sm:$0xff]  }
 0x6b0   : > { %6235 = vmatpush3.bf16.msra.mxu0 %v7095_v57  ;;  %v7141_v57 = vld [vmem:[%s12784_s5 + $0x198] sm:$0xff]  }
 0x6b1   : > { %6236 = vmatprep.subr.bf16.mxu0 %v7096_v16  ;;  %v7142_v16 = vld [vmem:[%s12784_s5 + $0x1e0] sm:$0xff]  }
 0x6b2   : > { %v4898_v60 = vpop.f32.mrb[116].mxu0 }
 0x6b3   : > { %v4900_v26 = vpop.f32.mrb[117].mxu0  ;;  %v5055_v23 = vpack.c.bf16 %v4898_v60, %v4898_v60  ;;  %v7145_v60 = vld [vmem:[%s12784_s5 + $0x1a8] sm:$0xff]  }
 0x6b4   : > { %6237 = vmatpush3.bf16.msra.mxu0 %v7097_v15  ;;  %v5056_v40 = vpack.c.bf16 %v4900_v26, %v4900_v26  ;;  %v4902_v13 = vpop.f32.mrb[118].mxu0  ;;  %v7143_v15 = vld [vmem:[%s12784_s5 + $0x1a0] sm:$0xff]   ;;  %v7146_v26 = vld [vmem:[%s12784_s5 + $0x1f0] sm:$0xff]  }
 0x6b5   : > { %6238 = vmatprep.subr.bf16.mxu0 %v7098_v47  ;;  %v4903_v22 = vpop.f32.mrb[119].mxu0  ;;  %v7144_v47 = vld [vmem:[%s12784_s5 + $0x1e8] sm:$0xff]   ;;  %v7148_v13 = vld [vmem:[%s12784_s5 + $0x1f8] sm:$0xff]  }
 0x6b6   : > { %5614 = vmatprep.mubr.bf16.mxu0 %v5056_v40  ;;  %v7147_v40 = vld [vmem:[%s12784_s5 + $0x1b0] sm:$0xff]  }
 0x6b8   : > { %6239 = vmatpush3.bf16.msra.mxu0 %v7099_v11  ;;  %v7149_v11 = vld [vmem:[%s12784_s5 + $0x1b8] sm:$0xff]  }
 0x6b9   : > { %6240 = vmatprep.subr.bf16.mxu0 %v7100_v37 }
 0x6bc   : > { %6241 = vmatpush3.bf16.msra.mxu0 %v7101_v35 }
 0x6bd   : > { %6248 = vmatprep.subr.bf16.mxu0 %v7102_v39 }
 0x6bf   : > { %5615 = vmatmul.mubr.bf16.vlgmr.msra.gmra.mrb[132].mxu0 %v5055_v23 }
 0x6c0   : > { %6249 = vmatpush3.bf16.msra.mxu0 %v7103_v30 }
 0x6c1   : > { %6250 = vmatprep.subr.bf16.mxu0 %v7104_v17 }
 0x6c4   : > { %6251 = vmatpush3.bf16.msra.mxu0 %v7105_v44 }
 0x6c5   : > { %6252 = vmatprep.subr.bf16.mxu0 %v7106_v43 }
 0x6c8   : > { %6253 = vmatpush3.bf16.msra.mxu0 %v7107_v19 }
 0x6c9   : > { %6254 = vmatprep.subr.bf16.mxu0 %v7108_v38 }
 0x6cc   : > { %6255 = vmatpush3.bf16.msra.mxu0 %v7109_v21  ;;  %v6159_v21 = vld [vmem:[%s12785_s6] ss:$0 sm:$0xff] }
 0x6cd   : > { %6256 = vmatprep.subr.bf16.mxu0 %v7110_v18 }
 0x6d0   : > { %6257 = vmatpush3.bf16.msra.mxu0 %v7111_v29 }
 0x6d1   : > { %6258 = vmatprep.subr.bf16.mxu0 %v7112_v10 }
 0x6d4   : > { %6259 = vmatpush3.bf16.msra.mxu0 %v7113_v20 }
 0x6d5   : > { %6260 = vmatprep.subr.bf16.mxu0 %v7114_v58 }
 0x6d8   : > { %6261 = vmatpush3.bf16.msra.mxu0 %v7115_v6 }
 0x6d9   : > { %6262 = vmatprep.subr.bf16.mxu0 %v7116_v54 }
 0x6dc   : > { %6263 = vmatpush3.bf16.msra.mxu0 %v7117_v41 }
 0x6dd   : > { %6270 = vmatprep.subr.bf16.mxu0 %v7118_v27 }
 0x6f2   : > { %v4948_v1 = vpop.f32.mrb[120].mxu0 }
 0x6f3   : > { %v5057_v12 = vpack.c.bf16 %v4948_v1, %v4948_v1  ;;  %v4950_v34 = vpop.f32.mrb[121].mxu0 }
 0x6f4   : > { %v5058_v52 = vpack.c.bf16 %v4950_v34, %v4950_v34  ;;  %v4952_v31 = vpop.f32.mrb[122].mxu0 }
 0x6f5   : > { %v4953_v3 = vpop.f32.mrb[123].mxu0 }
 0x6f6   : > { %5654 = vmatprep.mubr.bf16.mxu0 %v5058_v52 }
 0x6f7   : > { %5655 = vmatmul.mubr.bf16.vlgmr.msra.gmra.mrb[136].mxu0 %v5057_v12 }
 0x6f8   : > { %6271 = vmatpush3.bf16.msra.mxu0 %v7119_v2 }
 0x6f9   : > { %6272 = vmatprep.subr.bf16.mxu0 %v7120_v51 }
 0x6fc   : > { %6273 = vmatpush3.bf16.msra.mxu0 %v7121_v63 }
 0x6fd   : > { %6274 = vmatprep.subr.bf16.mxu0 %v7122_v8 }
 0x700   : > { %6275 = vmatpush3.bf16.msra.mxu0 %v7123_v46 }
 0x701   : > { %6276 = vmatprep.subr.bf16.mxu0 %v7124_v5 }
 0x704   : > { %6277 = vmatpush3.bf16.msra.mxu0 %v7125_v9 }
 0x705   : > { %6278 = vmatprep.subr.bf16.mxu0 %v7126_v0 }
 0x708   : > { %6279 = vmatpush3.bf16.msra.mxu0 %v7127_v7 }
 0x709   : > { %6280 = vmatprep.subr.bf16.mxu0 %v7128_v25 }
 0x70c   : > { %6281 = vmatpush3.bf16.msra.mxu0 %v7129_v59 }
 0x70d   : > { %6282 = vmatprep.subr.bf16.mxu0 %v7130_v32 }
 0x710   : > { %6283 = vmatpush3.bf16.msra.mxu0 %v7131_v49 }
 0x711   : > { %6284 = vmatprep.subr.bf16.mxu0 %v7132_v61 }
 0x714   : > { %6285 = vmatpush3.bf16.msra.mxu0 %v7133_v42 }
 0x715   : > { %6292 = vmatprep.subr.bf16.mxu0 %v7134_v4 }
 0x732   : > { %v4998_v36 = vpop.f32.mrb[124].mxu0 }
 0x733   : > { %v5059_v14 = vpack.c.bf16 %v4998_v36, %v4998_v36  ;;  %v5000_v33 = vpop.f32.mrb[125].mxu0 }
 0x734   : > { %v5060_v24 = vpack.c.bf16 %v5000_v33, %v5000_v33  ;;  %v5002_v45 = vpop.f32.mrb[126].mxu0 }
 0x735   : > { %v5003_v55 = vpop.f32.mrb[127].mxu0 }
 0x736   : > { %5694 = vmatprep.mubr.bf16.mxu0 %v5060_v24 }
 0x737   : > { %5695 = vmatmul.mubr.bf16.vlgmr.msra.gmra.mrb[140].mxu0 %v5059_v14 }
 0x738   : > { %6293 = vmatpush3.bf16.msra.mxu0 %v7135_v48 }
 0x739   : > { %6294 = vmatprep.subr.bf16.mxu0 %v7136_v62 }
 0x73c   : > { %6295 = vmatpush3.bf16.msra.mxu0 %v7137_v28 }
 0x73d   : > { %6296 = vmatprep.subr.bf16.mxu0 %v7138_v56 }
 0x740   : > { %6297 = vmatpush3.bf16.msra.mxu0 %v7139_v50 }
 0x741   : > { %6298 = vmatprep.subr.bf16.mxu0 %v7140_v53 }
 0x744   : > { %6299 = vmatpush3.bf16.msra.mxu0 %v7141_v57 }
 0x745   : > { %6300 = vmatprep.subr.bf16.mxu0 %v7142_v16 }
 0x748   : > { %6301 = vmatpush3.bf16.msra.mxu0 %v7143_v15 }
 0x749   : > { %6302 = vmatprep.subr.bf16.mxu0 %v7144_v47 }
 0x74c   : > { %6303 = vmatpush3.bf16.msra.mxu0 %v7145_v60 }
 0x74d   : > { %6304 = vmatprep.subr.bf16.mxu0 %v7146_v26 }
 0x750   : > { %6305 = vmatpush3.bf16.msra.mxu0 %v7147_v40 }
 0x751   : > { %6306 = vmatprep.subr.bf16.mxu0 %v7148_v13 }
 0x754   : > { %6307 = vmatpush3.bf16.msra.mxu0 %v7149_v11 }
 0x772   : > { %v5048_v22 = vpop.f32.mrb[128].mxu0 }
 0x773   : > { %v5050_v37 = vpop.f32.mrb[129].mxu0  ;;  %v5061_v30 = vpack.c.bf16 %v5048_v22, %v5048_v22 }
 0x774   : > { %v5062_v35 = vpack.c.bf16 %v5050_v37, %v5050_v37  ;;  %v5052_v39 = vpop.f32.mrb[130].mxu0 }
 0x775   : > { %v5053_v23 = vpop.f32.mrb[131].mxu0 }
 0x776   : > { %5734 = vmatprep.mubr.bf16.mxu0 %v5062_v35 }
 0x777   : > { %5735 = vmatmul.mubr.bf16.vlgmr.msra.gmra.mrb[144].mxu0 %v5061_v30 }
 0x792   : > { %v6242_v17 = vpop.f32.mrb[132].mxu0 }
 0x793   : > { %v6243_v44 = vpop.f32.mrb[133].mxu0 }
 0x794   : > { %v6244_v43 = vadd.f32 %v6243_v44, %v6242_v17  ;;  %v6245_v19 = vpop.f32.mrb[134].mxu0 }
 0x795   : > { %v6246_v38 = vpop.f32.mrb[135].mxu0 }
 0x796   : > { %v5617_v10 = vadd.f32 %v6244_v43, %v6159_v21 }
 0x7ca   : > { %v6264_v18 = vpop.f32.mrb[136].mxu0 }
 0x7cb   : > { %v6265_v29 = vpop.f32.mrb[137].mxu0 }
 0x7cc   : > { %v6266_v20 = vadd.f32 %v6265_v29, %v6264_v18  ;;  %v6267_v58 = vpop.f32.mrb[138].mxu0 }
 0x7cd   : > { %v6268_v6 = vpop.f32.mrb[139].mxu0 }
 0x7ce   : > { %v5657_v54 = vadd.f32 %v6266_v20, %v5617_v10 }
 0x80a   : > { %v6286_v41 = vpop.f32.mrb[140].mxu0 }
 0x80b   : > { %v6287_v27 = vpop.f32.mrb[141].mxu0 }
 0x80c   : > { %v6288_v1 = vadd.f32 %v6287_v27, %v6286_v41  ;;  %v6289_v12 = vpop.f32.mrb[142].mxu0 }
 0x80d   : > { %v6290_v34 = vpop.f32.mrb[143].mxu0 }
 0x80e   : > { %v5697_v52 = vadd.f32 %v6288_v1, %v5657_v54 }
 0x84a   : > { %v6308_v31 = vpop.f32.mrb[144].mxu0 }
 0x84b   : > { %v6309_v2 = vpop.f32.mrb[145].mxu0 }
 0x84c   : > { %v6310_v3 = vadd.f32 %v6309_v2, %v6308_v31  ;;  %v6311_v51 = vpop.f32.mrb[146].mxu0 }
 0x84d   : > { %v6312_v63 = vpop.f32.mrb[147].mxu0 }
 0x84e   : > { %v5737_v8 = vadd.f32 %v6310_v3, %v5697_v52 }
 0x850   : > { %5743 = vst.msk [vmem:[%s362_s18] sm:$0xff] %vm5742_vm6, %v5737_v8 }
 0x851 PF: > { %s21_s30 = sadd.s32 1, %s7252_s30  }
 0x852   : > { %p18_p10 = scmp.ge.s32.totalorder %s21_s30, 4  }
 0x854   :  { %20 = sbr.rel (!%p18_p10) target bundleno = 2 (0x2), region = 102 }
 0x85b   :  { %5763 = vsyncpa [#allocation3], 1 }
 0x85c   :  { %5765 = vsyncpa [#allocation3 + $0x1], 1 }
 0x85d   :  { %5766 = vsyncpa [#allocation5], 1 }

</bundles_post_ra>
